<compile_context>
chip_gen: v7x
topology: tpu7x:2x2x1
jax: 0.10.0
libtpu: 0.0.40
codegen_flags: <defaults>
</compile_context>

<pallas_src>
import jax
import jax.numpy as jnp
from jax.experimental import pallas as pl
from jax.experimental.pallas import tpu as pltpu

K = 9
PAD = K // 2
C1, C2 = 64, 32          # channel counts fixed by the module
BB = 128                 # batch block = lane width (use 256 on v6e/v7x for big B)


def fcn_kernel(x_ref, w1_ref, b1_ref, w2_ref, b2_ref, w3_ref, b3_ref,
               wm_ref, bm_ref, out_ref):
    NC, T = wm_ref.shape                 # (num_classes, time_length)
    N = x_ref.shape[1]                   # folded width = T * BB
    bb = N // T
    c1, kk = w1_ref.shape
    pad = kk // 2

    def shifted(h, k):
        """'same'-padded activation at time offset k, in folded (C, T*bb) layout.

        Column group t (bb lanes wide) of the result holds the activation at
        original time t + k - pad, or zeros when that index is out of range.
        All slice boundaries are multiples of bb (=128 lanes) -> lane aligned.
        """
        d = k - pad
        if d == 0:
            return h
        z = jnp.zeros((h.shape[0], abs(d) * bb), h.dtype)
        if d < 0:
            return jnp.concatenate([z, h[:, :(T + d) * bb]], axis=1)
        return jnp.concatenate([h[:, d * bb:], z], axis=1)

    x = x_ref[...]                                        # (1, N)

    # ---- conv1 (C_in = 1): 9 VPU broadcast FMAs, no MXU push ----
    w1 = w1_ref[...]                                      # (C1, K)
    h1 = jnp.zeros((c1, N), jnp.float32)
    for k in range(kk):
        h1 = h1 + w1[:, k:k + 1] * shifted(x, k)          # (C1,1)*(1,N)
    h1 = jnp.maximum(h1 + b1_ref[...], 0.0)               # (C1, N)

    # ---- conv2: fused im2col matmul, contraction depth C1*K = 576 ----
    im2 = jnp.concatenate([shifted(h1, k) for k in range(kk)], axis=0)  # (C1*K, N)
    h2 = jnp.dot(w2_ref[...], im2, preferred_element_type=jnp.float32)  # (C2, N)
    h2 = jnp.maximum(h2 + b2_ref[...], 0.0)

    # ---- conv3: fused im2col matmul, contraction depth C2*K = 288 ----
    im3 = jnp.concatenate([shifted(h2, k) for k in range(kk)], axis=0)  # (C2*K, N)
    h3 = jnp.dot(w3_ref[...], im3, preferred_element_type=jnp.float32)  # (1, N)
    h3 = jnp.maximum(h3 + b3_ref[...], 0.0)

    # ---- mlp: logits[n, b] = sum_t wm[n, t] * h3[t*bb + b]  (batch on lanes) ----
    wm = wm_ref[...]                                      # (NC, T)
    acc = jnp.zeros((NC, bb), jnp.float32)
    for t in range(T):                                    # lane-aligned slices
        acc = acc + wm[:, t:t + 1] * h3[:, t * bb:(t + 1) * bb]
    logits = acc + bm_ref[...]                            # (NC, bb)

    # ---- log_softmax over the class (sublane) axis ----
    m = jnp.max(logits, axis=0, keepdims=True)
    lse = m + jnp.log(jnp.sum(jnp.exp(logits - m), axis=0, keepdims=True))
    out_ref[...] = (logits - lse).astype(out_ref.dtype)   # lane-dense (NC, bb) store


def fcn_forward(x, w1c, b1, w2c, b2, w3c, b3, wm, bm):
    """x: (B, 1, T) float32, torch-layout params -> (B, num_classes) log-probs."""
    B, c_in, T = x.shape
    assert c_in == 1
    c1, _, kk = w1c.shape
    c2 = w2c.shape[0]
    NC = wm.shape[0]

    G = pl.cdiv(B, BB)
    B_pad = G * BB

    # fold batch onto the lane axis: xin[g, t*BB + j] = x[g*BB + j, 0, t]
    x2 = jnp.pad(x[:, 0, :], ((0, B_pad - B), (0, 0)))            # (B_pad, T)
    xin = x2.T.reshape(T, G, BB).transpose(1, 0, 2).reshape(G, T * BB)

    # weight plumbing (done once, outside the kernel)
    w1 = w1c[:, 0, :]                                             # (C1, K)
    w2f = jnp.transpose(w2c, (0, 2, 1)).reshape(c2, kk * c1)      # [o, k*C1 + c]
    w3f = jnp.transpose(w3c, (0, 2, 1)).reshape(1, kk * c2)       # [0, k*C2 + c]
    b1c = b1.reshape(c1, 1)
    b2c = b2.reshape(c2, 1)
    b3c = b3.reshape(1, 1)
    bmc = bm.reshape(NC, 1)

    out_t = pl.pallas_call(
        fcn_kernel,
        out_shape=jax.ShapeDtypeStruct((NC, B_pad), jnp.float32),
        grid_spec=pltpu.PrefetchScalarGridSpec(
            num_scalar_prefetch=0,
            grid=(G,),
            in_specs=[
                pl.BlockSpec((1, T * BB), lambda g: (g, 0)),
                pl.BlockSpec((c1, kk), lambda g: (0, 0)),
                pl.BlockSpec((c1, 1), lambda g: (0, 0)),
                pl.BlockSpec((c2, kk * c1), lambda g: (0, 0)),
                pl.BlockSpec((c2, 1), lambda g: (0, 0)),
                pl.BlockSpec((1, kk * c2), lambda g: (0, 0)),
                pl.BlockSpec((1, 1), lambda g: (0, 0)),
                pl.BlockSpec((NC, T), lambda g: (0, 0)),
                pl.BlockSpec((NC, 1), lambda g: (0, 0)),
            ],
            out_specs=pl.BlockSpec((NC, BB), lambda g: (0, g)),
        ),
        compiler_params=pltpu.CompilerParams(
            dimension_semantics=("parallel",),       # batch blocks are independent
            vmem_limit_bytes=32 * 1024 * 1024),      # ~8 MiB of temporaries used
    )(xin, w1, b1c, w2f, b2c, w3f, b3c, wm, bmc)

    return out_t.T[:B]                                            # (B, NC)


def ref_forward(x, w1c, b1, w2c, b2, w3c, b3, wm, bm):
    """Pure-JAX reference with identical semantics (torch layouts)."""
    dn = ('NCH', 'OIH', 'NCH')
    prec = jax.lax.Precision.HIGHEST
    h = jax.lax.conv_general_dilated(x, w1c, (1,), [(PAD, PAD)],
                                     dimension_numbers=dn, precision=prec)
    h = jax.nn.relu(h + b1[None, :, None])
    h = jax.lax.conv_general_dilated(h, w2c, (1,), [(PAD, PAD)],
                                     dimension_numbers=dn, precision=prec)
    h = jax.nn.relu(h + b2[None, :, None])
    h = jax.lax.conv_general_dilated(h, w3c, (1,), [(PAD, PAD)],
                                     dimension_numbers=dn, precision=prec)
    h = jax.nn.relu(h + b3[None, :, None])
    logits = jnp.dot(h[:, 0, :], wm.T, precision=prec) + bm[None, :]
    return jax.nn.log_softmax(logits, axis=1)


if __name__ == "__main__":
    B, T, num_classes = 2, 16, 8

    key = jax.random.PRNGKey(0)
    ks = jax.random.split(key, 9)

    def u(k, shape, fan_in):
        bound = 1.0 / (fan_in ** 0.5)
        return jax.random.uniform(k, shape, jnp.float32, -bound, bound)

    # deterministic synthetic parameters (PyTorch layouts + uniform bounds)
    w1c = u(ks[0], (C1, 1, K), 1 * K)        # Conv1d(1, 64, 9) weight
    b1 = u(ks[1], (C1,), 1 * K)
    w2c = u(ks[2], (C2, C1, K), C1 * K)      # Conv1d(64, 32, 9) weight
    b2 = u(ks[3], (C2,), C1 * K)
    w3c = u(ks[4], (1, C2, K), C2 * K)       # Conv1d(32, 1, 9) weight
    b3 = u(ks[5], (1,), C2 * K)
    wm = u(ks[6], (num_classes, T), T)       # Linear(T, num_classes)
    bm = u(ks[7], (num_classes,), T)

    x = jax.random.normal(ks[8], (B, 1, T), jnp.float32)
    params = (w1c, b1, w2c, b2, w3c, b3, wm, bm)

    out = jax.block_until_ready(jax.jit(fcn_forward)(x, *params))
    ref = ref_forward(x, *params)

    assert out.shape == (B, num_classes)
    if not jnp.allclose(out, ref, rtol=1e-3, atol=1e-3):
        err = float(jnp.max(jnp.abs(out - ref)))
        raise AssertionError(f"Pallas kernel output mismatch vs reference (max abs err {err})")
    print("KERNEL_OK")
</pallas_src>

<mosaic_0001>
module attributes {stable_mosaic.version = 11 : i64} {
  func.func @fcn_kernel(%arg0: i32, %arg1: memref<1x2048xf32, #tpu.memory_space<vmem>>, %arg2: memref<64x9xf32, #tpu.memory_space<vmem>>, %arg3: memref<64x1xf32, #tpu.memory_space<vmem>>, %arg4: memref<32x576xf32, #tpu.memory_space<vmem>>, %arg5: memref<32x1xf32, #tpu.memory_space<vmem>>, %arg6: memref<1x288xf32, #tpu.memory_space<vmem>>, %arg7: memref<1x1xf32, #tpu.memory_space<vmem>>, %arg8: memref<8x16xf32, #tpu.memory_space<vmem>>, %arg9: memref<8x1xf32, #tpu.memory_space<vmem>>, %arg10: memref<8x128xf32, #tpu.memory_space<vmem>>) attributes {dimension_semantics = [#tpu.dimension_semantics<parallel>], iteration_bounds = array<i64: 1>, scalar_prefetch = 0 : i64, scratch_operands = 0 : i64, tpu.core_type = #tpu.core_type<tc>, window_params = [{transform_indices = @transform_0, window_bounds = array<i64: 1, 2048>}, {pipeline_mode = #tpu.pipeline_mode<synchronous>, transform_indices = @transform_1, window_bounds = array<i64: 64, 9>}, {pipeline_mode = #tpu.pipeline_mode<synchronous>, transform_indices = @transform_2, window_bounds = array<i64: 64, 1>}, {pipeline_mode = #tpu.pipeline_mode<synchronous>, transform_indices = @transform_3, window_bounds = array<i64: 32, 576>}, {pipeline_mode = #tpu.pipeline_mode<synchronous>, transform_indices = @transform_4, window_bounds = array<i64: 32, 1>}, {pipeline_mode = #tpu.pipeline_mode<synchronous>, transform_indices = @transform_5, window_bounds = array<i64: 1, 288>}, {pipeline_mode = #tpu.pipeline_mode<synchronous>, transform_indices = @transform_6, window_bounds = array<i64: 1, 1>}, {pipeline_mode = #tpu.pipeline_mode<synchronous>, transform_indices = @transform_7, window_bounds = array<i64: 8, 16>}, {pipeline_mode = #tpu.pipeline_mode<synchronous>, transform_indices = @transform_8, window_bounds = array<i64: 8, 1>}, {transform_indices = @transform_9, window_bounds = array<i64: 8, 128>}]} {
    %c0 = arith.constant 0 : index
    %c0_0 = arith.constant 0 : index
    %0 = vector.load %arg1[%c0, %c0_0] : memref<1x2048xf32, #tpu.memory_space<vmem>>, vector<1x2048xf32>
    %c0_1 = arith.constant 0 : index
    %c0_2 = arith.constant 0 : index
    %1 = vector.load %arg2[%c0_1, %c0_2] : memref<64x9xf32, #tpu.memory_space<vmem>>, vector<64x9xf32>
    %cst = arith.constant 0.000000e+00 : f32
    %2 = vector.broadcast %cst : f32 to vector<64x2048xf32>
    %3 = vector.extract_strided_slice %1 {offsets = [0, 0], sizes = [64, 1], strides = [1, 1]} : vector<64x9xf32> to vector<64x1xf32>
    %cst_3 = arith.constant 0.000000e+00 : f32
    %4 = vector.broadcast %cst_3 : f32 to vector<1x512xf32>
    %5 = vector.extract_strided_slice %0 {offsets = [0, 0], sizes = [1, 1536], strides = [1, 1]} : vector<1x2048xf32> to vector<1x1536xf32>
    %6 = tpu.concatenate %4, %5 in 1 : vector<1x512xf32>, vector<1x1536xf32> -> vector<1x2048xf32>
    %7 = vector.broadcast %3 : vector<64x1xf32> to vector<64x2048xf32>
    %8 = vector.broadcast %6 : vector<1x2048xf32> to vector<64x2048xf32>
    %9 = arith.mulf %7, %8 : vector<64x2048xf32>
    %10 = arith.addf %2, %9 : vector<64x2048xf32>
    %11 = vector.extract_strided_slice %1 {offsets = [0, 1], sizes = [64, 1], strides = [1, 1]} : vector<64x9xf32> to vector<64x1xf32>
    %cst_4 = arith.constant 0.000000e+00 : f32
    %12 = vector.broadcast %cst_4 : f32 to vector<1x384xf32>
    %13 = vector.extract_strided_slice %0 {offsets = [0, 0], sizes = [1, 1664], strides = [1, 1]} : vector<1x2048xf32> to vector<1x1664xf32>
    %14 = tpu.concatenate %12, %13 in 1 : vector<1x384xf32>, vector<1x1664xf32> -> vector<1x2048xf32>
    %15 = vector.broadcast %11 : vector<64x1xf32> to vector<64x2048xf32>
    %16 = vector.broadcast %14 : vector<1x2048xf32> to vector<64x2048xf32>
    %17 = arith.mulf %15, %16 : vector<64x2048xf32>
    %18 = arith.addf %10, %17 : vector<64x2048xf32>
    %19 = vector.extract_strided_slice %1 {offsets = [0, 2], sizes = [64, 1], strides = [1, 1]} : vector<64x9xf32> to vector<64x1xf32>
    %cst_5 = arith.constant 0.000000e+00 : f32
    %20 = vector.broadcast %cst_5 : f32 to vector<1x256xf32>
    %21 = vector.extract_strided_slice %0 {offsets = [0, 0], sizes = [1, 1792], strides = [1, 1]} : vector<1x2048xf32> to vector<1x1792xf32>
    %22 = tpu.concatenate %20, %21 in 1 : vector<1x256xf32>, vector<1x1792xf32> -> vector<1x2048xf32>
    %23 = vector.broadcast %19 : vector<64x1xf32> to vector<64x2048xf32>
    %24 = vector.broadcast %22 : vector<1x2048xf32> to vector<64x2048xf32>
    %25 = arith.mulf %23, %24 : vector<64x2048xf32>
    %26 = arith.addf %18, %25 : vector<64x2048xf32>
    %27 = vector.extract_strided_slice %1 {offsets = [0, 3], sizes = [64, 1], strides = [1, 1]} : vector<64x9xf32> to vector<64x1xf32>
    %cst_6 = arith.constant 0.000000e+00 : f32
    %28 = vector.broadcast %cst_6 : f32 to vector<1x128xf32>
    %29 = vector.extract_strided_slice %0 {offsets = [0, 0], sizes = [1, 1920], strides = [1, 1]} : vector<1x2048xf32> to vector<1x1920xf32>
    %30 = tpu.concatenate %28, %29 in 1 : vector<1x128xf32>, vector<1x1920xf32> -> vector<1x2048xf32>
    %31 = vector.broadcast %27 : vector<64x1xf32> to vector<64x2048xf32>
    %32 = vector.broadcast %30 : vector<1x2048xf32> to vector<64x2048xf32>
    %33 = arith.mulf %31, %32 : vector<64x2048xf32>
    %34 = arith.addf %26, %33 : vector<64x2048xf32>
    %35 = vector.extract_strided_slice %1 {offsets = [0, 4], sizes = [64, 1], strides = [1, 1]} : vector<64x9xf32> to vector<64x1xf32>
    %36 = vector.broadcast %35 : vector<64x1xf32> to vector<64x2048xf32>
    %37 = vector.broadcast %0 : vector<1x2048xf32> to vector<64x2048xf32>
    %38 = arith.mulf %36, %37 : vector<64x2048xf32>
    %39 = arith.addf %34, %38 : vector<64x2048xf32>
    %40 = vector.extract_strided_slice %1 {offsets = [0, 5], sizes = [64, 1], strides = [1, 1]} : vector<64x9xf32> to vector<64x1xf32>
    %cst_7 = arith.constant 0.000000e+00 : f32
    %41 = vector.broadcast %cst_7 : f32 to vector<1x128xf32>
    %42 = vector.extract_strided_slice %0 {offsets = [0, 128], sizes = [1, 1920], strides = [1, 1]} : vector<1x2048xf32> to vector<1x1920xf32>
    %43 = tpu.concatenate %42, %41 in 1 : vector<1x1920xf32>, vector<1x128xf32> -> vector<1x2048xf32>
    %44 = vector.broadcast %40 : vector<64x1xf32> to vector<64x2048xf32>
    %45 = vector.broadcast %43 : vector<1x2048xf32> to vector<64x2048xf32>
    %46 = arith.mulf %44, %45 : vector<64x2048xf32>
    %47 = arith.addf %39, %46 : vector<64x2048xf32>
    %48 = vector.extract_strided_slice %1 {offsets = [0, 6], sizes = [64, 1], strides = [1, 1]} : vector<64x9xf32> to vector<64x1xf32>
    %cst_8 = arith.constant 0.000000e+00 : f32
    %49 = vector.broadcast %cst_8 : f32 to vector<1x256xf32>
    %50 = vector.extract_strided_slice %0 {offsets = [0, 256], sizes = [1, 1792], strides = [1, 1]} : vector<1x2048xf32> to vector<1x1792xf32>
    %51 = tpu.concatenate %50, %49 in 1 : vector<1x1792xf32>, vector<1x256xf32> -> vector<1x2048xf32>
    %52 = vector.broadcast %48 : vector<64x1xf32> to vector<64x2048xf32>
    %53 = vector.broadcast %51 : vector<1x2048xf32> to vector<64x2048xf32>
    %54 = arith.mulf %52, %53 : vector<64x2048xf32>
    %55 = arith.addf %47, %54 : vector<64x2048xf32>
    %56 = vector.extract_strided_slice %1 {offsets = [0, 7], sizes = [64, 1], strides = [1, 1]} : vector<64x9xf32> to vector<64x1xf32>
    %cst_9 = arith.constant 0.000000e+00 : f32
    %57 = vector.broadcast %cst_9 : f32 to vector<1x384xf32>
    %58 = vector.extract_strided_slice %0 {offsets = [0, 384], sizes = [1, 1664], strides = [1, 1]} : vector<1x2048xf32> to vector<1x1664xf32>
    %59 = tpu.concatenate %58, %57 in 1 : vector<1x1664xf32>, vector<1x384xf32> -> vector<1x2048xf32>
    %60 = vector.broadcast %56 : vector<64x1xf32> to vector<64x2048xf32>
    %61 = vector.broadcast %59 : vector<1x2048xf32> to vector<64x2048xf32>
    %62 = arith.mulf %60, %61 : vector<64x2048xf32>
    %63 = arith.addf %55, %62 : vector<64x2048xf32>
    %64 = vector.extract_strided_slice %1 {offsets = [0, 8], sizes = [64, 1], strides = [1, 1]} : vector<64x9xf32> to vector<64x1xf32>
    %cst_10 = arith.constant 0.000000e+00 : f32
    %65 = vector.broadcast %cst_10 : f32 to vector<1x512xf32>
    %66 = vector.extract_strided_slice %0 {offsets = [0, 512], sizes = [1, 1536], strides = [1, 1]} : vector<1x2048xf32> to vector<1x1536xf32>
    %67 = tpu.concatenate %66, %65 in 1 : vector<1x1536xf32>, vector<1x512xf32> -> vector<1x2048xf32>
    %68 = vector.broadcast %64 : vector<64x1xf32> to vector<64x2048xf32>
    %69 = vector.broadcast %67 : vector<1x2048xf32> to vector<64x2048xf32>
    %70 = arith.mulf %68, %69 : vector<64x2048xf32>
    %71 = arith.addf %63, %70 : vector<64x2048xf32>
    %c0_11 = arith.constant 0 : index
    %c0_12 = arith.constant 0 : index
    %72 = vector.load %arg3[%c0_11, %c0_12] : memref<64x1xf32, #tpu.memory_space<vmem>>, vector<64x1xf32>
    %73 = vector.broadcast %72 : vector<64x1xf32> to vector<64x2048xf32>
    %74 = arith.addf %71, %73 : vector<64x2048xf32>
    %cst_13 = arith.constant 0.000000e+00 : f32
    %75 = vector.broadcast %cst_13 : f32 to vector<64x2048xf32>
    %76 = arith.maximumf %74, %75 : vector<64x2048xf32>
    %cst_14 = arith.constant 0.000000e+00 : f32
    %77 = vector.broadcast %cst_14 : f32 to vector<64x512xf32>
    %78 = vector.extract_strided_slice %76 {offsets = [0, 0], sizes = [64, 1536], strides = [1, 1]} : vector<64x2048xf32> to vector<64x1536xf32>
    %79 = tpu.concatenate %77, %78 in 1 : vector<64x512xf32>, vector<64x1536xf32> -> vector<64x2048xf32>
    %cst_15 = arith.constant 0.000000e+00 : f32
    %80 = vector.broadcast %cst_15 : f32 to vector<64x384xf32>
    %81 = vector.extract_strided_slice %76 {offsets = [0, 0], sizes = [64, 1664], strides = [1, 1]} : vector<64x2048xf32> to vector<64x1664xf32>
    %82 = tpu.concatenate %80, %81 in 1 : vector<64x384xf32>, vector<64x1664xf32> -> vector<64x2048xf32>
    %cst_16 = arith.constant 0.000000e+00 : f32
    %83 = vector.broadcast %cst_16 : f32 to vector<64x256xf32>
    %84 = vector.extract_strided_slice %76 {offsets = [0, 0], sizes = [64, 1792], strides = [1, 1]} : vector<64x2048xf32> to vector<64x1792xf32>
    %85 = tpu.concatenate %83, %84 in 1 : vector<64x256xf32>, vector<64x1792xf32> -> vector<64x2048xf32>
    %cst_17 = arith.constant 0.000000e+00 : f32
    %86 = vector.broadcast %cst_17 : f32 to vector<64x128xf32>
    %87 = vector.extract_strided_slice %76 {offsets = [0, 0], sizes = [64, 1920], strides = [1, 1]} : vector<64x2048xf32> to vector<64x1920xf32>
    %88 = tpu.concatenate %86, %87 in 1 : vector<64x128xf32>, vector<64x1920xf32> -> vector<64x2048xf32>
    %cst_18 = arith.constant 0.000000e+00 : f32
    %89 = vector.broadcast %cst_18 : f32 to vector<64x128xf32>
    %90 = vector.extract_strided_slice %76 {offsets = [0, 128], sizes = [64, 1920], strides = [1, 1]} : vector<64x2048xf32> to vector<64x1920xf32>
    %91 = tpu.concatenate %90, %89 in 1 : vector<64x1920xf32>, vector<64x128xf32> -> vector<64x2048xf32>
    %cst_19 = arith.constant 0.000000e+00 : f32
    %92 = vector.broadcast %cst_19 : f32 to vector<64x256xf32>
    %93 = vector.extract_strided_slice %76 {offsets = [0, 256], sizes = [64, 1792], strides = [1, 1]} : vector<64x2048xf32> to vector<64x1792xf32>
    %94 = tpu.concatenate %93, %92 in 1 : vector<64x1792xf32>, vector<64x256xf32> -> vector<64x2048xf32>
    %cst_20 = arith.constant 0.000000e+00 : f32
    %95 = vector.broadcast %cst_20 : f32 to vector<64x384xf32>
    %96 = vector.extract_strided_slice %76 {offsets = [0, 384], sizes = [64, 1664], strides = [1, 1]} : vector<64x2048xf32> to vector<64x1664xf32>
    %97 = tpu.concatenate %96, %95 in 1 : vector<64x1664xf32>, vector<64x384xf32> -> vector<64x2048xf32>
    %cst_21 = arith.constant 0.000000e+00 : f32
    %98 = vector.broadcast %cst_21 : f32 to vector<64x512xf32>
    %99 = vector.extract_strided_slice %76 {offsets = [0, 512], sizes = [64, 1536], strides = [1, 1]} : vector<64x2048xf32> to vector<64x1536xf32>
    %100 = tpu.concatenate %99, %98 in 1 : vector<64x1536xf32>, vector<64x512xf32> -> vector<64x2048xf32>
    %101 = tpu.concatenate %79, %82, %85, %88, %76, %91, %94, %97, %100 in 0 : vector<64x2048xf32>, vector<64x2048xf32>, vector<64x2048xf32>, vector<64x2048xf32>, vector<64x2048xf32>, vector<64x2048xf32>, vector<64x2048xf32>, vector<64x2048xf32>, vector<64x2048xf32> -> vector<576x2048xf32>
    %c0_22 = arith.constant 0 : index
    %c0_23 = arith.constant 0 : index
    %102 = vector.load %arg4[%c0_22, %c0_23] : memref<32x576xf32, #tpu.memory_space<vmem>>, vector<32x576xf32>
    %cst_24 = arith.constant dense<0.000000e+00> : vector<32x2048xf32>
    %103 = tpu.matmul %102, %101, %cst_24 {dimension_numbers = #tpu.dot_dimension_numbers<[1], [0], [0], [1], [0, 0, 1, 1], [], []>} : vector<32x576xf32>, vector<576x2048xf32>, vector<32x2048xf32> -> vector<32x2048xf32>
    %c0_25 = arith.constant 0 : index
    %c0_26 = arith.constant 0 : index
    %104 = vector.load %arg5[%c0_25, %c0_26] : memref<32x1xf32, #tpu.memory_space<vmem>>, vector<32x1xf32>
    %105 = vector.broadcast %104 : vector<32x1xf32> to vector<32x2048xf32>
    %106 = arith.addf %103, %105 : vector<32x2048xf32>
    %cst_27 = arith.constant 0.000000e+00 : f32
    %107 = vector.broadcast %cst_27 : f32 to vector<32x2048xf32>
    %108 = arith.maximumf %106, %107 : vector<32x2048xf32>
    %cst_28 = arith.constant 0.000000e+00 : f32
    %109 = vector.broadcast %cst_28 : f32 to vector<32x512xf32>
    %110 = vector.extract_strided_slice %108 {offsets = [0, 0], sizes = [32, 1536], strides = [1, 1]} : vector<32x2048xf32> to vector<32x1536xf32>
    %111 = tpu.concatenate %109, %110 in 1 : vector<32x512xf32>, vector<32x1536xf32> -> vector<32x2048xf32>
    %cst_29 = arith.constant 0.000000e+00 : f32
    %112 = vector.broadcast %cst_29 : f32 to vector<32x384xf32>
    %113 = vector.extract_strided_slice %108 {offsets = [0, 0], sizes = [32, 1664], strides = [1, 1]} : vector<32x2048xf32> to vector<32x1664xf32>
    %114 = tpu.concatenate %112, %113 in 1 : vector<32x384xf32>, vector<32x1664xf32> -> vector<32x2048xf32>
    %cst_30 = arith.constant 0.000000e+00 : f32
    %115 = vector.broadcast %cst_30 : f32 to vector<32x256xf32>
    %116 = vector.extract_strided_slice %108 {offsets = [0, 0], sizes = [32, 1792], strides = [1, 1]} : vector<32x2048xf32> to vector<32x1792xf32>
    %117 = tpu.concatenate %115, %116 in 1 : vector<32x256xf32>, vector<32x1792xf32> -> vector<32x2048xf32>
    %cst_31 = arith.constant 0.000000e+00 : f32
    %118 = vector.broadcast %cst_31 : f32 to vector<32x128xf32>
    %119 = vector.extract_strided_slice %108 {offsets = [0, 0], sizes = [32, 1920], strides = [1, 1]} : vector<32x2048xf32> to vector<32x1920xf32>
    %120 = tpu.concatenate %118, %119 in 1 : vector<32x128xf32>, vector<32x1920xf32> -> vector<32x2048xf32>
    %cst_32 = arith.constant 0.000000e+00 : f32
    %121 = vector.broadcast %cst_32 : f32 to vector<32x128xf32>
    %122 = vector.extract_strided_slice %108 {offsets = [0, 128], sizes = [32, 1920], strides = [1, 1]} : vector<32x2048xf32> to vector<32x1920xf32>
    %123 = tpu.concatenate %122, %121 in 1 : vector<32x1920xf32>, vector<32x128xf32> -> vector<32x2048xf32>
    %cst_33 = arith.constant 0.000000e+00 : f32
    %124 = vector.broadcast %cst_33 : f32 to vector<32x256xf32>
    %125 = vector.extract_strided_slice %108 {offsets = [0, 256], sizes = [32, 1792], strides = [1, 1]} : vector<32x2048xf32> to vector<32x1792xf32>
    %126 = tpu.concatenate %125, %124 in 1 : vector<32x1792xf32>, vector<32x256xf32> -> vector<32x2048xf32>
    %cst_34 = arith.constant 0.000000e+00 : f32
    %127 = vector.broadcast %cst_34 : f32 to vector<32x384xf32>
    %128 = vector.extract_strided_slice %108 {offsets = [0, 384], sizes = [32, 1664], strides = [1, 1]} : vector<32x2048xf32> to vector<32x1664xf32>
    %129 = tpu.concatenate %128, %127 in 1 : vector<32x1664xf32>, vector<32x384xf32> -> vector<32x2048xf32>
    %cst_35 = arith.constant 0.000000e+00 : f32
    %130 = vector.broadcast %cst_35 : f32 to vector<32x512xf32>
    %131 = vector.extract_strided_slice %108 {offsets = [0, 512], sizes = [32, 1536], strides = [1, 1]} : vector<32x2048xf32> to vector<32x1536xf32>
    %132 = tpu.concatenate %131, %130 in 1 : vector<32x1536xf32>, vector<32x512xf32> -> vector<32x2048xf32>
    %133 = tpu.concatenate %111, %114, %117, %120, %108, %123, %126, %129, %132 in 0 : vector<32x2048xf32>, vector<32x2048xf32>, vector<32x2048xf32>, vector<32x2048xf32>, vector<32x2048xf32>, vector<32x2048xf32>, vector<32x2048xf32>, vector<32x2048xf32>, vector<32x2048xf32> -> vector<288x2048xf32>
    %c0_36 = arith.constant 0 : index
    %c0_37 = arith.constant 0 : index
    %134 = vector.load %arg6[%c0_36, %c0_37] : memref<1x288xf32, #tpu.memory_space<vmem>>, vector<1x288xf32>
    %cst_38 = arith.constant dense<0.000000e+00> : vector<1x2048xf32>
    %135 = tpu.matmul %134, %133, %cst_38 {dimension_numbers = #tpu.dot_dimension_numbers<[1], [0], [0], [1], [0, 0, 1, 1], [], []>} : vector<1x288xf32>, vector<288x2048xf32>, vector<1x2048xf32> -> vector<1x2048xf32>
    %c0_39 = arith.constant 0 : index
    %c0_40 = arith.constant 0 : index
    %136 = vector.load %arg7[%c0_39, %c0_40] : memref<1x1xf32, #tpu.memory_space<vmem>>, vector<1x1xf32>
    %137 = vector.broadcast %136 : vector<1x1xf32> to vector<1x2048xf32>
    %138 = arith.addf %135, %137 : vector<1x2048xf32>
    %cst_41 = arith.constant 0.000000e+00 : f32
    %139 = vector.broadcast %cst_41 : f32 to vector<1x2048xf32>
    %140 = arith.maximumf %138, %139 : vector<1x2048xf32>
    %c0_42 = arith.constant 0 : index
    %c0_43 = arith.constant 0 : index
    %141 = vector.load %arg8[%c0_42, %c0_43] : memref<8x16xf32, #tpu.memory_space<vmem>>, vector<8x16xf32>
    %cst_44 = arith.constant 0.000000e+00 : f32
    %142 = vector.broadcast %cst_44 : f32 to vector<8x128xf32>
    %143 = vector.extract_strided_slice %141 {offsets = [0, 0], sizes = [8, 1], strides = [1, 1]} : vector<8x16xf32> to vector<8x1xf32>
    %144 = vector.extract_strided_slice %140 {offsets = [0, 0], sizes = [1, 128], strides = [1, 1]} : vector<1x2048xf32> to vector<1x128xf32>
    %145 = vector.broadcast %143 : vector<8x1xf32> to vector<8x128xf32>
    %146 = vector.broadcast %144 : vector<1x128xf32> to vector<8x128xf32>
    %147 = arith.mulf %145, %146 : vector<8x128xf32>
    %148 = arith.addf %142, %147 : vector<8x128xf32>
    %149 = vector.extract_strided_slice %141 {offsets = [0, 1], sizes = [8, 1], strides = [1, 1]} : vector<8x16xf32> to vector<8x1xf32>
    %150 = vector.extract_strided_slice %140 {offsets = [0, 128], sizes = [1, 128], strides = [1, 1]} : vector<1x2048xf32> to vector<1x128xf32>
    %151 = vector.broadcast %149 : vector<8x1xf32> to vector<8x128xf32>
    %152 = vector.broadcast %150 : vector<1x128xf32> to vector<8x128xf32>
    %153 = arith.mulf %151, %152 : vector<8x128xf32>
    %154 = arith.addf %148, %153 : vector<8x128xf32>
    %155 = vector.extract_strided_slice %141 {offsets = [0, 2], sizes = [8, 1], strides = [1, 1]} : vector<8x16xf32> to vector<8x1xf32>
    %156 = vector.extract_strided_slice %140 {offsets = [0, 256], sizes = [1, 128], strides = [1, 1]} : vector<1x2048xf32> to vector<1x128xf32>
    %157 = vector.broadcast %155 : vector<8x1xf32> to vector<8x128xf32>
    %158 = vector.broadcast %156 : vector<1x128xf32> to vector<8x128xf32>
    %159 = arith.mulf %157, %158 : vector<8x128xf32>
    %160 = arith.addf %154, %159 : vector<8x128xf32>
    %161 = vector.extract_strided_slice %141 {offsets = [0, 3], sizes = [8, 1], strides = [1, 1]} : vector<8x16xf32> to vector<8x1xf32>
    %162 = vector.extract_strided_slice %140 {offsets = [0, 384], sizes = [1, 128], strides = [1, 1]} : vector<1x2048xf32> to vector<1x128xf32>
    %163 = vector.broadcast %161 : vector<8x1xf32> to vector<8x128xf32>
    %164 = vector.broadcast %162 : vector<1x128xf32> to vector<8x128xf32>
    %165 = arith.mulf %163, %164 : vector<8x128xf32>
    %166 = arith.addf %160, %165 : vector<8x128xf32>
    %167 = vector.extract_strided_slice %141 {offsets = [0, 4], sizes = [8, 1], strides = [1, 1]} : vector<8x16xf32> to vector<8x1xf32>
    %168 = vector.extract_strided_slice %140 {offsets = [0, 512], sizes = [1, 128], strides = [1, 1]} : vector<1x2048xf32> to vector<1x128xf32>
    %169 = vector.broadcast %167 : vector<8x1xf32> to vector<8x128xf32>
    %170 = vector.broadcast %168 : vector<1x128xf32> to vector<8x128xf32>
    %171 = arith.mulf %169, %170 : vector<8x128xf32>
    %172 = arith.addf %166, %171 : vector<8x128xf32>
    %173 = vector.extract_strided_slice %141 {offsets = [0, 5], sizes = [8, 1], strides = [1, 1]} : vector<8x16xf32> to vector<8x1xf32>
    %174 = vector.extract_strided_slice %140 {offsets = [0, 640], sizes = [1, 128], strides = [1, 1]} : vector<1x2048xf32> to vector<1x128xf32>
    %175 = vector.broadcast %173 : vector<8x1xf32> to vector<8x128xf32>
    %176 = vector.broadcast %174 : vector<1x128xf32> to vector<8x128xf32>
    %177 = arith.mulf %175, %176 : vector<8x128xf32>
    %178 = arith.addf %172, %177 : vector<8x128xf32>
    %179 = vector.extract_strided_slice %141 {offsets = [0, 6], sizes = [8, 1], strides = [1, 1]} : vector<8x16xf32> to vector<8x1xf32>
    %180 = vector.extract_strided_slice %140 {offsets = [0, 768], sizes = [1, 128], strides = [1, 1]} : vector<1x2048xf32> to vector<1x128xf32>
    %181 = vector.broadcast %179 : vector<8x1xf32> to vector<8x128xf32>
    %182 = vector.broadcast %180 : vector<1x128xf32> to vector<8x128xf32>
    %183 = arith.mulf %181, %182 : vector<8x128xf32>
    %184 = arith.addf %178, %183 : vector<8x128xf32>
    %185 = vector.extract_strided_slice %141 {offsets = [0, 7], sizes = [8, 1], strides = [1, 1]} : vector<8x16xf32> to vector<8x1xf32>
    %186 = vector.extract_strided_slice %140 {offsets = [0, 896], sizes = [1, 128], strides = [1, 1]} : vector<1x2048xf32> to vector<1x128xf32>
    %187 = vector.broadcast %185 : vector<8x1xf32> to vector<8x128xf32>
    %188 = vector.broadcast %186 : vector<1x128xf32> to vector<8x128xf32>
    %189 = arith.mulf %187, %188 : vector<8x128xf32>
    %190 = arith.addf %184, %189 : vector<8x128xf32>
    %191 = vector.extract_strided_slice %141 {offsets = [0, 8], sizes = [8, 1], strides = [1, 1]} : vector<8x16xf32> to vector<8x1xf32>
    %192 = vector.extract_strided_slice %140 {offsets = [0, 1024], sizes = [1, 128], strides = [1, 1]} : vector<1x2048xf32> to vector<1x128xf32>
    %193 = vector.broadcast %191 : vector<8x1xf32> to vector<8x128xf32>
    %194 = vector.broadcast %192 : vector<1x128xf32> to vector<8x128xf32>
    %195 = arith.mulf %193, %194 : vector<8x128xf32>
    %196 = arith.addf %190, %195 : vector<8x128xf32>
    %197 = vector.extract_strided_slice %141 {offsets = [0, 9], sizes = [8, 1], strides = [1, 1]} : vector<8x16xf32> to vector<8x1xf32>
    %198 = vector.extract_strided_slice %140 {offsets = [0, 1152], sizes = [1, 128], strides = [1, 1]} : vector<1x2048xf32> to vector<1x128xf32>
    %199 = vector.broadcast %197 : vector<8x1xf32> to vector<8x128xf32>
    %200 = vector.broadcast %198 : vector<1x128xf32> to vector<8x128xf32>
    %201 = arith.mulf %199, %200 : vector<8x128xf32>
    %202 = arith.addf %196, %201 : vector<8x128xf32>
    %203 = vector.extract_strided_slice %141 {offsets = [0, 10], sizes = [8, 1], strides = [1, 1]} : vector<8x16xf32> to vector<8x1xf32>
    %204 = vector.extract_strided_slice %140 {offsets = [0, 1280], sizes = [1, 128], strides = [1, 1]} : vector<1x2048xf32> to vector<1x128xf32>
    %205 = vector.broadcast %203 : vector<8x1xf32> to vector<8x128xf32>
    %206 = vector.broadcast %204 : vector<1x128xf32> to vector<8x128xf32>
    %207 = arith.mulf %205, %206 : vector<8x128xf32>
    %208 = arith.addf %202, %207 : vector<8x128xf32>
    %209 = vector.extract_strided_slice %141 {offsets = [0, 11], sizes = [8, 1], strides = [1, 1]} : vector<8x16xf32> to vector<8x1xf32>
    %210 = vector.extract_strided_slice %140 {offsets = [0, 1408], sizes = [1, 128], strides = [1, 1]} : vector<1x2048xf32> to vector<1x128xf32>
    %211 = vector.broadcast %209 : vector<8x1xf32> to vector<8x128xf32>
    %212 = vector.broadcast %210 : vector<1x128xf32> to vector<8x128xf32>
    %213 = arith.mulf %211, %212 : vector<8x128xf32>
    %214 = arith.addf %208, %213 : vector<8x128xf32>
    %215 = vector.extract_strided_slice %141 {offsets = [0, 12], sizes = [8, 1], strides = [1, 1]} : vector<8x16xf32> to vector<8x1xf32>
    %216 = vector.extract_strided_slice %140 {offsets = [0, 1536], sizes = [1, 128], strides = [1, 1]} : vector<1x2048xf32> to vector<1x128xf32>
    %217 = vector.broadcast %215 : vector<8x1xf32> to vector<8x128xf32>
    %218 = vector.broadcast %216 : vector<1x128xf32> to vector<8x128xf32>
    %219 = arith.mulf %217, %218 : vector<8x128xf32>
    %220 = arith.addf %214, %219 : vector<8x128xf32>
    %221 = vector.extract_strided_slice %141 {offsets = [0, 13], sizes = [8, 1], strides = [1, 1]} : vector<8x16xf32> to vector<8x1xf32>
    %222 = vector.extract_strided_slice %140 {offsets = [0, 1664], sizes = [1, 128], strides = [1, 1]} : vector<1x2048xf32> to vector<1x128xf32>
    %223 = vector.broadcast %221 : vector<8x1xf32> to vector<8x128xf32>
    %224 = vector.broadcast %222 : vector<1x128xf32> to vector<8x128xf32>
    %225 = arith.mulf %223, %224 : vector<8x128xf32>
    %226 = arith.addf %220, %225 : vector<8x128xf32>
    %227 = vector.extract_strided_slice %141 {offsets = [0, 14], sizes = [8, 1], strides = [1, 1]} : vector<8x16xf32> to vector<8x1xf32>
    %228 = vector.extract_strided_slice %140 {offsets = [0, 1792], sizes = [1, 128], strides = [1, 1]} : vector<1x2048xf32> to vector<1x128xf32>
    %229 = vector.broadcast %227 : vector<8x1xf32> to vector<8x128xf32>
    %230 = vector.broadcast %228 : vector<1x128xf32> to vector<8x128xf32>
    %231 = arith.mulf %229, %230 : vector<8x128xf32>
    %232 = arith.addf %226, %231 : vector<8x128xf32>
    %233 = vector.extract_strided_slice %141 {offsets = [0, 15], sizes = [8, 1], strides = [1, 1]} : vector<8x16xf32> to vector<8x1xf32>
    %234 = vector.extract_strided_slice %140 {offsets = [0, 1920], sizes = [1, 128], strides = [1, 1]} : vector<1x2048xf32> to vector<1x128xf32>
    %235 = vector.broadcast %233 : vector<8x1xf32> to vector<8x128xf32>
    %236 = vector.broadcast %234 : vector<1x128xf32> to vector<8x128xf32>
    %237 = arith.mulf %235, %236 : vector<8x128xf32>
    %238 = arith.addf %232, %237 : vector<8x128xf32>
    %c0_45 = arith.constant 0 : index
    %c0_46 = arith.constant 0 : index
    %239 = vector.load %arg9[%c0_45, %c0_46] : memref<8x1xf32, #tpu.memory_space<vmem>>, vector<8x1xf32>
    %240 = vector.broadcast %239 : vector<8x1xf32> to vector<8x128xf32>
    %241 = arith.addf %238, %240 : vector<8x128xf32>
    %cst_47 = arith.constant dense<0xFF800000> : vector<128xf32>
    %242 = vector.multi_reduction <maximumf>, %241, %cst_47 [0] : vector<8x128xf32> to vector<128xf32>
    %243 = vector.shape_cast %242 : vector<128xf32> to vector<1x128xf32>
    %244 = vector.broadcast %243 : vector<1x128xf32> to vector<8x128xf32>
    %245 = arith.subf %241, %244 : vector<8x128xf32>
    %246 = math.exp %245 : vector<8x128xf32>
    %cst_48 = arith.constant dense<0.000000e+00> : vector<128xf32>
    %247 = vector.multi_reduction <add>, %246, %cst_48 [0] : vector<8x128xf32> to vector<128xf32>
    %248 = vector.shape_cast %247 : vector<128xf32> to vector<1x128xf32>
    %249 = math.log %248 : vector<1x128xf32>
    %250 = arith.addf %243, %249 : vector<1x128xf32>
    %251 = vector.broadcast %250 : vector<1x128xf32> to vector<8x128xf32>
    %252 = arith.subf %241, %251 : vector<8x128xf32>
    %c0_49 = arith.constant 0 : index
    %c0_50 = arith.constant 0 : index
    %253 = vector.load %arg10[%c0_49, %c0_50] : memref<8x128xf32, #tpu.memory_space<vmem>>, vector<8x128xf32>
    tpu.vector_store %arg10[%c0_49, %c0_50], %252 {strides = array<i32>} : memref<8x128xf32, #tpu.memory_space<vmem>>, vector<8x128xf32>,
    return
  }
  func.func @transform_0(%arg0: i32) -> (i32, i32) {
    %c0_i32 = arith.constant 0 : i32
    %c0_i32_0 = arith.constant 0 : i32
    return %arg0, %c0_i32 : i32, i32
  }
  func.func @transform_1(%arg0: i32) -> (i32, i32) {
    %c0_i32 = arith.constant 0 : i32
    %c0_i32_0 = arith.constant 0 : i32
    %c0_i32_1 = arith.constant 0 : i32
    return %c0_i32, %c0_i32_0 : i32, i32
  }
  func.func @transform_2(%arg0: i32) -> (i32, i32) {
    %c0_i32 = arith.constant 0 : i32
    %c0_i32_0 = arith.constant 0 : i32
    %c0_i32_1 = arith.constant 0 : i32
    return %c0_i32, %c0_i32_0 : i32, i32
  }
  func.func @transform_3(%arg0: i32) -> (i32, i32) {
    %c0_i32 = arith.constant 0 : i32
    %c0_i32_0 = arith.constant 0 : i32
    %c0_i32_1 = arith.constant 0 : i32
    return %c0_i32, %c0_i32_0 : i32, i32
  }
  func.func @transform_4(%arg0: i32) -> (i32, i32) {
    %c0_i32 = arith.constant 0 : i32
    %c0_i32_0 = arith.constant 0 : i32
    %c0_i32_1 = arith.constant 0 : i32
    return %c0_i32, %c0_i32_0 : i32, i32
  }
  func.func @transform_5(%arg0: i32) -> (i32, i32) {
    %c0_i32 = arith.constant 0 : i32
    %c0_i32_0 = arith.constant 0 : i32
    %c0_i32_1 = arith.constant 0 : i32
    return %c0_i32, %c0_i32_0 : i32, i32
  }
  func.func @transform_6(%arg0: i32) -> (i32, i32) {
    %c0_i32 = arith.constant 0 : i32
    %c0_i32_0 = arith.constant 0 : i32
    %c0_i32_1 = arith.constant 0 : i32
    return %c0_i32, %c0_i32_0 : i32, i32
  }
  func.func @transform_7(%arg0: i32) -> (i32, i32) {
    %c0_i32 = arith.constant 0 : i32
    %c0_i32_0 = arith.constant 0 : i32
    %c0_i32_1 = arith.constant 0 : i32
    return %c0_i32, %c0_i32_0 : i32, i32
  }
  func.func @transform_8(%arg0: i32) -> (i32, i32) {
    %c0_i32 = arith.constant 0 : i32
    %c0_i32_0 = arith.constant 0 : i32
    %c0_i32_1 = arith.constant 0 : i32
    return %c0_i32, %c0_i32_0 : i32, i32
  }
  func.func @transform_9(%arg0: i32) -> (i32, i32) {
    %c0_i32 = arith.constant 0 : i32
    %c0_i32_0 = arith.constant 0 : i32
    return %c0_i32, %arg0 : i32, i32
  }
}

</mosaic_0001>

<bundles_post_ra>
// kernel: fcn_forward.1
= control target key start
LH: loop header
LB: loop body
LE: loop exit
PB: predicated region body
PF: predicated region fallthrough
CT: control target
= control target key end

     0   :  { %v14496_v0 = vmov 1   ;;  %v46_v3 = vlaneseq  ;;  %v14497_v7 = vmov 0   ;;  %v8569_v16 = vmov 2   ;;  %s14486_s1 = inlined_call_operand.vmem [shape: f32[64,9], index: 1, kind: input, shape index: {}]   ;;  %s14487_s0 = inlined_call_operand.vmem [shape: f32[1,2048], index: 0, kind: input, shape index: {}]   ;;  %s14488_s2 = inlined_call_operand.vmem [shape: f32[64,1], index: 2, kind: input, shape index: {}]   ;;  %s14489_s4 = inlined_call_operand.vmem [shape: f32[32,1], index: 4, kind: input, shape index: {}]   ;;  %s14490_s6 = inlined_call_operand.<no memory space> [shape: f32[1,1], index: 6, kind: input, shape index: {}]   ;;  %s14491_s7 = inlined_call_operand.vmem [shape: f32[8,16], index: 7, kind: input, shape index: {}]   ;;  %s14492_s3 = inlined_call_operand.vmem [shape: f32[32,576], index: 3, kind: input, shape index: {}]   ;;  %s14493_s5 = inlined_call_operand.vmem [shape: f32[1,288], index: 5, kind: input, shape index: {}]   ;;  %s14494_s8 = inlined_call_operand.vmem [shape: f32[8,1], index: 8, kind: input, shape index: {}]   ;;  %s14495_s9 = inlined_call_operand.vmem [shape: f32[8,128], index: 9, kind: output, shape index: {}]  }
   0x1   :  { %8452 = vset.pattern.permute.xlu0 %v14496_v0  ;;  %8443 = vset.pattern.permute.xlu1 %v14496_v0  ;;  %v8641_v1 = vld [vmem:[%s14486_s1 + $0x28] sm:$0xff]  ;;  %v8646_v2 = vld [vmem:[%s14486_s1] sm:$0xff]  ;;  %v8689_v17 = vld [vmem:[%s14486_s1 + $0x18] sm:$0xff]  ;;  %v14509_v24 = vmov 5   ;;  %v14505_v25 = vmov 3   ;;  %v14501_v27 = vmov 4   ;;  %v14_v40 = vstv %s14490_s6 }
   0x2   :  { %15047 = vst [vmem:[#allocation3_spill] sm:$0xff] %v8641_v1  ;;  %431 = vperm.xlu0 %8452, %v8641_v1   ;;  %411 = vperm.xlu1 %8443, %v8646_v2   ;;  %v8653_v4 = vld [vmem:[%s14486_s1 + $0x8] sm:$0xff]  ;;  %v8655_v5 = vshrl.u32 %v46_v3, 7  ;;  %v8660_v6 = vld [vmem:[%s14487_s0] sm:$0xff]  ;;  %v8700_v20 = vld [vmem:[%s14486_s1 + $0x10] sm:$0xff]  ;;  %v14507_v31 = vmov 8  }
   0x3   :  { %v8681_v15 = vld [vmem:[%s14487_s0 + $0x8] sm:$0xff]  ;;  %v8708_v21 = vld [vmem:[%s14486_s1 + $0x20] sm:$0xff]  ;;  %v8720_v23 = vld [vmem:[%s14486_s1 + $0x38] sm:$0xff]  ;;  %v14499_v32 = vmov 6   ;;  %v14503_v33 = vmov 7   ;;  %vm2997_vm0 = vcmask 523264  }
   0x4   :  { %v68_v8 = vsub.s32 5, %v8655_v5  ;;  %v72_v9 = vsub.s32 6, %v8655_v5  ;;  %v76_v10 = vsub.s32 7, %v8655_v5  ;;  %v60_v11 = vsub.s32 3, %v8655_v5  ;;  %15053 = vst [vmem:[#allocation9_spill] sm:$0xff] %v8720_v23  ;;  %v8745_v28 = vld [vmem:[%s14486_s1 + $0x30] sm:$0xff] }
   0x5   :  { %v64_v18 = vsub.s32 4, %v8655_v5  ;;  %v2650_v34 = vld [vmem:[%s14488_s2 + $0x8] sm:$0xff]  ;;  %v2651_v35 = vld [vmem:[%s14488_s2 + $0x10] sm:$0xff]  ;;  %v2653_v36 = vld [vmem:[%s14488_s2 + $0x20] sm:$0xff]  ;;  %15 = vst [vmem:[#allocation2] sm:$0x1] %v14_v40 }
   0x6   :  { %8453 = vset.pattern.permute.xlu0 %v14497_v7  ;;  %415 = vperm.xlu1 %8443, %v8653_v4   ;;  %v8670_v12 = vrot.slane %v8660_v6, %v68_v8  ;;  %v8673_v13 = vrot.slane %v8660_v6, %v72_v9  ;;  %v8676_v14 = vrot.slane %v8660_v6, %v76_v10  ;;  %v2656_v37 = vld [vmem:[%s14488_s2 + $0x38] sm:$0xff]  ;;  %v2974_v38 = vld [vmem:[%s14489_s4 + $0x8] sm:$0xff]  ;;  %v8824_v41 = vsub.s32 1, %v8655_v5  ;;  %v8835_v44 = vld [vmem:[%s14491_s7] sm:$0xff] }
   0x7   :  { %108 = vperm.xlu0 %8453, %v8646_v2   ;;  %v8695_v19 = vrot.slane %v8681_v15, %v60_v11  ;;  %v8713_v22 = vrot.slane %v8681_v15, %v64_v18  ;;  %v8730_v26 = vrot.slane %v8681_v15, %v68_v8  ;;  %v8751_v29 = vrot.slane %v8681_v15, %v72_v9  ;;  %v2976_v39 = vld [vmem:[%s14489_s4 + $0x18] sm:$0xff] }
   0x8   :  { %15048 = vst [vmem:[#allocation4_spill] sm:$0xff] %v8670_v12  ;;  %15049 = vst [vmem:[#allocation5_spill] sm:$0xff] %v8673_v13  ;;  %v8762_v30 = vrot.slane %v8681_v15, %v76_v10  ;;  %v8827_v42 = vsub.s32 0, %v8655_v5  ;;  %v8830_v43 = vsub.s32 2, %v8655_v5  ;;  %v8845_v47 = vrot.slane %v8660_v6, %v8824_v41 }
   0x9   :  { %15050 = vst [vmem:[#allocation6_spill] sm:$0xff] %v8676_v14  ;;  %15051 = vst [vmem:[#allocation7_spill] sm:$0xff] %v8695_v19  ;;  %v8855_v49 = vrot.slane %v8660_v6, %v60_v11  ;;  %v8860_v50 = vrot.slane %v8660_v6, %v64_v18  ;;  %v8877_v55 = vrot.slane %v8681_v15, %v8824_v41  ;;  %vm5236_vm1 = vcmask 261120  }
   0xa   :  { %8444 = vset.pattern.permute.xlu1 %v8569_v16  ;;  %15052 = vst [vmem:[#allocation8_spill] sm:$0xff] %v8713_v22  ;;  %15054 = vst [vmem:[#allocation10_spill] sm:$0xff] %v8730_v26  ;;  %v8850_v48 = vrot.slane %v8660_v6, %v8830_v43  ;;  %v8864_v51 = vrot.slane %v8681_v15, %v8827_v42  ;;  %v8870_v53 = vrot.slane %v8660_v6, %v8827_v42  ;;  %vm8581_vm2 = vmmov 0  }
   0xb   :  { %113 = vperm.xlu0 %8453, %v8653_v4   ;;  %680 = vperm.xlu1 %8444, %v8653_v4   ;;  %15055 = vst [vmem:[#allocation11_spill] sm:$0xff] %v8751_v29  ;;  %15056 = vst [vmem:[#allocation12_spill] sm:$0xff] %v8762_v30  ;;  %v8881_v56 = vrot.slane %v8681_v15, %v8830_v43  ;;  %v8885_v57 = vrot.slane %v8845_v47, %v8827_v42 }
   0xc   :  { %15057 = vst [vmem:[#allocation13_spill] sm:$0xff] %v8824_v41  ;;  %15058 = vst [vmem:[#allocation14_spill] sm:$0xff] %v8827_v42  ;;  %v8890_v58 = vrot.slane %v8850_v48, %v8827_v42  ;;  %v8894_v59 = vrot.slane %v8855_v49, %v8827_v42  ;;  %v8898_v60 = vrot.slane %v8860_v50, %v8827_v42  ;;  %v15089_v41 = vmov 8  }
   0xd   :  { %15059 = vst [vmem:[#allocation15_spill] sm:$0xff] %v8830_v43  ;;  %15062 = vst [vmem:[#allocation18_spill] sm:$0xff] %v8845_v47  ;;  %v8902_v61 = vrot.slane %v8864_v51, %v8827_v42  ;;  %v8907_v62 = vrot.slane %v8670_v12, %v8827_v42  ;;  %v8911_v63 = vrot.slane %v8673_v13, %v8827_v42 }
   0xe   :  { %15063 = vst [vmem:[#allocation19_spill] sm:$0xff] %v8850_v48  ;;  %15064 = vst [vmem:[#allocation20_spill] sm:$0xff] %v8855_v49  ;;  %v8919_v3 = vrot.slane %v8870_v53, %v8827_v42  ;;  %v8928_v8 = vrot.slane %v8877_v55, %v8827_v42  ;;  %v8932_v9 = vrot.slane %v8881_v56, %v8827_v42 }
   0xf   :  { %123 = vperm.xlu0 %8453, %v8689_v17   ;;  %8445 = vset.pattern.permute.xlu1 %v14497_v7  ;;  %15065 = vst [vmem:[#allocation21_spill] sm:$0xff] %v8860_v50  ;;  %15066 = vst [vmem:[#allocation22_spill] sm:$0xff] %v8864_v51  ;;  %v8936_v10 = vrot.slane %v8695_v19, %v8827_v42  ;;  %v8940_v11 = vrot.slane %v8713_v22, %v8827_v42 }
  0x10   :  { %118 = vperm.xlu1 %8445, %v8700_v20   ;;  %15068 = vst [vmem:[#allocation24_spill] sm:$0xff] %v8870_v53  ;;  %15070 = vst [vmem:[#allocation26_spill] sm:$0xff] %v8877_v55  ;;  %v8953_v18 = vrot.slane %v8751_v29, %v8827_v42 }
  0x11   :  { %15071 = vst [vmem:[#allocation27_spill] sm:$0xff] %v8881_v56  ;;  %15072 = vst [vmem:[#allocation28_spill] sm:$0xff] %v8885_v57 }
  0x12   :  { %15073 = vst [vmem:[#allocation29_spill] sm:$0xff] %v8902_v61  ;;  %15074 = vst [vmem:[#allocation30_spill] sm:$0xff] %v8911_v63 }
  0x13   :  { %128 = vperm.xlu0 %8453, %v8708_v21   ;;  %15078 = vst [vmem:[#allocation34_spill] sm:$0xff] %v8928_v8  ;;  %15079 = vst [vmem:[#allocation35_spill] sm:$0xff] %v8932_v9 }
  0x14   :  { %8446 = vset.pattern.permute.xlu1 %v14496_v0  ;;  %15080 = vst [vmem:[#allocation36_spill] sm:$0xff] %v8936_v10  ;;  %15081 = vst [vmem:[#allocation37_spill] sm:$0xff] %v8940_v11 }
  0x15   :  { %419 = vperm.xlu1 %8446, %v8700_v20   ;;  %15083 = vst [vmem:[#allocation39_spill] sm:$0xff] %v8953_v18 }
  0x17   :  { %143 = vperm.xlu0 %8453, %v8720_v23  }
  0x19   :  { %423 = vperm.xlu1 %8446, %v8689_v17  }
  0x1b   :  { %8460 = vset.pattern.permute.xlu0 %v14509_v24 }
  0x1c   :  { %1542 = vperm.xlu0 %8460, %v8646_v2  }
  0x1d   :  { %8447 = vset.pattern.permute.xlu1 %v14505_v25 }
  0x1e   :  { %961 = vperm.xlu1 %8447, %v8653_v4  }
  0x20   :  { %1554 = vperm.xlu0 %8460, %v8689_v17  }
  0x22   :  { %8448 = vset.pattern.permute.xlu1 %v8569_v16 }
  0x23   :  { %684 = vperm.xlu1 %8448, %v8700_v20  }
  0x24   :  { %8464 = vset.pattern.permute.xlu0 %v8569_v16 }
  0x25   :  { %676 = vperm.xlu0 %8464, %v8646_v2  }
  0x27   :  { %8449 = vset.pattern.permute.xlu1 %v14501_v27 }
  0x28   :  { %1249 = vperm.xlu1 %8449, %v8646_v2  }
  0x29   :  { %688 = vperm.xlu0 %8464, %v8689_v17  }
  0x2c   :  { %1253 = vperm.xlu1 %8449, %v8653_v4  }
  0x2d   :  { %696 = vperm.xlu0 %8464, %v8641_v1  }
  0x30   :  { %8450 = vset.pattern.permute.xlu1 %v14497_v7 }
  0x31   :  { %700 = vperm.xlu0 %8464, %v8745_v28   ;;  %133 = vperm.xlu1 %8450, %v8641_v1  }
  0x35   :  { %8466 = vset.pattern.permute.xlu0 %v14505_v25  ;;  %8451 = vset.pattern.permute.xlu1 %v14496_v0 }
  0x36   :  { %957 = vperm.xlu0 %8466, %v8646_v2   ;;  %427 = vperm.xlu1 %8451, %v8708_v21  }
  0x3a   :  { %973 = vperm.xlu0 %8466, %v8708_v21   ;;  %8454 = vset.pattern.permute.xlu1 %v14505_v25 }
  0x3b   :  { %965 = vperm.xlu1 %8454, %v8700_v20  }
  0x3e   :  { %985 = vperm.xlu0 %8466, %v8720_v23  }
  0x3f   :  { %969 = vperm.xlu1 %8454, %v8689_v17  }
  0x42   :  { %8472 = vset.pattern.permute.xlu0 %v14501_v27 }
  0x43   :  { %1269 = vperm.xlu0 %8472, %v8641_v1   ;;  %8455 = vset.pattern.permute.xlu1 %v14509_v24 }
  0x44   :  { %1546 = vperm.xlu1 %8455, %v8653_v4  }
  0x47   :  { %1277 = vperm.xlu0 %8472, %v8720_v23  }
  0x48   :  { %8456 = vset.pattern.permute.xlu1 %v8569_v16 }
  0x49   :  { %692 = vperm.xlu1 %8456, %v8708_v21  }
  0x4b   :  { %8476 = vset.pattern.permute.xlu0 %v14507_v31 }
  0x4c   :  { %2386 = vperm.xlu0 %8476, %v8646_v2  }
  0x4d   :  { %8457 = vset.pattern.permute.xlu1 %v14501_v27 }
  0x4e   :  { %1257 = vperm.xlu1 %8457, %v8700_v20  }
  0x50   :  { %2394 = vperm.xlu0 %8476, %v8700_v20  }
  0x52   :  { %1261 = vperm.xlu1 %8457, %v8689_v17  }
  0x54   :  { %8478 = vset.pattern.permute.xlu0 %v14499_v32 }
  0x55   :  { %1834 = vperm.xlu0 %8478, %v8646_v2  }
  0x56   :  { %8458 = vset.pattern.permute.xlu1 %v14499_v32 }
  0x57   :  { %1838 = vperm.xlu1 %8458, %v8653_v4  }
  0x59   :  { %1862 = vperm.xlu0 %8478, %v8720_v23  }
  0x5b   :  { %8459 = vset.pattern.permute.xlu1 %v14497_v7 }
  0x5c   :  { %138 = vperm.xlu1 %8459, %v8745_v28  }
  0x5d   :  { %8484 = vset.pattern.permute.xlu0 %v14503_v33 }
  0x5e   :  { %2122 = vperm.xlu0 %8484, %v8700_v20  }
  0x60   :  { %8461 = vset.pattern.permute.xlu1 %v14496_v0 }
  0x61   :  { %435 = vperm.xlu1 %8461, %v8745_v28  }
  0x62   :  { %2130 = vperm.xlu0 %8484, %v8708_v21  }
  0x65   :  { %439 = vperm.xlu1 %8461, %v8720_v23  }
  0x66   :  { %2142 = vperm.xlu0 %8484, %v8720_v23  }
  0x69   :  { %8462 = vset.pattern.permute.xlu1 %v14505_v25 }
  0x6a   :  { %977 = vperm.xlu1 %8462, %v8641_v1   ;;  %8488 = vset.pattern.permute.xlu0 %v14497_v7 }
  0x6b   :  { %2664 = vperm.xlu0 %8488, %v2650_v34  }
  0x6e   :  { %8463 = vset.pattern.permute.xlu1 %v14509_v24 }
  0x6f   :  { %1550 = vperm.xlu1 %8463, %v8700_v20   ;;  %2669 = vperm.xlu0 %8488, %v2651_v35  }
  0x73   :  { %8465 = vset.pattern.permute.xlu1 %v14503_v33  ;;  %2679 = vperm.xlu0 %8488, %v2653_v36  }
  0x74   :  { %2114 = vperm.xlu1 %8465, %v8646_v2   ;;  %v8915_v2 = vrot.slane %v8676_v14, %v8827_v42 }
  0x76   :  { %15075 = vst [vmem:[#allocation31_spill] sm:$0xff] %v8915_v2 }
  0x77   :  { %2694 = vperm.xlu0 %8488, %v2656_v37  }
  0x78   :  { %2118 = vperm.xlu1 %8465, %v8653_v4  }
  0x7b   :  { %2984 = vperm.xlu0 %8488, %v2974_v38  }
  0x7c   :  { %8467 = vset.pattern.permute.xlu1 %v8569_v16 }
  0x7d   :  { %704 = vperm.xlu1 %8467, %v8720_v23  }
  0x7f   :  { %2994 = vperm.xlu0 %8488, %v2976_v39  }
  0x81   :  { %8468 = vset.pattern.permute.xlu1 %v14501_v27  ;;  %v8838_v45 = vpop.permute.xlu1 %411  ;;  %v8840_v46 = vpop.permute.xlu0 %431 }
  0x82   :  { %15060 = vst [vmem:[#allocation16_spill] sm:$0xff] %v8838_v45  ;;  %15061 = vst [vmem:[#allocation17_spill] sm:$0xff] %v8840_v46  ;;  %1265 = vperm.xlu1 %8468, %v8708_v21   ;;  %v8944_v15 = vmul.f32 %v8840_v46, %v8885_v57  ;;  %v8961_v34 = vmul.f32 %v8840_v46, %v8890_v58  ;;  %v8965_v35 = vmul.f32 %v8840_v46, %v8894_v59 }
  0x83   :  { %6394 = vperm.xlu0 %8488, %v8835_v44   ;;  %v8969_v36 = vmul.f32 %v8840_v46, %v8898_v60  ;;  %v8973_v37 = vmul.f32 %v8840_v46, %v8907_v62  ;;  %v8977_v38 = vmul.f32 %v8840_v46, %v8911_v63  ;;  %v8981_v39 = vmul.f32 %v8840_v46, %v8915_v2 }
  0x84   :  { %v8985_v40 = vmul.f32 %v8840_v46, %v8902_v61  ;;  %v448_v0 = vmul.f32 %v8838_v45, %v8885_v57  ;;  %v449_v7 = vmul.f32 %v8838_v45, %v8890_v58  ;;  %v451_v27 = vmul.f32 %v8838_v45, %v8898_v60 }
  0x85   :  { %v8866_v52 = vpop.permute.xlu1 %415  ;;  %15085 = vst [vmem:[#allocation41_spill] sm:$0xff] %v8977_v38  ;;  %15086 = vst [vmem:[#allocation42_spill] sm:$0xff] %v8981_v39  ;;  %v452_v33 = vmul.f32 %v8838_v45, %v8907_v62  ;;  %v454_v22 = vmul.f32 %v8838_v45, %v8915_v2 }
  0x86   :  { %15067 = vst [vmem:[#allocation23_spill] sm:$0xff] %v8866_v52  ;;  %v8872_v54 = vpop.permute.xlu0 %108  ;;  %8469 = vset.pattern.permute.xlu1 %v14499_v32  ;;  %15087 = vst [vmem:[#allocation43_spill] sm:$0xff] %v8985_v40  ;;  %v450_v32 = vmul.f32 %v8838_v45, %v8894_v59  ;;  %v462_v18 = vmul.f32 %v8866_v52, %v8885_v57  ;;  %v463_v56 = vmul.f32 %v8866_v52, %v8890_v58 }
  0x87   :  { %15069 = vst [vmem:[#allocation25_spill] sm:$0xff] %v8872_v54  ;;  %1842 = vperm.xlu1 %8469, %v8700_v20   ;;  %8492 = vset.pattern.permute.xlu0 %v8569_v16  ;;  %v8949_v16 = vrot.slane %v8730_v26, %v8827_v42  ;;  %v8957_v20 = vrot.slane %v8762_v30, %v8827_v42 }
  0x88   :  { %6414 = vperm.xlu0 %8492, %v8835_v44   ;;  %v198_v31 = vmul.f32 %v8919_v3, %v8872_v54  ;;  %v200_v43 = vmul.f32 %v8890_v58, %v8872_v54  ;;  %v201_v42 = vmul.f32 %v8894_v59, %v8872_v54  ;;  %v202_v29 = vmul.f32 %v8898_v60, %v8872_v54 }
  0x89   :  { %15082 = vst [vmem:[#allocation38_spill] sm:$0xff] %v8949_v16  ;;  %15084 = vst [vmem:[#allocation40_spill] sm:$0xff] %v8957_v20  ;;  %v453_v26 = vmul.f32 %v8838_v45, %v8911_v63  ;;  %v455_v20 = vmul.f32 %v8838_v45, %v8902_v61  ;;  %v203_v19 = vmul.f32 %v8907_v62, %v8872_v54 }
  0x8a   :  { %v8922_v5 = vpop.permute.xlu0 %113  ;;  %v8924_v6 = vpop.permute.xlu1 %680  ;;  %v464_v16 = vmul.f32 %v8866_v52, %v8894_v59  ;;  %v204_v55 = vmul.f32 %v8911_v63, %v8872_v54  ;;  %v205_v11 = vmul.f32 %v8915_v2, %v8872_v54  ;;  %v465_v51 = vmul.f32 %v8866_v52, %v8898_v60 }
  0x8b   :  { %15076 = vst [vmem:[#allocation32_spill] sm:$0xff] %v8922_v5  ;;  %15077 = vst [vmem:[#allocation33_spill] sm:$0xff] %v8924_v6  ;;  %1846 = vperm.xlu1 %8469, %v8689_v17   ;;  %v9042_v14 = vadd.f32 %v448_v0, %v198_v31  ;;  %v9046_v13 = vadd.f32 %v450_v32, %v200_v43  ;;  %v9048_v8 = vadd.f32 %v451_v27, %v201_v42  ;;  %v15097_v31 = vmov 3  }
  0x8c   :  { %8495 = vset.pattern.permute.xlu0 %v14509_v24  ;;  %v199_v24 = vmul.f32 %v8885_v57, %v8872_v54  ;;  %v9051_v12 = vadd.f32 %v452_v33, %v202_v29  ;;  %v212_v23 = vmul.f32 %v8885_v57, %v8922_v5  ;;  %v213_v0 = vmul.f32 %v8890_v58, %v8922_v5 }
  0x8d   :  { %6444 = vperm.xlu0 %8495, %v8835_v44   ;;  %15094 = vst [vmem:[#allocation49_spill] sm:$0xff] %v9046_v13  ;;  %15095 = vst [vmem:[#allocation50_spill] sm:$0xff] %v9048_v8  ;;  %v214_v27 = vmul.f32 %v8894_v59, %v8922_v5  ;;  %v215_v29 = vmul.f32 %v8898_v60, %v8922_v5  ;;  %v216_v32 = vmul.f32 %v8907_v62, %v8922_v5 }
  0x8e   :  { %v8998_v25 = vpop.permute.xlu0 %123  ;;  %v9044_v9 = vadd.f32 %v449_v7, %v199_v24  ;;  %15096 = vst [vmem:[#allocation51_spill] sm:$0xff] %v9051_v12  ;;  %v9062_v24 = vadd.f32 %v453_v26, %v203_v19  ;;  %v9071_v33 = vadd.f32 %v454_v22, %v204_v55  ;;  %v9073_v42 = vadd.f32 %v455_v20, %v205_v11 }
  0x8f   :  { %15088 = vst [vmem:[#allocation44_spill] sm:$0xff] %v8998_v25  ;;  %8470 = vset.pattern.permute.xlu1 %v15089_v41  ;;  %v9010_v30 = vpop.permute.xlu1 %118  ;;  %v217_v43 = vmul.f32 %v8911_v63, %v8922_v5  ;;  %v218_v19 = vmul.f32 %v8915_v2, %v8922_v5  ;;  %v467_v22 = vmul.f32 %v8866_v52, %v8911_v63 }
  0x90   :  { %15090 = vst [vmem:[#allocation45_spill] sm:$0xff] %v9010_v30  ;;  %2390 = vperm.xlu1 %8470, %v8653_v4   ;;  %v9035_v4 = vmul.f32 %v8902_v61, %v8872_v54  ;;  %15093 = vst [vmem:[#allocation48_spill] sm:$0xff] %v9044_v9  ;;  %v468_v55 = vmul.f32 %v8866_v52, %v8915_v2  ;;  %v469_v11 = vmul.f32 %v8866_v52, %v8902_v61 }
  0x91   :  { %8498 = vset.pattern.permute.xlu0 %v15089_v41  ;;  %15099 = vst [vmem:[#allocation53_spill] sm:$0xff] %v9062_v24  ;;  %15100 = vst [vmem:[#allocation54_spill] sm:$0xff] %v9071_v33  ;;  %v466_v24 = vmul.f32 %v8866_v52, %v8907_v62  ;;  %v9097_v33 = vadd.f32 %v464_v16, %v213_v0  ;;  %v9105_v13 = vadd.f32 %v467_v22, %v216_v32 }
  0x92   :  { %15091 = vst [vmem:[#allocation46_spill] sm:$0xff] %v9035_v4  ;;  %v9039_v10 = vpop.permute.xlu0 %128  ;;  %6474 = vperm.xlu0 %8498, %v8835_v44   ;;  %v211_v4 = vmul.f32 %v8919_v3, %v8922_v5  ;;  %15101 = vst [vmem:[#allocation55_spill] sm:$0xff] %v9073_v42  ;;  %v9083_v44 = vmul.f32 %v8902_v61, %v8922_v5  ;;  %v9095_v42 = vadd.f32 %v463_v56, %v212_v23  ;;  %v14545_v56 = vmov 0.0|0.0  }
  0x93   :  { %15092 = vst [vmem:[#allocation47_spill] sm:$0xff] %v9039_v10  ;;  %15105 = vst [vmem:[#allocation59_spill] sm:$0xff] %v9097_v33  ;;  %v9103_v8 = vadd.f32 %v466_v24, %v215_v29  ;;  %v9108_v9 = vadd.f32 %v468_v55, %v217_v43  ;;  %v9110_v40 = vadd.f32 %v469_v11, %v218_v19  ;;  %6664 = vmatprep.subr.bf16.mxu0 %v14545_v56 }
  0x94   :  { %8471 = vset.pattern.permute.xlu1 %v15097_v31  ;;  %v9060_v7 = vpop.permute.xlu1 %419  ;;  %15103 = vst [vmem:[#allocation57_spill] sm:$0xff] %v9083_v44  ;;  %v9093_v20 = vadd.f32 %v462_v18, %v211_v4  ;;  %15104 = vst [vmem:[#allocation58_spill] sm:$0xff] %v9095_v42  ;;  %v9101_v44 = vadd.f32 %v465_v51, %v214_v27  ;;  %v15110_v31 = vmov 5   ;;  %v9114_v23 = vmul.f32 %v8919_v3, %v9010_v30 }
  0x95   :  { %15098 = vst [vmem:[#allocation52_spill] sm:$0xff] %v9060_v7  ;;  %981 = vperm.xlu1 %8471, %v8745_v28   ;;  %15108 = vst [vmem:[#allocation62_spill] sm:$0xff] %v9103_v8  ;;  %v9120_v51 = vmul.f32 %v8885_v57, %v9010_v30  ;;  %v9124_v16 = vmul.f32 %v8890_v58, %v9010_v30  ;;  %v9128_v18 = vmul.f32 %v8894_v59, %v9010_v30 }
  0x96   :  { %v9079_v26 = vpop.permute.xlu0 %143  ;;  %15107 = vst [vmem:[#allocation61_spill] sm:$0xff] %v9101_v44  ;;  %15109 = vst [vmem:[#allocation63_spill] sm:$0xff] %v9105_v13  ;;  %6665 = vmatpush1.bf16.msra.mxu0 %v14545_v56  ;;  %6780 = vmatprep.subr.bf16.mxu1 %v14545_v56  ;;  %v9136_v0 = vmul.f32 %v8898_v60, %v9010_v30  ;;  %v9140_v24 = vmul.f32 %v8907_v62, %v9010_v30  ;;  %v197_v44 = vmul.f32 0.0, %v8872_v54 }
  0x97   :  { %15102 = vst [vmem:[#allocation56_spill] sm:$0xff] %v9079_v26  ;;  %15111 = vst [vmem:[#allocation64_spill] sm:$0xff] %v9108_v9  ;;  %v9144_v27 = vmul.f32 %v8911_v63, %v9010_v30  ;;  %6666 = vmatprep.subr.bf16.mxu0 %v14545_v56  ;;  %6781 = vmatpush1.bf16.msra.mxu1 %v14545_v56  ;;  %v9150_v29 = vmul.f32 %v8915_v2, %v9010_v30 }
  0x98   :  { %v9099_v12 = vpop.permute.xlu1 %423  ;;  %15112 = vst [vmem:[#allocation65_spill] sm:$0xff] %v9110_v40  ;;  %15113 = vst [vmem:[#allocation66_spill] sm:$0xff] %v9114_v23  ;;  %v9154_v32 = vmul.f32 %v8919_v3, %v8998_v25  ;;  %v9158_v43 = vmul.f32 %v8885_v57, %v8998_v25  ;;  %v9162_v19 = vmul.f32 %v8890_v58, %v8998_v25  ;;  %6782 = vmatprep.subr.bf16.mxu1 %v14545_v56 }
  0x99   :  { %15106 = vst [vmem:[#allocation60_spill] sm:$0xff] %v9099_v12  ;;  %8473 = vset.pattern.permute.xlu1 %v15110_v31  ;;  %15114 = vst [vmem:[#allocation67_spill] sm:$0xff] %v9120_v51  ;;  %v9169_v55 = vmul.f32 %v8894_v59, %v8998_v25  ;;  %v9173_v11 = vmul.f32 %v8898_v60, %v8998_v25  ;;  %v9181_v40 = vmul.f32 %v8911_v63, %v8998_v25 }
  0x9a   :  { %1558 = vperm.xlu1 %8473, %v8708_v21   ;;  %15115 = vst [vmem:[#allocation68_spill] sm:$0xff] %v9124_v16  ;;  %15116 = vst [vmem:[#allocation69_spill] sm:$0xff] %v9128_v18  ;;  %v9186_v56 = vmul.f32 %v8915_v2, %v8998_v25  ;;  %v9194_v9 = vmul.f32 %v8919_v3, %v9039_v10  ;;  %v9205_v13 = vmul.f32 %v8890_v58, %v9039_v10 }
  0x9b   :  { %v9130_v4 = vpop.permute.xlu0 %1542  ;;  %15118 = vst [vmem:[#allocation71_spill] sm:$0xff] %v9136_v0  ;;  %15119 = vst [vmem:[#allocation72_spill] sm:$0xff] %v9140_v24  ;;  %v9223_v0 = vmul.f32 %v8911_v63, %v9039_v10  ;;  %v9227_v8 = vmul.f32 %v8915_v2, %v9039_v10  ;;  %v9268_v16 = vmul.f32 %v8911_v63, %v9079_v26 }
  0x9c   :  { %15117 = vst [vmem:[#allocation70_spill] sm:$0xff] %v9130_v4  ;;  %15120 = vst [vmem:[#allocation73_spill] sm:$0xff] %v9144_v27  ;;  %v9190_v27 = vmul.f32 %v8902_v61, %v8998_v25  ;;  %v9278_v54 = vmul.f32 %v8915_v2, %v9079_v26  ;;  %v9282_v51 = vmul.f32 %v8902_v61, %v9079_v26 }
  0x9d   :  { %15121 = vst [vmem:[#allocation74_spill] sm:$0xff] %v9150_v29  ;;  %15122 = vst [vmem:[#allocation75_spill] sm:$0xff] %v9154_v32  ;;  %v9164_v22 = vpop.permute.xlu1 %961  ;;  %v9177_v29 = vmul.f32 %v8907_v62, %v8998_v25  ;;  %v475_v32 = vmul.f32 %v9060_v7, %v8919_v3 }
  0x9e   :  { %15123 = vst [vmem:[#allocation76_spill] sm:$0xff] %v9158_v43  ;;  %15124 = vst [vmem:[#allocation77_spill] sm:$0xff] %v9162_v19  ;;  %1562 = vperm.xlu1 %8473, %v8641_v1   ;;  %v9264_v19 = vmul.f32 %v8907_v62, %v9079_v26  ;;  %v446_v43 = vmul.f32 0.0, %v8838_v45 }
  0x9f   :  { %15125 = vst [vmem:[#allocation78_spill] sm:$0xff] %v9164_v22  ;;  %15126 = vst [vmem:[#allocation79_spill] sm:$0xff] %v9169_v55  ;;  %v9200_v24 = vpop.permute.xlu0 %1554  ;;  %v9237_v55 = vmul.f32 %v8919_v3, %v9079_v26 }
  0xa0   :  { %15127 = vst [vmem:[#allocation80_spill] sm:$0xff] %v9173_v11  ;;  %15128 = vst [vmem:[#allocation81_spill] sm:$0xff] %v9177_v29  ;;  %v9198_v29 = vmul.f32 %v8885_v57, %v9039_v10  ;;  %v9219_v11 = vmul.f32 %v8907_v62, %v9039_v10 }
  0xa1   :  { %15129 = vst [vmem:[#allocation82_spill] sm:$0xff] %v9181_v40  ;;  %15130 = vst [vmem:[#allocation83_spill] sm:$0xff] %v9186_v56  ;;  %v15135_v40 = vmov 0.0|0.0   ;;  %v9209_v56 = vmul.f32 %v8894_v59, %v9039_v10 }
  0xa2   :  { %15131 = vst [vmem:[#allocation84_spill] sm:$0xff] %v9190_v27  ;;  %15132 = vst [vmem:[#allocation85_spill] sm:$0xff] %v9194_v9  ;;  %6667 = vmatpush1.bf16.msra.mxu0 %v15135_v40  ;;  %v9213_v27 = vmul.f32 %v8898_v60, %v9039_v10  ;;  %6783 = vmatpush1.bf16.msra.mxu1 %v15135_v40  ;;  %v9248_v18 = vpop.permute.xlu1 %684  ;;  %v236_v9 = vmul.f32 0.0, %v8998_v25  ;;  %v9326_v25 = vmul.f32 %v9130_v4, %v8885_v57 }
  0xa3   :  { %15133 = vst [vmem:[#allocation86_spill] sm:$0xff] %v9198_v29  ;;  %15134 = vst [vmem:[#allocation87_spill] sm:$0xff] %v9200_v24  ;;  %6668 = vmatprep.subr.bf16.mxu0 %v15135_v40  ;;  %6784 = vmatprep.subr.bf16.mxu1 %v15135_v40  ;;  %v461_v29 = vmul.f32 %v8866_v52, %v8919_v3 }
  0xa4   :  { %15136 = vst [vmem:[#allocation88_spill] sm:$0xff] %v9205_v13  ;;  %15137 = vst [vmem:[#allocation89_spill] sm:$0xff] %v9209_v56  ;;  %v9233_v56 = vmul.f32 %v8902_v61, %v9039_v10  ;;  %v460_v13 = vmul.f32 0.0, %v8866_v52  ;;  %v9270_v33 = vpop.permute.xlu0 %676  ;;  %v727_v52 = vmul.f32 %v8924_v6, %v8919_v3  ;;  %v474_v61 = vmul.f32 0.0, %v9060_v7 }
  0xa5   :  { %15138 = vst [vmem:[#allocation90_spill] sm:$0xff] %v9213_v27  ;;  %15139 = vst [vmem:[#allocation91_spill] sm:$0xff] %v9219_v11  ;;  %v210_v27 = vmul.f32 0.0, %v8922_v5  ;;  %v9241_v11 = vmul.f32 %v8885_v57, %v9079_v26  ;;  %v9252_v5 = vmul.f32 %v8894_v59, %v9079_v26 }
  0xa6   :  { %15140 = vst [vmem:[#allocation92_spill] sm:$0xff] %v9223_v0  ;;  %15141 = vst [vmem:[#allocation93_spill] sm:$0xff] %v9227_v8  ;;  %v9245_v0 = vmul.f32 %v8890_v58, %v9079_v26  ;;  %v15146_v8 = vmov 7   ;;  %6669 = vmatpush1.bf16.msra.mxu0 %v15135_v40  ;;  %6785 = vmatpush1.bf16.msra.mxu1 %v15135_v40 }
  0xa7   :  { %15142 = vst [vmem:[#allocation94_spill] sm:$0xff] %v9233_v56  ;;  %15143 = vst [vmem:[#allocation95_spill] sm:$0xff] %v9237_v55  ;;  %8474 = vset.pattern.permute.xlu1 %v15146_v8  ;;  %v9256_v56 = vmul.f32 %v8898_v60, %v9079_v26  ;;  %6670 = vmatprep.subr.bf16.mxu0 %v15135_v40  ;;  %v572_v42 = vadd.f32 %v460_v13, %v210_v27  ;;  %v1008_v13 = vmul.f32 0.0, %v9164_v22 }
  0xa8   :  { %15144 = vst [vmem:[#allocation96_spill] sm:$0xff] %v9241_v11  ;;  %15145 = vst [vmem:[#allocation97_spill] sm:$0xff] %v9245_v0  ;;  %2126 = vperm.xlu1 %8474, %v8689_v17   ;;  %6786 = vmatprep.subr.bf16.mxu1 %v15135_v40  ;;  %v728_v0 = vmul.f32 %v8924_v6, %v8885_v57  ;;  %v223_v11 = vmul.f32 0.0, %v9010_v30  ;;  %v489_v8 = vmul.f32 %v9099_v12, %v8919_v3 }
  0xa9   :  { %15147 = vst [vmem:[#allocation98_spill] sm:$0xff] %v9248_v18  ;;  %15148 = vst [vmem:[#allocation99_spill] sm:$0xff] %v9252_v5  ;;  %v15155_v5 = vmov 4   ;;  %v847_v23 = vadd.f32 %v727_v52, %v572_v42  ;;  %v9329_v52 = vmul.f32 0.0, %v9039_v10 }
  0xaa   :  { %15149 = vst [vmem:[#allocation100_spill] sm:$0xff] %v9256_v56  ;;  %15150 = vst [vmem:[#allocation101_spill] sm:$0xff] %v9264_v19  ;;  %v573_v19 = vadd.f32 %v461_v29, %v210_v27  ;;  %v726_v56 = vmul.f32 0.0, %v8924_v6  ;;  %6671 = vmatpush1.bf16.msra.mxu0 %v15135_v40  ;;  %v1009_v27 = vmul.f32 %v9164_v22, %v8919_v3  ;;  %v9300_v29 = vpop.permute.xlu0 %688  ;;  %6787 = vmatpush1.bf16.msra.mxu1 %v15135_v40 }
  0xab   :  { %15151 = vst [vmem:[#allocation102_spill] sm:$0xff] %v9268_v16  ;;  %15152 = vst [vmem:[#allocation103_spill] sm:$0xff] %v9270_v33  ;;  %v447_v16 = vmul.f32 %v8838_v45, %v8919_v3  ;;  %6672 = vmatprep.subr.bf16.mxu0 %v15135_v40  ;;  %v586_v10 = vadd.f32 %v474_v61, %v223_v11  ;;  %v9354_v61 = vmul.f32 0.0, %v8840_v46 }
  0xac   :  { %15153 = vst [vmem:[#allocation104_spill] sm:$0xff] %v9278_v54  ;;  %15154 = vst [vmem:[#allocation105_spill] sm:$0xff] %v9282_v51  ;;  %8475 = vset.pattern.permute.xlu1 %v15155_v5  ;;  %v9292_v54 = vpop.permute.xlu1 %1249  ;;  %v558_v51 = vadd.f32 %v446_v43, %v197_v44  ;;  %v1010_v5 = vmul.f32 %v9164_v22, %v8885_v57  ;;  %v1011_v43 = vmul.f32 %v9164_v22, %v8890_v58 }
  0xad   :  { %15156 = vst [vmem:[#allocation106_spill] sm:$0xff] %v9292_v54  ;;  %15157 = vst [vmem:[#allocation107_spill] sm:$0xff] %v9300_v29  ;;  %1273 = vperm.xlu1 %8475, %v8745_v28   ;;  %v559_v45 = vadd.f32 %v447_v16, %v197_v44  ;;  %v846_v55 = vadd.f32 %v726_v56, %v572_v42  ;;  %v848_v44 = vadd.f32 %v728_v0, %v573_v19  ;;  %v15161_v42 = vmov 6  }
  0xae   :  { %v488_v16 = vmul.f32 0.0, %v9099_v12  ;;  %6673 = vmatpush1.bf16.msra.mxu0 %v15135_v40  ;;  %15159 = vst [vmem:[#allocation109_spill] sm:$0xff] %v9326_v25  ;;  %15160 = vst [vmem:[#allocation110_spill] sm:$0xff] %v9329_v52  ;;  %v9332_v0 = vpop.permute.xlu0 %696  ;;  %v9335_v19 = vadd.f32 %v1010_v5, %v847_v23  ;;  %v587_v25 = vadd.f32 %v475_v32, %v223_v11 }
  0xaf   :  { %v9320_v30 = vadd.f32 %v1008_v13, %v846_v55  ;;  %v9322_v56 = vadd.f32 %v1009_v27, %v846_v55  ;;  %15162 = vst [vmem:[#allocation111_spill] sm:$0xff] %v9332_v0  ;;  %6674 = vmatprep.subr.bf16.mxu0 %v15135_v40  ;;  %v1139_v38 = vadd.f32 %v1011_v43, %v848_v44  ;;  %v741_v13 = vmul.f32 0.0, %v9248_v18 }
  0xb0   :  { %v9317_v39 = vpop.permute.xlu1 %1253  ;;  %v742_v55 = vmul.f32 %v9248_v18, %v8919_v3  ;;  %v711_v27 = vmul.f32 0.0, %v9270_v33  ;;  %v712_v52 = vmul.f32 %v9270_v33, %v8919_v3  ;;  %v600_v5 = vadd.f32 %v488_v16, %v236_v9 }
  0xb1   :  { %15158 = vst [vmem:[#allocation108_spill] sm:$0xff] %v9317_v39  ;;  %8477 = vset.pattern.permute.xlu1 %v15161_v42  ;;  %v743_v42 = vmul.f32 %v9248_v18, %v8885_v57  ;;  %v601_v23 = vadd.f32 %v489_v8, %v236_v9  ;;  %v9348_v43 = vmul.f32 %v9200_v24, %v8885_v57 }
  0xb2   :  { %1850 = vperm.xlu1 %8477, %v8708_v21   ;;  %6675 = vmatpush1.bf16.msra.mxu0 %v15135_v40  ;;  %v713_v21 = vmul.f32 %v9270_v33, %v8885_v57  ;;  %v9358_v32 = vmul.f32 %v8840_v46, %v8919_v3  ;;  %v9362_v11 = vmul.f32 %v9130_v4, %v8890_v58  ;;  %v9366_v9 = vpop.permute.xlu0 %700 }
  0xb3   :  { %15163 = vst [vmem:[#allocation112_spill] sm:$0xff] %v9348_v43  ;;  %15167 = vst [vmem:[#allocation116_spill] sm:$0xff] %v9366_v9  ;;  %6676 = vmatprep.subr.bf16.mxu0 %v15135_v40  ;;  %v9369_v44 = vadd.f32 %v741_v13, %v586_v10  ;;  %v9371_v16 = vadd.f32 %v742_v55, %v586_v10  ;;  %v9375_v43 = vmul.f32 %v9200_v24, %v8890_v58 }
  0xb4   :  { %15164 = vst [vmem:[#allocation113_spill] sm:$0xff] %v9358_v32  ;;  %15165 = vst [vmem:[#allocation114_spill] sm:$0xff] %v9362_v11  ;;  %v9364_v8 = vpop.permute.xlu1 %133  ;;  %v9379_v46 = vmul.f32 %v9130_v4, %v8894_v59  ;;  %v9382_v11 = vadd.f32 %v711_v27, %v558_v51  ;;  %v9384_v32 = vadd.f32 %v743_v42, %v587_v25 }
  0xb5   :  { %15166 = vst [vmem:[#allocation115_spill] sm:$0xff] %v9364_v8  ;;  %15168 = vst [vmem:[#allocation117_spill] sm:$0xff] %v9369_v44  ;;  %v9388_v13 = vmul.f32 %v9200_v24, %v8894_v59  ;;  %v9392_v10 = vmul.f32 %v9130_v4, %v8898_v60  ;;  %v9394_v55 = vadd.f32 %v712_v52, %v558_v51 }
  0xb6   :  { %15169 = vst [vmem:[#allocation118_spill] sm:$0xff] %v9371_v16  ;;  %15170 = vst [vmem:[#allocation119_spill] sm:$0xff] %v9375_v43  ;;  %1854 = vperm.xlu1 %8477, %v8641_v1   ;;  %v756_v43 = vmul.f32 0.0, %v9300_v29  ;;  %v758_v27 = vmul.f32 %v9300_v29, %v8885_v57  ;;  %6677 = vmatpush1.bf16.msra.mxu0 %v15135_v40  ;;  %v9402_v25 = vadd.f32 %v713_v21, %v559_v45 }
  0xb7   :  { %15171 = vst [vmem:[#allocation120_spill] sm:$0xff] %v9379_v46  ;;  %15172 = vst [vmem:[#allocation121_spill] sm:$0xff] %v9384_v32  ;;  %v757_v46 = vmul.f32 %v9300_v29, %v8919_v3  ;;  %v9406_v42 = vmul.f32 %v9292_v54, %v8870_v53  ;;  %v9410_v51 = vmul.f32 %v9292_v54, %v8855_v49  ;;  %6678 = vmatprep.subr.bf16.mxu0 %v15135_v40  ;;  %v9423_v32 = vpop.permute.xlu0 %957 }
  0xb8   :  { %15173 = vst [vmem:[#allocation122_spill] sm:$0xff] %v9388_v13  ;;  %15174 = vst [vmem:[#allocation123_spill] sm:$0xff] %v9392_v10  ;;  %v1301_v52 = vmul.f32 %v9317_v39, %v8870_v53  ;;  %v1304_v13 = vmul.f32 %v9317_v39, %v8855_v49  ;;  %v1302_v45 = vmul.f32 %v9317_v39, %v8845_v47  ;;  %v9426_v16 = vpop.permute.xlu1 %427 }
  0xb9   :  { %15175 = vst [vmem:[#allocation124_spill] sm:$0xff] %v9410_v51  ;;  %v1303_v21 = vmul.f32 %v9317_v39, %v8850_v48  ;;  %v714_v10 = vmul.f32 %v9270_v33, %v8890_v58  ;;  %15176 = vst [vmem:[#allocation125_spill] sm:$0xff] %v9423_v32  ;;  %v9430_v53 = vmul.f32 %v9292_v54, %v8845_v47 }
  0xba   :  { %8479 = vset.pattern.permute.xlu1 %v15089_v41  ;;  %15177 = vst [vmem:[#allocation126_spill] sm:$0xff] %v9426_v16  ;;  %v9434_v49 = vmul.f32 %v9292_v54, %v8850_v48  ;;  %v9438_v1 = vmul.f32 %v9200_v24, %v8898_v60  ;;  %v729_v33 = vmul.f32 %v8924_v6, %v8890_v58 }
  0xbb   :  { %2398 = vperm.xlu1 %8479, %v8689_v17   ;;  %v9443_v41 = vadd.f32 %v756_v43, %v600_v5  ;;  %v9445_v44 = vadd.f32 %v757_v46, %v600_v5  ;;  %v9447_v51 = vadd.f32 %v758_v27, %v601_v23  ;;  %v9451_v47 = vmul.f32 %v9164_v22, %v8894_v59  ;;  %v2649_v5 = vld [vmem:[%s14488_s2] sm:$0xff] }
  0xbc   :  { %15178 = vst [vmem:[#allocation127_spill] sm:$0xff] %v9438_v1  ;;  %6679 = vmatpush1.bf16.msra.mxu0 %v15135_v40  ;;  %v9455_v24 = vadd.f32 %v1301_v52, %v9320_v30  ;;  %v9459_v6 = vmul.f32 %v9332_v0, %v8919_v3  ;;  %v9463_v17 = vmul.f32 %v9332_v0, %v8885_v57 }
  0xbd   :  { %v9467_v46 = vmul.f32 %v9292_v54, %v8860_v50  ;;  %6680 = vmatprep.subr.bf16.mxu0 %v15135_v40  ;;  %v9473_v30 = vadd.f32 %v1304_v13, %v1139_v38  ;;  %v9476_v23 = vadd.f32 %v1302_v45, %v9322_v56  ;;  %v9479_v43 = vadd.f32 %v1303_v21, %v9335_v19  ;;  %v9486_v54 = vpop.permute.xlu0 %973 }
  0xbe   :  { %v9482_v27 = vadd.f32 %v714_v10, %v9042_v14  ;;  %v263_v52 = vmul.f32 %v8919_v3, %v9364_v8  ;;  %15179 = vst [vmem:[#allocation128_spill] sm:$0xff] %v9486_v54  ;;  %v9489_v22 = vadd.f32 %v729_v33, %v9093_v20  ;;  %v9493_v38 = vmul.f32 %v9317_v39, %v8860_v50  ;;  %v9506_v33 = vpop.permute.xlu1 %965 }
  0xbf   :  { %v9497_v56 = vmul.f32 %v9130_v4, %v8907_v62  ;;  %v264_v14 = vmul.f32 %v8885_v57, %v9364_v8  ;;  %v265_v19 = vmul.f32 %v8890_v58, %v9364_v8  ;;  %v266_v13 = vmul.f32 %v8894_v59, %v9364_v8  ;;  %15182 = vst [vmem:[#allocation130_spill] sm:$0xff] %v9506_v33 }
  0xc0   :  { %v15181_v10 = vmov 0   ;;  %v992_v20 = vmul.f32 0.0, %v9423_v32  ;;  %6681 = vmatpush1.bf16.msra.mxu0 %v15135_v40  ;;  %v9511_v45 = vmul.f32 0.0, %v9079_v26  ;;  %v9515_v21 = vmul.f32 %v9060_v7, %v8885_v57 }
  0xc1   :  { %15180 = vst [vmem:[#allocation129_spill] sm:$0xff] %v9497_v56  ;;  %8480 = vset.pattern.permute.xlu1 %v15181_v10  ;;  %v9519_v4 = vmul.f32 %v9099_v12, %v8885_v57  ;;  %v9523_v39 = vmul.f32 %v9248_v18, %v8890_v58  ;;  %6682 = vmatprep.subr.bf16.mxu0 %v15135_v40  ;;  %v9544_v50 = vpop.permute.xlu0 %985 }
  0xc2   :  { %2659 = vperm.xlu1 %8480, %v2649_v5   ;;  %15183 = vst [vmem:[#allocation131_spill] sm:$0xff] %v9511_v45  ;;  %v267_v5 = vmul.f32 %v8898_v60, %v9364_v8  ;;  %v995_v26 = vmul.f32 %v9423_v32, %v8890_v58  ;;  %v262_v45 = vmul.f32 0.0, %v9364_v8  ;;  %v9533_v7 = vmul.f32 %v9300_v29, %v8890_v58  ;;  %v9555_v56 = vpop.permute.xlu1 %969 }
  0xc3   :  { %15184 = vst [vmem:[#allocation132_spill] sm:$0xff] %v9523_v39  ;;  %v268_v12 = vmul.f32 %v8907_v62, %v9364_v8  ;;  %v269_v18 = vmul.f32 %v8911_v63, %v9364_v8  ;;  %v270_v1 = vmul.f32 %v8915_v2, %v9364_v8  ;;  %v9542_v10 = vadd.f32 %v8944_v15, %v263_v52  ;;  %v15195_v8 = vld [vmem:[#allocation42_spill] sm:$0xff] }
  0xc4   :  { %15185 = vst [vmem:[#allocation133_spill] sm:$0xff] %v9533_v7  ;;  %15187 = vst [vmem:[#allocation135_spill] sm:$0xff] %v9544_v50  ;;  %v9547_v39 = vadd.f32 %v8961_v34, %v264_v14  ;;  %v9550_v29 = vadd.f32 %v8965_v35, %v265_v19  ;;  %v9553_v7 = vadd.f32 %v8969_v36, %v266_v13  ;;  %6683 = vmatpush1.bf16.msra.mxu0 %v15135_v40  ;;  %v15193_v13 = vld [vmem:[#allocation41_spill] sm:$0xff] }
  0xc5   :  { %15186 = vst [vmem:[#allocation134_spill] sm:$0xff] %v9542_v10  ;;  %15191 = vst [vmem:[#allocation139_spill] sm:$0xff] %v9555_v56  ;;  %v1120_v63 = vadd.f32 %v992_v20, %v9382_v11  ;;  %v993_v15 = vmul.f32 %v9423_v32, %v8919_v3  ;;  %v994_v34 = vmul.f32 %v9423_v32, %v8885_v57  ;;  %v502_v35 = vmul.f32 0.0, %v9426_v16 }
  0xc6   :  { %15188 = vst [vmem:[#allocation136_spill] sm:$0xff] %v9547_v39  ;;  %15189 = vst [vmem:[#allocation137_spill] sm:$0xff] %v9550_v29  ;;  %8481 = vset.pattern.permute.xlu1 %v15110_v31  ;;  %v503_v36 = vmul.f32 %v9426_v16, %v8919_v3  ;;  %v9568_v52 = vadd.f32 %v8973_v37, %v267_v5  ;;  %6684 = vmatprep.subr.bf16.mxu0 %v15135_v40  ;;  %v786_v19 = vmul.f32 0.0, %v9332_v0  ;;  %v15197_v29 = vld [vmem:[#allocation43_spill] sm:$0xff]  ;;  %v15199_v37 = vld [vmem:[#allocation113_spill] sm:$0xff] }
  0xc7   :  { %15190 = vst [vmem:[#allocation138_spill] sm:$0xff] %v9553_v7  ;;  %1566 = vperm.xlu1 %8481, %v8745_v28   ;;  %v1123_v31 = vadd.f32 %v995_v26, %v9402_v25  ;;  %v628_v14 = vadd.f32 %v9354_v61, %v262_v45  ;;  %v9576_v20 = vadd.f32 %v15193_v13, %v268_v12  ;;  %v9587_v10 = vmul.f32 0.0, %v9366_v9  ;;  %v9599_v61 = vpop.permute.xlu0 %1269 }
  0xc8   :  { %15192 = vst [vmem:[#allocation140_spill] sm:$0xff] %v9568_v52  ;;  %v9579_v7 = vadd.f32 %v15195_v8, %v269_v18  ;;  %v9582_v39 = vadd.f32 %v15197_v29, %v270_v1  ;;  %v629_v5 = vadd.f32 %v15199_v37, %v262_v45  ;;  %v1413_v52 = vadd.f32 %v9406_v42, %v1120_v63  ;;  %v9597_v18 = vpop.permute.xlu1 %1546  ;;  %v15205_v29 = vld [vmem:[#allocation110_spill] sm:$0xff]  ;;  %v15206_v42 = vld [vmem:[#allocation9_spill] sm:$0xff]  ;;  %v15207_v45 = vld [vmem:[#allocation124_spill] sm:$0xff] }
  0xc9   :  { %15194 = vst [vmem:[#allocation41_spill] sm:$0xff] %v9576_v20  ;;  %15200 = vst [vmem:[#allocation113_spill] sm:$0xff] %v9587_v10  ;;  %v9591_v26 = vmul.f32 %v9366_v9, %v8919_v3  ;;  %v9595_v12 = vmul.f32 %v9366_v9, %v8885_v57  ;;  %6685 = vmatpush1.bf16.msra.mxu0 %v15135_v40  ;;  %v1121_v1 = vadd.f32 %v993_v15, %v9382_v11  ;;  %v15217_v10 = vld [vmem:[#allocation118_spill] sm:$0xff] }
  0xca   :  { %15196 = vst [vmem:[#allocation42_spill] sm:$0xff] %v9579_v7  ;;  %15198 = vst [vmem:[#allocation43_spill] sm:$0xff] %v9582_v39  ;;  %v1122_v63 = vadd.f32 %v994_v34, %v9394_v55  ;;  %v9605_v8 = vadd.f32 %v502_v35, %v15205_v29  ;;  %v9608_v25 = vadd.f32 %v503_v36, %v15205_v29  ;;  %6686 = vmatprep.subr.bf16.mxu0 %v15135_v40  ;;  %v15211_v36 = vld [vmem:[#allocation109_spill] sm:$0xff] }
  0xcb   :  { %15201 = vst [vmem:[#allocation141_spill] sm:$0xff] %v9591_v26  ;;  %15202 = vst [vmem:[#allocation142_spill] sm:$0xff] %v9595_v12  ;;  %1570 = vperm.xlu1 %8481, %v15206_v42   ;;  %v1416_v13 = vadd.f32 %v15207_v45, %v1123_v31  ;;  %v1024_v37 = vmul.f32 0.0, %v9506_v33  ;;  %v9614_v39 = vadd.f32 %v786_v19, %v628_v14  ;;  %v9632_v19 = vmul.f32 0.0, %v9486_v54  ;;  %v15214_v7 = vld [vmem:[#allocation117_spill] sm:$0xff]  ;;  %v9663_v12 = vpop.permute.xlu0 %1277  ;;  %v15216_v26 = vld [vmem:[#allocation3_spill] sm:$0xff] }
  0xcc   :  { %15203 = vst [vmem:[#allocation143_spill] sm:$0xff] %v9597_v18  ;;  %15204 = vst [vmem:[#allocation144_spill] sm:$0xff] %v9599_v61  ;;  %v9617_v11 = vadd.f32 %v9459_v6, %v628_v14  ;;  %v1025_v55 = vmul.f32 %v9506_v33, %v8919_v3  ;;  %v1026_v15 = vmul.f32 %v9506_v33, %v8885_v57  ;;  %v1040_v29 = vmul.f32 0.0, %v9555_v56  ;;  %v9651_v45 = vpop.permute.xlu1 %692 }
  0xcd   :  { %15208 = vst [vmem:[#allocation110_spill] sm:$0xff] %v9614_v39  ;;  %v1027_v34 = vmul.f32 %v9506_v33, %v8890_v58  ;;  %v9626_v35 = vadd.f32 %v9463_v17, %v629_v5  ;;  %v9629_v31 = vadd.f32 %v15211_v36, %v1413_v52  ;;  %v9636_v6 = vmul.f32 %v9486_v54, %v8919_v3 }
  0xce   :  { %15209 = vst [vmem:[#allocation9_spill] sm:$0xff] %v9617_v11  ;;  %v9640_v14 = vmul.f32 %v9486_v54, %v8885_v57  ;;  %6687 = vmatpush1.bf16.msra.mxu0 %v15135_v40  ;;  %v1041_v17 = vmul.f32 %v9555_v56, %v8919_v3  ;;  %v1042_v52 = vmul.f32 %v9555_v56, %v8885_v57  ;;  %v15212_v42 = vmov 7   ;;  %15213 = vst [vmem:[#allocation109_spill] sm:$0xff] %v9651_v45 }
  0xcf   :  { %15210 = vst [vmem:[#allocation124_spill] sm:$0xff] %v9626_v35  ;;  %v996_v5 = vmul.f32 %v9423_v32, %v8894_v59  ;;  %8482 = vset.pattern.permute.xlu1 %v15212_v42  ;;  %v1043_v36 = vmul.f32 %v9555_v56, %v8890_v58  ;;  %v9656_v20 = vadd.f32 %v1024_v37, %v15214_v7  ;;  %15215 = vst [vmem:[#allocation117_spill] sm:$0xff] %v9663_v12  ;;  %v15218_v35 = vld [vmem:[#allocation121_spill] sm:$0xff] }
  0xd0   :  { %v9660_v40 = vmul.f32 %v9486_v54, %v8890_v58  ;;  %v1414_v9 = vadd.f32 %v9430_v53, %v1121_v1  ;;  %2134 = vperm.xlu1 %8482, %v15216_v26   ;;  %v9667_v32 = vadd.f32 %v1025_v55, %v15214_v7  ;;  %v9670_v11 = vadd.f32 %v1026_v15, %v15217_v10  ;;  %v15222_v26 = vld [vmem:[#allocation123_spill] sm:$0xff] }
  0xd1   :  { %v9673_v39 = vadd.f32 %v1027_v34, %v15218_v35  ;;  %v1415_v37 = vadd.f32 %v9434_v49, %v1122_v63  ;;  %v9678_v54 = vmul.f32 %v9544_v50, %v8919_v3  ;;  %v9682_v53 = vmul.f32 %v9544_v50, %v8885_v57  ;;  %v15223_v35 = vld [vmem:[#allocation114_spill] sm:$0xff] }
  0xd2   :  { %v9686_v7 = vmul.f32 %v9544_v50, %v8890_v58  ;;  %v9689_v10 = vadd.f32 %v15222_v26, %v1416_v13  ;;  %v9692_v1 = vadd.f32 %v1040_v29, %v9443_v41  ;;  %v9695_v49 = vadd.f32 %v1041_v17, %v9443_v41  ;;  %v9712_v41 = vpop.permute.xlu1 %1257 }
  0xd3   :  { %15219 = vst [vmem:[#allocation3_spill] sm:$0xff] %v9678_v54  ;;  %15220 = vst [vmem:[#allocation118_spill] sm:$0xff] %v9682_v53  ;;  %v9698_v63 = vadd.f32 %v1042_v52, %v9445_v44  ;;  %v1124_v55 = vadd.f32 %v996_v5, %v9482_v27  ;;  %v1593_v15 = vmul.f32 %v9597_v18, %v8885_v57  ;;  %v15224_v26 = vmov 6   ;;  %v15226_v44 = vld [vmem:[#allocation24_spill] sm:$0xff] }
  0xd4   :  { %15221 = vst [vmem:[#allocation121_spill] sm:$0xff] %v9686_v7  ;;  %v9704_v34 = vadd.f32 %v1043_v36, %v9447_v51  ;;  %v1594_v13 = vmul.f32 %v9597_v18, %v8890_v58  ;;  %v9709_v29 = vadd.f32 %v15223_v35, %v1414_v9  ;;  %8483 = vset.pattern.permute.xlu1 %v15224_v26  ;;  %15225 = vst [vmem:[#allocation123_spill] sm:$0xff] %v9712_v41  ;;  %v15228_v52 = vld [vmem:[#allocation120_spill] sm:$0xff]  ;;  %v15231_v35 = vld [vmem:[#allocation18_spill] sm:$0xff] }
  0xd5   :  { %v9716_v17 = vmul.f32 %v9599_v61, %v15226_v44  ;;  %v1595_v27 = vmul.f32 %v9597_v18, %v8894_v59  ;;  %v9721_v51 = vadd.f32 %v15228_v52, %v1415_v37  ;;  %v1140_v5 = vadd.f32 %v9451_v47, %v9489_v22  ;;  %1858 = vperm.xlu1 %8483, %v8745_v28   ;;  %v15229_v9 = vld [vmem:[#allocation20_spill] sm:$0xff]  ;;  %v9740_v52 = vpop.permute.xlu0 %2386 }
  0xd6   :  { %v9728_v36 = vmul.f32 %v9599_v61, %v15229_v9  ;;  %v9732_v26 = vmul.f32 %v9599_v61, %v15231_v35  ;;  %v9736_v53 = vmul.f32 %v9599_v61, %v8850_v48  ;;  %v1596_v37 = vmul.f32 %v9597_v18, %v8898_v60  ;;  %15234 = vst [vmem:[#allocation147_spill] sm:$0xff] %v9740_v52 }
  0xd7   :  { %15227 = vst [vmem:[#allocation114_spill] sm:$0xff] %v9716_v17  ;;  %v771_v47 = vmul.f32 0.0, %v9651_v45  ;;  %v1417_v28 = vadd.f32 %v9467_v46, %v1124_v55  ;;  %v1433_v22 = vadd.f32 %v9493_v38, %v1140_v5  ;;  %v1597_v54 = vmul.f32 %v9597_v18, %v8907_v62  ;;  %v15238_v55 = vld [vmem:[#allocation66_spill] sm:$0xff] }
  0xd8   :  { %15230 = vst [vmem:[#allocation120_spill] sm:$0xff] %v9728_v36  ;;  %15232 = vst [vmem:[#allocation145_spill] sm:$0xff] %v9732_v26  ;;  %v9748_v7 = vadd.f32 %v1593_v15, %v9455_v24  ;;  %v772_v61 = vmul.f32 %v9651_v45, %v8919_v3  ;;  %v773_v50 = vmul.f32 %v9651_v45, %v8885_v57  ;;  %v9757_v26 = vpop.permute.xlu1 %1261  ;;  %v15239_v5 = vmov 8   ;;  %v15245_v36 = vld [vmem:[#allocation133_spill] sm:$0xff] }
  0xd9   :  { %15233 = vst [vmem:[#allocation146_spill] sm:$0xff] %v9736_v53  ;;  %v9755_v53 = vadd.f32 %v1594_v13, %v9476_v23  ;;  %15235 = vst [vmem:[#allocation148_spill] sm:$0xff] %v9757_v26  ;;  %v9761_v46 = vmul.f32 %v9663_v12, %v15226_v44  ;;  %v9765_v38 = vmul.f32 %v9663_v12, %v15229_v9  ;;  %8485 = vset.pattern.permute.xlu1 %v15239_v5  ;;  %v9801_v17 = vpop.permute.xlu0 %2394 }
  0xda   :  { %v9768_v24 = vadd.f32 %v1595_v27, %v9479_v43  ;;  %v588_v15 = vadd.f32 %v9515_v21, %v15238_v55  ;;  %v9775_v23 = vmul.f32 %v9663_v12, %v15231_v35  ;;  %v9779_v13 = vmul.f32 %v9663_v12, %v8850_v48  ;;  %v8512_v21 = vld [vmem:[%s14486_s1 + $0x20] sm:$0xff]  ;;  %v15243_v55 = vld [vmem:[#allocation129_spill] sm:$0xff]  ;;  %v15244_v12 = vld [vmem:[#allocation132_spill] sm:$0xff] }
  0xdb   :  { %15236 = vst [vmem:[#allocation149_spill] sm:$0xff] %v9761_v46  ;;  %15237 = vst [vmem:[#allocation150_spill] sm:$0xff] %v9765_v38  ;;  %v9782_v18 = vadd.f32 %v1596_v37, %v9473_v30  ;;  %v15242_v38 = vld [vmem:[#allocation75_spill] sm:$0xff]  ;;  %2402 = vperm.xlu1 %8485, %v8512_v21   ;;  %v891_v27 = vadd.f32 %v771_v47, %v9605_v8  ;;  %v9791_v46 = vadd.f32 %v15243_v55, %v1417_v28  ;;  %v15249_v28 = vld [vmem:[#allocation30_spill] sm:$0xff] }
  0xdc   :  { %15240 = vst [vmem:[#allocation66_spill] sm:$0xff] %v9775_v23  ;;  %15241 = vst [vmem:[#allocation151_spill] sm:$0xff] %v9779_v13  ;;  %v602_v43 = vadd.f32 %v9519_v4, %v15242_v38  ;;  %v9793_v23 = vadd.f32 %v1597_v54, %v1433_v22  ;;  %v864_v13 = vadd.f32 %v15244_v12, %v588_v15 }
  0xdd   :  { %v892_v30 = vadd.f32 %v772_v61, %v9605_v8  ;;  %v893_v37 = vadd.f32 %v773_v50, %v9608_v25  ;;  %v1028_v38 = vmul.f32 %v9506_v33, %v8894_v59  ;;  %15246 = vst [vmem:[#allocation75_spill] sm:$0xff] %v9801_v17  ;;  %v9805_v47 = vmul.f32 %v9740_v52, %v8898_v60  ;;  %v15247_v50 = vld [vmem:[#allocation87_spill] sm:$0xff]  ;;  %v9817_v8 = vpop.permute.xlu1 %1838 }
  0xde   :  { %v879_v4 = vadd.f32 %v15245_v36, %v602_v43  ;;  %v9809_v54 = vmul.f32 %v9740_v52, %v8907_v62  ;;  %v1044_v12 = vmul.f32 %v9555_v56, %v8894_v59  ;;  %v9815_v61 = vmul.f32 %v15247_v50, %v8907_v62  ;;  %15248 = vst [vmem:[#allocation129_spill] sm:$0xff] %v9817_v8  ;;  %v8513_v43 = vld [vmem:[%s14486_s1 + $0x28] sm:$0xff] }
  0xdf   :  { %v1317_v25 = vmul.f32 %v9712_v41, %v15226_v44  ;;  %v1320_v36 = vmul.f32 %v9712_v41, %v15229_v9  ;;  %v9825_v22 = vmul.f32 %v9740_v52, %v15249_v28  ;;  %v9829_v15 = vmul.f32 %v9740_v52, %v8915_v2  ;;  %2406 = vperm.xlu1 %8485, %v8513_v43  }
  0xe0   :  { %v9835_v21 = vadd.f32 %v9632_v19, %v891_v27  ;;  %v9838_v55 = vadd.f32 %v9636_v6, %v891_v27  ;;  %v1318_v50 = vmul.f32 %v9712_v41, %v15231_v35  ;;  %v1319_v56 = vmul.f32 %v9712_v41, %v8850_v48  ;;  %v15258_v19 = vld [vmem:[#allocation21_spill] sm:$0xff] }
  0xe1   :  { %15250 = vst [vmem:[#allocation132_spill] sm:$0xff] %v9825_v22  ;;  %15251 = vst [vmem:[#allocation133_spill] sm:$0xff] %v9829_v15  ;;  %v9845_v33 = vadd.f32 %v9640_v14, %v892_v30  ;;  %v9848_v15 = vadd.f32 %v9660_v40, %v893_v37  ;;  %v15256_v22 = vld [vmem:[#allocation29_spill] sm:$0xff]  ;;  %v1321_v6 = vmul.f32 %v9712_v41, %v15258_v19 }
  0xe2   :  { %15252 = vst [vmem:[#allocation30_spill] sm:$0xff] %v9835_v21  ;;  %15253 = vst [vmem:[#allocation152_spill] sm:$0xff] %v9838_v55  ;;  %v9852_v43 = vmul.f32 %v9740_v52, %v15256_v22  ;;  %v2652_v27 = vld [vmem:[%s14488_s2 + $0x18] sm:$0xff]  ;;  %v1333_v55 = vmul.f32 %v9757_v26, %v15226_v44  ;;  %v1336_v14 = vmul.f32 %v9757_v26, %v15229_v9  ;;  %v15260_v21 = vmov 0   ;;  %v9876_v44 = vpop.permute.xlu1 %138  ;;  %v15275_v9 = vld [vmem:[#allocation127_spill] sm:$0xff] }
  0xe3   :  { %15254 = vst [vmem:[#allocation153_spill] sm:$0xff] %v9845_v33  ;;  %15255 = vst [vmem:[#allocation154_spill] sm:$0xff] %v9848_v15  ;;  %v1334_v40 = vmul.f32 %v9757_v26, %v15231_v35  ;;  %v1335_v30 = vmul.f32 %v9757_v26, %v8850_v48  ;;  %v9868_v37 = vadd.f32 %v1317_v25, %v9656_v20  ;;  %v9873_v15 = vpop.permute.xlu0 %1834  ;;  %8486 = vset.pattern.permute.xlu1 %v15260_v21 }
  0xe4   :  { %15257 = vst [vmem:[#allocation155_spill] sm:$0xff] %v9852_v43  ;;  %v9871_v41 = vadd.f32 %v1320_v36, %v9673_v39  ;;  %v1156_v52 = vadd.f32 %v1028_v38, %v864_v13  ;;  %v1172_v33 = vadd.f32 %v1044_v12, %v879_v4  ;;  %15259 = vst [vmem:[#allocation21_spill] sm:$0xff] %v9873_v15  ;;  %2674 = vperm.xlu1 %8486, %v2652_v27  }
  0xe5   :  { %15261 = vst [vmem:[#allocation156_spill] sm:$0xff] %v9876_v44  ;;  %v9880_v35 = vmul.f32 %v9801_v17, %v8898_v60  ;;  %v9883_v48 = vadd.f32 %v1318_v50, %v9667_v32  ;;  %v9887_v20 = vmul.f32 %v9801_v17, %v8907_v62  ;;  %v9890_v39 = vadd.f32 %v1319_v56, %v9670_v11 }
  0xe6   :  { %v9894_v13 = vmul.f32 %v9801_v17, %v15249_v28  ;;  %v9898_v4 = vmul.f32 %v9801_v17, %v8915_v2  ;;  %v1337_v32 = vmul.f32 %v9757_v26, %v15258_v19  ;;  %v9902_v38 = vadd.f32 %v1321_v6, %v1156_v52 }
  0xe7   :  { %15262 = vst [vmem:[#allocation157_spill] sm:$0xff] %v9880_v35  ;;  %15263 = vst [vmem:[#allocation158_spill] sm:$0xff] %v9887_v20  ;;  %v1461_v12 = vadd.f32 %v1333_v55, %v9692_v1  ;;  %v1464_v50 = vadd.f32 %v1336_v14, %v9704_v34  ;;  %v1462_v56 = vadd.f32 %v1334_v40, %v9695_v49  ;;  %v9925_v55 = vpop.permute.xlu1 %435  ;;  %v9927_v6 = vpop.permute.xlu0 %1862  ;;  %v15271_v20 = vld [vmem:[#allocation119_spill] sm:$0xff]  ;;  %v15273_v35 = vld [vmem:[#allocation122_spill] sm:$0xff] }
  0xe8   :  { %15264 = vst [vmem:[#allocation159_spill] sm:$0xff] %v9894_v13  ;;  %15265 = vst [vmem:[#allocation160_spill] sm:$0xff] %v9898_v4  ;;  %v1463_v11 = vadd.f32 %v1335_v30, %v9698_v63  ;;  %v1865_v25 = vmul.f32 %v9873_v15, %v8890_v58  ;;  %v1866_v36 = vmul.f32 %v9873_v15, %v8894_v59  ;;  %8487 = vset.pattern.permute.xlu1 %v15212_v42  ;;  %v8514_v42 = vld [vmem:[%s14486_s1 + $0x30] sm:$0xff] }
  0xe9   :  { %v1867_v27 = vmul.f32 %v9873_v15, %v8898_v60  ;;  %v1868_v52 = vmul.f32 %v9873_v15, %v8907_v62  ;;  %v1880_v1 = vmul.f32 %v9817_v8, %v8890_v58  ;;  %v1881_v49 = vmul.f32 %v9817_v8, %v8894_v59  ;;  %15266 = vst [vmem:[#allocation161_spill] sm:$0xff] %v9925_v55  ;;  %v15269_v4 = vld [vmem:[#allocation112_spill] sm:$0xff] }
  0xea   :  { %v1882_v63 = vmul.f32 %v9817_v8, %v8898_v60  ;;  %v1883_v34 = vmul.f32 %v9817_v8, %v8907_v62  ;;  %15267 = vst [vmem:[#allocation162_spill] sm:$0xff] %v9927_v6  ;;  %v1869_v14 = vmul.f32 %v9873_v15, %v15249_v28  ;;  %v1884_v40 = vmul.f32 %v9817_v8, %v15249_v28 }
  0xeb   :  { %v9935_v30 = vmul.f32 %v9801_v17, %v15256_v22  ;;  %v504_v26 = vmul.f32 %v9426_v16, %v8885_v57  ;;  %2138 = vperm.xlu1 %8487, %v8514_v42   ;;  %v9943_v13 = vadd.f32 %v15269_v4, %v1461_v12  ;;  %v9946_v15 = vadd.f32 %v15271_v20, %v1462_v56 }
  0xec   :  { %v9949_v8 = vadd.f32 %v15273_v35, %v1463_v11  ;;  %v9952_v17 = vadd.f32 %v15275_v9, %v1464_v50  ;;  %v9958_v16 = vadd.f32 %v1866_v36, %v9709_v29  ;;  %v9961_v43 = vadd.f32 %v1867_v27, %v9721_v51  ;;  %v9978_v29 = vpop.permute.xlu1 %439 }
  0xed   :  { %15268 = vst [vmem:[#allocation163_spill] sm:$0xff] %v9935_v30  ;;  %15270 = vst [vmem:[#allocation112_spill] sm:$0xff] %v9943_v13  ;;  %v9955_v30 = vadd.f32 %v1865_v25, %v9629_v31  ;;  %v9964_v4 = vadd.f32 %v1868_v52, %v9689_v10  ;;  %v9967_v20 = vadd.f32 %v1880_v1, %v9748_v7  ;;  %v15278_v7 = vld [vmem:[#allocation85_spill] sm:$0xff]  ;;  %v275_v36 = vmul.f32 0.0, %v9876_v44 }
  0xee   :  { %15272 = vst [vmem:[#allocation119_spill] sm:$0xff] %v9946_v15  ;;  %15274 = vst [vmem:[#allocation122_spill] sm:$0xff] %v9949_v8  ;;  %v9970_v35 = vadd.f32 %v1881_v49, %v9755_v53  ;;  %v9973_v9 = vadd.f32 %v1882_v63, %v9768_v24  ;;  %v9976_v31 = vadd.f32 %v1883_v34, %v9782_v18 }
  0xef   :  { %15276 = vst [vmem:[#allocation127_spill] sm:$0xff] %v9952_v17  ;;  %15277 = vst [vmem:[#allocation164_spill] sm:$0xff] %v9978_v29  ;;  %v9981_v51 = vadd.f32 %v1869_v14, %v9791_v46  ;;  %v9984_v10 = vadd.f32 %v1884_v40, %v9793_v23  ;;  %v1465_v12 = vadd.f32 %v1337_v32, %v1172_v33  ;;  %8489 = vset.pattern.permute.xlu1 %v15239_v5  ;;  %v10010_v32 = vpop.permute.xlu0 %2122 }
  0xf0   :  { %v9987_v50 = vadd.f32 %v504_v26, %v15278_v7  ;;  %v276_v53 = vmul.f32 %v8919_v3, %v9876_v44  ;;  %v277_v24 = vmul.f32 %v8885_v57, %v9876_v44  ;;  %v9996_v18 = vmul.f32 %v9651_v45, %v8890_v58  ;;  %2410 = vperm.xlu1 %8489, %v8514_v42   ;;  %v10037_v14 = vpop.permute.xlu1 %977 }
  0xf1   :  { %v10000_v46 = vmul.f32 %v9332_v0, %v8890_v58  ;;  %v278_v33 = vmul.f32 %v8890_v58, %v9876_v44  ;;  %v279_v26 = vmul.f32 %v8894_v59, %v9876_v44  ;;  %v280_v23 = vmul.f32 %v8898_v60, %v9876_v44  ;;  %15279 = vst [vmem:[#allocation85_spill] sm:$0xff] %v10010_v32 }
  0xf2   :  { %v281_v5 = vmul.f32 %v8907_v62, %v9876_v44  ;;  %v282_v56 = vmul.f32 %v15249_v28, %v9876_v44  ;;  %v283_v11 = vmul.f32 %v8915_v2, %v9876_v44  ;;  %v10018_v25 = vmul.f32 %v10010_v32, %v8894_v59  ;;  %15282 = vst [vmem:[#allocation167_spill] sm:$0xff] %v10037_v14 }
  0xf3   :  { %v532_v27 = vmul.f32 %v9925_v55, %v8885_v57  ;;  %v533_v42 = vmul.f32 %v9925_v55, %v8890_v58  ;;  %v534_v52 = vmul.f32 %v9925_v55, %v8894_v59  ;;  %v10029_v1 = vmul.f32 %v9927_v6, %v8890_v58 }
  0xf4   :  { %15280 = vst [vmem:[#allocation165_spill] sm:$0xff] %v10018_v25  ;;  %v535_v49 = vmul.f32 %v9925_v55, %v8898_v60  ;;  %v536_v63 = vmul.f32 %v9925_v55, %v8907_v62  ;;  %v537_v34 = vmul.f32 %v9925_v55, %v15249_v28  ;;  %v10041_v40 = vmul.f32 %v10010_v32, %v8898_v60 }
  0xf5   :  { %15281 = vst [vmem:[#allocation166_spill] sm:$0xff] %v10029_v1  ;;  %v538_v7 = vmul.f32 %v9925_v55, %v8915_v2  ;;  %v539_v44 = vmul.f32 %v9925_v55, %v15256_v22  ;;  %v8515_v1 = vld [vmem:[%s14486_s1 + $0x38] sm:$0xff]  ;;  %v10052_v0 = vmul.f32 %v9927_v6, %v8894_v59  ;;  %v10056_v45 = vmul.f32 %v10010_v32, %v8907_v62 }
  0xf6   :  { %15283 = vst [vmem:[#allocation168_spill] sm:$0xff] %v10041_v40  ;;  %2414 = vperm.xlu1 %8489, %v8515_v1   ;;  %v10060_v17 = vmul.f32 %v9927_v6, %v8898_v60  ;;  %v10064_v8 = vmul.f32 %v10010_v32, %v15249_v28  ;;  %v10068_v15 = vmul.f32 %v9927_v6, %v8907_v62  ;;  %v15309_v6 = vld [vmem:[#allocation99_spill] sm:$0xff] }
  0xf7   :  { %15284 = vst [vmem:[#allocation169_spill] sm:$0xff] %v10052_v0  ;;  %15285 = vst [vmem:[#allocation170_spill] sm:$0xff] %v10056_v45  ;;  %v10071_v1 = vadd.f32 %v9815_v61, %v1465_v12  ;;  %v10073_v0 = vadd.f32 %v532_v27, %v276_v53  ;;  %v10075_v13 = vadd.f32 %v533_v42, %v277_v24  ;;  %v10101_v27 = vpop.permute.xlu1 %1550 }
  0xf8   :  { %15286 = vst [vmem:[#allocation171_spill] sm:$0xff] %v10060_v17  ;;  %15287 = vst [vmem:[#allocation172_spill] sm:$0xff] %v10064_v8  ;;  %v10077_v45 = vadd.f32 %v534_v52, %v278_v33  ;;  %v2654_v17 = vld [vmem:[%s14488_s2 + $0x28] sm:$0xff]  ;;  %v10084_v8 = vmul.f32 %v10010_v32, %v8915_v2  ;;  %v10086_v40 = vadd.f32 %v535_v49, %v279_v26  ;;  %v530_v26 = vmul.f32 0.0, %v9925_v55  ;;  %v10120_v49 = vpop.permute.xlu0 %2130 }
  0xf9   :  { %15288 = vst [vmem:[#allocation173_spill] sm:$0xff] %v10068_v15  ;;  %15289 = vst [vmem:[#allocation174_spill] sm:$0xff] %v10071_v1  ;;  %v10088_v15 = vadd.f32 %v536_v63, %v280_v23  ;;  %v10090_v61 = vadd.f32 %v537_v34, %v281_v5  ;;  %v546_v12 = vmul.f32 %v9978_v29, %v8885_v57  ;;  %v1072_v5 = vmul.f32 0.0, %v10037_v14 }
  0xfa   :  { %15290 = vst [vmem:[#allocation175_spill] sm:$0xff] %v10075_v13  ;;  %15291 = vst [vmem:[#allocation176_spill] sm:$0xff] %v10077_v45  ;;  %v10094_v53 = vadd.f32 %v538_v7, %v282_v56  ;;  %v10096_v24 = vadd.f32 %v539_v44, %v283_v11  ;;  %v547_v33 = vmul.f32 %v9978_v29, %v8890_v58  ;;  %8490 = vset.pattern.permute.xlu1 %v15260_v21  ;;  %v15300_v21 = vld [vmem:[#allocation95_spill] sm:$0xff]  ;;  %v15304_v13 = vld [vmem:[#allocation97_spill] sm:$0xff] }
  0xfb   :  { %15292 = vst [vmem:[#allocation177_spill] sm:$0xff] %v10084_v8  ;;  %15293 = vst [vmem:[#allocation178_spill] sm:$0xff] %v10086_v40  ;;  %v548_v23 = vmul.f32 %v9978_v29, %v8894_v59  ;;  %2684 = vperm.xlu1 %8490, %v2654_v17   ;;  %v1075_v56 = vmul.f32 %v10037_v14, %v8890_v58  ;;  %v531_v44 = vmul.f32 %v9925_v55, %v8919_v3  ;;  %v2655_v17 = vld [vmem:[%s14488_s2 + $0x30] sm:$0xff]  ;;  %v10142_v1 = vpop.permute.xlu1 %2114 }
  0xfc   :  { %15294 = vst [vmem:[#allocation179_spill] sm:$0xff] %v10088_v15  ;;  %15295 = vst [vmem:[#allocation180_spill] sm:$0xff] %v10090_v61  ;;  %v549_v11 = vmul.f32 %v9978_v29, %v8898_v60  ;;  %v550_v42 = vmul.f32 %v9978_v29, %v8907_v62  ;;  %v551_v52 = vmul.f32 %v9978_v29, %v15249_v28  ;;  %v544_v15 = vmul.f32 0.0, %v9978_v29 }
  0xfd   :  { %15296 = vst [vmem:[#allocation181_spill] sm:$0xff] %v10094_v53  ;;  %15297 = vst [vmem:[#allocation182_spill] sm:$0xff] %v10096_v24  ;;  %v1073_v63 = vmul.f32 %v10037_v14, %v8919_v3  ;;  %v552_v34 = vmul.f32 %v9978_v29, %v8915_v2  ;;  %v553_v7 = vmul.f32 %v9978_v29, %v15256_v22  ;;  %v15302_v53 = vld [vmem:[#allocation96_spill] sm:$0xff] }
  0xfe   :  { %15298 = vst [vmem:[#allocation183_spill] sm:$0xff] %v10101_v27  ;;  %15299 = vst [vmem:[#allocation184_spill] sm:$0xff] %v10120_v49  ;;  %v10129_v55 = vadd.f32 %v546_v12, %v15300_v21  ;;  %v1074_v24 = vmul.f32 %v10037_v14, %v8885_v57  ;;  %v10134_v61 = vadd.f32 %v547_v33, %v15302_v53  ;;  %v15307_v21 = vld [vmem:[#allocation110_spill] sm:$0xff]  ;;  %v15308_v22 = vld [vmem:[#allocation124_spill] sm:$0xff] }
  0xff   :  { %v545_v40 = vmul.f32 %v9978_v29, %v8919_v3  ;;  %v642_v45 = vadd.f32 %v530_v26, %v275_v36  ;;  %v10140_v32 = vadd.f32 %v548_v23, %v15304_v13  ;;  %2689 = vperm.xlu1 %8490, %v2655_v17   ;;  %15306 = vst [vmem:[#allocation185_spill] sm:$0xff] %v10142_v1  ;;  %v15311_v33 = vld [vmem:[#allocation100_spill] sm:$0xff]  ;;  %v2973_v13 = vld [vmem:[%s14489_s4] sm:$0xff]  ;;  %v15323_v17 = vld [vmem:[#allocation113_spill] sm:$0xff] }
 0x100   :  { %15301 = vst [vmem:[#allocation95_spill] sm:$0xff] %v10129_v55  ;;  %15303 = vst [vmem:[#allocation96_spill] sm:$0xff] %v10134_v61  ;;  %v1200_v12 = vadd.f32 %v1072_v5, %v15307_v21  ;;  %v1203_v8 = vadd.f32 %v1075_v56, %v15308_v22  ;;  %v643_v25 = vadd.f32 %v531_v44, %v275_v36  ;;  %v15313_v55 = vld [vmem:[#allocation101_spill] sm:$0xff]  ;;  %v15315_v23 = vld [vmem:[#allocation102_spill] sm:$0xff] }
 0x101   :  { %15305 = vst [vmem:[#allocation97_spill] sm:$0xff] %v10140_v32  ;;  %v10147_v53 = vadd.f32 %v549_v11, %v15309_v6  ;;  %v10150_v61 = vadd.f32 %v550_v42, %v15311_v33  ;;  %v10153_v29 = vadd.f32 %v551_v52, %v15313_v55  ;;  %v1201_v26 = vadd.f32 %v1073_v63, %v15307_v21  ;;  %v15317_v22 = vld [vmem:[#allocation104_spill] sm:$0xff]  ;;  %v15319_v6 = vld [vmem:[#allocation9_spill] sm:$0xff]  ;;  %v10170_v55 = vpop.permute.xlu0 %2142  ;;  %v15322_v11 = vld [vmem:[#allocation131_spill] sm:$0xff] }
 0x102   :  { %v10160_v5 = vadd.f32 %v552_v34, %v15315_v23  ;;  %v10163_v36 = vadd.f32 %v553_v7, %v15317_v22  ;;  %v1202_v56 = vadd.f32 %v1074_v24, %v15319_v6  ;;  %v10168_v44 = vmul.f32 %v10120_v49, %v8894_v59  ;;  %15321 = vst [vmem:[#allocation104_spill] sm:$0xff] %v10170_v55  ;;  %v15324_v34 = vld [vmem:[#allocation141_spill] sm:$0xff]  ;;  %v10184_v24 = vpop.permute.xlu1 %2118  ;;  %v15326_v21 = vld [vmem:[#allocation114_spill] sm:$0xff]  ;;  %v15328_v23 = vld [vmem:[#allocation120_spill] sm:$0xff] }
 0x103   :  { %15310 = vst [vmem:[#allocation110_spill] sm:$0xff] %v10147_v53  ;;  %15312 = vst [vmem:[#allocation124_spill] sm:$0xff] %v10150_v61  ;;  %v10173_v42 = vadd.f32 %v544_v15, %v15322_v11  ;;  %v10176_v52 = vadd.f32 %v545_v40, %v15322_v11  ;;  %v10179_v63 = vadd.f32 %v15323_v17, %v642_v45  ;;  %2979 = vperm.xlu1 %8490, %v2973_v13   ;;  %v15330_v15 = vld [vmem:[#allocation142_spill] sm:$0xff]  ;;  %v15332_v11 = vld [vmem:[#allocation145_spill] sm:$0xff] }
 0x104   :  { %15314 = vst [vmem:[#allocation99_spill] sm:$0xff] %v10153_v29  ;;  %15316 = vst [vmem:[#allocation100_spill] sm:$0xff] %v10160_v5  ;;  %v10182_v7 = vadd.f32 %v15324_v34, %v642_v45  ;;  %v10187_v33 = vadd.f32 %v15326_v21, %v1200_v12  ;;  %v10190_v22 = vadd.f32 %v15328_v23, %v1203_v8  ;;  %v2975_v45 = vld [vmem:[%s14489_s4 + $0x10] sm:$0xff]  ;;  %v15336_v21 = vld [vmem:[#allocation146_spill] sm:$0xff] }
 0x105   :  { %15318 = vst [vmem:[#allocation101_spill] sm:$0xff] %v10163_v36  ;;  %15320 = vst [vmem:[#allocation102_spill] sm:$0xff] %v10168_v44  ;;  %v10193_v6 = vadd.f32 %v15330_v15, %v643_v25  ;;  %v10197_v40 = vmul.f32 %v10170_v55, %v8894_v59  ;;  %v1609_v13 = vmul.f32 %v10101_v27, %v8885_v57  ;;  %v15340_v29 = vld [vmem:[#allocation128_spill] sm:$0xff] }
 0x106   :  { %15325 = vst [vmem:[#allocation9_spill] sm:$0xff] %v10184_v24  ;;  %15327 = vst [vmem:[#allocation131_spill] sm:$0xff] %v10187_v33  ;;  %v1610_v12 = vmul.f32 %v10101_v27, %v8890_v58  ;;  %v10207_v8 = vadd.f32 %v15332_v11, %v1201_v26  ;;  %v10211_v25 = vmul.f32 %v10120_v49, %v8898_v60  ;;  %v10244_v32 = vpop.permute.xlu1 %704 }
 0x107   :  { %15329 = vst [vmem:[#allocation113_spill] sm:$0xff] %v10190_v22  ;;  %15331 = vst [vmem:[#allocation141_spill] sm:$0xff] %v10197_v40  ;;  %v10215_v17 = vmul.f32 %v10170_v55, %v8898_v60  ;;  %v1611_v34 = vmul.f32 %v10101_v27, %v8894_v59  ;;  %v10220_v23 = vadd.f32 %v15336_v21, %v1202_v56  ;;  %2989 = vperm.xlu1 %8490, %v2975_v45  }
 0x108   :  { %15333 = vst [vmem:[#allocation114_spill] sm:$0xff] %v10207_v8  ;;  %15334 = vst [vmem:[#allocation120_spill] sm:$0xff] %v10211_v25  ;;  %v10224_v15 = vmul.f32 %v10120_v49, %v8907_v62  ;;  %v10228_v26 = vmul.f32 %v10170_v55, %v8907_v62  ;;  %v1612_v11 = vmul.f32 %v10101_v27, %v8898_v60 }
 0x109   :  { %15335 = vst [vmem:[#allocation142_spill] sm:$0xff] %v10215_v17  ;;  %15337 = vst [vmem:[#allocation145_spill] sm:$0xff] %v10220_v23  ;;  %v1613_v36 = vmul.f32 %v10101_v27, %v8907_v62  ;;  %v894_v5 = vadd.f32 %v9996_v18, %v9987_v50  ;;  %v2145_v56 = vmul.f32 %v10142_v1, %v8894_v59  ;;  %v2954_v50 = vld [vmem:[%s14492_s3 + $0x8] sm:$0xff]  ;;  %v15379_v23 = vld [vmem:[#allocation149_spill] sm:$0xff] }
 0x10a   :  { %15338 = vst [vmem:[#allocation146_spill] sm:$0xff] %v10224_v15  ;;  %15339 = vst [vmem:[#allocation186_spill] sm:$0xff] %v10228_v26  ;;  %v2146_v21 = vmul.f32 %v10142_v1, %v8898_v60  ;;  %v1060_v61 = vmul.f32 %v15340_v29, %v8894_v59  ;;  %v1076_v53 = vmul.f32 %v10037_v14, %v8894_v59  ;;  %v5211_v26 = vld [vmem:[#allocation2] sm:$0x1]  ;;  %v15342_v14 = vld [vmem:[#allocation135_spill] sm:$0xff]  ;;  %3074 = vmatprep.mubr.f32.mxu0 %v2954_v50 }
 0x10b   :  { %15341 = vst [vmem:[#allocation187_spill] sm:$0xff] %v10244_v32  ;;  %v10247_v17 = vadd.f32 %v1609_v13, %v9868_v37  ;;  %v2147_v18 = vmul.f32 %v10142_v1, %v8907_v62  ;;  %v2148_v45 = vmul.f32 %v10142_v1, %v15249_v28  ;;  %v2149_v40 = vmul.f32 %v10142_v1, %v8915_v2  ;;  %v15344_v13 = vld [vmem:[#allocation134_spill] sm:$0xff] }
 0x10c   :  { %v1104_v29 = vmul.f32 0.0, %v15342_v14  ;;  %v10260_v15 = vadd.f32 %v1610_v12, %v9883_v48  ;;  %3341 = vmatprep.mubr.f32.mxu1 %v2954_v50  ;;  %v10264_v37 = vmul.f32 %v10120_v49, %v15249_v28  ;;  %v909_v25 = vadd.f32 %v10000_v46, %v15344_v13  ;;  %5214 = vperm.xlu1 %8490, %v5211_v26   ;;  %v10290_v13 = vpop.permute.xlu1 %1265 }
 0x10d   :  { %v10269_v44 = vadd.f32 %v1611_v34, %v9890_v39  ;;  %v10272_v27 = vadd.f32 %v1612_v11, %v9871_v41  ;;  %v10276_v22 = vmul.f32 %v10170_v55, %v15249_v28  ;;  %v10279_v48 = vadd.f32 %v1613_v36, %v9902_v38  ;;  %15346 = vst [vmem:[#allocation189_spill] sm:$0xff] %v10290_v13 }
 0x10e   :  { %15343 = vst [vmem:[#allocation188_spill] sm:$0xff] %v10264_v37  ;;  %v2257_v12 = vadd.f32 %v2145_v56, %v9955_v30  ;;  %v2258_v50 = vadd.f32 %v2146_v21, %v9958_v16  ;;  %v10283_v37 = vadd.f32 %v1060_v61, %v894_v5  ;;  %v1204_v46 = vadd.f32 %v1076_v53, %v909_v25  ;;  %v15347_v61 = vld [vmem:[#allocation144_spill] sm:$0xff] }
 0x10f   :  { %15345 = vst [vmem:[#allocation134_spill] sm:$0xff] %v10276_v22  ;;  %v2159_v39 = vmul.f32 %v10184_v24, %v8894_v59  ;;  %v2259_v41 = vadd.f32 %v2147_v18, %v9961_v43  ;;  %v2260_v34 = vadd.f32 %v2148_v45, %v9964_v4  ;;  %v2261_v11 = vadd.f32 %v2149_v40, %v9981_v51  ;;  %v15349_v5 = vld [vmem:[#allocation116_spill] sm:$0xff] }
 0x110   :  { %v816_v38 = vmul.f32 0.0, %v10244_v32  ;;  %v818_v30 = vmul.f32 %v10244_v32, %v8885_v57  ;;  %v2160_v16 = vmul.f32 %v10184_v24, %v8898_v60  ;;  %v1369_v53 = vmul.f32 %v15347_v61, %v15258_v19  ;;  %v15353_v45 = vld [vmem:[#allocation132_spill] sm:$0xff] }
 0x111   :  { %v2161_v43 = vmul.f32 %v10184_v24, %v8907_v62  ;;  %v2162_v4 = vmul.f32 %v10184_v24, %v15249_v28  ;;  %v10305_v51 = vmul.f32 %v10120_v49, %v8915_v2  ;;  %v804_v36 = vmul.f32 %v15349_v5, %v8890_v58  ;;  %v15355_v5 = vld [vmem:[#allocation133_spill] sm:$0xff] }
 0x112   :  { %v10310_v40 = vadd.f32 %v9805_v47, %v2257_v12  ;;  %v817_v25 = vmul.f32 %v10244_v32, %v8919_v3  ;;  %v10315_v26 = vadd.f32 %v9809_v54, %v2258_v50  ;;  %v2163_v56 = vmul.f32 %v10184_v24, %v8915_v2  ;;  %v15357_v12 = vld [vmem:[#allocation103_spill] sm:$0xff] }
 0x113   :  { %15348 = vst [vmem:[#allocation190_spill] sm:$0xff] %v10305_v51  ;;  %v15352_v21 = vmov 1   ;;  %v10321_v18 = vadd.f32 %v2159_v39, %v9967_v20  ;;  %v10324_v22 = vadd.f32 %v15353_v45, %v2259_v41  ;;  %v10327_v47 = vadd.f32 %v15355_v5, %v2260_v34  ;;  %v10334_v54 = vld [vmem:[%s14491_s7] sm:$0xff]  ;;  %v10344_v34 = vpop.permute.xlu1 %1842 }
 0x114   :  { %15350 = vst [vmem:[#allocation191_spill] sm:$0xff] %v10310_v40  ;;  %15351 = vst [vmem:[#allocation192_spill] sm:$0xff] %v10315_v26  ;;  %8491 = vset.pattern.permute.xlu1 %v15352_v21  ;;  %v715_v49 = vmul.f32 %v15357_v12, %v8894_v59  ;;  %v936_v50 = vadd.f32 %v816_v38, %v10173_v42  ;;  %v938_v20 = vadd.f32 %v818_v30, %v10176_v52  ;;  %v15359_v45 = vld [vmem:[#allocation155_spill] sm:$0xff] }
 0x115   :  { %15354 = vst [vmem:[#allocation132_spill] sm:$0xff] %v10324_v22  ;;  %15356 = vst [vmem:[#allocation133_spill] sm:$0xff] %v10327_v47  ;;  %6404 = vperm.xlu1 %8491, %v10334_v54   ;;  %v10340_v39 = vadd.f32 %v2160_v16, %v9970_v35  ;;  %v819_v41 = vmul.f32 %v10244_v32, %v8890_v58  ;;  %v10347_v5 = vadd.f32 %v2161_v43, %v9973_v9  ;;  %v15363_v16 = vld [vmem:[#allocation117_spill] sm:$0xff]  ;;  %v15377_v51 = vld [vmem:[#allocation19_spill] sm:$0xff] }
 0x116   :  { %15358 = vst [vmem:[#allocation193_spill] sm:$0xff] %v10344_v34  ;;  %v10350_v21 = vadd.f32 %v2162_v4, %v9976_v31  ;;  %v10353_v12 = vadd.f32 %v15359_v45, %v2261_v11  ;;  %v10355_v38 = vadd.f32 %v1369_v53, %v1204_v46  ;;  %v937_v52 = vadd.f32 %v817_v25, %v10173_v42  ;;  %v15364_v43 = vld [vmem:[#allocation33_spill] sm:$0xff]  ;;  %v15365_v4 = vld [vmem:[#allocation48_spill] sm:$0xff]  ;;  %v15378_v22 = vld [vmem:[#allocation58_spill] sm:$0xff] }
 0x117   :  { %v10359_v35 = vadd.f32 %v2163_v56, %v9984_v10  ;;  %v10362_v30 = vadd.f32 %v804_v36, %v10073_v0  ;;  %v1108_v9 = vmul.f32 %v15342_v14, %v8894_v59  ;;  %v1401_v31 = vmul.f32 %v15363_v16, %v15258_v19  ;;  %v15366_v53 = vld [vmem:[#allocation125_spill] sm:$0xff]  ;;  %v15369_v36 = vld [vmem:[#allocation95_spill] sm:$0xff]  ;;  %v15370_v14 = vld [vmem:[#allocation78_spill] sm:$0xff]  ;;  %v10379_v16 = vpop.permute.xlu1 %1846 }
 0x118   :  { %15360 = vst [vmem:[#allocation155_spill] sm:$0xff] %v10353_v12  ;;  %15361 = vst [vmem:[#allocation194_spill] sm:$0xff] %v10355_v38  ;;  %v730_v11 = vmul.f32 %v15364_v43, %v8894_v59  ;;  %v835_v46 = vadd.f32 %v715_v49, %v15365_v4  ;;  %v997_v42 = vmul.f32 %v15366_v53, %v8898_v60  ;;  %v15367_v25 = vmov 3   ;;  %v15368_v56 = vld [vmem:[#allocation121_spill] sm:$0xff]  ;;  %v15375_v43 = vld [vmem:[#allocation118_spill] sm:$0xff] }
 0x119   :  { %15362 = vst [vmem:[#allocation195_spill] sm:$0xff] %v10362_v30  ;;  %8493 = vset.pattern.permute.xlu1 %v15367_v25  ;;  %v1232_v10 = vadd.f32 %v1104_v29, %v936_v50  ;;  %v1235_v0 = vadd.f32 %v15368_v56, %v938_v20  ;;  %v939_v45 = vadd.f32 %v819_v41, %v15369_v36  ;;  %15371 = vst [vmem:[#allocation48_spill] sm:$0xff] %v10379_v16  ;;  %v15372_v41 = vld [vmem:[#allocation24_spill] sm:$0xff]  ;;  %v15376_v12 = vld [vmem:[#allocation18_spill] sm:$0xff] }
 0x11a   :  { %v1013_v32 = vmul.f32 %v15370_v14, %v8898_v60  ;;  %6424 = vperm.xlu1 %8493, %v10334_v54   ;;  %v1895_v49 = vmul.f32 %v10344_v34, %v8890_v58  ;;  %v1896_v4 = vmul.f32 %v10344_v34, %v8894_v59  ;;  %v1897_v29 = vmul.f32 %v10344_v34, %v8898_v60  ;;  %v15373_v56 = vld [vmem:[#allocation20_spill] sm:$0xff]  ;;  %v15374_v14 = vld [vmem:[#allocation3_spill] sm:$0xff]  ;;  %v15384_v30 = vld [vmem:[#allocation106_spill] sm:$0xff] }
 0x11b   :  { %v1898_v20 = vmul.f32 %v10344_v34, %v8907_v62  ;;  %v1349_v25 = vmul.f32 %v10290_v13, %v15372_v41  ;;  %v1352_v36 = vmul.f32 %v10290_v13, %v15373_v56  ;;  %v1233_v53 = vadd.f32 %v15374_v14, %v936_v50  ;;  %v15381_v41 = vld [vmem:[#allocation150_spill] sm:$0xff]  ;;  %v15383_v56 = vld [vmem:[#allocation4_spill] sm:$0xff] }
 0x11c   :  { %v1234_v61 = vadd.f32 %v15375_v43, %v937_v52  ;;  %v1350_v26 = vmul.f32 %v10290_v13, %v15376_v12  ;;  %v1351_v47 = vmul.f32 %v10290_v13, %v15377_v51  ;;  %v850_v40 = vadd.f32 %v730_v11, %v15378_v22  ;;  %v15385_v50 = vld [vmem:[#allocation108_spill] sm:$0xff]  ;;  %v10416_v11 = vpop.permute.xlu1 %2390 }
 0x11d   :  { %v1125_v38 = vadd.f32 %v997_v42, %v835_v46  ;;  %v10401_v8 = vadd.f32 %v15379_v23, %v1232_v10  ;;  %v10404_v33 = vadd.f32 %v15381_v41, %v1235_v0  ;;  %v1290_v14 = vmul.f32 %v15384_v30, %v15383_v56  ;;  %15387 = vst [vmem:[#allocation3_spill] sm:$0xff] %v10416_v11  ;;  %v15388_v46 = vld [vmem:[#allocation30_spill] sm:$0xff] }
 0x11e   :  { %v1306_v52 = vmul.f32 %v15385_v50, %v15383_v56  ;;  %v15386_v43 = vmov 4   ;;  %v2017_v12 = vadd.f32 %v1895_v49, %v10247_v17  ;;  %v2018_v51 = vadd.f32 %v1896_v4, %v10260_v15  ;;  %v15389_v10 = vld [vmem:[#allocation154_spill] sm:$0xff]  ;;  %v15392_v17 = vld [vmem:[#allocation151_spill] sm:$0xff]  ;;  %v15394_v15 = vld [vmem:[#allocation152_spill] sm:$0xff] }
 0x11f   :  { %15380 = vst [vmem:[#allocation121_spill] sm:$0xff] %v10401_v8  ;;  %15382 = vst [vmem:[#allocation95_spill] sm:$0xff] %v10404_v33  ;;  %8494 = vset.pattern.permute.xlu1 %v15386_v43  ;;  %v2019_v22 = vadd.f32 %v1897_v29, %v10269_v44  ;;  %v2020_v23 = vadd.f32 %v1898_v20, %v10272_v27  ;;  %v10419_v42 = vadd.f32 %v1349_v25, %v15388_v46  ;;  %v15390_v41 = vld [vmem:[#allocation66_spill] sm:$0xff]  ;;  %v15395_v27 = vld [vmem:[#allocation153_spill] sm:$0xff]  ;;  %v10438_v25 = vpop.permute.xlu0 %2664  ;;  %v15414_v8 = vmov 7  }
 0x120   :  { %6434 = vperm.xlu1 %8494, %v10334_v54   ;;  %v10422_v0 = vadd.f32 %v1352_v36, %v15389_v10  ;;  %v10425_v43 = vadd.f32 %v15390_v41, %v1233_v53  ;;  %v10428_v49 = vadd.f32 %v15392_v17, %v1234_v61  ;;  %v10431_v44 = vadd.f32 %v1350_v26, %v15394_v15  ;;  %v15397_v36 = vld [vmem:[#allocation162_spill] sm:$0xff]  ;;  %v15400_v10 = vld [vmem:[#allocation165_spill] sm:$0xff]  ;;  %v15403_v50 = vld [vmem:[#allocation172_spill] sm:$0xff] }
 0x121   :  { %v10434_v4 = vadd.f32 %v1351_v47, %v15395_v27  ;;  %v1353_v29 = vmul.f32 %v10290_v13, %v15258_v19  ;;  %v1236_v20 = vadd.f32 %v1108_v9, %v939_v45  ;;  %15396 = vst [vmem:[#allocation149_spill] sm:$0xff] %v10438_v25  ;;  %v10442_v46 = vmul.f32 %v15397_v36, %v15249_v28  ;;  %v15401_v47 = vld [vmem:[#allocation168_spill] sm:$0xff]  ;;  %v15402_v15 = vld [vmem:[#allocation170_spill] sm:$0xff]  ;;  %v15450_v13 = vld [vmem:[#allocation139_spill] sm:$0xff] }
 0x122   :  { %15391 = vst [vmem:[#allocation118_spill] sm:$0xff] %v10425_v43  ;;  %15393 = vst [vmem:[#allocation58_spill] sm:$0xff] %v10428_v49  ;;  %v10446_v61 = vmul.f32 %v10170_v55, %v8915_v2  ;;  %v1141_v53 = vadd.f32 %v1013_v32, %v850_v40  ;;  %v1418_v26 = vadd.f32 %v1290_v14, %v1125_v38  ;;  %v15404_v45 = vmov 6   ;;  %v15405_v55 = vld [vmem:[#allocation70_spill] sm:$0xff]  ;;  %v15406_v40 = vld [vmem:[#allocation143_spill] sm:$0xff] }
 0x123   :  { %15398 = vst [vmem:[#allocation150_spill] sm:$0xff] %v10442_v46  ;;  %v2289_v41 = vadd.f32 %v15400_v10, %v2017_v12  ;;  %v2290_v17 = vadd.f32 %v15401_v47, %v2018_v51  ;;  %v2291_v27 = vadd.f32 %v15402_v15, %v2019_v22  ;;  %v2292_v9 = vadd.f32 %v15403_v50, %v2020_v23  ;;  %v10462_v51 = vpop.permute.xlu1 %981  ;;  %v15411_v46 = vld [vmem:[#allocation159_spill] sm:$0xff] }
 0x124   :  { %15399 = vst [vmem:[#allocation4_spill] sm:$0xff] %v10446_v61  ;;  %8496 = vset.pattern.permute.xlu1 %v15404_v45  ;;  %v2430_v30 = vmul.f32 %v10416_v11, %v8898_v60  ;;  %v1899_v36 = vmul.f32 %v10344_v34, %v15249_v28  ;;  %v1582_v32 = vmul.f32 %v15405_v55, %v15249_v28  ;;  %15407 = vst [vmem:[#allocation30_spill] sm:$0xff] %v10462_v51  ;;  %v15409_v45 = vld [vmem:[#allocation157_spill] sm:$0xff]  ;;  %v15410_v55 = vld [vmem:[#allocation158_spill] sm:$0xff] }
 0x125   :  { %v1598_v12 = vmul.f32 %v15406_v40, %v15249_v28  ;;  %6454 = vperm.xlu1 %8496, %v10334_v54   ;;  %v2431_v38 = vmul.f32 %v10416_v11, %v8907_v62  ;;  %v2432_v14 = vmul.f32 %v10416_v11, %v15249_v28  ;;  %v10469_v50 = vadd.f32 %v1353_v29, %v10283_v37  ;;  %v15412_v37 = vld [vmem:[#allocation160_spill] sm:$0xff] }
 0x126   :  { %v10471_v22 = vadd.f32 %v1401_v31, %v1236_v20  ;;  %v1910_v23 = vmul.f32 %v10379_v16, %v8890_v58  ;;  %v1911_v10 = vmul.f32 %v10379_v16, %v8894_v59  ;;  %v1912_v47 = vmul.f32 %v10379_v16, %v8898_v60  ;;  %v10483_v31 = vpop.permute.xlu0 %2669 }
 0x127   :  { %v1434_v15 = vadd.f32 %v1306_v52, %v1141_v53  ;;  %v2553_v40 = vadd.f32 %v15409_v45, %v2289_v41  ;;  %v2554_v61 = vadd.f32 %v15410_v55, %v2290_v17  ;;  %v2555_v33 = vadd.f32 %v15411_v46, %v2291_v27  ;;  %15413 = vst [vmem:[#allocation66_spill] sm:$0xff] %v10483_v31  ;;  %v15415_v46 = vld [vmem:[#allocation21_spill] sm:$0xff]  ;;  %v10495_v17 = vpop.permute.xlu1 %1558  ;;  %v15418_v27 = vld [vmem:[#allocation119_spill] sm:$0xff] }
 0x128   :  { %15408 = vst [vmem:[#allocation154_spill] sm:$0xff] %v10471_v22  ;;  %v2556_v29 = vadd.f32 %v15412_v37, %v2292_v9  ;;  %v2537_v20 = vadd.f32 %v2430_v30, %v10321_v18  ;;  %v2433_v22 = vmul.f32 %v10416_v11, %v8915_v2  ;;  %v2021_v49 = vadd.f32 %v1899_v36, %v10279_v48  ;;  %v15417_v18 = vld [vmem:[#allocation112_spill] sm:$0xff]  ;;  %v15419_v36 = vld [vmem:[#allocation122_spill] sm:$0xff]  ;;  %v15428_v45 = vld [vmem:[#allocation127_spill] sm:$0xff] }
 0x129   :  { %v1710_v43 = vadd.f32 %v1582_v32, %v1418_v26  ;;  %8497 = vset.pattern.permute.xlu1 %v15414_v8  ;;  %v2538_v52 = vadd.f32 %v2431_v38, %v10340_v39  ;;  %v2539_v55 = vadd.f32 %v2432_v14, %v10347_v5  ;;  %v1726_v53 = vadd.f32 %v1598_v12, %v1434_v15  ;;  %v15424_v14 = vld [vmem:[#allocation177_spill] sm:$0xff] }
 0x12a   :  { %v1870_v41 = vmul.f32 %v15415_v46, %v8915_v2  ;;  %6464 = vperm.xlu1 %8497, %v10334_v54   ;;  %15416 = vst [vmem:[#allocation151_spill] sm:$0xff] %v10495_v17  ;;  %v10498_v30 = vadd.f32 %v1910_v23, %v15417_v18  ;;  %v10501_v48 = vadd.f32 %v1911_v10, %v15418_v27  ;;  %v1088_v23 = vmul.f32 0.0, %v10462_v51  ;;  %v15426_v10 = vld [vmem:[#allocation29_spill] sm:$0xff]  ;;  %v15429_v27 = vld [vmem:[#allocation174_spill] sm:$0xff] }
 0x12b   :  { %v10504_v8 = vadd.f32 %v1912_v47, %v15419_v36  ;;  %v1913_v39 = vmul.f32 %v10379_v16, %v8907_v62  ;;  %v10509_v5 = vadd.f32 %v10483_v31, %v2553_v40  ;;  %v10512_v26 = vadd.f32 %v10483_v31, %v2554_v61  ;;  %v10536_v15 = vpop.permute.xlu1 %1562 }
 0x12c   :  { %v10515_v54 = vadd.f32 %v10483_v31, %v2555_v33  ;;  %v10518_v9 = vadd.f32 %v10483_v31, %v2556_v29  ;;  %v10521_v32 = vadd.f32 %v10438_v25, %v2537_v20  ;;  %v2540_v12 = vadd.f32 %v2433_v22, %v10350_v21  ;;  %15427 = vst [vmem:[#allocation172_spill] sm:$0xff] %v10536_v15 }
 0x12d   :  { %15420 = vst [vmem:[#allocation152_spill] sm:$0xff] %v10509_v5  ;;  %15421 = vst [vmem:[#allocation153_spill] sm:$0xff] %v10512_v26  ;;  %v1914_v38 = vmul.f32 %v10379_v16, %v15249_v28  ;;  %v2293_v40 = vadd.f32 %v15424_v14, %v2021_v49  ;;  %v10529_v61 = vadd.f32 %v10438_v25, %v2538_v52  ;;  %v15430_v14 = vld [vmem:[#allocation163_spill] sm:$0xff]  ;;  %v15439_v26 = vld [vmem:[#allocation114_spill] sm:$0xff] }
 0x12e   :  { %15422 = vst [vmem:[#allocation165_spill] sm:$0xff] %v10515_v54  ;;  %15423 = vst [vmem:[#allocation168_spill] sm:$0xff] %v10518_v9  ;;  %v10532_v33 = vadd.f32 %v10438_v25, %v2539_v55  ;;  %v2434_v47 = vmul.f32 %v10416_v11, %v15426_v10  ;;  %v1089_v21 = vmul.f32 %v10462_v51, %v8919_v3 }
 0x12f   :  { %15425 = vst [vmem:[#allocation170_spill] sm:$0xff] %v10529_v61  ;;  %v1090_v22 = vmul.f32 %v10462_v51, %v8885_v57  ;;  %v1091_v49 = vmul.f32 %v10462_v51, %v8890_v58  ;;  %v10545_v37 = vadd.f32 %v1913_v39, %v15428_v45  ;;  %v10553_v3 = vadd.f32 %v10438_v25, %v2540_v12 }
 0x130   :  { %v10556_v36 = vadd.f32 %v1914_v38, %v15429_v27  ;;  %v2557_v46 = vadd.f32 %v15430_v14, %v2293_v40  ;;  %v10560_v39 = vadd.f32 %v1088_v23, %v10179_v63  ;;  %v2541_v52 = vadd.f32 %v2434_v47, %v10359_v35  ;;  %v15431_v40 = vld [vmem:[#allocation129_spill] sm:$0xff]  ;;  %v10576_v23 = vpop.permute.xlu1 %2126 }
 0x131   :  { %v10566_v55 = vadd.f32 %v1089_v21, %v10179_v63  ;;  %v10569_v12 = vadd.f32 %v1090_v22, %v10182_v7  ;;  %v10572_v38 = vadd.f32 %v1091_v49, %v10193_v6  ;;  %v1885_v27 = vmul.f32 %v15431_v40, %v8915_v2  ;;  %15432 = vst [vmem:[#allocation157_spill] sm:$0xff] %v10576_v23  ;;  %v15434_v40 = vld [vmem:[#allocation34_spill] sm:$0xff] }
 0x132   :  { %v1641_v14 = vmul.f32 %v10495_v17, %v8885_v57  ;;  %v1642_v35 = vmul.f32 %v10495_v17, %v8890_v58  ;;  %v1643_v63 = vmul.f32 %v10495_v17, %v8894_v59  ;;  %v1092_v7 = vmul.f32 %v10462_v51, %v8894_v59 }
 0x133   :  { %v1644_v47 = vmul.f32 %v10495_v17, %v8898_v60  ;;  %v10590_v21 = vadd.f32 %v10483_v31, %v2557_v46  ;;  %v2164_v22 = vmul.f32 %v10184_v24, %v15426_v10  ;;  %v10595_v49 = vadd.f32 %v10438_v25, %v2541_v52 }
 0x134   :  { %v1645_v29 = vmul.f32 %v10495_v17, %v8907_v62  ;;  %v1990_v45 = vadd.f32 %v1870_v41, %v1710_v43  ;;  %v2150_v20 = vmul.f32 %v10142_v1, %v15426_v10  ;;  %v1657_v6 = vmul.f32 %v10536_v15, %v8885_v57  ;;  %v15435_v41 = vld [vmem:[#allocation195_spill] sm:$0xff]  ;;  %v10619_v54 = vpop.permute.xlu1 %1273  ;;  %v15452_v57 = vld [vmem:[#allocation24_spill] sm:$0xff] }
 0x135   :  { %15433 = vst [vmem:[#allocation158_spill] sm:$0xff] %v10590_v21  ;;  %v1658_v46 = vmul.f32 %v10536_v15, %v8890_v58  ;;  %v2006_v18 = vadd.f32 %v1885_v27, %v1726_v53  ;;  %v2435_v24 = vmul.f32 %v10416_v11, %v15434_v40  ;;  %v10608_v52 = vadd.f32 %v1641_v14, %v10419_v42 }
 0x136   :  { %v10611_v9 = vadd.f32 %v1642_v35, %v10431_v44  ;;  %v10614_v43 = vadd.f32 %v1643_v63, %v10434_v4  ;;  %v10617_v1 = vadd.f32 %v1092_v7, %v15435_v41  ;;  %15436 = vst [vmem:[#allocation159_spill] sm:$0xff] %v10619_v54  ;;  %v1659_v53 = vmul.f32 %v10536_v15, %v8894_v59  ;;  %v15437_v63 = vld [vmem:[#allocation147_spill] sm:$0xff] }
 0x137   :  { %v1660_v27 = vmul.f32 %v10536_v15, %v8898_v60  ;;  %v10626_v42 = vadd.f32 %v1644_v47, %v10422_v0  ;;  %v2278_v14 = vadd.f32 %v2164_v22, %v2006_v18  ;;  %v1661_v44 = vmul.f32 %v10536_v15, %v8907_v62  ;;  %v15438_v41 = vld [vmem:[#allocation131_spill] sm:$0xff]  ;;  %v15440_v0 = vld [vmem:[#allocation60_spill] sm:$0xff] }
 0x138   :  { %v10631_v4 = vadd.f32 %v1645_v29, %v10469_v50  ;;  %v2262_v35 = vadd.f32 %v2150_v20, %v1990_v45  ;;  %v2422_v7 = vmul.f32 %v15437_v63, %v15434_v40  ;;  %v10636_v11 = vadd.f32 %v1657_v6, %v15438_v41  ;;  %v15441_v20 = vld [vmem:[#allocation52_spill] sm:$0xff]  ;;  %v15442_v6 = vld [vmem:[#allocation145_spill] sm:$0xff]  ;;  %v10661_v63 = vpop.permute.xlu1 %1850 }
 0x139   :  { %v10639_v21 = vadd.f32 %v1658_v46, %v15439_v26  ;;  %v2542_v5 = vadd.f32 %v2435_v24, %v2278_v14  ;;  %v491_v18 = vmul.f32 %v15440_v0, %v8890_v58  ;;  %v2187_v47 = vmul.f32 %v10576_v23, %v8894_v59  ;;  %v15443_v26 = vld [vmem:[#allocation113_spill] sm:$0xff]  ;;  %v15444_v14 = vld [vmem:[#allocation107_spill] sm:$0xff]  ;;  %15445 = vst [vmem:[#allocation160_spill] sm:$0xff] %v10661_v63  ;;  %v15446_v0 = vld [vmem:[#allocation194_spill] sm:$0xff] }
 0x13a   :  { %v2188_v50 = vmul.f32 %v10576_v23, %v8898_v60  ;;  %v2189_v29 = vmul.f32 %v10576_v23, %v8907_v62  ;;  %v477_v45 = vmul.f32 %v15441_v20, %v8890_v58  ;;  %v10652_v22 = vadd.f32 %v1659_v53, %v15442_v6  ;;  %v15447_v20 = vld [vmem:[#allocation98_spill] sm:$0xff] }
 0x13b   :  { %v2190_v24 = vmul.f32 %v10576_v23, %v15249_v28  ;;  %v10657_v46 = vadd.f32 %v1660_v27, %v15443_v26  ;;  %v760_v41 = vmul.f32 %v15444_v14, %v8894_v59  ;;  %v10664_v51 = vadd.f32 %v1661_v44, %v15446_v0  ;;  %v15448_v6 = vld [vmem:[#allocation130_spill] sm:$0xff]  ;;  %v15449_v14 = vld [vmem:[#allocation76_spill] sm:$0xff] }
 0x13c   :  { %v10666_v61 = vadd.f32 %v2422_v7, %v2262_v35  ;;  %v745_v53 = vmul.f32 %v15447_v20, %v8894_v59  ;;  %v1029_v15 = vmul.f32 %v15448_v6, %v8898_v60  ;;  %v2191_v27 = vmul.f32 %v10576_v23, %v8915_v2  ;;  %v15451_v6 = vld [vmem:[#allocation67_spill] sm:$0xff] }
 0x13d   :  { %v10675_v26 = vadd.f32 %v10438_v25, %v2542_v5  ;;  %v603_v17 = vadd.f32 %v491_v18, %v15449_v14  ;;  %v1045_v44 = vmul.f32 %v15450_v13, %v8898_v60  ;;  %v10681_v35 = vadd.f32 %v2187_v47, %v10498_v30  ;;  %v15453_v14 = vld [vmem:[#allocation148_spill] sm:$0xff]  ;;  %v10697_v30 = vpop.permute.xlu1 %1854 }
 0x13e   :  { %v10684_v7 = vadd.f32 %v2188_v50, %v10501_v48  ;;  %v10687_v0 = vadd.f32 %v2189_v29, %v10504_v8  ;;  %v589_v20 = vadd.f32 %v477_v45, %v15451_v6  ;;  %v1381_v5 = vmul.f32 %v10619_v54, %v15452_v57  ;;  %15454 = vst [vmem:[#allocation112_spill] sm:$0xff] %v10697_v30  ;;  %v15455_v47 = vld [vmem:[#allocation20_spill] sm:$0xff]  ;;  %v15456_v50 = vld [vmem:[#allocation18_spill] sm:$0xff]  ;;  %v15457_v45 = vld [vmem:[#allocation123_spill] sm:$0xff] }
 0x13f   :  { %v10693_v25 = vadd.f32 %v2190_v24, %v10545_v37  ;;  %v880_v18 = vadd.f32 %v760_v41, %v603_v17  ;;  %v1338_v13 = vmul.f32 %v15453_v14, %v15383_v56  ;;  %v1384_v48 = vmul.f32 %v10619_v54, %v15455_v47  ;;  %v15458_v57 = vld [vmem:[#allocation19_spill] sm:$0xff] }
 0x140   :  { %v1382_v8 = vmul.f32 %v10619_v54, %v15456_v50  ;;  %v865_v29 = vadd.f32 %v745_v53, %v589_v20  ;;  %v1322_v6 = vmul.f32 %v15457_v45, %v15383_v56  ;;  %v1383_v37 = vmul.f32 %v10619_v54, %v15458_v57  ;;  %v15459_v41 = vld [vmem:[#allocation183_spill] sm:$0xff] }
 0x141   :  { %v10708_v17 = vadd.f32 %v2191_v27, %v10556_v36  ;;  %v1173_v24 = vadd.f32 %v1045_v44, %v880_v18  ;;  %v1614_v14 = vmul.f32 %v15459_v41, %v15249_v28  ;;  %v1925_v47 = vmul.f32 %v10661_v63, %v8890_v58  ;;  %v15460_v44 = vld [vmem:[#allocation87_spill] sm:$0xff] }
 0x142   :  { %v1926_v50 = vmul.f32 %v10661_v63, %v8894_v59  ;;  %v1385_v20 = vmul.f32 %v10619_v54, %v15258_v19  ;;  %v1157_v53 = vadd.f32 %v1029_v15, %v865_v29  ;;  %v10719_v45 = vadd.f32 %v1381_v5, %v10560_v39  ;;  %v10733_v29 = vpop.permute.xlu1 %2398  ;;  %v15463_v54 = vld [vmem:[#allocation85_spill] sm:$0xff] }
 0x143   :  { %v1927_v36 = vmul.f32 %v10661_v63, %v8898_v60  ;;  %v1466_v27 = vadd.f32 %v1338_v13, %v1173_v24  ;;  %v1630_v18 = vmul.f32 %v15460_v44, %v15249_v28  ;;  %v10726_v57 = vadd.f32 %v1384_v48, %v10572_v38  ;;  %15461 = vst [vmem:[#allocation119_spill] sm:$0xff] %v10733_v29  ;;  %v15462_v38 = vld [vmem:[#allocation126_spill] sm:$0xff] }
 0x144   :  { %v10729_v41 = vadd.f32 %v1382_v8, %v10566_v55  ;;  %v1928_v19 = vmul.f32 %v10661_v63, %v8907_v62  ;;  %v1450_v15 = vadd.f32 %v1322_v6, %v1157_v53  ;;  %v1929_v39 = vmul.f32 %v10661_v63, %v15249_v28 }
 0x145   :  { %v1900_v13 = vmul.f32 %v10344_v34, %v8915_v2  ;;  %v1915_v5 = vmul.f32 %v10379_v16, %v8915_v2  ;;  %v505_v48 = vmul.f32 %v15462_v38, %v8890_v58  ;;  %v2049_v55 = vadd.f32 %v1925_v47, %v10608_v52 }
 0x146   :  { %v2050_v8 = vadd.f32 %v1926_v50, %v10611_v9  ;;  %v10746_v6 = vadd.f32 %v1383_v37, %v10569_v12  ;;  %v10749_v24 = vadd.f32 %v1385_v20, %v10617_v1  ;;  %v2051_v53 = vadd.f32 %v1927_v36, %v10614_v43  ;;  %v15464_v12 = vld [vmem:[#allocation75_spill] sm:$0xff]  ;;  %v10763_v20 = vpop.permute.xlu1 %2659  ;;  %v15467_v36 = vld [vmem:[#allocation102_spill] sm:$0xff] }
 0x147   :  { %v1742_v44 = vadd.f32 %v1614_v14, %v1450_v15  ;;  %v1758_v34 = vadd.f32 %v1630_v18, %v1466_v27  ;;  %v2178_v16 = vmul.f32 %v15463_v54, %v15426_v10  ;;  %v1940_v38 = vmul.f32 %v10697_v30, %v8890_v58  ;;  %v15465_v14 = vld [vmem:[#allocation86_spill] sm:$0xff]  ;;  %15466 = vst [vmem:[#allocation122_spill] sm:$0xff] %v10763_v20  ;;  %v15468_v18 = vld [vmem:[#allocation120_spill] sm:$0xff] }
 0x148   :  { %v1941_v52 = vmul.f32 %v10697_v30, %v8894_v59  ;;  %v2052_v9 = vadd.f32 %v1928_v19, %v10626_v42  ;;  %v2448_v37 = vmul.f32 %v15464_v12, %v15434_v40  ;;  %v2053_v1 = vadd.f32 %v1929_v39, %v10631_v4  ;;  %v15470_v12 = vld [vmem:[#allocation191_spill] sm:$0xff]  ;;  %v15472_v39 = vld [vmem:[#allocation146_spill] sm:$0xff] }
 0x149   :  { %v2022_v47 = vadd.f32 %v1900_v13, %v1742_v44  ;;  %v2038_v43 = vadd.f32 %v1915_v5, %v1758_v34  ;;  %v617_v50 = vadd.f32 %v505_v48, %v15465_v14  ;;  %v10766_v27 = vadd.f32 %v15467_v36, %v2049_v55  ;;  %v15471_v34 = vld [vmem:[#allocation132_spill] sm:$0xff]  ;;  %v15474_v5 = vld [vmem:[#allocation133_spill] sm:$0xff] }
 0x14a   :  { %v10769_v15 = vadd.f32 %v15468_v18, %v2050_v8  ;;  %v1942_v42 = vmul.f32 %v10697_v30, %v8898_v60  ;;  %v2192_v19 = vmul.f32 %v10576_v23, %v15426_v10  ;;  %v2697_v4 = vadd.f32 %v10763_v20, %v15470_v12  ;;  %v15475_v36 = vld [vmem:[#allocation188_spill] sm:$0xff]  ;;  %v10803_v54 = vpop.permute.xlu1 %1566 }
 0x14b   :  { %v2699_v44 = vadd.f32 %v10763_v20, %v15471_v34  ;;  %v10780_v13 = vadd.f32 %v15472_v39, %v2051_v53  ;;  %v2700_v48 = vadd.f32 %v10763_v20, %v15474_v5  ;;  %v10785_v55 = vadd.f32 %v1940_v38, %v10636_v11  ;;  %v15477_v38 = vld [vmem:[#allocation109_spill] sm:$0xff]  ;;  %15479 = vst [vmem:[#allocation163_spill] sm:$0xff] %v10803_v54 }
 0x14c   :  { %15469 = vst [vmem:[#allocation177_spill] sm:$0xff] %v10769_v15  ;;  %v10788_v8 = vadd.f32 %v1941_v52, %v10639_v21  ;;  %v1943_v14 = vmul.f32 %v10697_v30, %v8907_v62  ;;  %v10793_v12 = vadd.f32 %v15475_v36, %v2052_v9  ;;  %v2825_v18 = vmax.f32 %v2697_v4, 0.0  ;;  %v15478_v52 = vld [vmem:[#allocation111_spill] sm:$0xff] }
 0x14d   :  { %15473 = vst [vmem:[#allocation127_spill] sm:$0xff] %v10780_v13  ;;  %v2827_v34 = vmax.f32 %v2699_v44, 0.0  ;;  %v2828_v23 = vmax.f32 %v2700_v48, 0.0  ;;  %v2294_v53 = vadd.f32 %v2178_v16, %v2022_v47  ;;  %v2456_v39 = vmul.f32 %v10733_v29, %v8898_v60 }
 0x14e   :  { %15476 = vst [vmem:[#allocation174_spill] sm:$0xff] %v10793_v12  ;;  %v1944_v11 = vmul.f32 %v10697_v30, %v15249_v28  ;;  %v775_v21 = vmul.f32 %v15477_v38, %v8894_v59  ;;  %v790_v5 = vmul.f32 %v15478_v52, %v8894_v59  ;;  %v15480_v9 = vmax.f32 %v10521_v32, 0.0 }
 0x14f   :  { %v2457_v16 = vmul.f32 %v10733_v29, %v8907_v62  ;;  %v15482_v47 = vmax.f32 %v10532_v33, 0.0  ;;  %v15484_v48 = vmax.f32 %v10553_v3, 0.0  ;;  %v2458_v52 = vmul.f32 %v10733_v29, %v15249_v28 }
 0x150   :  { %v10807_v4 = vpack.c.bf16 %v15480_v9, %v2825_v18  ;;  %v10822_v38 = vadd.f32 %v1942_v42, %v10652_v22  ;;  %v10825_v32 = vadd.f32 %v1943_v14, %v10657_v46  ;;  %v15486_v18 = vld [vmem:[#allocation190_spill] sm:$0xff]  ;;  %v2459_v33 = vmul.f32 %v10733_v29, %v8915_v2 }
 0x151   :  { %v10813_v44 = vpack.c.bf16 %v15482_v47, %v2827_v34  ;;  %v10817_v36 = vpack.c.bf16 %v15484_v48, %v2828_v23  ;;  %v10828_v9 = vadd.f32 %v15486_v18, %v2053_v1  ;;  %v2845_v3 = vmax.f32 %v10595_v49, 0.0  ;;  %v15489_v34 = vld [vmem:[#allocation128_spill] sm:$0xff]  ;;  %v10844_v48 = vpop.permute.xlu1 %1570 }
 0x152   :  { %15481 = vst [vmem:[#allocation195_spill] sm:$0xff] %v10807_v4  ;;  %6689 = vmatprep.subr.bf16.mxu0 %v10807_v4  ;;  %6789 = vmatprep.subr.bf16.mxu1 %v10807_v4  ;;  %v2460_v23 = vmul.f32 %v10733_v29, %v15426_v10  ;;  %v2558_v22 = vadd.f32 %v2448_v37, %v2294_v53  ;;  %v15488_v42 = vmov 0.0|0.0   ;;  %v2846_v46 = vmax.f32 %v10675_v26, 0.0  ;;  %15490 = vst [vmem:[#allocation113_spill] sm:$0xff] %v10844_v48  ;;  %v15492_v53 = vld [vmem:[#allocation136_spill] sm:$0xff]  ;;  %v15506_v4 = vld [vmem:[#allocation121_spill] sm:$0xff] }
 0x153   :  { %15483 = vst [vmem:[#allocation131_spill] sm:$0xff] %v10813_v44  ;;  %15485 = vst [vmem:[#allocation114_spill] sm:$0xff] %v10817_v36  ;;  %6690 = vmatpush1.bf16.msra.mxu0 %v15488_v42  ;;  %6790 = vmatpush1.bf16.msra.mxu1 %v15488_v42  ;;  %v10840_v1 = vadd.f32 %v2192_v19, %v2038_v43  ;;  %v895_v14 = vadd.f32 %v775_v21, %v617_v50  ;;  %v15493_v26 = vld [vmem:[#allocation192_spill] sm:$0xff]  ;;  %v15495_v19 = vld [vmem:[#allocation155_spill] sm:$0xff] }
 0x154   :  { %15487 = vst [vmem:[#allocation145_spill] sm:$0xff] %v10828_v9  ;;  %v1061_v47 = vmul.f32 %v15489_v34, %v8898_v60  ;;  %v10847_v49 = vadd.f32 %v2456_v39, %v10681_v35  ;;  %v10850_v18 = vadd.f32 %v2457_v16, %v10684_v7  ;;  %v10853_v37 = vadd.f32 %v1944_v11, %v10664_v51  ;;  %v15499_v11 = vld [vmem:[#allocation167_spill] sm:$0xff]  ;;  %v15510_v9 = vld [vmem:[#allocation170_spill] sm:$0xff] }
 0x155   :  { %v910_v36 = vadd.f32 %v790_v5, %v15492_v53  ;;  %v2698_v43 = vadd.f32 %v10763_v20, %v15493_v26  ;;  %v10859_v50 = vadd.f32 %v2458_v52, %v10687_v0  ;;  %v2701_v21 = vadd.f32 %v10763_v20, %v15495_v19  ;;  %v15500_v0 = vld [vmem:[#allocation28_spill] sm:$0xff]  ;;  %v15503_v26 = vld [vmem:[#allocation151_spill] sm:$0xff] }
 0x156   :  { %15491 = vst [vmem:[#allocation194_spill] sm:$0xff] %v10850_v18  ;;  %v2702_v35 = vadd.f32 %v10763_v20, %v10666_v61  ;;  %v10866_v7 = vadd.f32 %v2459_v33, %v10693_v25  ;;  %v10869_v51 = vadd.f32 %v2460_v23, %v10708_v17  ;;  %v10872_v39 = vadd.f32 %v10483_v31, %v2558_v22  ;;  %v15501_v61 = vld [vmem:[#allocation189_spill] sm:$0xff]  ;;  %v15502_v23 = vld [vmem:[#allocation144_spill] sm:$0xff]  ;;  %v10890_v31 = vpop.permute.xlu1 %2134 }
 0x157   :  { %15494 = vst [vmem:[#allocation76_spill] sm:$0xff] %v10859_v50  ;;  %v1077_v5 = vmul.f32 %v15499_v11, %v8898_v60  ;;  %v1689_v52 = vmul.f32 %v10844_v48, %v15500_v0  ;;  %v1690_v16 = vmul.f32 %v10844_v48, %v8890_v58  ;;  %v1189_v53 = vadd.f32 %v1061_v47, %v895_v14  ;;  %v15505_v47 = vld [vmem:[#allocation172_spill] sm:$0xff] }
 0x158   :  { %15496 = vst [vmem:[#allocation67_spill] sm:$0xff] %v10866_v7  ;;  %15497 = vst [vmem:[#allocation24_spill] sm:$0xff] %v10869_v51  ;;  %v1354_v25 = vmul.f32 %v15501_v61, %v15383_v56  ;;  %v1691_v17 = vmul.f32 %v10844_v48, %v8894_v59  ;;  %v1692_v33 = vmul.f32 %v10844_v48, %v8898_v60  ;;  %v2826_v34 = vmax.f32 %v2698_v43, 0.0  ;;  %v15507_v43 = vld [vmem:[#allocation118_spill] sm:$0xff] }
 0x159   :  { %15498 = vst [vmem:[#allocation20_spill] sm:$0xff] %v10872_v39  ;;  %v1370_v22 = vmul.f32 %v15502_v23, %v15383_v56  ;;  %v1646_v19 = vmul.f32 %v15503_v26, %v15249_v28  ;;  %15504 = vst [vmem:[#allocation18_spill] sm:$0xff] %v10890_v31  ;;  %v2829_v11 = vmax.f32 %v2701_v21, 0.0  ;;  %v2830_v14 = vmax.f32 %v2702_v35, 0.0  ;;  %v15508_v51 = vld [vmem:[#allocation58_spill] sm:$0xff] }
 0x15a   :  { %v1662_v61 = vmul.f32 %v15505_v47, %v15249_v28  ;;  %v1673_v20 = vmul.f32 %v10803_v54, %v15500_v0  ;;  %v1674_v44 = vmul.f32 %v10803_v54, %v8890_v58  ;;  %v1675_v23 = vmul.f32 %v10803_v54, %v8894_v59  ;;  %v15509_v0 = vld [vmem:[#allocation95_spill] sm:$0xff] }
 0x15b   :  { %v1676_v26 = vmul.f32 %v10803_v54, %v8898_v60  ;;  %v1817_v39 = vadd.f32 %v1689_v52, %v15506_v4  ;;  %v1818_v21 = vadd.f32 %v1690_v16, %v15507_v43  ;;  %v1677_v35 = vmul.f32 %v10803_v54, %v8907_v62  ;;  %v15523_v43 = vld [vmem:[#allocation142_spill] sm:$0xff] }
 0x15c   :  { %v1205_v47 = vadd.f32 %v1077_v5, %v910_v36  ;;  %v1819_v42 = vadd.f32 %v1691_v17, %v15508_v51  ;;  %v1820_v7 = vadd.f32 %v1692_v33, %v15509_v0  ;;  %v2461_v50 = vmul.f32 %v10733_v29, %v15434_v40  ;;  %v10920_v36 = vpop.permute.xlu1 %1858  ;;  %v15520_v17 = vld [vmem:[#allocation154_spill] sm:$0xff] }
 0x15d   :  { %v1482_v18 = vadd.f32 %v1354_v25, %v1189_v53  ;;  %v15511_v12 = vmax.f32 %v15510_v9, 0.0  ;;  %v10914_v15 = vpack.c.bf16 %v2845_v3, %v2829_v11  ;;  %v1693_v4 = vmul.f32 %v10844_v48, %v8907_v62  ;;  %15515 = vst [vmem:[#allocation120_spill] sm:$0xff] %v10920_v36 }
 0x15e   :  { %v10918_v52 = vpack.c.bf16 %v2846_v46, %v2830_v14  ;;  %v1801_v51 = vadd.f32 %v1673_v20, %v10719_v45  ;;  %v1802_v5 = vadd.f32 %v1674_v44, %v10729_v41  ;;  %v10925_v16 = vadd.f32 %v1675_v23, %v10746_v6  ;;  %v15518_v41 = vld [vmem:[#allocation171_spill] sm:$0xff]  ;;  %v15519_v6 = vld [vmem:[#allocation173_spill] sm:$0xff] }
 0x15f   :  { %v10912_v13 = vpack.c.bf16 %v15511_v12, %v2826_v34  ;;  %15513 = vst [vmem:[#allocation86_spill] sm:$0xff] %v10914_v15  ;;  %v10928_v9 = vadd.f32 %v1676_v26, %v10726_v57  ;;  %v15516_v12 = vld [vmem:[#allocation166_spill] sm:$0xff]  ;;  %v15517_v34 = vld [vmem:[#allocation169_spill] sm:$0xff]  ;;  %v10933_v53 = vadd.f32 %v1677_v35, %v10749_v24  ;;  %v1930_v46 = vmul.f32 %v10661_v63, %v8915_v2 }
 0x160   :  { %15514 = vst [vmem:[#allocation102_spill] sm:$0xff] %v10918_v52  ;;  %v2097_v3 = vadd.f32 %v15516_v12, %v1817_v39  ;;  %v2098_v11 = vadd.f32 %v15517_v34, %v1818_v21  ;;  %v2215_v45 = vmul.f32 %v10890_v31, %v8894_v59  ;;  %v2099_v20 = vadd.f32 %v15518_v41, %v1819_v42  ;;  %v15527_v12 = vld [vmem:[#allocation187_spill] sm:$0xff] }
 0x161   :  { %15512 = vst [vmem:[#allocation19_spill] sm:$0xff] %v10912_v13  ;;  %v2100_v44 = vadd.f32 %v15519_v6, %v1820_v7  ;;  %v1498_v25 = vadd.f32 %v1370_v22, %v1205_v47  ;;  %v2216_v57 = vmul.f32 %v10890_v31, %v8898_v60  ;;  %v2217_v39 = vmul.f32 %v10890_v31, %v8907_v62  ;;  %v10953_v7 = vpop.permute.xlu1 %2402  ;;  %v15522_v22 = vld [vmem:[#allocation141_spill] sm:$0xff] }
 0x162   :  { %v1821_v24 = vadd.f32 %v1693_v4, %v15520_v17  ;;  %v1774_v33 = vadd.f32 %v1646_v19, %v1482_v18  ;;  %v2218_v23 = vmul.f32 %v10890_v31, %v15249_v28  ;;  %v10949_v26 = vadd.f32 %v2461_v50, %v10840_v1  ;;  %15521 = vst [vmem:[#allocation191_spill] sm:$0xff] %v10953_v7  ;;  %v15524_v18 = vld [vmem:[#allocation184_spill] sm:$0xff]  ;;  %v15525_v1 = vld [vmem:[#allocation186_spill] sm:$0xff] }
 0x163   :  { %v1790_v14 = vadd.f32 %v1662_v61, %v1498_v25  ;;  %v1945_v42 = vmul.f32 %v10697_v30, %v8915_v2  ;;  %v10956_v47 = vadd.f32 %v15522_v22, %v2097_v3  ;;  %v10959_v21 = vadd.f32 %v15523_v43, %v2098_v11  ;;  %v15526_v61 = vld [vmem:[#allocation134_spill] sm:$0xff] }
 0x164   :  { %v2054_v35 = vadd.f32 %v1930_v46, %v1774_v33  ;;  %v2206_v19 = vmul.f32 %v15524_v18, %v15426_v10  ;;  %v10964_v0 = vadd.f32 %v2215_v45, %v10785_v55  ;;  %v10967_v50 = vadd.f32 %v15525_v1, %v2099_v20  ;;  %v15528_v55 = vld [vmem:[#allocation150_spill] sm:$0xff]  ;;  %v15532_v33 = vld [vmem:[#allocation96_spill] sm:$0xff]  ;;  %v11047_v18 = vpop.permute.xlu0 %2679 }
 0x165   :  { %v10970_v4 = vadd.f32 %v15526_v61, %v2100_v44  ;;  %v820_v3 = vmul.f32 %v15527_v12, %v8894_v59  ;;  %v10975_v34 = vadd.f32 %v2216_v57, %v10788_v8  ;;  %v10978_v11 = vadd.f32 %v2217_v39, %v10822_v38  ;;  %v10990_v8 = vpop.permute.xlu1 %2406  ;;  %v15530_v57 = vld [vmem:[#allocation116_spill] sm:$0xff]  ;;  %v15531_v17 = vld [vmem:[#allocation30_spill] sm:$0xff]  ;;  %15539 = vst [vmem:[#allocation133_spill] sm:$0xff] %v11047_v18 }
 0x166   :  { %v2219_v46 = vmul.f32 %v10890_v31, %v8915_v2  ;;  %v2101_v45 = vadd.f32 %v15528_v55, %v1821_v24  ;;  %v1955_v41 = vmul.f32 %v10920_v36, %v8890_v58  ;;  %v10986_v20 = vadd.f32 %v2218_v23, %v10825_v32  ;;  %15529 = vst [vmem:[#allocation132_spill] sm:$0xff] %v10990_v8 }
 0x167   :  { %v2070_v6 = vadd.f32 %v1945_v42, %v1790_v14  ;;  %v2220_v44 = vmul.f32 %v10890_v31, %v15426_v10  ;;  %v1956_v38 = vmul.f32 %v10920_v36, %v8894_v59  ;;  %v2326_v25 = vadd.f32 %v2206_v19, %v2054_v35  ;;  %v15533_v14 = vld [vmem:[#allocation135_spill] sm:$0xff]  ;;  %v15534_v19 = vld [vmem:[#allocation4_spill] sm:$0xff]  ;;  %v15540_v31 = vld [vmem:[#allocation177_spill] sm:$0xff] }
 0x168   :  { %v805_v39 = vmul.f32 %v15530_v57, %v8894_v59  ;;  %v1093_v24 = vmul.f32 %v15531_v17, %v8898_v60  ;;  %v1957_v58 = vmul.f32 %v10920_v36, %v8898_v60  ;;  %v1958_v32 = vmul.f32 %v10920_v36, %v8907_v62 }
 0x169   :  { %v940_v23 = vadd.f32 %v820_v3, %v15532_v33  ;;  %v1109_v42 = vmul.f32 %v15533_v14, %v8898_v60  ;;  %v2469_v22 = vmul.f32 %v10953_v7, %v8898_v60  ;;  %v11008_v43 = vadd.f32 %v2219_v46, %v10853_v37  ;;  %v15535_v46 = vld [vmem:[#allocation175_spill] sm:$0xff]  ;;  %v15564_v14 = vld [vmem:[#allocation168_spill] sm:$0xff] }
 0x16a   :  { %v1959_v35 = vmul.f32 %v10920_v36, %v15249_v28  ;;  %v11013_v1 = vadd.f32 %v15534_v19, %v2101_v45  ;;  %v11015_v61 = vadd.f32 %v1955_v41, %v1801_v51  ;;  %v2470_v3 = vmul.f32 %v10953_v7, %v8907_v62  ;;  %v15536_v45 = vld [vmem:[#allocation159_spill] sm:$0xff]  ;;  %v11030_v51 = vpop.permute.xlu1 %2674 }
 0x16b   :  { %v2471_v55 = vmul.f32 %v10953_v7, %v15249_v28  ;;  %v11021_v33 = vadd.f32 %v2220_v44, %v2070_v6  ;;  %v11023_v52 = vadd.f32 %v1956_v38, %v1802_v5  ;;  %v2472_v37 = vmul.f32 %v10953_v7, %v8915_v2  ;;  %15537 = vst [vmem:[#allocation146_spill] sm:$0xff] %v11030_v51  ;;  %v15538_v5 = vld [vmem:[#allocation117_spill] sm:$0xff] }
 0x16c   :  { %v925_v15 = vadd.f32 %v805_v39, %v15535_v46  ;;  %v1386_v19 = vmul.f32 %v15536_v45, %v15383_v56  ;;  %v2473_v41 = vmul.f32 %v10953_v7, %v15426_v10  ;;  %v2474_v17 = vmul.f32 %v10953_v7, %v15434_v40  ;;  %v15541_v7 = vld [vmem:[#allocation127_spill] sm:$0xff] }
 0x16d   :  { %v1237_v6 = vadd.f32 %v1109_v42, %v940_v23  ;;  %v1402_v44 = vmul.f32 %v15538_v5, %v15383_v56  ;;  %v2745_v38 = vadd.f32 %v11030_v51, %v10847_v49  ;;  %v2585_v39 = vadd.f32 %v2469_v22, %v10766_v27  ;;  %v15542_v49 = vld [vmem:[#allocation174_spill] sm:$0xff] }
 0x16e   :  { %v11042_v46 = vadd.f32 %v1957_v58, %v10925_v16  ;;  %v11045_v45 = vadd.f32 %v1958_v32, %v10928_v9  ;;  %v2586_v57 = vadd.f32 %v2470_v3, %v15540_v31  ;;  %v2587_v23 = vadd.f32 %v2471_v55, %v15541_v7  ;;  %v15543_v9 = vld [vmem:[#allocation145_spill] sm:$0xff]  ;;  %v11064_v22 = vpop.permute.xlu1 %2138 }
 0x16f   :  { %v11052_v42 = vadd.f32 %v1959_v35, %v10933_v53  ;;  %v1221_v56 = vadd.f32 %v1093_v24, %v925_v15  ;;  %v2873_v5 = vmax.f32 %v2745_v38, 0.0  ;;  %v2588_v30 = vadd.f32 %v2472_v37, %v15542_v49  ;;  %15544 = vst [vmem:[#allocation188_spill] sm:$0xff] %v11064_v22  ;;  %v15545_v53 = vld [vmem:[#allocation152_spill] sm:$0xff] }
 0x170   :  { %v11057_v27 = vmul.f32 %v10803_v54, %v15249_v28  ;;  %v1694_v16 = vmul.f32 %v10844_v48, %v15249_v28  ;;  %v2589_v58 = vadd.f32 %v2473_v41, %v15543_v9  ;;  %v2590_v32 = vadd.f32 %v2474_v17, %v2326_v25  ;;  %v15548_v41 = vld [vmem:[#allocation194_spill] sm:$0xff]  ;;  %v15553_v9 = vld [vmem:[#allocation24_spill] sm:$0xff] }
 0x171   :  { %v11062_v31 = vadd.f32 %v1386_v19, %v1221_v56  ;;  %v1530_v7 = vadd.f32 %v1402_v44, %v1237_v6  ;;  %v15546_v15 = vmax.f32 %v15545_v53, 0.0  ;;  %v2482_v35 = vmul.f32 %v10990_v8, %v8898_v60  ;;  %v15550_v44 = vld [vmem:[#allocation67_spill] sm:$0xff] }
 0x172   :  { %v11073_v3 = vadd.f32 %v11047_v18, %v2585_v39  ;;  %v2483_v55 = vmul.f32 %v10990_v8, %v8907_v62  ;;  %v11078_v25 = vadd.f32 %v11047_v18, %v2586_v57  ;;  %v2484_v17 = vmul.f32 %v10990_v8, %v15249_v28  ;;  %v15551_v39 = vld [vmem:[#allocation158_spill] sm:$0xff] }
 0x173   :  { %v11068_v24 = vpack.c.bf16 %v2873_v5, %v15546_v15  ;;  %v11083_v37 = vadd.f32 %v11047_v18, %v2587_v23  ;;  %v2485_v19 = vmul.f32 %v10990_v8, %v8915_v2  ;;  %v2746_v6 = vadd.f32 %v11030_v51, %v15548_v41  ;;  %v15549_v5 = vld [vmem:[#allocation76_spill] sm:$0xff] }
 0x174   :  { %v2747_v57 = vadd.f32 %v11030_v51, %v15549_v5  ;;  %v2748_v38 = vadd.f32 %v11030_v51, %v15550_v44  ;;  %v2861_v56 = vmax.f32 %v15551_v39, 0.0  ;;  %v15552_v23 = vmov 0.0|0.0   ;;  %v15554_v41 = vld [vmem:[#allocation20_spill] sm:$0xff] }
 0x175   :  { %15547 = vst [vmem:[#allocation190_spill] sm:$0xff] %v11068_v24  ;;  %6692 = vmatprep.subr.bf16.mxu0 %v11068_v24  ;;  %6792 = vmatprep.subr.bf16.mxu1 %v11068_v24  ;;  %v11099_v49 = vadd.f32 %v11047_v18, %v2588_v30  ;;  %v2749_v53 = vadd.f32 %v11030_v51, %v15553_v9  ;;  %v2862_v5 = vmax.f32 %v15554_v41, 0.0  ;;  %v11113_v30 = vpop.permute.xlu1 %2410  ;;  %v15565_v12 = vmax.f32 %v15564_v14, 0.0 }
 0x176   :  { %6693 = vmatpush1.bf16.msra.mxu0 %v15552_v23  ;;  %6793 = vmatpush1.bf16.msra.mxu1 %v15552_v23  ;;  %v2750_v15 = vadd.f32 %v11030_v51, %v10949_v26  ;;  %v2601_v54 = vadd.f32 %v2482_v35, %v10964_v0  ;;  %v11109_v39 = vadd.f32 %v2483_v55, %v10975_v34  ;;  %v2874_v35 = vmax.f32 %v2746_v6, 0.0 }
 0x177   :  { %v2486_v48 = vmul.f32 %v10990_v8, %v15426_v10  ;;  %15555 = vst [vmem:[#allocation136_spill] sm:$0xff] %v11113_v30  ;;  %v11117_v9 = vadd.f32 %v2484_v17, %v10978_v11  ;;  %v11120_v26 = vadd.f32 %v11047_v18, %v2589_v58  ;;  %v2487_v0 = vmul.f32 %v10990_v8, %v15434_v40  ;;  %v15561_v17 = vld [vmem:[#allocation165_spill] sm:$0xff] }
 0x178   :  { %v2875_v41 = vmax.f32 %v2747_v57, 0.0  ;;  %v2876_v55 = vmax.f32 %v2748_v38, 0.0  ;;  %v2229_v44 = vmul.f32 %v11064_v22, %v8894_v59  ;;  %v11128_v51 = vadd.f32 %v2485_v19, %v10986_v20 }
 0x179   :  { %15556 = vst [vmem:[#allocation192_spill] sm:$0xff] %v11120_v26  ;;  %v2877_v63 = vmax.f32 %v2749_v53, 0.0  ;;  %v2878_v11 = vmax.f32 %v2750_v15, 0.0  ;;  %v2230_v58 = vmul.f32 %v11064_v22, %v8898_v60  ;;  %v11134_v8 = vadd.f32 %v2486_v48, %v11008_v43  ;;  %v11139_v57 = vpop.permute.xlu1 %2414  ;;  %v15558_v43 = vld [vmem:[#allocation153_spill] sm:$0xff] }
 0x17a   :  { %v11137_v6 = vadd.f32 %v11047_v18, %v2590_v32  ;;  %15557 = vst [vmem:[#allocation155_spill] sm:$0xff] %v11139_v57  ;;  %v2231_v38 = vmul.f32 %v11064_v22, %v8907_v62  ;;  %v2232_v20 = vmul.f32 %v11064_v22, %v15249_v28  ;;  %v11147_v53 = vadd.f32 %v2487_v0, %v11021_v33 }
 0x17b   :  { %v2508_v48 = vmul.f32 %v11139_v57, %v8898_v60  ;;  %v15559_v15 = vmax.f32 %v15558_v43, 0.0  ;;  %v15562_v34 = vmax.f32 %v15561_v17, 0.0  ;;  %v11161_v29 = vpack.c.bf16 %v2876_v55, %v15565_v12 }
 0x17c   :  { %v2353_v19 = vadd.f32 %v2229_v44, %v11015_v61  ;;  %v11164_v26 = vpack.c.bf16 %v2877_v63, %v2861_v56  ;;  %v2233_v33 = vmul.f32 %v11064_v22, %v8915_v2  ;;  %v11168_v0 = vpack.c.bf16 %v2878_v11, %v2862_v5  ;;  %v11196_v11 = vpop.permute.xlu0 %2694 }
 0x17d   :  { %v11153_v32 = vpack.c.bf16 %v2874_v35, %v15559_v15  ;;  %v11157_v18 = vpack.c.bf16 %v2875_v41, %v15562_v34  ;;  %15566 = vst [vmem:[#allocation118_spill] sm:$0xff] %v11161_v29  ;;  %v2354_v35 = vadd.f32 %v2230_v58, %v11023_v52  ;;  %v1822_v43 = vadd.f32 %v1694_v16, %v1530_v7  ;;  %v15569_v34 = vld [vmem:[#allocation162_spill] sm:$0xff]  ;;  %v11180_v5 = vpop.permute.xlu1 %2684 }
 0x17e   :  { %15567 = vst [vmem:[#allocation58_spill] sm:$0xff] %v11164_v26  ;;  %15568 = vst [vmem:[#allocation95_spill] sm:$0xff] %v11168_v0  ;;  %v1960_v41 = vmul.f32 %v10920_v36, %v8915_v2  ;;  %v1975_v14 = vmul.f32 %v15569_v34, %v8915_v2  ;;  %v2495_v12 = vmul.f32 %v11113_v30, %v8898_v60 }
 0x17f   :  { %15560 = vst [vmem:[#allocation28_spill] sm:$0xff] %v11153_v32  ;;  %15563 = vst [vmem:[#allocation121_spill] sm:$0xff] %v11157_v18  ;;  %v2633_v63 = vadd.f32 %v2508_v48, %v10956_v47  ;;  %v2355_v61 = vadd.f32 %v2231_v38, %v11042_v46  ;;  %v2356_v56 = vadd.f32 %v2232_v20, %v11045_v45  ;;  %v15572_v20 = vld [vmem:[#allocation104_spill] sm:$0xff] }
 0x180   :  { %15570 = vst [vmem:[#allocation170_spill] sm:$0xff] %v11180_v5  ;;  %v2496_v52 = vmul.f32 %v11113_v30, %v8907_v62  ;;  %v2497_v16 = vmul.f32 %v11113_v30, %v15249_v28  ;;  %v2498_v7 = vmul.f32 %v11113_v30, %v8915_v2  ;;  %v1806_v44 = vadd.f32 %v11057_v27, %v11062_v31 }
 0x181   :  { %v2777_v47 = vadd.f32 %v11180_v5, %v2601_v54  ;;  %v2509_v46 = vmul.f32 %v11139_v57, %v8907_v62  ;;  %v2357_v45 = vadd.f32 %v2233_v33, %v11052_v42  ;;  %v2234_v55 = vmul.f32 %v11064_v22, %v15426_v10  ;;  %15571 = vst [vmem:[#allocation166_spill] sm:$0xff] %v11196_v11  ;;  %v11205_v15 = vpop.permute.xlu1 %2689 }
 0x182   :  { %v2499_v58 = vmul.f32 %v11113_v30, %v15426_v10  ;;  %v2086_v17 = vadd.f32 %v1960_v41, %v1806_v44  ;;  %v2102_v38 = vadd.f32 %v1975_v14, %v1822_v43  ;;  %v2248_v27 = vmul.f32 %v15572_v20, %v15426_v10  ;;  %15573 = vst [vmem:[#allocation169_spill] sm:$0xff] %v11205_v15 }
 0x183   :  { %v2905_v31 = vmax.f32 %v2777_v47, 0.0  ;;  %v2617_v54 = vadd.f32 %v2495_v12, %v2353_v19  ;;  %v2809_v48 = vadd.f32 %v11196_v11, %v2633_v63  ;;  %v2500_v42 = vmul.f32 %v11113_v30, %v15434_v40 }
 0x184   :  { %v2618_v33 = vadd.f32 %v2496_v52, %v2354_v35  ;;  %v2510_v0 = vmul.f32 %v11139_v57, %v15249_v28  ;;  %v2619_v26 = vadd.f32 %v2497_v16, %v2355_v61  ;;  %v11209_v22 = vadd.f32 %v2498_v7, %v2356_v56  ;;  %v15576_v56 = vld [vmem:[#allocation103_spill] sm:$0xff] }
 0x185   :  { %v15574_v43 = vmax.f32 %v11073_v3, 0.0  ;;  %v2793_v19 = vadd.f32 %v11205_v15, %v2617_v54  ;;  %v2634_v14 = vadd.f32 %v2509_v46, %v10959_v21  ;;  %v2511_v12 = vmul.f32 %v11139_v57, %v8915_v2 }
 0x186   :  { %v2512_v35 = vmul.f32 %v11139_v57, %v15426_v10  ;;  %v11221_v63 = vadd.f32 %v2499_v58, %v2357_v45  ;;  %v2513_v61 = vmul.f32 %v11139_v57, %v15434_v40  ;;  %v716_v3 = vmul.f32 %v15576_v56, %v8898_v60 }
 0x187   :  { %v11213_v41 = vpack.c.bf16 %v2905_v31, %v15574_v43  ;;  %v2921_v52 = vmax.f32 %v2793_v19, 0.0  ;;  %v2937_v21 = vmax.f32 %v2809_v48, 0.0  ;;  %v2778_v16 = vadd.f32 %v11180_v5, %v11109_v39 }
 0x188   :  { %v2779_v7 = vadd.f32 %v11180_v5, %v11117_v9  ;;  %v2635_v44 = vadd.f32 %v2510_v0, %v10967_v50  ;;  %v2780_v47 = vadd.f32 %v11180_v5, %v11128_v51  ;;  %v2374_v45 = vadd.f32 %v2248_v27, %v2102_v38  ;;  %v15578_v50 = vld [vmem:[#allocation33_spill] sm:$0xff] }
 0x189   :  { %15575 = vst [vmem:[#allocation171_spill] sm:$0xff] %v11213_v41  ;;  %6695 = vmatprep.subr.bf16.mxu0 %v11213_v41  ;;  %6795 = vmatprep.subr.bf16.mxu1 %v11213_v41  ;;  %v11239_v58 = vpack.c.bf16 %v2937_v21, %v2921_v52  ;;  %v2810_v31 = vadd.f32 %v11196_v11, %v2634_v14  ;;  %v2906_v51 = vmax.f32 %v2778_v16, 0.0  ;;  %v15579_v27 = vld [vmem:[#allocation49_spill] sm:$0xff] }
 0x18a   :  { %6696 = vmatpush1.bf16.msra.mxu0 %v15552_v23  ;;  %6796 = vmatpush1.bf16.msra.mxu1 %v15552_v23  ;;  %v2636_v39 = vadd.f32 %v2511_v12, %v10970_v4  ;;  %v2358_v54 = vadd.f32 %v2234_v55, %v2086_v17  ;;  %v2794_v9 = vadd.f32 %v11205_v15, %v2618_v33  ;;  %v2907_v38 = vmax.f32 %v2779_v7, 0.0  ;;  %v15580_v14 = vld [vmem:[#allocation125_spill] sm:$0xff]  ;;  %v15581_v12 = vld [vmem:[#allocation59_spill] sm:$0xff] }
 0x18b   :  { %15577 = vst [vmem:[#allocation173_spill] sm:$0xff] %v11239_v58  ;;  %v2637_v48 = vadd.f32 %v2512_v35, %v11013_v1  ;;  %v2638_v43 = vadd.f32 %v2513_v61, %v2374_v45  ;;  %v731_v0 = vmul.f32 %v15578_v50, %v8898_v60  ;;  %6698 = vmatprep.subr.bf16.mxu0 %v11239_v58  ;;  %v11257_v1 = vld [vmem:[%s14492_s3] sm:$0xff]  ;;  %v2908_v17 = vmax.f32 %v2780_v47, 0.0 }
 0x18c   :  { %6798 = vmatprep.subr.bf16.mxu1 %v11239_v58  ;;  %v836_v19 = vadd.f32 %v716_v3, %v15579_v27  ;;  %v998_v4 = vmul.f32 %v15580_v14, %v8907_v62  ;;  %v11260_v55 = vadd.f32 %v11196_v11, %v2635_v44  ;;  %v11262_v33 = vadd.f32 %v2500_v42, %v2358_v54  ;;  %v11315_v27 = vld [vmem:[%s14492_s3 + $0x28] sm:$0xff] }
 0x18d   :  { %v851_v35 = vadd.f32 %v731_v0, %v15581_v12  ;;  %v2938_v61 = vmax.f32 %v2810_v31, 0.0  ;;  %v11268_v3 = vadd.f32 %v11196_v11, %v2636_v39  ;;  %v11272_v52 = vadd.f32 %v11180_v5, %v11134_v8  ;;  %v11296_v39 = vld [vmem:[%s14492_s3 + $0x30] sm:$0xff]  ;;  %v15589_v0 = vld [vmem:[#allocation195_spill] sm:$0xff]  ;;  %15592 = vst [vmem:[#allocation186_spill] sm:$0xff] %v11315_v27 }
 0x18e   :  { %6699 = vmatpush1.bf16.msra.mxu0 %v15552_v23  ;;  %6799 = vmatpush1.bf16.msra.mxu1 %v15552_v23  ;;  %v1126_v21 = vadd.f32 %v998_v4, %v836_v19  ;;  %v2922_v16 = vmax.f32 %v2794_v9, 0.0  ;;  %v11275_v7 = vadd.f32 %v11196_v11, %v2637_v48  ;;  %v11279_v42 = vadd.f32 %v11180_v5, %v11147_v53  ;;  %v15586_v53 = vld [vmem:[#allocation78_spill] sm:$0xff]  ;;  %v15587_v9 = vld [vmem:[#allocation5_spill] sm:$0xff]  ;;  %v15593_v19 = vld [vmem:[#allocation52_spill] sm:$0xff] }
 0x18f   :  { %6701 = vmatprep.subr.bf16.mxu0 %v10912_v13  ;;  %6801 = vmatprep.subr.bf16.mxu1 %v10912_v13  ;;  %v11282_v44 = vadd.f32 %v11196_v11, %v2638_v43  ;;  %v15582_v47 = vmax.f32 %v11078_v25, 0.0  ;;  %v15584_v8 = vmax.f32 %v11083_v37, 0.0  ;;  %v1014_v54 = vmul.f32 %v15586_v53, %v8907_v62  ;;  %v15588_v48 = vld [vmem:[#allocation106_spill] sm:$0xff]  ;;  %v15594_v12 = vld [vmem:[#allocation108_spill] sm:$0xff]  ;;  %v15606_v5 = vld [vmem:[#allocation107_spill] sm:$0xff] }
 0x190   :  { %v1291_v43 = vmul.f32 %v15588_v48, %v15587_v9  ;;  %v11305_v25 = vadd.f32 %v11205_v15, %v2619_v26  ;;  %v478_v4 = vmul.f32 %v15593_v19, %v8894_v59  ;;  %v2796_v46 = vadd.f32 %v11205_v15, %v11209_v22  ;;  %v15597_v26 = vld [vmem:[#allocation98_spill] sm:$0xff]  ;;  %v11355_v19 = vld [vmem:[%s14492_s3 + $0x50] sm:$0xff] }
 0x191   :  { %3075 = vmatmul.mubr.f32.vlgmr.msra.gmra.mrb[0].mxu0 %v11257_v1  ;;  %v11287_v45 = vpack.c.bf16 %v2906_v51, %v15582_v47  ;;  %v11291_v31 = vpack.c.bf16 %v2907_v38, %v15584_v8  ;;  %v15590_v51 = vmax.f32 %v11099_v49, 0.0  ;;  %v1307_v47 = vmul.f32 %v15594_v12, %v15587_v9  ;;  %15602 = vst [vmem:[#allocation96_spill] sm:$0xff] %v11355_v19  ;;  %v15609_v12 = vld [vmem:[#allocation123_spill] sm:$0xff] }
 0x192   :  { %6703 = vmatpush1.bf16.msra.mxu0 %v15589_v0  ;;  %6803 = vmatpush1.bf16.msra.mxu1 %v15589_v0  ;;  %v1419_v49 = vadd.f32 %v1291_v43, %v1126_v21  ;;  %v11333_v37 = vadd.f32 %v11205_v15, %v11221_v63  ;;  %v746_v23 = vmul.f32 %v15597_v26, %v8898_v60  ;;  %v11341_v21 = vld [vmem:[%s14492_s3 + $0x58] sm:$0xff]  ;;  %v15601_v63 = vld [vmem:[#allocation60_spill] sm:$0xff]  ;;  %v2909_v26 = vmax.f32 %v11272_v52, 0.0 }
 0x193   :  { %15583 = vst [vmem:[#allocation154_spill] sm:$0xff] %v11287_v45  ;;  %15585 = vst [vmem:[#allocation141_spill] sm:$0xff] %v11291_v31  ;;  %v11310_v38 = vpack.c.bf16 %v2908_v17, %v15590_v51  ;;  %6705 = vmatprep.subr.bf16.mxu0 %v11153_v32  ;;  %6805 = vmatprep.subr.bf16.mxu1 %v11153_v32  ;;  %v15595_v17 = vld [vmem:[#allocation70_spill] sm:$0xff]  ;;  %v11326_v51 = vpack.c.bf16 %v2938_v61, %v2922_v16  ;;  %v15599_v16 = vld [vmem:[#allocation143_spill] sm:$0xff]  ;;  %v15618_v20 = vmax.f32 %v11260_v55, 0.0 }
 0x194   :  { %v1583_v8 = vmul.f32 %v15595_v17, %v8915_v2  ;;  %3080 = vmatprep.mubr.f32.mxu0 %v11296_v39  ;;  %15598 = vst [vmem:[#allocation150_spill] sm:$0xff] %v11341_v21  ;;  %v1142_v61 = vadd.f32 %v1014_v54, %v851_v35  ;;  %v1599_v22 = vmul.f32 %v15599_v16, %v8915_v2  ;;  %v15600_v43 = vld [vmem:[#allocation21_spill] sm:$0xff]  ;;  %v15604_v16 = vld [vmem:[#allocation68_spill] sm:$0xff]  ;;  %v2925_v55 = vmax.f32 %v11333_v37, 0.0 }
 0x195   :  { %15591 = vst [vmem:[#allocation142_spill] sm:$0xff] %v11310_v38  ;;  %15596 = vst [vmem:[#allocation134_spill] sm:$0xff] %v11326_v51  ;;  %3081 = vmatmul.mubr.f32.gmra.mrb[2].mxu0 %v11315_v27  ;;  %v1871_v0 = vmul.f32 %v15600_v43, %v15426_v10  ;;  %v492_v11 = vmul.f32 %v15601_v63, %v8894_v59  ;;  %v15603_v35 = vld [vmem:[#allocation129_spill] sm:$0xff]  ;;  %v590_v30 = vadd.f32 %v478_v4, %v15604_v16  ;;  %v15605_v43 = vld [vmem:[#allocation130_spill] sm:$0xff] }
 0x196   :  { %6707 = vmatpush1.bf16.msra.mxu0 %v11068_v24  ;;  %6807 = vmatpush1.bf16.msra.mxu1 %v11068_v24  ;;  %v1886_v54 = vmul.f32 %v15603_v35, %v15426_v10  ;;  %v1030_v57 = vmul.f32 %v15605_v43, %v8907_v62  ;;  %v2923_v24 = vmax.f32 %v11305_v25, 0.0  ;;  %v1435_v52 = vadd.f32 %v1307_v47, %v1142_v61  ;;  %v15607_v35 = vld [vmem:[#allocation185_spill] sm:$0xff]  ;;  %v11378_v25 = vld [vmem:[%s14492_s3 + $0x80] sm:$0xff] }
 0x197   :  { %6709 = vmatprep.subr.bf16.mxu0 %v11287_v45  ;;  %6809 = vmatprep.subr.bf16.mxu1 %v11287_v45  ;;  %v1711_v63 = vadd.f32 %v1583_v8, %v1419_v49  ;;  %v761_v17 = vmul.f32 %v15606_v5, %v8898_v60  ;;  %v2151_v38 = vmul.f32 %v15607_v35, %v15434_v40  ;;  %v15608_v4 = vld [vmem:[#allocation9_spill] sm:$0xff]  ;;  %v15610_v8 = vld [vmem:[#allocation35_spill] sm:$0xff] }
 0x198   :  { %3086 = vmatprep.mubr.f32.mxu0 %v11341_v21  ;;  %v2165_v16 = vmul.f32 %v15608_v4, %v15434_v40  ;;  %v866_v43 = vadd.f32 %v746_v23, %v590_v30  ;;  %v1323_v48 = vmul.f32 %v15609_v12, %v15587_v9  ;;  %v1727_v47 = vadd.f32 %v1599_v22, %v1435_v52  ;;  %v15611_v61 = vld [vmem:[#allocation147_spill] sm:$0xff]  ;;  %v15612_v35 = vld [vmem:[#allocation77_spill] sm:$0xff] }
 0x199   :  { %3087 = vmatmul.mubr.f32.gmra.mrb[4].mxu0 %v11355_v19  ;;  %v1991_v49 = vadd.f32 %v1871_v0, %v1711_v63  ;;  %v2423_v5 = vmul.f32 %v15611_v61, %v15610_v8  ;;  %v604_v21 = vadd.f32 %v492_v11, %v15612_v35  ;;  %v2924_v23 = vmax.f32 %v2796_v46, 0.0  ;;  %v11388_v30 = vld [vmem:[%s14492_s3 + $0x78] sm:$0xff]  ;;  %v15613_v12 = vld [vmem:[#allocation139_spill] sm:$0xff] }
 0x19a   :  { %6711 = vmatpush1.bf16.msra.mxu0 %v11213_v41  ;;  %6811 = vmatpush1.bf16.msra.mxu1 %v11213_v41  ;;  %v1046_v4 = vmul.f32 %v15613_v12, %v8907_v62  ;;  %v1158_v22 = vadd.f32 %v1030_v57, %v866_v43  ;;  %v15614_v0 = vld [vmem:[#allocation183_spill] sm:$0xff]  ;;  %v2910_v11 = vmax.f32 %v11279_v42, 0.0  ;;  %v2007_v35 = vadd.f32 %v1886_v54, %v1727_v47  ;;  %v15616_v12 = vld [vmem:[#allocation148_spill] sm:$0xff] }
 0x19b   :  { %v1615_v63 = vmul.f32 %v15614_v0, %v8915_v2  ;;  %6713 = vmatprep.subr.bf16.mxu0 %v11326_v51  ;;  %6813 = vmatprep.subr.bf16.mxu1 %v11326_v51  ;;  %v15615_v46 = vld [vmem:[#allocation3_spill] sm:$0xff]  ;;  %v881_v41 = vadd.f32 %v761_v17, %v604_v21  ;;  %v2263_v61 = vadd.f32 %v2151_v38, %v1991_v49  ;;  %v15617_v0 = vld [vmem:[#allocation193_spill] sm:$0xff]  ;;  %v15620_v42 = vld [vmem:[#allocation192_spill] sm:$0xff] }
 0x19c   :  { %v2436_v52 = vmul.f32 %v15615_v46, %v15610_v8  ;;  %3092 = vmatprep.mubr.f32.mxu0 %v11378_v25  ;;  %v1339_v57 = vmul.f32 %v15616_v12, %v15587_v9  ;;  %v1451_v43 = vadd.f32 %v1323_v48, %v1158_v22  ;;  %v1901_v19 = vmul.f32 %v15617_v0, %v15426_v10  ;;  %v11416_v38 = vld [vmem:[%s14492_s3 + $0x18] sm:$0xff]  ;;  %v15625_v49 = vld [vmem:[#allocation131_spill] sm:$0xff] }
 0x19d   :  { %v11406_v27 = vpack.c.bf16 %v15618_v20, %v2923_v24  ;;  %v15621_v54 = vmax.f32 %v15620_v42, 0.0  ;;  %3093 = vmatmul.mubr.f32.gmra.mrb[6].mxu0 %v11388_v30  ;;  %v2798_v48 = vadd.f32 %v11205_v15, %v11262_v33  ;;  %v2279_v17 = vadd.f32 %v2165_v16, %v2007_v35  ;;  %v15626_v16 = vld [vmem:[#allocation87_spill] sm:$0xff]  ;;  %v15627_v42 = vld [vmem:[#allocation126_spill] sm:$0xff] }
 0x19e   :  { %6715 = vmatpush1.bf16.msra.mxu0 %v11239_v58  ;;  %6815 = vmatpush1.bf16.msra.mxu1 %v11239_v58  ;;  %v15623_v24 = vmax.f32 %v11268_v3, 0.0  ;;  %v1743_v21 = vadd.f32 %v1615_v63, %v1451_v43  ;;  %v2941_v22 = vmax.f32 %v11275_v7, 0.0  ;;  %v1631_v35 = vmul.f32 %v15626_v16, %v8915_v2  ;;  %v15642_v16 = vld [vmem:[#allocation137_spill] sm:$0xff] }
 0x19f   :  { %15619 = vst [vmem:[#allocation4_spill] sm:$0xff] %v11406_v27  ;;  %v11410_v47 = vpack.c.bf16 %v2909_v26, %v15621_v54  ;;  %v1174_v26 = vadd.f32 %v1046_v4, %v881_v41  ;;  %6717 = vmatprep.subr.bf16.mxu0 %v15625_v49  ;;  %6817 = vmatprep.subr.bf16.mxu1 %v15625_v49  ;;  %v15628_v41 = vld [vmem:[#allocation85_spill] sm:$0xff]  ;;  %v15629_v63 = vmax.f32 %v11137_v6, 0.0  ;;  %v2926_v7 = vmax.f32 %v2798_v48, 0.0 }
 0x1a0   :  { %v11424_v20 = vpack.c.bf16 %v15623_v24, %v2924_v23  ;;  %v2543_v33 = vadd.f32 %v2436_v52, %v2279_v17  ;;  %v506_v54 = vmul.f32 %v15627_v42, %v8894_v59  ;;  %3163 = vmatprep.mubr.f32.mxu0 %v11416_v38  ;;  %v2527_v3 = vadd.f32 %v2423_v5, %v2263_v61  ;;  %v15631_v52 = vld [vmem:[#allocation109_spill] sm:$0xff]  ;;  %v15632_v24 = vld [vmem:[#allocation111_spill] sm:$0xff]  ;;  %v15634_v5 = vld [vmem:[#allocation122_spill] sm:$0xff] }
 0x1a1   :  { %15622 = vst [vmem:[#allocation175_spill] sm:$0xff] %v11410_v47  ;;  %v1467_v23 = vadd.f32 %v1339_v57, %v1174_v26  ;;  %v2023_v37 = vadd.f32 %v1901_v19, %v1743_v21  ;;  %v2179_v4 = vmul.f32 %v15628_v41, %v15434_v40  ;;  %v11439_v43 = vpack.c.bf16 %v2910_v11, %v15629_v63  ;;  %v15635_v61 = vld [vmem:[#allocation48_spill] sm:$0xff]  ;;  %v15636_v57 = vld [vmem:[#allocation149_spill] sm:$0xff]  ;;  %v15638_v63 = vld [vmem:[#allocation167_spill] sm:$0xff] }
 0x1a2   :  { %15624 = vst [vmem:[#allocation177_spill] sm:$0xff] %v11424_v20  ;;  %v776_v17 = vmul.f32 %v15631_v52, %v8898_v60  ;;  %v791_v58 = vmul.f32 %v15632_v24, %v8898_v60  ;;  %6719 = vmatpush1.bf16.msra.mxu0 %v10912_v13  ;;  %6819 = vmatpush1.bf16.msra.mxu1 %v10912_v13  ;;  %v2942_v11 = vmax.f32 %v11282_v44, 0.0  ;;  %v15637_v26 = vld [vmem:[#allocation88_spill] sm:$0xff] }
 0x1a3   :  { %15630 = vst [vmem:[#allocation127_spill] sm:$0xff] %v11439_v43  ;;  %v11447_v59 = vpack.c.bf16 %v2941_v22, %v2925_v55  ;;  %v2703_v19 = vadd.f32 %v15634_v5, %v2527_v3  ;;  %v1916_v6 = vmul.f32 %v15635_v61, %v15426_v10  ;;  %6721 = vmatprep.subr.bf16.mxu0 %v11157_v18  ;;  %v15639_v22 = vld [vmem:[#allocation157_spill] sm:$0xff] }
 0x1a4   :  { %6821 = vmatprep.subr.bf16.mxu1 %v11157_v18  ;;  %v2719_v48 = vadd.f32 %v15636_v57, %v2543_v33  ;;  %v618_v21 = vadd.f32 %v506_v54, %v15637_v26  ;;  %v1078_v13 = vmul.f32 %v15638_v63, %v8907_v62  ;;  %v1759_v55 = vadd.f32 %v1631_v35, %v1467_v23  ;;  %v15643_v33 = vld [vmem:[#allocation128_spill] sm:$0xff]  ;;  %v15644_v23 = vld [vmem:[#allocation119_spill] sm:$0xff] }
 0x1a5   :  { %15633 = vst [vmem:[#allocation174_spill] sm:$0xff] %v11447_v59  ;;  %v2193_v3 = vmul.f32 %v15639_v22, %v15434_v40  ;;  %v2295_v43 = vadd.f32 %v2179_v4, %v2023_v37  ;;  %v15640_v59 = vld [vmem:[#allocation75_spill] sm:$0xff]  ;;  %v11463_v61 = vpack.c.bf16 %v2942_v11, %v2926_v7  ;;  %v911_v44 = vadd.f32 %v791_v58, %v15642_v16  ;;  %v15645_v4 = vld [vmem:[#allocation189_spill] sm:$0xff]  ;;  %v15646_v16 = vld [vmem:[#allocation144_spill] sm:$0xff] }
 0x1a6   :  { %v2449_v41 = vmul.f32 %v15640_v59, %v15610_v8  ;;  %v896_v0 = vadd.f32 %v776_v17, %v618_v21  ;;  %v1062_v57 = vmul.f32 %v15643_v33, %v8907_v62  ;;  %6723 = vmatpush1.bf16.msra.mxu0 %v11153_v32  ;;  %6823 = vmatpush1.bf16.msra.mxu1 %v11153_v32  ;;  %v2831_v35 = vmax.f32 %v2703_v19, 0.0  ;;  %v15647_v17 = vld [vmem:[#allocation187_spill] sm:$0xff]  ;;  %v15650_v22 = vld [vmem:[#allocation172_spill] sm:$0xff] }
 0x1a7   :  { %15641 = vst [vmem:[#allocation145_spill] sm:$0xff] %v11463_v61  ;;  %v2039_v54 = vadd.f32 %v1916_v6, %v1759_v55  ;;  %v2462_v37 = vmul.f32 %v15644_v23, %v15610_v8  ;;  %v1355_v26 = vmul.f32 %v15645_v4, %v15587_v9  ;;  %6725 = vmatprep.subr.bf16.mxu0 %v11291_v31  ;;  %v2847_v21 = vmax.f32 %v2719_v48, 0.0  ;;  %v15648_v55 = vld [vmem:[#allocation135_spill] sm:$0xff] }
 0x1a8   :  { %6825 = vmatprep.subr.bf16.mxu1 %v11291_v31  ;;  %v1206_v58 = vadd.f32 %v1078_v13, %v911_v44  ;;  %v1371_v7 = vmul.f32 %v15646_v16, %v15587_v9  ;;  %v821_v11 = vmul.f32 %v15647_v17, %v8898_v60  ;;  %v2559_v6 = vadd.f32 %v2449_v41, %v2295_v43  ;;  %v15649_v23 = vld [vmem:[#allocation151_spill] sm:$0xff]  ;;  %v15651_v13 = vld [vmem:[#allocation97_spill] sm:$0xff]  ;;  %v15653_v41 = vld [vmem:[#allocation160_spill] sm:$0xff] }
 0x1a9   :  { %v2311_v19 = vadd.f32 %v2193_v3, %v2039_v54  ;;  %v1110_v32 = vmul.f32 %v15648_v55, %v8907_v62  ;;  %v1190_v61 = vadd.f32 %v1062_v57, %v896_v0  ;;  %v1647_v59 = vmul.f32 %v15649_v23, %v8915_v2  ;;  %v15654_v3 = vld [vmem:[#allocation112_spill] sm:$0xff] }
 0x1aa   :  { %v1663_v4 = vmul.f32 %v15650_v22, %v8915_v2  ;;  %v941_v44 = vadd.f32 %v821_v11, %v15651_v13  ;;  %6727 = vmatpush1.bf16.msra.mxu0 %v11287_v45  ;;  %6827 = vmatpush1.bf16.msra.mxu1 %v11287_v45  ;;  %v11489_v17 = vpack.c.bf16 %v2847_v21, %v2831_v35  ;;  %v15655_v11 = vld [vmem:[#allocation66_spill] sm:$0xff]  ;;  %v15656_v45 = vld [vmem:[#allocation116_spill] sm:$0xff] }
 0x1ab   :  { %v2575_v48 = vadd.f32 %v2462_v37, %v2311_v19  ;;  %v1931_v43 = vmul.f32 %v15653_v41, %v15426_v10  ;;  %6729 = vmatprep.subr.bf16.mxu0 %v11406_v27  ;;  %6829 = vmatprep.subr.bf16.mxu1 %v11406_v27  ;;  %v1483_v0 = vadd.f32 %v1355_v26, %v1190_v61  ;;  %v15657_v37 = vld [vmem:[#allocation117_spill] sm:$0xff]  ;;  %v15659_v61 = vld [vmem:[#allocation18_spill] sm:$0xff] }
 0x1ac   :  { %15652 = vst [vmem:[#allocation152_spill] sm:$0xff] %v11489_v17  ;;  %v1499_v57 = vadd.f32 %v1371_v7, %v1206_v58  ;;  %v1946_v54 = vmul.f32 %v15654_v3, %v15426_v10  ;;  %v11498_v13 = vadd.f32 %v15655_v11, %v2559_v6  ;;  %v806_v35 = vmul.f32 %v15656_v45, %v8898_v60  ;;  %v15658_v17 = vld [vmem:[#allocation146_spill] sm:$0xff]  ;;  %v15660_v58 = vld [vmem:[#allocation184_spill] sm:$0xff] }
 0x1ad   :  { %v1238_v21 = vadd.f32 %v1110_v32, %v941_v44  ;;  %v1403_v19 = vmul.f32 %v15657_v37, %v15587_v9  ;;  %v11505_v55 = vadd.f32 %v15658_v17, %v2575_v48  ;;  %v1775_v41 = vadd.f32 %v1647_v59, %v1483_v0  ;;  %v15661_v32 = vld [vmem:[#allocation132_spill] sm:$0xff]  ;;  %v15662_v44 = vld [vmem:[#allocation113_spill] sm:$0xff]  ;;  %v15663_v48 = vld [vmem:[#allocation114_spill] sm:$0xff] }
 0x1ae   :  { %v1791_v22 = vadd.f32 %v1663_v4, %v1499_v57  ;;  %v2221_v26 = vmul.f32 %v15659_v61, %v15434_v40  ;;  %6731 = vmatpush1.bf16.msra.mxu0 %v11326_v51  ;;  %6831 = vmatpush1.bf16.msra.mxu1 %v11326_v51  ;;  %v2207_v7 = vmul.f32 %v15660_v58, %v15434_v40  ;;  %v15664_v0 = vld [vmem:[#allocation30_spill] sm:$0xff]  ;;  %v15665_v51 = vld [vmem:[#allocation191_spill] sm:$0xff]  ;;  %v15666_v37 = vld [vmem:[#allocation176_spill] sm:$0xff] }
 0x1af   :  { %v2488_v6 = vmul.f32 %v15661_v32, %v15610_v8  ;;  %v1695_v11 = vmul.f32 %v15662_v44, %v8915_v2  ;;  %6733 = vmatprep.subr.bf16.mxu0 %v15663_v48  ;;  %6833 = vmatprep.subr.bf16.mxu1 %v15663_v48  ;;  %v2055_v59 = vadd.f32 %v1931_v43, %v1775_v41  ;;  %v15667_v58 = vld [vmem:[#allocation159_spill] sm:$0xff] }
 0x1b0   :  { %v2071_v4 = vadd.f32 %v1946_v54, %v1791_v22  ;;  %v1094_v57 = vmul.f32 %v15664_v0, %v8907_v62  ;;  %v2475_v17 = vmul.f32 %v15665_v51, %v15610_v8  ;;  %v926_v45 = vadd.f32 %v806_v35, %v15666_v37  ;;  %v15668_v22 = vld [vmem:[#allocation163_spill] sm:$0xff] }
 0x1b1   :  { %v1531_v61 = vadd.f32 %v1403_v19, %v1238_v21  ;;  %v717_v32 = vmul.f32 %v15576_v56, %v8907_v62  ;;  %3342 = vmatmul.mubr.f32.vlgmr.msra.gmra.mrb[0].mxu1 %v11257_v1  ;;  %v1387_v3 = vmul.f32 %v15667_v58, %v15587_v9  ;;  %v1679_v41 = vmul.f32 %v15668_v22, %v8915_v2  ;;  %v15669_v21 = vld [vmem:[#allocation50_spill] sm:$0xff]  ;;  %v15684_v2 = vld [vmem:[#allocation136_spill] sm:$0xff] }
 0x1b2   :  { %v2343_v44 = vadd.f32 %v2221_v26, %v2071_v4  ;;  %v999_v43 = vmul.f32 %v15580_v14, %v15249_v28  ;;  %6735 = vmatpush1.bf16.msra.mxu0 %v15625_v49  ;;  %6835 = vmatpush1.bf16.msra.mxu1 %v15625_v49  ;;  %v1976_v35 = vmul.f32 %v15569_v34, %v15426_v10  ;;  %v15683_v14 = vld [vmem:[#allocation96_spill] sm:$0xff] }
 0x1b3   :  { %v1823_v54 = vadd.f32 %v1695_v11, %v1531_v61  ;;  %v837_v1 = vadd.f32 %v717_v32, %v15669_v21  ;;  %6737 = vmatprep.subr.bf16.mxu0 %v11161_v29  ;;  %6837 = vmatprep.subr.bf16.mxu1 %v11161_v29  ;;  %v2327_v9 = vadd.f32 %v2207_v7, %v2055_v59  ;;  %v15670_v32 = vld [vmem:[#allocation186_spill] sm:$0xff]  ;;  %v15671_v7 = vld [vmem:[#allocation104_spill] sm:$0xff] }
 0x1b4   :  { %v2607_v37 = vadd.f32 %v2488_v6, %v2343_v44  ;;  %v1222_v19 = vadd.f32 %v1094_v57, %v926_v45  ;;  %3347 = vmatprep.mubr.f32.mxu1 %v11296_v39  ;;  %v1961_v26 = vmul.f32 %v10920_v36, %v15426_v10  ;;  %v732_v11 = vmul.f32 %v15578_v50, %v8907_v62  ;;  %v15672_v45 = vld [vmem:[#allocation6_spill] sm:$0xff]  ;;  %v15674_v57 = vld [vmem:[#allocation61_spill] sm:$0xff] }
 0x1b5   :  { %v1015_v61 = vmul.f32 %v15586_v53, %v15249_v28  ;;  %v1127_v4 = vadd.f32 %v999_v43, %v837_v1  ;;  %3348 = vmatmul.mubr.f32.gmra.mrb[2].mxu1 %v15670_v32  ;;  %v2591_v21 = vadd.f32 %v2475_v17, %v2327_v9  ;;  %v2249_v6 = vmul.f32 %v15671_v7, %v15434_v40  ;;  %v15673_v44 = vld [vmem:[#allocation106_spill] sm:$0xff]  ;;  %v15675_v53 = vld [vmem:[#allocation108_spill] sm:$0xff] }
 0x1b6   :  { %v1515_v49 = vadd.f32 %v1387_v3, %v1222_v19  ;;  %v1292_v39 = vmul.f32 %v15673_v44, %v15672_v45  ;;  %6739 = vmatpush1.bf16.msra.mxu0 %v11157_v18  ;;  %6839 = vmatpush1.bf16.msra.mxu1 %v11157_v18  ;;  %v2103_v59 = vadd.f32 %v1976_v35, %v1823_v54  ;;  %v15676_v1 = vld [vmem:[#allocation142_spill] sm:$0xff]  ;;  %v15677_v17 = vld [vmem:[#allocation188_spill] sm:$0xff]  ;;  %v15681_v35 = vld [vmem:[#allocation155_spill] sm:$0xff] }
 0x1b7   :  { %v852_v50 = vadd.f32 %v732_v11, %v15674_v57  ;;  %v1308_v43 = vmul.f32 %v15675_v53, %v15672_v45  ;;  %6741 = vmatprep.subr.bf16.mxu0 %v15676_v1  ;;  %6841 = vmatprep.subr.bf16.mxu1 %v15676_v1  ;;  %v2235_v3 = vmul.f32 %v15677_v17, %v15434_v40  ;;  %v15678_v19 = vld [vmem:[#allocation70_spill] sm:$0xff]  ;;  %v15682_v53 = vld [vmem:[#allocation133_spill] sm:$0xff] }
 0x1b8   :  { %v1420_v9 = vadd.f32 %v1292_v39, %v1127_v4  ;;  %v1584_v32 = vmul.f32 %v15678_v19, %v15426_v10  ;;  %v15679_v44 = vld [vmem:[#allocation170_spill] sm:$0xff]  ;;  %v1807_v54 = vadd.f32 %v1679_v41, %v1515_v49  ;;  %v2514_v11 = vmul.f32 %v15681_v35, %v15610_v8  ;;  %v15685_v4 = vld [vmem:[#allocation143_spill] sm:$0xff]  ;;  %v15686_v19 = vld [vmem:[#allocation21_spill] sm:$0xff] }
 0x1b9   :  { %v2783_v7 = vadd.f32 %v15679_v44, %v2607_v37  ;;  %v15680_v18 = vld [vmem:[#allocation150_spill] sm:$0xff]  ;;  %v1143_v57 = vadd.f32 %v1015_v61, %v852_v50  ;;  %v2767_v36 = vadd.f32 %v15682_v53, %v2591_v21  ;;  %v2501_v17 = vmul.f32 %v15684_v2, %v15610_v8  ;;  %v15687_v61 = vld [vmem:[#allocation129_spill] sm:$0xff] }
 0x1ba   :  { %3353 = vmatprep.mubr.f32.mxu1 %v15680_v18  ;;  %v1600_v39 = vmul.f32 %v15685_v4, %v15426_v10  ;;  %v1872_v37 = vmul.f32 %v15686_v19, %v15434_v40  ;;  %6743 = vmatpush1.bf16.msra.mxu0 %v11291_v31  ;;  %v2087_v18 = vadd.f32 %v1961_v26, %v1807_v54  ;;  %v15688_v4 = vld [vmem:[#allocation185_spill] sm:$0xff]  ;;  %v2879_v2 = vmax.f32 %v11505_v55, 0.0  ;;  %v15692_v54 = vld [vmem:[#allocation147_spill] sm:$0xff] }
 0x1bb   :  { %3354 = vmatmul.mubr.f32.gmra.mrb[4].mxu1 %v15683_v14  ;;  %v2375_v49 = vadd.f32 %v2249_v6, %v2103_v59  ;;  %v1436_v50 = vadd.f32 %v1308_v43, %v1143_v57  ;;  %6745 = vmatprep.subr.bf16.mxu0 %v11424_v20  ;;  %v2863_v14 = vmax.f32 %v11498_v13, 0.0  ;;  %v1712_v41 = vadd.f32 %v1584_v32, %v1420_v9  ;;  %v15689_v13 = vld [vmem:[#allocation9_spill] sm:$0xff]  ;;  %v15690_v9 = vld [vmem:[#allocation52_spill] sm:$0xff]  ;;  %v15694_v57 = vld [vmem:[#allocation86_spill] sm:$0xff] }
 0x1bc   :  { %6843 = vmatpush1.bf16.msra.mxu1 %v11291_v31  ;;  %v1887_v21 = vmul.f32 %v15687_v61, %v15434_v40  ;;  %v2152_v19 = vmul.f32 %v15688_v4, %v15610_v8  ;;  %v2911_v35 = vmax.f32 %v2783_v7, 0.0  ;;  %v2359_v31 = vadd.f32 %v2235_v3, %v2087_v18  ;;  %3359 = vmatprep.mubr.f32.mxu1 %v11378_v25  ;;  %v15691_v3 = vld [vmem:[#allocation36_spill] sm:$0xff] }
 0x1bd   :  { %6845 = vmatprep.subr.bf16.mxu1 %v11424_v20  ;;  %v2639_v26 = vadd.f32 %v2514_v11, %v2375_v49  ;;  %v1728_v6 = vadd.f32 %v1600_v39, %v1436_v50  ;;  %v1992_v59 = vadd.f32 %v1872_v37, %v1712_v41  ;;  %v2166_v43 = vmul.f32 %v15689_v13, %v15610_v8  ;;  %v15693_v25 = vld [vmem:[#allocation60_spill] sm:$0xff] }
 0x1be   :  { %v479_v32 = vmul.f32 %v15690_v9, %v8898_v60  ;;  %6747 = vmatpush1.bf16.msra.mxu0 %v11406_v27  ;;  %v2895_v55 = vmax.f32 %v2767_v36, 0.0  ;;  %v2623_v7 = vadd.f32 %v2501_v17, %v2359_v31  ;;  %v2424_v11 = vmul.f32 %v15692_v54, %v15691_v3  ;;  %v15697_v36 = vld [vmem:[#allocation98_spill] sm:$0xff]  ;;  %v15698_v17 = vld [vmem:[#allocation107_spill] sm:$0xff] }
 0x1bf   :  { %3360 = vmatmul.mubr.f32.gmra.mrb[6].mxu1 %v11388_v30  ;;  %v493_v30 = vmul.f32 %v15693_v25, %v8898_v60  ;;  %6749 = vmatprep.subr.bf16.mxu0 %v15694_v57  ;;  %v2008_v39 = vadd.f32 %v1887_v21, %v1728_v6  ;;  %v2264_v37 = vadd.f32 %v2152_v19, %v1992_v59  ;;  %v15699_v21 = vld [vmem:[#allocation166_spill] sm:$0xff]  ;;  %v15700_v59 = vld [vmem:[#allocation69_spill] sm:$0xff] }
 0x1c0   :  { %6847 = vmatpush1.bf16.msra.mxu1 %v11406_v27  ;;  %v2437_v18 = vmul.f32 %v15615_v46, %v15691_v3  ;;  %v11601_v49 = vpack.c.bf16 %v2879_v2, %v2863_v14  ;;  %v11603_v50 = vpack.c.bf16 %v2911_v35, %v2895_v55  ;;  %3430 = vmatprep.mubr.f32.mxu1 %v11416_v38  ;;  %v15701_v38 = vld [vmem:[#allocation79_spill] sm:$0xff]  ;;  %v15702_v14 = vld [vmem:[#allocation130_spill] sm:$0xff] }
 0x1c1   :  { %6849 = vmatprep.subr.bf16.mxu1 %v15694_v57  ;;  %v747_v31 = vmul.f32 %v15697_v36, %v8907_v62  ;;  %v762_v41 = vmul.f32 %v15698_v17, %v8907_v62  ;;  %v11611_v27 = vadd.f32 %v11205_v15, %v2623_v7  ;;  %v11614_v19 = vadd.f32 %v15699_v21, %v2639_v26  ;;  %v15703_v46 = vld [vmem:[#allocation139_spill] sm:$0xff]  ;;  %v15704_v7 = vld [vmem:[#allocation58_spill] sm:$0xff] }
 0x1c2   :  { %15695 = vst [vmem:[#allocation194_spill] sm:$0xff] %v11601_v49  ;;  %15696 = vst [vmem:[#allocation76_spill] sm:$0xff] %v11603_v50  ;;  %v2280_v6 = vadd.f32 %v2166_v43, %v2008_v39  ;;  %v591_v2 = vadd.f32 %v479_v32, %v15700_v59  ;;  %6751 = vmatpush1.bf16.msra.mxu0 %v15663_v48  ;;  %v605_v35 = vadd.f32 %v493_v30, %v15701_v38  ;;  %v15705_v32 = vld [vmem:[#allocation123_spill] sm:$0xff] }
 0x1c3   :  { %v1031_v55 = vmul.f32 %v15702_v14, %v15249_v28  ;;  %v1047_v54 = vmul.f32 %v15703_v46, %v15249_v28  ;;  %6753 = vmatprep.subr.bf16.mxu0 %v15704_v7  ;;  %v2528_v26 = vadd.f32 %v2424_v11, %v2264_v37  ;;  %v1324_v39 = vmul.f32 %v15705_v32, %v15672_v45  ;;  %v15706_v11 = vld [vmem:[#allocation183_spill] sm:$0xff] }
 0x1c4   :  { %6851 = vmatpush1.bf16.msra.mxu1 %v15663_v48  ;;  %v11626_v43 = vadd.f32 %v2437_v18, %v2280_v6  ;;  %v867_v59 = vadd.f32 %v747_v31, %v591_v2  ;;  %v882_v48 = vadd.f32 %v762_v41, %v605_v35  ;;  %v507_v30 = vmul.f32 %v15627_v42, %v8898_v60  ;;  %v15707_v31 = vld [vmem:[#allocation89_spill] sm:$0xff]  ;;  %v15708_v35 = vld [vmem:[#allocation87_spill] sm:$0xff] }
 0x1c5   :  { %6853 = vmatprep.subr.bf16.mxu1 %v15704_v7  ;;  %v777_v38 = vmul.f32 %v15631_v52, %v8907_v62  ;;  %v11635_v46 = vadd.f32 %v15634_v5, %v2528_v26  ;;  %v1340_v50 = vmul.f32 %v15616_v12, %v15672_v45  ;;  %v1616_v37 = vmul.f32 %v15706_v11, %v15426_v10  ;;  %v15712_v11 = vld [vmem:[#allocation85_spill] sm:$0xff] }
 0x1c6   :  { %v792_v18 = vmul.f32 %v15632_v24, %v8907_v62  ;;  %6755 = vmatpush1.bf16.msra.mxu0 %v11161_v29  ;;  %v1159_v60 = vadd.f32 %v1031_v55, %v867_v59  ;;  %v619_v41 = vadd.f32 %v507_v30, %v15707_v31  ;;  %v1079_v6 = vmul.f32 %v15638_v63, %v15249_v28  ;;  %v15710_v30 = vld [vmem:[#allocation138_spill] sm:$0xff]  ;;  %v15711_v63 = vld [vmem:[#allocation48_spill] sm:$0xff] }
 0x1c7   :  { %6757 = vmatprep.subr.bf16.mxu0 %v11410_v47  ;;  %v1175_v2 = vadd.f32 %v1047_v54, %v882_v48  ;;  %v1632_v26 = vmul.f32 %v15708_v35, %v15426_v10  ;;  %v1063_v5 = vmul.f32 %v15643_v33, %v15249_v28  ;;  %v1917_v42 = vmul.f32 %v15711_v63, %v15434_v40  ;;  %v15713_v54 = vld [vmem:[#allocation189_spill] sm:$0xff]  ;;  %v15719_v33 = vld [vmem:[#allocation160_spill] sm:$0xff] }
 0x1c8   :  { %6855 = vmatpush1.bf16.msra.mxu1 %v11161_v29  ;;  %v1452_v24 = vadd.f32 %v1324_v39, %v1159_v60  ;;  %v15709_v29 = vld [vmem:[#allocation193_spill] sm:$0xff]  ;;  %v897_v59 = vadd.f32 %v777_v38, %v619_v41  ;;  %v912_v31 = vadd.f32 %v792_v18, %v15710_v30  ;;  %v2180_v48 = vmul.f32 %v15712_v11, %v15610_v8  ;;  %v15714_v18 = vld [vmem:[#allocation174_spill] sm:$0xff]  ;;  %v15716_v11 = vld [vmem:[#allocation75_spill] sm:$0xff] }
 0x1c9   :  { %6857 = vmatprep.subr.bf16.mxu1 %v11410_v47  ;;  %v1902_v55 = vmul.f32 %v15709_v29, %v15434_v40  ;;  %v1468_v52 = vadd.f32 %v1340_v50, %v1175_v2  ;;  %v1356_v35 = vmul.f32 %v15713_v54, %v15672_v45  ;;  %v1372_v38 = vmul.f32 %v15646_v16, %v15672_v45  ;;  %v15715_v50 = vld [vmem:[#allocation157_spill] sm:$0xff] }
 0x1ca   :  { %6759 = vmatpush1.bf16.msra.mxu0 %v15676_v1  ;;  %v1744_v39 = vadd.f32 %v1616_v37, %v1452_v24  ;;  %v1207_v60 = vadd.f32 %v1079_v6, %v912_v31  ;;  %v2194_v41 = vmul.f32 %v15715_v50, %v15610_v8  ;;  %v1191_v2 = vadd.f32 %v1063_v5, %v897_v59  ;;  %v15717_v24 = vld [vmem:[#allocation119_spill] sm:$0xff]  ;;  %v15718_v6 = vld [vmem:[#allocation172_spill] sm:$0xff] }
 0x1cb   :  { %6761 = vmatprep.subr.bf16.mxu0 %v15714_v18  ;;  %v1648_v30 = vmul.f32 %v15649_v23, %v15426_v10  ;;  %v2463_v37 = vmul.f32 %v15717_v24, %v15691_v3  ;;  %v1664_v31 = vmul.f32 %v15718_v6, %v15426_v10  ;;  %v1760_v16 = vadd.f32 %v1632_v26, %v1468_v52  ;;  %v15720_v5 = vld [vmem:[#allocation187_spill] sm:$0xff]  ;;  %v15721_v24 = vld [vmem:[#allocation112_spill] sm:$0xff]  ;;  %v15724_v6 = vld [vmem:[#allocation110_spill] sm:$0xff] }
 0x1cc   :  { %6859 = vmatpush1.bf16.msra.mxu1 %v15676_v1  ;;  %v2024_v54 = vadd.f32 %v1902_v55, %v1744_v39  ;;  %v2450_v1 = vmul.f32 %v15716_v11, %v15691_v3  ;;  %v1484_v63 = vadd.f32 %v1356_v35, %v1191_v2  ;;  %v1932_v29 = vmul.f32 %v15719_v33, %v15434_v40  ;;  %v11688_v55 = vld [vmem:[%s14492_s3 + $0x10] sm:$0xff]  ;;  %v15722_v35 = vld [vmem:[#allocation135_spill] sm:$0xff]  ;;  %v15723_v2 = vld [vmem:[#allocation102_spill] sm:$0xff] }
 0x1cd   :  { %6861 = vmatprep.subr.bf16.mxu1 %v15714_v18  ;;  %v822_v59 = vmul.f32 %v15720_v5, %v8907_v62  ;;  %v1500_v39 = vadd.f32 %v1372_v38, %v1207_v60  ;;  %v1947_v52 = vmul.f32 %v15721_v24, %v15434_v40  ;;  %v1111_v26 = vmul.f32 %v15722_v35, %v15249_v28  ;;  %v15725_v50 = vld [vmem:[#allocation184_spill] sm:$0xff]  ;;  %v15726_v60 = vld [vmem:[#allocation18_spill] sm:$0xff] }
 0x1ce   :  { %6763 = vmatpush1.bf16.msra.mxu0 %v11424_v20  ;;  %v2040_v5 = vadd.f32 %v1917_v42, %v1760_v16  ;;  %v1776_v33 = vadd.f32 %v1648_v30, %v1484_v63  ;;  %v2296_v11 = vadd.f32 %v2180_v48, %v2024_v54  ;;  %v2208_v12 = vmul.f32 %v15725_v50, %v15610_v8  ;;  %v11705_v35 = vld [vmem:[%s14492_s3 + $0x40] sm:$0xff]  ;;  %v15727_v42 = vld [vmem:[#allocation116_spill] sm:$0xff]  ;;  %v15728_v48 = vld [vmem:[#allocation117_spill] sm:$0xff] }
 0x1cf   :  { %6765 = vmatprep.subr.bf16.mxu0 %v15723_v2  ;;  %v1792_v23 = vadd.f32 %v1664_v31, %v1500_v39  ;;  %v2222_v38 = vmul.f32 %v15726_v60, %v15610_v8  ;;  %v807_v63 = vmul.f32 %v15727_v42, %v8907_v62  ;;  %v1404_v54 = vmul.f32 %v15728_v48, %v15672_v45  ;;  %v11716_v30 = vld [vmem:[%s14492_s3 + $0x38] sm:$0xff] }
 0x1d0   :  { %6863 = vmatpush1.bf16.msra.mxu1 %v11424_v20  ;;  %v942_v20 = vadd.f32 %v822_v59, %v15724_v6  ;;  %v2056_v24 = vadd.f32 %v1932_v29, %v1776_v33  ;;  %v15729_v6 = vld [vmem:[#allocation149_spill] sm:$0xff]  ;;  %v15730_v33 = vld [vmem:[#allocation132_spill] sm:$0xff]  ;;  %v2927_v39 = vmax.f32 %v11611_v27, 0.0 }
 0x1d1   :  { %6865 = vmatprep.subr.bf16.mxu1 %v15723_v2  ;;  %3164 = vmatmul.mubr.f32.vlgmr.msra.gmra.mrb[0].mxu0 %v11688_v55  ;;  %v2720_v31 = vadd.f32 %v15729_v6, %v11626_v43  ;;  %v2072_v29 = vadd.f32 %v1947_v52, %v1792_v23  ;;  %v2489_v59 = vmul.f32 %v15730_v33, %v15691_v3  ;;  %v15732_v48 = vld [vmem:[#allocation113_spill] sm:$0xff]  ;;  %v2832_v23 = vmax.f32 %v11635_v46, 0.0  ;;  %v11737_v27 = vld [vmem:[%s14492_s3 + $0x68] sm:$0xff]  ;;  %v11745_v46 = vld [vmem:[%s14492_s3 + $0x60] sm:$0xff] }
 0x1d2   :  { %v1239_v16 = vadd.f32 %v1111_v26, %v942_v20  ;;  %6767 = vmatpush1.bf16.msra.mxu0 %v15694_v57  ;;  %v15731_v20 = vld [vmem:[#allocation95_spill] sm:$0xff]  ;;  %v2312_v26 = vadd.f32 %v2194_v41, %v2040_v5  ;;  %v1696_v50 = vmul.f32 %v15732_v48, %v15426_v10  ;;  %3169 = vmatprep.mubr.f32.mxu0 %v11705_v35 }
 0x1d3   :  { %6769 = vmatprep.subr.bf16.mxu0 %v15731_v20  ;;  %v2560_v43 = vadd.f32 %v2450_v1, %v2296_v11  ;;  %v2344_v52 = vadd.f32 %v2222_v38, %v2072_v29  ;;  %v1095_v33 = vmul.f32 %v15664_v0, %v15249_v28  ;;  %v2328_v5 = vadd.f32 %v2208_v12, %v2056_v24 }
 0x1d4   :  { %6867 = vmatpush1.bf16.msra.mxu1 %v15694_v57  ;;  %v2476_v57 = vmul.f32 %v15665_v51, %v15691_v3  ;;  %v2576_v41 = vadd.f32 %v2463_v37, %v2312_v26  ;;  %v15733_v51 = vld [vmem:[#allocation178_spill] sm:$0xff]  ;;  %v1532_v42 = vadd.f32 %v1404_v54, %v1239_v16  ;;  %v2943_v1 = vmax.f32 %v11614_v19, 0.0  ;;  %v15737_v26 = vld [vmem:[#allocation125_spill] sm:$0xff] }
 0x1d5   :  { %6869 = vmatprep.subr.bf16.mxu1 %v15731_v20  ;;  %3170 = vmatmul.mubr.f32.gmra.mrb[2].mxu0 %v11716_v30  ;;  %v927_v48 = vadd.f32 %v807_v63, %v15733_v51  ;;  %v2608_v11 = vadd.f32 %v2489_v59, %v2344_v52  ;;  %v1388_v38 = vmul.f32 %v15667_v58, %v15672_v45  ;;  %v15734_v51 = vld [vmem:[#allocation127_spill] sm:$0xff]  ;;  %v2848_v24 = vmax.f32 %v2720_v31, 0.0  ;;  %v15735_v19 = vld [vmem:[#allocation146_spill] sm:$0xff] }
 0x1d6   :  { %6771 = vmatpush1.bf16.msra.mxu0 %v15704_v7  ;;  %v718_v12 = vmul.f32 %v15576_v56, %v15249_v28  ;;  %v2592_v37 = vadd.f32 %v2476_v57, %v2328_v5  ;;  %v1824_v63 = vadd.f32 %v1696_v50, %v1532_v42  ;;  %v1977_v16 = vmul.f32 %v15569_v34, %v15434_v40  ;;  %v15736_v59 = vld [vmem:[#allocation31_spill] sm:$0xff]  ;;  %v11766_v57 = vld [vmem:[%s14492_s3 + $0x90] sm:$0xff]  ;;  %v15740_v31 = vld [vmem:[#allocation66_spill] sm:$0xff] }
 0x1d7   :  { %6773 = vmatprep.subr.bf16.mxu0 %v15734_v51  ;;  %3175 = vmatprep.mubr.f32.mxu0 %v11737_v27  ;;  %v2752_v54 = vadd.f32 %v15735_v19, %v2576_v41  ;;  %v1223_v29 = vadd.f32 %v1095_v33, %v927_v48  ;;  %v1680_v45 = vmul.f32 %v15668_v22, %v15426_v10  ;;  %v11779_v33 = vld [vmem:[%s14492_s3 + $0x88] sm:$0xff] }
 0x1d8   :  { %6871 = vmatpush1.bf16.msra.mxu1 %v15704_v7  ;;  %v1000_v52 = vmul.f32 %v15737_v26, %v15736_v59  ;;  %v11768_v50 = vpack.c.bf16 %v2943_v1, %v2927_v39  ;;  %v11770_v42 = vpack.c.bf16 %v2848_v24, %v2832_v23  ;;  %v2736_v41 = vadd.f32 %v15740_v31, %v2560_v43  ;;  %v15742_v7 = vld [vmem:[#allocation120_spill] sm:$0xff]  ;;  %v15743_v1 = vld [vmem:[#allocation51_spill] sm:$0xff]  ;;  %v15744_v24 = vld [vmem:[#allocation145_spill] sm:$0xff] }
 0x1d9   :  { %6873 = vmatprep.subr.bf16.mxu1 %v15734_v51  ;;  %3176 = vmatmul.mubr.f32.gmra.mrb[4].mxu0 %v11745_v46  ;;  %v2784_v48 = vadd.f32 %v15679_v44, %v2608_v11  ;;  %15741 = vst [vmem:[#allocation24_spill] sm:$0xff] %v11779_v33  ;;  %v1516_v5 = vadd.f32 %v1388_v38, %v1223_v29  ;;  %v2880_v34 = vmax.f32 %v2752_v54, 0.0  ;;  %v15746_v29 = vld [vmem:[#allocation188_spill] sm:$0xff]  ;;  %v11804_v54 = vld [vmem:[%s14492_s3 + $0x20] sm:$0xff]  ;;  %v14813_v31 = vmov 0.0  }
 0x1da   :  { %15738 = vst [vmem:[#allocation67_spill] sm:$0xff] %v11768_v50  ;;  %15739 = vst [vmem:[#allocation158_spill] sm:$0xff] %v11770_v42  ;;  %6775 = vmatpush1.bf16.msra.mxu0 %v11410_v47  ;;  %v1962_v39 = vmul.f32 %v15742_v7, %v15434_v40  ;;  %v838_v23 = vadd.f32 %v718_v12, %v15743_v1  ;;  %v2768_v43 = vadd.f32 %v15682_v53, %v2592_v37  ;;  %v15747_v1 = vld [vmem:[#allocation155_spill] sm:$0xff]  ;;  %v15748_v37 = vld [vmem:[#allocation33_spill] sm:$0xff] }
 0x1db   :  { %6777 = vmatprep.subr.bf16.mxu0 %v15744_v24  ;;  %v2104_v11 = vadd.f32 %v1977_v16, %v1824_v63  ;;  %3181 = vmatprep.mubr.f32.mxu0 %v11766_v57  ;;  %v1808_v38 = vadd.f32 %v1680_v45, %v1516_v5  ;;  %v2236_v7 = vmul.f32 %v15746_v29, %v15610_v8  ;;  %v2912_v12 = vmax.f32 %v2784_v48, 0.0  ;;  %v15749_v16 = vld [vmem:[#allocation78_spill] sm:$0xff]  ;;  %v15750_v48 = vld [vmem:[#allocation136_spill] sm:$0xff] }
 0x1dc   :  { %6875 = vmatpush1.bf16.msra.mxu1 %v11410_v47  ;;  %v15745_v47 = vld [vmem:[#allocation104_spill] sm:$0xff]  ;;  %v1128_v26 = vadd.f32 %v1000_v52, %v838_v23  ;;  %v2515_v10 = vmul.f32 %v15747_v1, %v15691_v3  ;;  %v733_v63 = vmul.f32 %v15748_v37, %v15249_v28  ;;  %v2864_v45 = vmax.f32 %v2736_v41, 0.0  ;;  %v15751_v23 = vld [vmem:[#allocation22_spill] sm:$0xff] }
 0x1dd   :  { %6877 = vmatprep.subr.bf16.mxu1 %v15744_v24  ;;  %v2250_v44 = vmul.f32 %v15745_v47, %v15610_v8  ;;  %3182 = vmatmul.mubr.f32.gmra.mrb[6].mxu0 %v11779_v33  ;;  %v1016_v47 = vmul.f32 %v15749_v16, %v15736_v59  ;;  %v2088_v52 = vadd.f32 %v1962_v39, %v1808_v38  ;;  %v15752_v1 = vld [vmem:[#allocation106_spill] sm:$0xff]  ;;  %v15753_v29 = vld [vmem:[#allocation152_spill] sm:$0xff]  ;;  %v15754_v16 = vld [vmem:[#allocation19_spill] sm:$0xff]  ;;  %v2896_v37 = vmax.f32 %v2768_v43, 0.0 }
 0x1de   :  { %6779 = vmatpush1.bf16.msra.mxu0 %v15714_v18  ;;  %v2502_v5 = vmul.f32 %v15750_v48, %v15691_v3  ;;  %v1293_v53 = vmul.f32 %v15752_v1, %v15751_v23  ;;  %v15756_v33 = vld [vmem:[#allocation108_spill] sm:$0xff]  ;;  %3252 = vmatprep.mubr.f32.mxu0 %v14813_v31  ;;  %v11816_v41 = vpack.c.bf16 %v2880_v34, %v2864_v45  ;;  %v15758_v48 = vld [vmem:[#allocation70_spill] sm:$0xff]  ;;  %v15761_v31 = vld [vmem:[#allocation195_spill] sm:$0xff] }
 0x1df   :  { %6913 = vmatprep.subr.bf16.mxu0 %v15754_v16  ;;  %v2376_v56 = vadd.f32 %v2250_v44, %v2104_v11  ;;  %v1309_v19 = vmul.f32 %v15756_v33, %v15751_v23  ;;  %v2360_v39 = vadd.f32 %v2236_v7, %v2088_v52  ;;  %v1585_v1 = vmul.f32 %v15758_v48, %v15434_v40  ;;  %v15760_v11 = vld [vmem:[#allocation143_spill] sm:$0xff]  ;;  %v15762_v7 = vld [vmem:[#allocation21_spill] sm:$0xff] }
 0x1e0   :  { %6879 = vmatpush1.bf16.msra.mxu1 %v15714_v18  ;;  %v15755_v18 = vld [vmem:[#allocation62_spill] sm:$0xff]  ;;  %15757 = vst [vmem:[#allocation20_spill] sm:$0xff] %v11816_v41  ;;  %v1421_v38 = vadd.f32 %v1293_v53, %v1128_v26  ;;  %v11822_v43 = vpack.c.bf16 %v2912_v12, %v2896_v37  ;;  %v11831_v34 = vld [vmem:[%s14492_s3 + $0x48] sm:$0xff]  ;;  %v1873_v26 = vmul.f32 %v15762_v7, %v15610_v8  ;;  %v15764_v12 = vmov 0.0  }
 0x1e1   :  { %6881 = vmatprep.subr.bf16.mxu1 %v15753_v29  ;;  %v853_v22 = vadd.f32 %v733_v63, %v15755_v18  ;;  %6584 = vmatmul.mubr.msk.f32.vlgmr.msra.gmra.mrb[0].mxu0 %vm2997_vm0, %v11804_v54  ;;  %v2640_v44 = vadd.f32 %v2515_v10, %v2376_v56  ;;  %v1601_v63 = vmul.f32 %v15760_v11, %v15434_v40  ;;  %v15763_v56 = vld [vmem:[#allocation28_spill] sm:$0xff] }
 0x1e2   :  { %15759 = vst [vmem:[#allocation153_spill] sm:$0xff] %v11822_v43  ;;  %6915 = vmatpush1.bf16.msra.mxu0 %v15761_v31  ;;  %v2624_v53 = vadd.f32 %v2502_v5, %v2360_v39  ;;  %v480_v10 = vmul.f32 %v15690_v9, %v8907_v62  ;;  %v494_v31 = vmul.f32 %v15693_v25, %v8907_v62  ;;  %v15785_v9 = vld [vmem:[#allocation167_spill] sm:$0xff] }
 0x1e3   :  { %v1144_v18 = vadd.f32 %v1016_v47, %v853_v22  ;;  %6917 = vmatprep.subr.bf16.mxu0 %v15763_v56  ;;  %v1888_v22 = vmul.f32 %v15687_v61, %v15610_v8  ;;  %3258 = vmatprep.mubr.f32.mxu0 %v15764_v12  ;;  %v1713_v45 = vadd.f32 %v1585_v1, %v1421_v38  ;;  %v15765_v1 = vld [vmem:[#allocation190_spill] sm:$0xff]  ;;  %v11863_v38 = vld [vmem:[%s14492_s3 + $0x70] sm:$0xff] }
 0x1e4   :  { %6883 = vmatpush1.bf16.msra.mxu1 %v15723_v2  ;;  %v11845_v37 = vadd.f32 %v11205_v15, %v2624_v53  ;;  %v2153_v52 = vmul.f32 %v15688_v4, %v15691_v3  ;;  %v748_v5 = vmul.f32 %v15697_v36, %v15249_v28  ;;  %v763_v53 = vmul.f32 %v15698_v17, %v15249_v28  ;;  %v15767_v15 = vld [vmem:[#allocation71_spill] sm:$0xff]  ;;  %v15770_v17 = vld [vmem:[#allocation80_spill] sm:$0xff]  ;;  %v15772_v4 = vld [vmem:[#allocation37_spill] sm:$0xff] }
 0x1e5   :  { %6885 = vmatprep.subr.bf16.mxu1 %v11601_v49  ;;  %v1437_v47 = vadd.f32 %v1309_v19, %v1144_v18  ;;  %6585 = vmatmul.mubr.msk.f32.gmra.mrb[2].mxu0 %vm2997_vm0, %v11831_v34  ;;  %v2816_v19 = vadd.f32 %v15699_v21, %v2640_v44  ;;  %v2167_v18 = vmul.f32 %v15689_v13, %v15691_v3 }
 0x1e6   :  { %6919 = vmatpush1.bf16.msra.mxu0 %v15765_v1  ;;  %15766 = vst [vmem:[#allocation165_spill] sm:$0xff] %v11863_v38  ;;  %v1993_v2 = vadd.f32 %v1873_v26, %v1713_v45  ;;  %v592_v36 = vadd.f32 %v480_v10, %v15767_v15  ;;  %v1032_v44 = vmul.f32 %v15702_v14, %v15736_v59  ;;  %v15771_v1 = vld [vmem:[#allocation139_spill] sm:$0xff] }
 0x1e7   :  { %v1729_v39 = vadd.f32 %v1601_v63, %v1437_v47  ;;  %v15768_v63 = vld [vmem:[#allocation76_spill] sm:$0xff]  ;;  %v15769_v47 = vld [vmem:[#allocation154_spill] sm:$0xff]  ;;  %v1048_v13 = vmul.f32 %v15771_v1, %v15736_v59  ;;  %3264 = vmatprep.mubr.f32.mxu0 %v15764_v12  ;;  %v15773_v26 = vld [vmem:[#allocation147_spill] sm:$0xff]  ;;  %v1325_v10 = vmul.f32 %v15705_v32, %v15751_v23 }
 0x1e8   :  { %6887 = vmatpush1.bf16.msra.mxu1 %v15731_v20  ;;  %6921 = vmatprep.subr.bf16.mxu0 %v15769_v47  ;;  %v606_v20 = vadd.f32 %v494_v31, %v15770_v17  ;;  %v2265_v25 = vadd.f32 %v2153_v52, %v1993_v2  ;;  %v2425_v45 = vmul.f32 %v15773_v26, %v15772_v4  ;;  %v15776_v2 = vld [vmem:[#allocation171_spill] sm:$0xff] }
 0x1e9   :  { %6889 = vmatprep.subr.bf16.mxu1 %v15768_v63  ;;  %v2009_v21 = vadd.f32 %v1888_v22, %v1729_v39  ;;  %v868_v15 = vadd.f32 %v748_v5, %v592_v36  ;;  %6586 = vmatmul.mubr.msk.f32.gmra.mrb[4].mxu0 %vm2997_vm0, %v11863_v38  ;;  %v15774_v22 = vld [vmem:[#allocation3_spill] sm:$0xff]  ;;  %v15775_v39 = vld [vmem:[#allocation148_spill] sm:$0xff]  ;;  %v11889_v36 = vld [vmem:[%s14492_s3 + $0x98] sm:$0xff] }
 0x1ea   :  { %v2438_v17 = vmul.f32 %v15774_v22, %v15772_v4  ;;  %v883_v31 = vadd.f32 %v763_v53, %v606_v20  ;;  %v1341_v1 = vmul.f32 %v15775_v39, %v15751_v23  ;;  %6923 = vmatpush1.bf16.msra.mxu0 %v15776_v2  ;;  %v15777_v5 = vld [vmem:[#allocation183_spill] sm:$0xff]  ;;  %v15779_v20 = vld [vmem:[#allocation134_spill] sm:$0xff]  ;;  %v2928_v53 = vmax.f32 %v11845_v37, 0.0  ;;  %v15780_v2 = vld [vmem:[#allocation109_spill] sm:$0xff]  ;;  %3270 = vmatprep.mubr.f32.mxu0 %v15764_v12 }
 0x1eb   :  { %v2281_v14 = vadd.f32 %v2167_v18, %v2009_v21  ;;  %v1160_v52 = vadd.f32 %v1032_v44, %v868_v15  ;;  %v1617_v21 = vmul.f32 %v15777_v5, %v15434_v40  ;;  %v15778_v18 = vld [vmem:[#allocation126_spill] sm:$0xff]  ;;  %6925 = vmatprep.subr.bf16.mxu0 %v15779_v20  ;;  %v778_v39 = vmul.f32 %v15780_v2, %v15249_v28  ;;  %v15781_v22 = vld [vmem:[#allocation111_spill] sm:$0xff]  ;;  %v15782_v5 = vld [vmem:[#allocation193_spill] sm:$0xff] }
 0x1ec   :  { %6891 = vmatpush1.bf16.msra.mxu1 %v15734_v51  ;;  %v508_v32 = vmul.f32 %v15778_v18, %v8907_v62  ;;  %v1176_v51 = vadd.f32 %v1048_v13, %v883_v31  ;;  %v793_v26 = vmul.f32 %v15781_v22, %v15249_v28  ;;  %v2529_v44 = vadd.f32 %v2425_v45, %v2265_v25  ;;  %v15783_v18 = vld [vmem:[#allocation90_spill] sm:$0xff]  ;;  %v15784_v31 = vld [vmem:[#allocation87_spill] sm:$0xff]  ;;  %v15786_v25 = vld [vmem:[#allocation173_spill] sm:$0xff] }
 0x1ed   :  { %6893 = vmatprep.subr.bf16.mxu1 %v11768_v50  ;;  %v1453_v15 = vadd.f32 %v1325_v10, %v1160_v52  ;;  %v1903_v62 = vmul.f32 %v15782_v5, %v15610_v8  ;;  %6587 = vmatmul.mubr.msk.f32.gmra.mrb[6].mxu0 %vm2997_vm0, %v11889_v36  ;;  %v2545_v37 = vadd.f32 %v2438_v17, %v2281_v14  ;;  %v2944_v45 = vmax.f32 %v2816_v19, 0.0  ;;  %v15788_v14 = vld [vmem:[#allocation131_spill] sm:$0xff]  ;;  %v15790_v17 = vld [vmem:[#allocation48_spill] sm:$0xff] }
 0x1ee   :  { %v620_v38 = vadd.f32 %v508_v32, %v15783_v18  ;;  %v1469_v13 = vadd.f32 %v1341_v1, %v1176_v51  ;;  %v1633_v2 = vmul.f32 %v15784_v31, %v15434_v40  ;;  %v1080_v22 = vmul.f32 %v15785_v9, %v15736_v59  ;;  %6927 = vmatpush1.bf16.msra.mxu0 %v15786_v25  ;;  %v15787_v32 = vld [vmem:[#allocation128_spill] sm:$0xff]  ;;  %v15789_v51 = vld [vmem:[#allocation122_spill] sm:$0xff] }
 0x1ef   :  { %v1745_v10 = vadd.f32 %v1617_v21, %v1453_v15  ;;  %v1064_v18 = vmul.f32 %v15787_v32, %v15736_v59  ;;  %6929 = vmatprep.subr.bf16.mxu0 %v15788_v14  ;;  %v2705_v1 = vadd.f32 %v15789_v51, %v2529_v44  ;;  %v1918_v31 = vmul.f32 %v15790_v17, %v15610_v8  ;;  %v15791_v9 = vld [vmem:[#allocation140_spill] sm:$0xff]  ;;  %v15794_v44 = vld [vmem:[#allocation189_spill] sm:$0xff]  ;;  %v15797_v32 = vld [vmem:[#allocation151_spill] sm:$0xff] }
 0x1f0   :  { %6895 = vmatpush1.bf16.msra.mxu1 %v15744_v24  ;;  %v898_v52 = vadd.f32 %v778_v39, %v620_v38  ;;  %v913_v5 = vadd.f32 %v793_v26, %v15791_v9  ;;  %v11922_v24 = vpack.c.bf16 %v2944_v45, %v2928_v53  ;;  %v11927_v19 = vld [vmem:[%s14492_s3 + $0x8] sm:$0xff]  ;;  %v15793_v39 = vld [vmem:[#allocation85_spill] sm:$0xff]  ;;  %v1357_v15 = vmul.f32 %v15794_v44, %v15751_v23 }
 0x1f1   :  { %6897 = vmatprep.subr.bf16.mxu1 %v11770_v42  ;;  %3608 = vmatprep.mubr.f32.mxu0 %v11927_v19  ;;  %v2025_v38 = vadd.f32 %v1903_v62, %v1745_v10  ;;  %v2181_v21 = vmul.f32 %v15793_v39, %v15691_v3  ;;  %v1761_v25 = vadd.f32 %v1633_v2, %v1469_v13  ;;  %v15795_v9 = vld [vmem:[#allocation157_spill] sm:$0xff]  ;;  %v15796_v45 = vld [vmem:[#allocation144_spill] sm:$0xff]  ;;  %v2833_v2 = vmax.f32 %v2705_v1, 0.0 }
 0x1f2   :  { %15792 = vst [vmem:[#allocation168_spill] sm:$0xff] %v11922_v24  ;;  %v2195_v26 = vmul.f32 %v15795_v9, %v15691_v3  ;;  %v1208_v53 = vadd.f32 %v1080_v22, %v913_v5  ;;  %v1373_v42 = vmul.f32 %v15796_v45, %v15751_v23  ;;  %6931 = vmatpush1.bf16.msra.mxu0 %v15754_v16  ;;  %v15799_v22 = vld [vmem:[#allocation75_spill] sm:$0xff]  ;;  %v15800_v45 = vld [vmem:[#allocation172_spill] sm:$0xff] }
 0x1f3   :  { %3431 = vmatmul.mubr.f32.vlgmr.msra.gmra.mrb[0].mxu1 %v11688_v55  ;;  %v2721_v62 = vadd.f32 %v15729_v6, %v2545_v37  ;;  %v1192_v10 = vadd.f32 %v1064_v18, %v898_v52  ;;  %v1649_v44 = vmul.f32 %v15797_v32, %v15434_v40  ;;  %v15798_v55 = vld [vmem:[#allocation121_spill] sm:$0xff]  ;;  %v2041_v13 = vadd.f32 %v1918_v31, %v1761_v25  ;;  %v15801_v37 = vld [vmem:[#allocation119_spill] sm:$0xff]  ;;  %v15802_v32 = vld [vmem:[#allocation160_spill] sm:$0xff] }
 0x1f4   :  { %6899 = vmatpush1.bf16.msra.mxu1 %v15753_v29  ;;  %6933 = vmatprep.subr.bf16.mxu0 %v15798_v55  ;;  %v2451_v5 = vmul.f32 %v15799_v22, %v15772_v4  ;;  %v1665_v29 = vmul.f32 %v15800_v45, %v15434_v40  ;;  %v2297_v16 = vadd.f32 %v2181_v21, %v2025_v38  ;;  %v15803_v25 = vld [vmem:[#allocation112_spill] sm:$0xff]  ;;  %v15804_v9 = vld [vmem:[#allocation187_spill] sm:$0xff] }
 0x1f5   :  { %6901 = vmatprep.subr.bf16.mxu1 %v11816_v41  ;;  %3436 = vmatprep.mubr.f32.mxu1 %v11705_v35  ;;  %v2464_v52 = vmul.f32 %v15801_v37, %v15772_v4  ;;  %v1485_v18 = vadd.f32 %v1357_v15, %v1192_v10  ;;  %v1933_v41 = vmul.f32 %v15802_v32, %v15610_v8  ;;  %v2849_v35 = vmax.f32 %v2721_v62, 0.0  ;;  %v15805_v15 = vld [vmem:[#allocation135_spill] sm:$0xff] }
 0x1f6   :  { %v2313_v1 = vadd.f32 %v2195_v26, %v2041_v13  ;;  %v1501_v31 = vadd.f32 %v1373_v42, %v1208_v53  ;;  %v1948_v22 = vmul.f32 %v15803_v25, %v15610_v8  ;;  %v823_v45 = vmul.f32 %v15804_v9, %v15249_v28  ;;  %6935 = vmatpush1.bf16.msra.mxu0 %v15763_v56  ;;  %v15806_v42 = vld [vmem:[#allocation141_spill] sm:$0xff]  ;;  %v15807_v53 = vld [vmem:[#allocation116_spill] sm:$0xff] }
 0x1f7   :  { %3437 = vmatmul.mubr.f32.gmra.mrb[2].mxu1 %v11716_v30  ;;  %v1777_v38 = vadd.f32 %v1649_v44, %v1485_v18  ;;  %v2223_v21 = vmul.f32 %v15726_v60, %v15691_v3  ;;  %v1112_v30 = vmul.f32 %v15805_v15, %v15736_v59  ;;  %6937 = vmatprep.subr.bf16.mxu0 %v15806_v42  ;;  %v15808_v13 = vld [vmem:[#allocation124_spill] sm:$0xff] }
 0x1f8   :  { %6903 = vmatpush1.bf16.msra.mxu1 %v11601_v49  ;;  %v1793_v26 = vadd.f32 %v1665_v29, %v1501_v31  ;;  %v808_v10 = vmul.f32 %v15807_v53, %v15249_v28  ;;  %v943_v49 = vadd.f32 %v823_v45, %v15808_v13  ;;  %3442 = vmatprep.mubr.f32.mxu1 %v11737_v27  ;;  %v15810_v18 = vld [vmem:[#allocation184_spill] sm:$0xff]  ;;  %v15812_v27 = vld [vmem:[#allocation191_spill] sm:$0xff] }
 0x1f9   :  { %6905 = vmatprep.subr.bf16.mxu1 %v11822_v43  ;;  %v11972_v56 = vpack.c.bf16 %v2849_v35, %v2833_v2  ;;  %v2561_v44 = vadd.f32 %v2451_v5, %v2297_v16  ;;  %v2057_v62 = vadd.f32 %v1933_v41, %v1777_v38  ;;  %v2209_v60 = vmul.f32 %v15810_v18, %v15691_v3  ;;  %v15811_v29 = vld [vmem:[#allocation132_spill] sm:$0xff]  ;;  %v15813_v2 = vld [vmem:[#allocation117_spill] sm:$0xff]  ;;  %v15815_v16 = vld [vmem:[#allocation179_spill] sm:$0xff] }
 0x1fa   :  { %v2577_v43 = vadd.f32 %v2464_v52, %v2313_v1  ;;  %v2073_v25 = vadd.f32 %v1948_v22, %v1793_v26  ;;  %v2490_v31 = vmul.f32 %v15811_v29, %v15772_v4  ;;  %v1096_v53 = vmul.f32 %v15664_v0, %v15736_v59  ;;  %6939 = vmatpush1.bf16.msra.mxu0 %v15769_v47  ;;  %v15816_v47 = vld [vmem:[#allocation66_spill] sm:$0xff]  ;;  %v15818_v26 = vld [vmem:[#allocation113_spill] sm:$0xff] }
 0x1fb   :  { %15809 = vst [vmem:[#allocation49_spill] sm:$0xff] %v11972_v56  ;;  %3443 = vmatmul.mubr.f32.gmra.mrb[4].mxu1 %v11745_v46  ;;  %v2477_v41 = vmul.f32 %v15812_v27, %v15772_v4  ;;  %v1240_v45 = vadd.f32 %v1112_v30, %v943_v49  ;;  %v1405_v5 = vmul.f32 %v15813_v2, %v15751_v23  ;;  %v15814_v46 = vld [vmem:[#allocation4_spill] sm:$0xff]  ;;  %v15817_v38 = vld [vmem:[#allocation146_spill] sm:$0xff] }
 0x1fc   :  { %6907 = vmatpush1.bf16.msra.mxu1 %v15768_v63  ;;  %6941 = vmatprep.subr.bf16.mxu0 %v15814_v46  ;;  %v2345_v22 = vadd.f32 %v2223_v21, %v2073_v25  ;;  %v928_v52 = vadd.f32 %v808_v10, %v15815_v16  ;;  %v1389_v1 = vmul.f32 %v15667_v58, %v15751_v23  ;;  %v15819_v56 = vld [vmem:[#allocation24_spill] sm:$0xff]  ;;  %v15820_v10 = vld [vmem:[#allocation163_spill] sm:$0xff]  ;;  %v15824_v63 = vld [vmem:[#allocation114_spill] sm:$0xff] }
 0x1fd   :  { %6909 = vmatprep.subr.bf16.mxu1 %v11922_v24  ;;  %3448 = vmatprep.mubr.f32.mxu1 %v11766_v57  ;;  %v11994_v35 = vadd.f32 %v15816_v47, %v2561_v44  ;;  %v11997_v49 = vadd.f32 %v15817_v38, %v2577_v43  ;;  %v2329_v30 = vadd.f32 %v2209_v60, %v2057_v62  ;;  %v15821_v23 = vld [vmem:[#allocation103_spill] sm:$0xff]  ;;  %v15822_v60 = vld [vmem:[#allocation29_spill] sm:$0xff] }
 0x1fe   :  { %v1697_v13 = vmul.f32 %v15818_v26, %v15434_v40  ;;  %v2609_v25 = vadd.f32 %v2490_v31, %v2345_v22  ;;  %v1224_v21 = vadd.f32 %v1096_v53, %v928_v52  ;;  %v1681_v16 = vmul.f32 %v15820_v10, %v15434_v40  ;;  %6943 = vmatpush1.bf16.msra.mxu0 %v15779_v20  ;;  %v15823_v62 = vld [vmem:[#allocation125_spill] sm:$0xff]  ;;  %v15827_v20 = vld [vmem:[#allocation162_spill] sm:$0xff] }
 0x1ff   :  { %3449 = vmatmul.mubr.f32.gmra.mrb[6].mxu1 %v15819_v56  ;;  %v719_v57 = vmul.f32 %v15821_v23, %v15736_v59  ;;  %v2593_v43 = vadd.f32 %v2477_v41, %v2329_v30  ;;  %v1533_v44 = vadd.f32 %v1405_v5, %v1240_v45  ;;  %v1001_v24 = vmul.f32 %v15823_v62, %v15822_v60  ;;  %v15825_v56 = vld [vmem:[#allocation120_spill] sm:$0xff]  ;;  %v15826_v22 = vld [vmem:[#allocation53_spill] sm:$0xff]  ;;  %v15829_v30 = vld [vmem:[#allocation78_spill] sm:$0xff] }
 0x200   :  { %6911 = vmatpush1.bf16.msra.mxu1 %v11768_v50  ;;  %6945 = vmatprep.subr.bf16.mxu0 %v15824_v63  ;;  %v1517_v53 = vadd.f32 %v1389_v1, %v1224_v21  ;;  %v1963_v31 = vmul.f32 %v15825_v56, %v15610_v8  ;;  %v1978_v41 = vmul.f32 %v15827_v20, %v15610_v8  ;;  %v15828_v45 = vld [vmem:[#allocation33_spill] sm:$0xff]  ;;  %v15830_v1 = vld [vmem:[#allocation170_spill] sm:$0xff] }
 0x201   :  { %7057 = vmatprep.subr.bf16.mxu1 %v15824_v63  ;;  %v839_v52 = vadd.f32 %v719_v57, %v15826_v22  ;;  %3519 = vmatprep.mubr.f32.mxu1 %v15764_v12  ;;  %v1825_v50 = vadd.f32 %v1697_v13, %v1533_v44  ;;  %v734_v5 = vmul.f32 %v15828_v45, %v15736_v59  ;;  %v15831_v57 = vld [vmem:[#allocation188_spill] sm:$0xff]  ;;  %v15832_v13 = vld [vmem:[#allocation26_spill] sm:$0xff]  ;;  %v15834_v45 = vld [vmem:[#allocation133_spill] sm:$0xff] }
 0x202   :  { %v1017_v62 = vmul.f32 %v15829_v30, %v15822_v60  ;;  %v12025_v21 = vadd.f32 %v15830_v1, %v2609_v25  ;;  %v2237_v22 = vmul.f32 %v15831_v57, %v15691_v3  ;;  %v15833_v44 = vld [vmem:[#allocation106_spill] sm:$0xff]  ;;  %6947 = vmatpush1.bf16.msra.mxu0 %v15788_v14  ;;  %v12034_v20 = vadd.f32 %v15834_v45, %v2593_v43  ;;  %v15835_v30 = vld [vmem:[#allocation63_spill] sm:$0xff]  ;;  %v15837_v43 = vld [vmem:[#allocation104_spill] sm:$0xff] }
 0x203   :  { %6588 = vmatmul.mubr.msk.f32.vlgmr.msra.gmra.mrb[0].mxu1 %vm2997_vm0, %v11804_v54  ;;  %v1129_v56 = vadd.f32 %v1001_v24, %v839_v52  ;;  %v1294_v40 = vmul.f32 %v15833_v44, %v15832_v13  ;;  %v854_v23 = vadd.f32 %v734_v5, %v15835_v30  ;;  %v1310_v54 = vmul.f32 %v15756_v33, %v15832_v13  ;;  %v15836_v25 = vld [vmem:[#allocation118_spill] sm:$0xff]  ;;  %v15838_v5 = vld [vmem:[#allocation136_spill] sm:$0xff] }
 0x204   :  { %7059 = vmatpush1.bf16.msra.mxu1 %v15788_v14  ;;  %6949 = vmatprep.subr.bf16.mxu0 %v15836_v25  ;;  %v1809_v24 = vadd.f32 %v1681_v16, %v1517_v53  ;;  %v1586_v1 = vmul.f32 %v15758_v48, %v15610_v8  ;;  %v2105_v14 = vadd.f32 %v1978_v41, %v1825_v50  ;;  %v15839_v16 = vld [vmem:[#allocation155_spill] sm:$0xff]  ;;  %v2881_v41 = vmax.f32 %v11997_v49, 0.0  ;;  %v15845_v48 = vld [vmem:[#allocation98_spill] sm:$0xff] }
 0x205   :  { %7061 = vmatprep.subr.bf16.mxu1 %v15836_v25  ;;  %v1422_v52 = vadd.f32 %v1294_v40, %v1129_v56  ;;  %3525 = vmatprep.mubr.f32.mxu1 %v15764_v12  ;;  %v2251_v45 = vmul.f32 %v15837_v43, %v15691_v3  ;;  %v2503_v30 = vmul.f32 %v15838_v5, %v15772_v4  ;;  %v15846_v43 = vld [vmem:[#allocation165_spill] sm:$0xff] }
 0x206   :  { %v1145_v44 = vadd.f32 %v1017_v62, %v854_v23  ;;  %v2089_v33 = vadd.f32 %v1963_v31, %v1809_v24  ;;  %v2516_v40 = vmul.f32 %v15839_v16, %v15772_v4  ;;  %v1602_v53 = vmul.f32 %v15760_v11, %v15610_v8  ;;  %6951 = vmatpush1.bf16.msra.mxu0 %v15798_v55  ;;  %v15841_v31 = vld [vmem:[#allocation142_spill] sm:$0xff]  ;;  %v15843_v11 = vld [vmem:[#allocation60_spill] sm:$0xff] }
 0x207   :  { %6589 = vmatmul.mubr.msk.f32.gmra.mrb[2].mxu1 %vm2997_vm0, %v11831_v34  ;;  %v1874_v50 = vmul.f32 %v15762_v7, %v15691_v3  ;;  %v1889_v23 = vmul.f32 %v15687_v61, %v15691_v3  ;;  %v15840_v34 = vld [vmem:[#allocation52_spill] sm:$0xff]  ;;  %6953 = vmatprep.subr.bf16.mxu0 %v15841_v31  ;;  %v1714_v24 = vadd.f32 %v1586_v1, %v1422_v52  ;;  %v15842_v7 = vld [vmem:[#allocation185_spill] sm:$0xff]  ;;  %v15847_v52 = vld [vmem:[#allocation38_spill] sm:$0xff] }
 0x208   :  { %7063 = vmatpush1.bf16.msra.mxu1 %v15798_v55  ;;  %v1438_v56 = vadd.f32 %v1310_v54, %v1145_v44  ;;  %v481_v62 = vmul.f32 %v15840_v34, %v15249_v28  ;;  %v2154_v16 = vmul.f32 %v15842_v7, %v15772_v4  ;;  %v495_v55 = vmul.f32 %v15843_v11, %v15249_v28  ;;  %v15844_v61 = vld [vmem:[#allocation9_spill] sm:$0xff]  ;;  %v15848_v7 = vld [vmem:[#allocation147_spill] sm:$0xff] }
 0x209   :  { %7065 = vmatprep.subr.bf16.mxu1 %v15841_v31  ;;  %3531 = vmatprep.mubr.f32.mxu1 %v15764_v12  ;;  %v2361_v44 = vadd.f32 %v2237_v22, %v2089_v33  ;;  %v2377_v54 = vadd.f32 %v2251_v45, %v2105_v14  ;;  %v2168_v34 = vmul.f32 %v15844_v61, %v15772_v4  ;;  %v15849_v11 = vld [vmem:[#allocation107_spill] sm:$0xff]  ;;  %v2865_v33 = vmax.f32 %v11994_v35, 0.0  ;;  %v15851_v14 = vld [vmem:[#allocation72_spill] sm:$0xff] }
 0x20a   :  { %v749_v5 = vmul.f32 %v15845_v48, %v15736_v59  ;;  %v1730_v49 = vadd.f32 %v1602_v53, %v1438_v56  ;;  %v1994_v1 = vadd.f32 %v1874_v50, %v1714_v24  ;;  %v2426_v57 = vmul.f32 %v15848_v7, %v15847_v52  ;;  %6955 = vmatpush1.bf16.msra.mxu0 %v15806_v42  ;;  %v15850_v45 = vld [vmem:[#allocation3_spill] sm:$0xff]  ;;  %v15853_v50 = vld [vmem:[#allocation177_spill] sm:$0xff] }
 0x20b   :  { %6590 = vmatmul.mubr.msk.f32.gmra.mrb[4].mxu1 %vm2997_vm0, %v15846_v43  ;;  %v764_v10 = vmul.f32 %v15849_v11, %v15736_v59  ;;  %v2439_v22 = vmul.f32 %v15850_v45, %v15847_v52  ;;  %v593_v61 = vadd.f32 %v481_v62, %v15851_v14  ;;  %v15852_v43 = vld [vmem:[#allocation130_spill] sm:$0xff]  ;;  %6957 = vmatprep.subr.bf16.mxu0 %v15853_v50  ;;  %v15854_v7 = vld [vmem:[#allocation81_spill] sm:$0xff]  ;;  %v15856_v45 = vld [vmem:[#allocation139_spill] sm:$0xff] }
 0x20c   :  { %7067 = vmatpush1.bf16.msra.mxu1 %v15806_v42  ;;  %v1033_v53 = vmul.f32 %v15852_v43, %v15822_v60  ;;  %v2010_v56 = vadd.f32 %v1889_v23, %v1730_v49  ;;  %v2266_v24 = vadd.f32 %v2154_v16, %v1994_v1  ;;  %v607_v11 = vadd.f32 %v495_v55, %v15854_v7  ;;  %v15857_v62 = vld [vmem:[#allocation123_spill] sm:$0xff]  ;;  %v15860_v1 = vld [vmem:[#allocation86_spill] sm:$0xff] }
 0x20d   :  { %7069 = vmatprep.subr.bf16.mxu1 %v15853_v50  ;;  %3537 = vmatprep.mubr.f32.mxu1 %v15764_v12  ;;  %v12092_v42 = vpack.c.bf16 %v2881_v41, %v2865_v33  ;;  %v869_v35 = vadd.f32 %v749_v5, %v593_v61  ;;  %v1049_v48 = vmul.f32 %v15856_v45, %v15822_v60  ;;  %v2913_v7 = vmax.f32 %v12025_v21, 0.0  ;;  %v15858_v5 = vld [vmem:[#allocation148_spill] sm:$0xff]  ;;  %v15859_v55 = vld [vmem:[#allocation183_spill] sm:$0xff] }
 0x20e   :  { %v1326_v14 = vmul.f32 %v15857_v62, %v15832_v13  ;;  %v2625_v43 = vadd.f32 %v2503_v30, %v2361_v44  ;;  %v2641_v58 = vadd.f32 %v2516_v40, %v2377_v54  ;;  %v2282_v23 = vadd.f32 %v2168_v34, %v2010_v56  ;;  %6959 = vmatpush1.bf16.msra.mxu0 %v15814_v46  ;;  %v15862_v34 = vld [vmem:[#allocation193_spill] sm:$0xff]  ;;  %v15863_v54 = vld [vmem:[#allocation126_spill] sm:$0xff] }
 0x20f   :  { %15855 = vst [vmem:[#allocation59_spill] sm:$0xff] %v12092_v42  ;;  %6591 = vmatmul.mubr.msk.f32.gmra.mrb[6].mxu1 %vm2997_vm0, %v11889_v36  ;;  %v884_v16 = vadd.f32 %v764_v10, %v607_v11  ;;  %v1161_v61 = vadd.f32 %v1033_v53, %v869_v35  ;;  %v1342_v41 = vmul.f32 %v15858_v5, %v15832_v13  ;;  %v2897_v36 = vmax.f32 %v12034_v20, 0.0  ;;  %v15861_v11 = vld [vmem:[#allocation169_spill] sm:$0xff]  ;;  %v15864_v53 = vld [vmem:[#allocation166_spill] sm:$0xff]  ;;  %v15865_v20 = vld [vmem:[#allocation87_spill] sm:$0xff] }
 0x210   :  { %7071 = vmatpush1.bf16.msra.mxu1 %v15814_v46  ;;  %v1618_v49 = vmul.f32 %v15859_v55, %v15610_v8  ;;  %6961 = vmatprep.subr.bf16.mxu0 %v15860_v1  ;;  %v2801_v10 = vadd.f32 %v15861_v11, %v2625_v43  ;;  %v2530_v30 = vadd.f32 %v2426_v57, %v2266_v24  ;;  %v15866_v57 = vld [vmem:[#allocation109_spill] sm:$0xff]  ;;  %v15867_v43 = vld [vmem:[#allocation111_spill] sm:$0xff] }
 0x211   :  { %7073 = vmatprep.subr.bf16.mxu1 %v15860_v1  ;;  %v2546_v40 = vadd.f32 %v2439_v22, %v2282_v23  ;;  %3875 = vmatprep.mubr.f32.mxu1 %v11927_v19  ;;  %v1177_v46 = vadd.f32 %v1049_v48, %v884_v16  ;;  %v1454_v21 = vadd.f32 %v1326_v14, %v1161_v61  ;;  %v15870_v16 = vld [vmem:[#allocation91_spill] sm:$0xff] }
 0x212   :  { %v1904_v44 = vmul.f32 %v15862_v34, %v15691_v3  ;;  %v509_v33 = vmul.f32 %v15863_v54, %v15249_v28  ;;  %v2817_v56 = vadd.f32 %v15864_v53, %v2641_v58  ;;  %v2706_v35 = vadd.f32 %v15789_v51, %v2530_v30  ;;  %6963 = vmatpush1.bf16.msra.mxu0 %v15824_v63  ;;  %v15868_v28 = vld [vmem:[#allocation58_spill] sm:$0xff]  ;;  %v15879_v53 = vld [vmem:[#allocation144_spill] sm:$0xff] }
 0x213   :  { %v1634_v12 = vmul.f32 %v15865_v20, %v15610_v8  ;;  %v779_v22 = vmul.f32 %v15866_v57, %v15736_v59  ;;  %v1470_v48 = vadd.f32 %v1342_v41, %v1177_v46  ;;  %v1746_v19 = vadd.f32 %v1618_v49, %v1454_v21  ;;  %6965 = vmatprep.subr.bf16.mxu0 %v15868_v28  ;;  %v15871_v49 = vld [vmem:[#allocation167_spill] sm:$0xff] }
 0x214   :  { %7075 = vmatpush1.bf16.msra.mxu1 %v15824_v63  ;;  %v794_v24 = vmul.f32 %v15867_v43, %v15736_v59  ;;  %v12128_v58 = vpack.c.bf16 %v2913_v7, %v2897_v36  ;;  %v2929_v14 = vmax.f32 %v2801_v10, 0.0  ;;  %v2722_v23 = vadd.f32 %v15729_v6, %v2546_v40  ;;  %v15872_v7 = vld [vmem:[#allocation128_spill] sm:$0xff]  ;;  %v15873_v40 = vld [vmem:[#allocation157_spill] sm:$0xff] }
 0x215   :  { %7077 = vmatprep.subr.bf16.mxu1 %v15868_v28  ;;  %v621_v61 = vadd.f32 %v509_v33, %v15870_v16  ;;  %v1919_v30 = vmul.f32 %v15790_v17, %v15691_v3  ;;  %v2026_v63 = vadd.f32 %v1904_v44, %v1746_v19  ;;  %v2182_v41 = vmul.f32 %v15793_v39, %v15772_v4  ;;  %v15874_v33 = vld [vmem:[#allocation41_spill] sm:$0xff]  ;;  %v15875_v16 = vld [vmem:[#allocation175_spill] sm:$0xff] }
 0x216   :  { %15869 = vst [vmem:[#allocation5_spill] sm:$0xff] %v12128_v58  ;;  %v1081_v46 = vmul.f32 %v15871_v49, %v15822_v60  ;;  %v2945_v21 = vmax.f32 %v2817_v56, 0.0  ;;  %v2834_v42 = vmax.f32 %v2706_v35, 0.0  ;;  %v1065_v36 = vmul.f32 %v15872_v7, %v15822_v60  ;;  %6967 = vmatpush1.bf16.msra.mxu0 %v15836_v25  ;;  %v15878_v58 = vld [vmem:[#allocation189_spill] sm:$0xff] }
 0x217   :  { %v899_v51 = vadd.f32 %v779_v22, %v621_v61  ;;  %v1762_v10 = vadd.f32 %v1634_v12, %v1470_v48  ;;  %v2196_v44 = vmul.f32 %v15873_v40, %v15772_v4  ;;  %v914_v19 = vadd.f32 %v794_v24, %v15874_v33  ;;  %6969 = vmatprep.subr.bf16.mxu0 %v15875_v16  ;;  %v15877_v22 = vld [vmem:[#allocation75_spill] sm:$0xff] }
 0x218   :  { %7079 = vmatpush1.bf16.msra.mxu1 %v15836_v25  ;;  %v12147_v56 = vpack.c.bf16 %v2945_v21, %v2929_v14  ;;  %v2850_v35 = vmax.f32 %v2722_v23, 0.0  ;;  %v2452_v61 = vmul.f32 %v15877_v22, %v15847_v52  ;;  %v1358_v6 = vmul.f32 %v15878_v58, %v15832_v13  ;;  %v15881_v23 = vld [vmem:[#allocation151_spill] sm:$0xff] }
 0x219   :  { %7081 = vmatprep.subr.bf16.mxu1 %v15875_v16  ;;  %v2042_v25 = vadd.f32 %v1919_v30, %v1762_v10  ;;  %v2298_v12 = vadd.f32 %v2182_v41, %v2026_v63  ;;  %v1209_v48 = vadd.f32 %v1081_v46, %v914_v19  ;;  %v1374_v7 = vmul.f32 %v15879_v53, %v15832_v13  ;;  %v15882_v30 = vld [vmem:[#allocation172_spill] sm:$0xff] }
 0x21a   :  { %15876 = vst [vmem:[#allocation68_spill] sm:$0xff] %v12147_v56  ;;  %v12155_v24 = vpack.c.bf16 %v2850_v35, %v2834_v42  ;;  %v2465_v33 = vmul.f32 %v15801_v37, %v15847_v52  ;;  %v1193_v14 = vadd.f32 %v1065_v36, %v899_v51  ;;  %v1650_v21 = vmul.f32 %v15881_v23, %v15610_v8  ;;  %v15883_v42 = vld [vmem:[#allocation174_spill] sm:$0xff]  ;;  %v15885_v35 = vld [vmem:[#allocation99_spill] sm:$0xff] }
 0x21b   :  { %6971 = vmatpush1.bf16.msra.mxu0 %v15841_v31  ;;  %v2314_v56 = vadd.f32 %v2196_v44, %v2042_v25  ;;  %v1666_v63 = vmul.f32 %v15882_v30, %v15610_v8  ;;  %v824_v41 = vmul.f32 %v15804_v9, %v15736_v59  ;;  %v1934_v51 = vmul.f32 %v15802_v32, %v15691_v3  ;;  %v15884_v44 = vld [vmem:[#allocation112_spill] sm:$0xff]  ;;  %v15886_v30 = vld [vmem:[#allocation18_spill] sm:$0xff] }
 0x21c   :  { %15880 = vst [vmem:[#allocation77_spill] sm:$0xff] %v12155_v24  ;;  %7083 = vmatpush1.bf16.msra.mxu1 %v15841_v31  ;;  %6973 = vmatprep.subr.bf16.mxu0 %v15883_v42  ;;  %v1486_v46 = vadd.f32 %v1358_v6, %v1193_v14  ;;  %v1113_v36 = vmul.f32 %v15805_v15, %v15822_v60  ;;  %v15887_v6 = vld [vmem:[#allocation116_spill] sm:$0xff] }
 0x21d   :  { %7085 = vmatprep.subr.bf16.mxu1 %v15883_v42  ;;  %v2562_v10 = vadd.f32 %v2452_v61, %v2298_v12  ;;  %v1502_v31 = vadd.f32 %v1374_v7, %v1209_v48  ;;  %v1949_v19 = vmul.f32 %v15884_v44, %v15691_v3  ;;  %v944_v25 = vadd.f32 %v824_v41, %v15885_v35  ;;  %v15888_v12 = vld [vmem:[#allocation102_spill] sm:$0xff] }
 0x21e   :  { %v2578_v24 = vadd.f32 %v2465_v33, %v2314_v56  ;;  %v1778_v9 = vadd.f32 %v1650_v21, %v1486_v46  ;;  %v2224_v23 = vmul.f32 %v15886_v30, %v15772_v4  ;;  %v809_v14 = vmul.f32 %v15887_v6, %v15736_v59 }
 0x21f   :  { %6975 = vmatpush1.bf16.msra.mxu0 %v15853_v50  ;;  %v1794_v15 = vadd.f32 %v1666_v63, %v1502_v31  ;;  %v1241_v61 = vadd.f32 %v1113_v36, %v944_v25  ;;  %v1406_v7 = vmul.f32 %v15813_v2, %v15832_v13  ;;  %v2210_v48 = vmul.f32 %v15810_v18, %v15772_v4  ;;  %v15891_v25 = vld [vmem:[#allocation163_spill] sm:$0xff] }
 0x220   :  { %7087 = vmatpush1.bf16.msra.mxu1 %v15853_v50  ;;  %6977 = vmatprep.subr.bf16.mxu0 %v15888_v12  ;;  %v2058_v56 = vadd.f32 %v1934_v51, %v1778_v9  ;;  %v1097_v33 = vmul.f32 %v15664_v0, %v15822_v60  ;;  %v12191_v21 = vadd.f32 %v15816_v47, %v2562_v10  ;;  %v12200_v9 = vld [vmem:[%s14492_s3] sm:$0xff]  ;;  %v15924_v47 = vld [vmem:[#allocation52_spill] sm:$0xff] }
 0x221   :  { %7089 = vmatprep.subr.bf16.mxu1 %v15888_v12  ;;  %v2074_v50 = vadd.f32 %v1949_v19, %v1794_v15  ;;  %v2491_v63 = vmul.f32 %v15811_v29, %v15847_v52  ;;  %v1698_v41 = vmul.f32 %v15818_v26, %v15610_v8  ;;  %v12204_v46 = vadd.f32 %v15817_v38, %v2578_v24  ;;  %v15889_v15 = vld [vmem:[#allocation180_spill] sm:$0xff]  ;;  %v15890_v10 = vld [vmem:[#allocation159_spill] sm:$0xff] }
 0x222   :  { %3609 = vmatmul.mubr.f32.vlgmr.msra.gmra.mrb[8].mxu0 %v12200_v9  ;;  %v2478_v51 = vmul.f32 %v15812_v27, %v15847_v52  ;;  %v929_v36 = vadd.f32 %v809_v14, %v15889_v15  ;;  %v1390_v31 = vmul.f32 %v15890_v10, %v15832_v13  ;;  %v1534_v35 = vadd.f32 %v1406_v7, %v1241_v61  ;;  %v15892_v2 = vld [vmem:[#allocation95_spill] sm:$0xff]  ;;  %v12222_v13 = vld [vmem:[%s14492_s3 + $0x30] sm:$0xff]  ;;  %v15895_v7 = vld [vmem:[#allocation162_spill] sm:$0xff] }
 0x223   :  { %6979 = vmatpush1.bf16.msra.mxu0 %v15860_v1  ;;  %v2346_v19 = vadd.f32 %v2224_v23, %v2074_v50  ;;  %v1682_v26 = vmul.f32 %v15891_v25, %v15610_v8  ;;  %v2330_v24 = vadd.f32 %v2210_v48, %v2058_v56  ;;  %v15893_v14 = vld [vmem:[#allocation103_spill] sm:$0xff]  ;;  %15894 = vst [vmem:[#allocation192_spill] sm:$0xff] %v12222_v13  ;;  %v15897_v8 = vld [vmem:[#allocation125_spill] sm:$0xff]  ;;  %v15903_v10 = vld [vmem:[#allocation78_spill] sm:$0xff] }
 0x224   :  { %7091 = vmatpush1.bf16.msra.mxu1 %v15860_v1  ;;  %6981 = vmatprep.subr.bf16.mxu0 %v15892_v2  ;;  %v1225_v27 = vadd.f32 %v1097_v33, %v929_v36  ;;  %v720_v15 = vmul.f32 %v15893_v14, %v15822_v60  ;;  %v1826_v61 = vadd.f32 %v1698_v41, %v1534_v35  ;;  %v15896_v1 = vld [vmem:[#allocation34_spill] sm:$0xff]  ;;  %v12232_v56 = vld [vmem:[%s14492_s3 + $0x28] sm:$0xff] }
 0x225   :  { %7093 = vmatprep.subr.bf16.mxu1 %v15892_v2  ;;  %3614 = vmatprep.mubr.f32.mxu0 %v12222_v13  ;;  %v2610_v23 = vadd.f32 %v2491_v63, %v2346_v19  ;;  %v1979_v50 = vmul.f32 %v15895_v7, %v15691_v3  ;;  %v1002_v25 = vmul.f32 %v15897_v8, %v15896_v1  ;;  %v15899_v36 = vld [vmem:[#allocation120_spill] sm:$0xff]  ;;  %v15900_v63 = vld [vmem:[#allocation54_spill] sm:$0xff]  ;;  %v15902_v8 = vld [vmem:[#allocation33_spill] sm:$0xff] }
 0x226   :  { %15898 = vst [vmem:[#allocation88_spill] sm:$0xff] %v12232_v56  ;;  %3615 = vmatmul.mubr.f32.gmra.mrb[10].mxu0 %v12232_v56  ;;  %v2594_v48 = vadd.f32 %v2478_v51, %v2330_v24  ;;  %v1518_v33 = vadd.f32 %v1390_v31, %v1225_v27  ;;  %v1964_v14 = vmul.f32 %v15899_v36, %v15691_v3  ;;  %v15901_v19 = vld [vmem:[#allocation188_spill] sm:$0xff]  ;;  %v15904_v51 = vld [vmem:[#allocation127_spill] sm:$0xff] }
 0x227   :  { %v840_v41 = vadd.f32 %v720_v15, %v15900_v63  ;;  %6983 = vmatpush1.bf16.msra.mxu0 %v15868_v28  ;;  %v2238_v35 = vmul.f32 %v15901_v19, %v15772_v4  ;;  %v735_v7 = vmul.f32 %v15902_v8, %v15822_v60  ;;  %v1018_v56 = vmul.f32 %v15903_v10, %v15896_v1  ;;  %v15905_v27 = vld [vmem:[#allocation104_spill] sm:$0xff]  ;;  %v15906_v15 = vld [vmem:[#allocation27_spill] sm:$0xff]  ;;  %v15907_v63 = vld [vmem:[#allocation106_spill] sm:$0xff] }
 0x228   :  { %7095 = vmatpush1.bf16.msra.mxu1 %v15868_v28  ;;  %6985 = vmatprep.subr.bf16.mxu0 %v15904_v51  ;;  %v2252_v31 = vmul.f32 %v15905_v27, %v15772_v4  ;;  %v1295_v28 = vmul.f32 %v15907_v63, %v15906_v15  ;;  %v12255_v19 = vld [vmem:[%s14492_s3 + $0x58] sm:$0xff]  ;;  %v1810_v36 = vadd.f32 %v1682_v26, %v1518_v33  ;;  %v15909_v8 = vld [vmem:[#allocation64_spill] sm:$0xff]  ;;  %v15915_v33 = vld [vmem:[#allocation143_spill] sm:$0xff] }
 0x229   :  { %7097 = vmatprep.subr.bf16.mxu1 %v15904_v51  ;;  %v1130_v24 = vadd.f32 %v1002_v25, %v840_v41  ;;  %15908 = vst [vmem:[#allocation137_spill] sm:$0xff] %v12255_v19  ;;  %3620 = vmatprep.mubr.f32.mxu0 %v12255_v19  ;;  %v2106_v10 = vadd.f32 %v1979_v50, %v1826_v61  ;;  %v15910_v29 = vld [vmem:[#allocation108_spill] sm:$0xff]  ;;  %v15912_v41 = vld [vmem:[#allocation170_spill] sm:$0xff] }
 0x22a   :  { %v855_v0 = vadd.f32 %v735_v7, %v15909_v8  ;;  %v1311_v13 = vmul.f32 %v15910_v29, %v15906_v15  ;;  %v12264_v25 = vld [vmem:[%s14492_s3 + $0x50] sm:$0xff]  ;;  %v12268_v63 = vadd.f32 %v15912_v41, %v2610_v23  ;;  %v15914_v61 = vld [vmem:[#allocation70_spill] sm:$0xff]  ;;  %v2090_v7 = vadd.f32 %v1964_v14, %v1810_v36 }
 0x22b   :  { %15911 = vst [vmem:[#allocation97_spill] sm:$0xff] %v12264_v25  ;;  %3621 = vmatmul.mubr.f32.gmra.mrb[12].mxu0 %v12264_v25  ;;  %v15913_v27 = vld [vmem:[#allocation136_spill] sm:$0xff]  ;;  %v1423_v26 = vadd.f32 %v1295_v28, %v1130_v24  ;;  %v1587_v8 = vmul.f32 %v15914_v61, %v15691_v3  ;;  %v1603_v29 = vmul.f32 %v15915_v33, %v15691_v3  ;;  %v15916_v25 = vld [vmem:[#allocation145_spill] sm:$0xff]  ;;  %v15918_v28 = vld [vmem:[#allocation155_spill] sm:$0xff] }
 0x22c   :  { %v2504_v19 = vmul.f32 %v15913_v27, %v15847_v52  ;;  %6987 = vmatpush1.bf16.msra.mxu0 %v15875_v16  ;;  %7099 = vmatpush1.bf16.msra.mxu1 %v15875_v16  ;;  %v1146_v50 = vadd.f32 %v1018_v56, %v855_v0  ;;  %v15917_v23 = vld [vmem:[#allocation133_spill] sm:$0xff]  ;;  %v2517_v24 = vmul.f32 %v15918_v28, %v15847_v52  ;;  %v12290_v0 = vld [vmem:[%s14492_s3 + $0x80] sm:$0xff] }
 0x22d   :  { %6989 = vmatprep.subr.bf16.mxu0 %v15916_v25  ;;  %7101 = vmatprep.subr.bf16.mxu1 %v15916_v25  ;;  %v12281_v41 = vadd.f32 %v15917_v23, %v2594_v48  ;;  %v15919_v27 = vld [vmem:[#allocation21_spill] sm:$0xff]  ;;  %15920 = vst [vmem:[#allocation176_spill] sm:$0xff] %v12290_v0  ;;  %v2362_v14 = vadd.f32 %v2238_v35, %v2090_v7 }
 0x22e   :  { %v1875_v61 = vmul.f32 %v15919_v27, %v15772_v4  ;;  %3626 = vmatprep.mubr.f32.mxu0 %v12290_v0  ;;  %v2378_v56 = vadd.f32 %v2252_v31, %v2106_v10  ;;  %v1439_v36 = vadd.f32 %v1311_v13, %v1146_v50  ;;  %v15921_v16 = vld [vmem:[#allocation129_spill] sm:$0xff]  ;;  %v1715_v27 = vadd.f32 %v1587_v8, %v1423_v26  ;;  %v15925_v10 = vld [vmem:[#allocation60_spill] sm:$0xff]  ;;  %v15926_v31 = vld [vmem:[#allocation98_spill] sm:$0xff] }
 0x22f   :  { %v1890_v48 = vmul.f32 %v15921_v16, %v15772_v4  ;;  %v12298_v28 = vld [vmem:[%s14492_s3 + $0x78] sm:$0xff]  ;;  %v482_v0 = vmul.f32 %v15924_v47, %v15736_v59  ;;  %v496_v13 = vmul.f32 %v15925_v10, %v15736_v59  ;;  %v750_v7 = vmul.f32 %v15926_v31, %v15822_v60  ;;  %v15927_v50 = vld [vmem:[#allocation107_spill] sm:$0xff]  ;;  %v15928_v8 = vld [vmem:[#allocation152_spill] sm:$0xff] }
 0x230   :  { %15922 = vst [vmem:[#allocation50_spill] sm:$0xff] %v12298_v28  ;;  %3627 = vmatmul.mubr.f32.gmra.mrb[14].mxu0 %v12298_v28  ;;  %v15923_v33 = vld [vmem:[#allocation185_spill] sm:$0xff]  ;;  %7103 = vmatpush1.bf16.msra.mxu1 %v15883_v42  ;;  %v1731_v35 = vadd.f32 %v1603_v29, %v1439_v36  ;;  %v765_v26 = vmul.f32 %v15927_v50, %v15822_v60  ;;  %v15931_v36 = vld [vmem:[#allocation39_spill] sm:$0xff]  ;;  %v15933_v31 = vld [vmem:[#allocation82_spill] sm:$0xff] }
 0x231   :  { %v2155_v23 = vmul.f32 %v15923_v33, %v15847_v52  ;;  %6991 = vmatpush1.bf16.msra.mxu0 %v15883_v42  ;;  %7105 = vmatprep.subr.bf16.mxu1 %v15928_v8  ;;  %v1995_v33 = vadd.f32 %v1875_v61, %v1715_v27  ;;  %v15929_v47 = vld [vmem:[#allocation9_spill] sm:$0xff]  ;;  %v15932_v42 = vld [vmem:[#allocation147_spill] sm:$0xff]  ;;  %v608_v6 = vadd.f32 %v496_v13, %v15933_v31 }
 0x232   :  { %6993 = vmatprep.subr.bf16.mxu0 %v15928_v8  ;;  %v2169_v16 = vmul.f32 %v15929_v47, %v15847_v52  ;;  %v15930_v10 = vld [vmem:[#allocation73_spill] sm:$0xff]  ;;  %v2427_v50 = vmul.f32 %v15932_v42, %v15931_v36  ;;  %v15934_v8 = vld [vmem:[#allocation130_spill] sm:$0xff]  ;;  %v1050_v61 = vmul.f32 %v15856_v45, %v15896_v1  ;;  %v1327_v38 = vmul.f32 %v15857_v62, %v15906_v15 }
 0x233   :  { %v594_v28 = vadd.f32 %v482_v0, %v15930_v10  ;;  %v12321_v29 = vld [vmem:[%s14492_s3 + $0x18] sm:$0xff]  ;;  %v1034_v27 = vmul.f32 %v15934_v8, %v15896_v1  ;;  %v2267_v47 = vadd.f32 %v2155_v23, %v1995_v33  ;;  %v15935_v0 = vld [vmem:[#allocation3_spill] sm:$0xff]  ;;  %v2011_v42 = vadd.f32 %v1890_v48, %v1731_v35 }
 0x234   :  { %3697 = vmatprep.mubr.f32.mxu0 %v12321_v29  ;;  %v2440_v10 = vmul.f32 %v15935_v0, %v15931_v36  ;;  %7107 = vmatpush1.bf16.msra.mxu1 %v15888_v12  ;;  %v885_v13 = vadd.f32 %v765_v26, %v608_v6  ;;  %v1343_v31 = vmul.f32 %v15858_v5, %v15906_v15  ;;  %v15936_v8 = vld [vmem:[#allocation194_spill] sm:$0xff]  ;;  %v2866_v33 = vmax.f32 %v12191_v21, 0.0 }
 0x235   :  { %v870_v30 = vadd.f32 %v750_v7, %v594_v28  ;;  %6995 = vmatpush1.bf16.msra.mxu0 %v15888_v12  ;;  %7109 = vmatprep.subr.bf16.mxu1 %v15936_v8  ;;  %v2626_v23 = vadd.f32 %v2504_v19, %v2362_v14  ;;  %v1619_v7 = vmul.f32 %v15859_v55, %v15691_v3  ;;  %v15937_v19 = vld [vmem:[#allocation76_spill] sm:$0xff] }
 0x236   :  { %6997 = vmatprep.subr.bf16.mxu0 %v15936_v8  ;;  %v2642_v62 = vadd.f32 %v2517_v24, %v2378_v56  ;;  %v2283_v45 = vadd.f32 %v2169_v16, %v2011_v42  ;;  %v1178_v0 = vadd.f32 %v1050_v61, %v885_v13  ;;  %v1635_v6 = vmul.f32 %v15865_v20, %v15691_v3  ;;  %v15938_v61 = vld [vmem:[#allocation92_spill] sm:$0xff] }
 0x237   :  { %v1162_v28 = vadd.f32 %v1034_v27, %v870_v30  ;;  %v12347_v48 = vadd.f32 %v15861_v11, %v2626_v23  ;;  %v2531_v35 = vadd.f32 %v2427_v50, %v2267_v47  ;;  %v1905_v12 = vmul.f32 %v15862_v34, %v15772_v4 }
 0x238   :  { %7111 = vmatpush1.bf16.msra.mxu1 %v15892_v2  ;;  %v2882_v30 = vmax.f32 %v12204_v46, 0.0  ;;  %v2547_v21 = vadd.f32 %v2440_v10, %v2283_v45  ;;  %v1471_v16 = vadd.f32 %v1343_v31, %v1178_v0  ;;  %v1920_v42 = vmul.f32 %v15790_v17, %v15772_v4 }
 0x239   :  { %v1455_v26 = vadd.f32 %v1327_v38, %v1162_v28  ;;  %6999 = vmatpush1.bf16.msra.mxu0 %v15892_v2  ;;  %7113 = vmatprep.subr.bf16.mxu1 %v15937_v19  ;;  %v2914_v47 = vmax.f32 %v12268_v63, 0.0  ;;  %v2183_v24 = vmul.f32 %v15793_v39, %v15847_v52  ;;  %v510_v14 = vmul.f32 %v15863_v54, %v15736_v59  ;;  %v15940_v28 = vld [vmem:[#allocation67_spill] sm:$0xff] }
 0x23a   :  { %7001 = vmatprep.subr.bf16.mxu0 %v15937_v19  ;;  %v1763_v56 = vadd.f32 %v1635_v6, %v1471_v16  ;;  %v2197_v45 = vmul.f32 %v15873_v40, %v15847_v52  ;;  %v780_v46 = vmul.f32 %v15866_v57, %v15822_v60  ;;  %v795_v50 = vmul.f32 %v15867_v43, %v15822_v60 }
 0x23b   :  { %v1747_v38 = vadd.f32 %v1619_v7, %v1455_v26  ;;  %v2453_v63 = vmul.f32 %v15877_v22, %v15931_v36  ;;  %v622_v0 = vadd.f32 %v510_v14, %v15938_v61  ;;  %v1082_v10 = vmul.f32 %v15871_v49, %v15896_v1  ;;  %v15941_v26 = vld [vmem:[#allocation42_spill] sm:$0xff] }
 0x23c   :  { %7115 = vmatpush1.bf16.msra.mxu1 %v15904_v51  ;;  %v2898_v59 = vmax.f32 %v12281_v41, 0.0  ;;  %v2043_v13 = vadd.f32 %v1920_v42, %v1763_v56  ;;  %v2466_v31 = vmul.f32 %v15801_v37, %v15931_v36  ;;  %v915_v16 = vadd.f32 %v795_v50, %v15941_v26  ;;  %v15944_v41 = vld [vmem:[#allocation166_spill] sm:$0xff]  ;;  %v15953_v26 = vld [vmem:[#allocation152_spill] sm:$0xff] }
 0x23d   :  { %v2027_v27 = vadd.f32 %v1905_v12, %v1747_v38  ;;  %7003 = vmatpush1.bf16.msra.mxu0 %v15904_v51  ;;  %v15939_v12 = vld [vmem:[#allocation128_spill] sm:$0xff]  ;;  %7117 = vmatprep.subr.bf16.mxu1 %v15940_v28  ;;  %v900_v6 = vadd.f32 %v780_v46, %v622_v0  ;;  %v12384_v38 = vpack.c.bf16 %v2882_v30, %v2866_v33  ;;  %v15945_v61 = vld [vmem:[#allocation122_spill] sm:$0xff]  ;;  %v15946_v33 = vld [vmem:[#allocation149_spill] sm:$0xff] }
 0x23e   :  { %v1066_v23 = vmul.f32 %v15939_v12, %v15896_v1  ;;  %7005 = vmatprep.subr.bf16.mxu0 %v15940_v28  ;;  %v12386_v14 = vpack.c.bf16 %v2914_v47, %v2898_v59  ;;  %v2818_v42 = vadd.f32 %v15944_v41, %v2642_v62  ;;  %v1359_v56 = vmul.f32 %v15878_v58, %v15906_v15  ;;  %v15948_v46 = vld [vmem:[#allocation158_spill] sm:$0xff] }
 0x23f   :  { %v2299_v7 = vadd.f32 %v2183_v24, %v2027_v27  ;;  %15942 = vst [vmem:[#allocation186_spill] sm:$0xff] %v12384_v38  ;;  %v2707_v51 = vadd.f32 %v15945_v61, %v2531_v35  ;;  %v2315_v2 = vadd.f32 %v2197_v45, %v2043_v13  ;;  %v1210_v12 = vadd.f32 %v1082_v10, %v915_v16  ;;  %v15947_v24 = vld [vmem:[#allocation151_spill] sm:$0xff]  ;;  %v15949_v27 = vld [vmem:[#allocation172_spill] sm:$0xff] }
 0x240   :  { %15943 = vst [vmem:[#allocation6_spill] sm:$0xff] %v12386_v14  ;;  %v1375_v37 = vmul.f32 %v15879_v53, %v15906_v15  ;;  %7119 = vmatpush1.bf16.msra.mxu1 %v15916_v25  ;;  %v2723_v30 = vadd.f32 %v15946_v33, %v2547_v21  ;;  %v1194_v47 = vadd.f32 %v1066_v23, %v900_v6  ;;  %v2930_v35 = vmax.f32 %v12347_v48, 0.0  ;;  %v15950_v23 = vld [vmem:[#allocation146_spill] sm:$0xff]  ;;  %v15959_v14 = vld [vmem:[#allocation192_spill] sm:$0xff] }
 0x241   :  { %7007 = vmatpush1.bf16.msra.mxu0 %v15916_v25  ;;  %v1651_v62 = vmul.f32 %v15947_v24, %v15691_v3  ;;  %7121 = vmatprep.subr.bf16.mxu1 %v15948_v46  ;;  %v2563_v45 = vadd.f32 %v2453_v63, %v2299_v7  ;;  %v2579_v50 = vadd.f32 %v2466_v31, %v2315_v2  ;;  %v15951_v2 = vld [vmem:[#allocation18_spill] sm:$0xff]  ;;  %v15952_v31 = vld [vmem:[#allocation187_spill] sm:$0xff]  ;;  %v2946_v16 = vmax.f32 %v2818_v42, 0.0  ;;  %v15963_v24 = vld [vmem:[#allocation88_spill] sm:$0xff] }
 0x242   :  { %7009 = vmatprep.subr.bf16.mxu0 %v15948_v46  ;;  %v1667_v0 = vmul.f32 %v15949_v27, %v15691_v3  ;;  %v1487_v10 = vadd.f32 %v1359_v56, %v1194_v47  ;;  %v1935_v59 = vmul.f32 %v15802_v32, %v15772_v4  ;;  %v1950_v21 = vmul.f32 %v15884_v44, %v15772_v4  ;;  %v15954_v47 = vld [vmem:[#allocation116_spill] sm:$0xff] }
 0x243   :  { %v2211_v13 = vmul.f32 %v15810_v18, %v15847_v52  ;;  %3876 = vmatmul.mubr.f32.vlgmr.msra.gmra.mrb[8].mxu1 %v12200_v9  ;;  %v2755_v6 = vadd.f32 %v15950_v23, %v2579_v50  ;;  %v1503_v48 = vadd.f32 %v1375_v37, %v1210_v12  ;;  %v2225_v63 = vmul.f32 %v15951_v2, %v15847_v52  ;;  %v15955_v9 = vld [vmem:[#allocation135_spill] sm:$0xff]  ;;  %v15956_v50 = vld [vmem:[#allocation20_spill] sm:$0xff]  ;;  %v15957_v12 = vld [vmem:[#allocation66_spill] sm:$0xff] }
 0x244   :  { %v825_v7 = vmul.f32 %v15952_v31, %v15822_v60  ;;  %7123 = vmatpush1.bf16.msra.mxu1 %v15953_v26  ;;  %v1779_v56 = vadd.f32 %v1651_v62, %v1487_v10  ;;  %v810_v25 = vmul.f32 %v15954_v47, %v15822_v60  ;;  %v1114_v18 = vmul.f32 %v15955_v9, %v15896_v1  ;;  %v15958_v44 = vld [vmem:[#allocation100_spill] sm:$0xff]  ;;  %v15962_v9 = vld [vmem:[#allocation117_spill] sm:$0xff] }
 0x245   :  { %7011 = vmatpush1.bf16.msra.mxu0 %v15953_v26  ;;  %7125 = vmatprep.subr.bf16.mxu1 %v15956_v50  ;;  %v2835_v37 = vmax.f32 %v2707_v51, 0.0  ;;  %v2739_v23 = vadd.f32 %v15957_v12, %v2563_v45  ;;  %v1795_v2 = vadd.f32 %v1667_v0, %v1503_v48  ;;  %v15960_v62 = vld [vmem:[#allocation132_spill] sm:$0xff]  ;;  %v15961_v26 = vld [vmem:[#allocation30_spill] sm:$0xff]  ;;  %v1407_v32 = vmul.f32 %v15962_v9, %v15906_v15  ;;  %v15964_v0 = vld [vmem:[#allocation113_spill] sm:$0xff] }
 0x246   :  { %7013 = vmatprep.subr.bf16.mxu0 %v15956_v50  ;;  %v945_v31 = vadd.f32 %v825_v7, %v15958_v44  ;;  %3881 = vmatprep.mubr.f32.mxu1 %v15959_v14  ;;  %v2059_v42 = vadd.f32 %v1935_v59, %v1779_v56  ;;  %v2492_v10 = vmul.f32 %v15960_v62, %v15931_v36  ;;  %v2883_v27 = vmax.f32 %v2755_v6, 0.0  ;;  %v15965_v59 = vld [vmem:[#allocation191_spill] sm:$0xff]  ;;  %v15966_v7 = vld [vmem:[#allocation181_spill] sm:$0xff] }
 0x247   :  { %v1098_v47 = vmul.f32 %v15961_v26, %v15896_v1  ;;  %3882 = vmatmul.mubr.f32.gmra.mrb[10].mxu1 %v15963_v24  ;;  %v2075_v51 = vadd.f32 %v1950_v21, %v1795_v2  ;;  %v1699_v44 = vmul.f32 %v15964_v0, %v15691_v3  ;;  %v2851_v14 = vmax.f32 %v2723_v30, 0.0  ;;  %v15967_v62 = vld [vmem:[#allocation159_spill] sm:$0xff]  ;;  %v15968_v12 = vld [vmem:[#allocation153_spill] sm:$0xff] }
 0x248   :  { %v1242_v45 = vadd.f32 %v1114_v18, %v945_v31  ;;  %7127 = vmatpush1.bf16.msra.mxu1 %v15936_v8  ;;  %v2479_v48 = vmul.f32 %v15965_v59, %v15931_v36  ;;  %v930_v56 = vadd.f32 %v810_v25, %v15966_v7  ;;  %v1391_v6 = vmul.f32 %v15967_v62, %v15906_v15  ;;  %v15972_v25 = vld [vmem:[#allocation163_spill] sm:$0xff]  ;;  %v15974_v9 = vld [vmem:[#allocation97_spill] sm:$0xff] }
 0x249   :  { %7015 = vmatpush1.bf16.msra.mxu0 %v15936_v8  ;;  %7129 = vmatprep.subr.bf16.mxu1 %v15968_v12  ;;  %v12445_v18 = vpack.c.bf16 %v2946_v16, %v2930_v35  ;;  %v2867_v24 = vmax.f32 %v2739_v23, 0.0  ;;  %v2347_v21 = vadd.f32 %v2225_v63, %v2075_v51  ;;  %v12447_v31 = vpack.c.bf16 %v2851_v14, %v2835_v37  ;;  %v15971_v8 = vld [vmem:[#allocation137_spill] sm:$0xff]  ;;  %v15975_v35 = vld [vmem:[#allocation162_spill] sm:$0xff]  ;;  %v15977_v16 = vld [vmem:[#allocation168_spill] sm:$0xff] }
 0x24a   :  { %7017 = vmatprep.subr.bf16.mxu0 %v15968_v12  ;;  %v1535_v2 = vadd.f32 %v1407_v32, %v1242_v45  ;;  %v2331_v30 = vadd.f32 %v2211_v13, %v2059_v42  ;;  %3887 = vmatprep.mubr.f32.mxu1 %v15971_v8  ;;  %v1226_v59 = vadd.f32 %v1098_v47, %v930_v56  ;;  %v15976_v8 = vld [vmem:[#allocation103_spill] sm:$0xff]  ;;  %v15980_v37 = vld [vmem:[#allocation125_spill] sm:$0xff]  ;;  %v15982_v45 = vld [vmem:[#allocation170_spill] sm:$0xff] }
 0x24b   :  { %15969 = vst [vmem:[#allocation61_spill] sm:$0xff] %v12445_v18  ;;  %15970 = vst [vmem:[#allocation150_spill] sm:$0xff] %v12447_v31  ;;  %v1683_v7 = vmul.f32 %v15972_v25, %v15691_v3  ;;  %v12452_v0 = vpack.c.bf16 %v2883_v27, %v2867_v24  ;;  %v2611_v15 = vadd.f32 %v2492_v10, %v2347_v21  ;;  %3888 = vmatmul.mubr.f32.gmra.mrb[12].mxu1 %v15974_v9  ;;  %v15978_v27 = vld [vmem:[#allocation33_spill] sm:$0xff]  ;;  %v15979_v9 = vld [vmem:[#allocation35_spill] sm:$0xff] }
 0x24c   :  { %v1827_v62 = vadd.f32 %v1699_v44, %v1535_v2  ;;  %v1980_v23 = vmul.f32 %v15975_v35, %v15772_v4  ;;  %7131 = vmatpush1.bf16.msra.mxu1 %v15937_v19  ;;  %v2595_v32 = vadd.f32 %v2479_v48, %v2331_v30  ;;  %v1519_v13 = vadd.f32 %v1391_v6, %v1226_v59  ;;  %v15981_v10 = vld [vmem:[#allocation78_spill] sm:$0xff]  ;;  %v15983_v59 = vld [vmem:[#allocation120_spill] sm:$0xff]  ;;  %v15985_v6 = vld [vmem:[#allocation55_spill] sm:$0xff] }
 0x24d   :  { %15973 = vst [vmem:[#allocation96_spill] sm:$0xff] %v12452_v0  ;;  %7019 = vmatpush1.bf16.msra.mxu0 %v15937_v19  ;;  %v721_v63 = vmul.f32 %v15976_v8, %v15896_v1  ;;  %7133 = vmatprep.subr.bf16.mxu1 %v15977_v16  ;;  %v736_v47 = vmul.f32 %v15978_v27, %v15896_v1  ;;  %v15984_v56 = vld [vmem:[#allocation176_spill] sm:$0xff]  ;;  %v15987_v19 = vld [vmem:[#allocation50_spill] sm:$0xff]  ;;  %v15988_v27 = vld [vmem:[#allocation65_spill] sm:$0xff] }
 0x24e   :  { %7021 = vmatprep.subr.bf16.mxu0 %v15977_v16  ;;  %v1003_v42 = vmul.f32 %v15980_v37, %v15979_v9  ;;  %v1019_v51 = vmul.f32 %v15981_v10, %v15979_v9  ;;  %v12470_v44 = vadd.f32 %v15982_v45, %v2611_v15  ;;  %v1811_v14 = vadd.f32 %v1683_v7, %v1519_v13  ;;  %v15986_v2 = vld [vmem:[#allocation104_spill] sm:$0xff]  ;;  %v15989_v10 = vld [vmem:[#allocation7_spill] sm:$0xff]  ;;  %v15991_v13 = vld [vmem:[#allocation106_spill] sm:$0xff] }
 0x24f   :  { %v1965_v48 = vmul.f32 %v15983_v59, %v15772_v4  ;;  %3893 = vmatprep.mubr.f32.mxu1 %v15984_v56  ;;  %v841_v24 = vadd.f32 %v721_v63, %v15985_v6  ;;  %v2107_v21 = vadd.f32 %v1980_v23, %v1827_v62  ;;  %v2253_v30 = vmul.f32 %v15986_v2, %v15847_v52  ;;  %v15990_v3 = vld [vmem:[#allocation108_spill] sm:$0xff]  ;;  %v15992_v62 = vld [vmem:[#allocation70_spill] sm:$0xff]  ;;  %v15993_v63 = vld [vmem:[#allocation49_spill] sm:$0xff] }
 0x250   :  { %3894 = vmatmul.mubr.f32.gmra.mrb[14].mxu1 %v15987_v19  ;;  %v856_v37 = vadd.f32 %v736_v47, %v15988_v27  ;;  %v1312_v15 = vmul.f32 %v15990_v3, %v15989_v10  ;;  %v1296_v56 = vmul.f32 %v15991_v13, %v15989_v10  ;;  %v1588_v23 = vmul.f32 %v15992_v62, %v15772_v4  ;;  %v15994_v19 = vld [vmem:[#allocation133_spill] sm:$0xff]  ;;  %v15995_v47 = vld [vmem:[#allocation188_spill] sm:$0xff]  ;;  %v16010_v31 = vld [vmem:[#allocation74_spill] sm:$0xff] }
 0x251   :  { %7023 = vmatpush1.bf16.msra.mxu0 %v15940_v28  ;;  %7135 = vmatpush1.bf16.msra.mxu1 %v15940_v28  ;;  %v1131_v7 = vadd.f32 %v1003_v42, %v841_v24  ;;  %v2771_v27 = vadd.f32 %v15994_v19, %v2595_v32  ;;  %v2239_v6 = vmul.f32 %v15995_v47, %v15847_v52  ;;  %v15996_v45 = vld [vmem:[#allocation136_spill] sm:$0xff]  ;;  %v15997_v24 = vld [vmem:[#allocation143_spill] sm:$0xff]  ;;  %v15998_v0 = vld [vmem:[#allocation21_spill] sm:$0xff] }
 0x252   :  { %7025 = vmatprep.subr.bf16.mxu0 %v15993_v63  ;;  %7137 = vmatprep.subr.bf16.mxu1 %v15993_v63  ;;  %v1147_v3 = vadd.f32 %v1019_v51, %v856_v37  ;;  %v2505_v28 = vmul.f32 %v15996_v45, %v15931_v36  ;;  %v1604_v13 = vmul.f32 %v15997_v24, %v15772_v4  ;;  %v15999_v32 = vld [vmem:[#allocation155_spill] sm:$0xff]  ;;  %v16000_v51 = vld [vmem:[#allocation129_spill] sm:$0xff] }
 0x253   :  { %v1424_v42 = vadd.f32 %v1296_v56, %v1131_v7  ;;  %v1876_v62 = vmul.f32 %v15998_v0, %v15847_v52  ;;  %3964 = vmatprep.mubr.f32.mxu1 %v12321_v29  ;;  %v2091_v8 = vadd.f32 %v1965_v48, %v1811_v14  ;;  %v2379_v2 = vadd.f32 %v2253_v30, %v2107_v21  ;;  %v16001_v56 = vld [vmem:[#allocation185_spill] sm:$0xff]  ;;  %v16002_v0 = vld [vmem:[#allocation59_spill] sm:$0xff]  ;;  %v16003_v29 = vld [vmem:[#allocation52_spill] sm:$0xff] }
 0x254   :  { %v2518_v19 = vmul.f32 %v15999_v32, %v15931_v36  ;;  %v1440_v59 = vadd.f32 %v1312_v15, %v1147_v3  ;;  %v1891_v7 = vmul.f32 %v16000_v51, %v15847_v52  ;;  %v2156_v24 = vmul.f32 %v16001_v56, %v15931_v36  ;;  %v16004_v3 = vld [vmem:[#allocation60_spill] sm:$0xff]  ;;  %v16005_v21 = vld [vmem:[#allocation98_spill] sm:$0xff]  ;;  %v16008_v56 = vld [vmem:[#allocation147_spill] sm:$0xff] }
 0x255   :  { %7027 = vmatpush1.bf16.msra.mxu0 %v15948_v46  ;;  %7139 = vmatpush1.bf16.msra.mxu1 %v15948_v46  ;;  %v1716_v37 = vadd.f32 %v1588_v23, %v1424_v42  ;;  %v483_v14 = vmul.f32 %v16003_v29, %v15822_v60  ;;  %v497_v48 = vmul.f32 %v16004_v3, %v15822_v60  ;;  %v16006_v42 = vld [vmem:[#allocation9_spill] sm:$0xff]  ;;  %v16007_v51 = vld [vmem:[#allocation40_spill] sm:$0xff]  ;;  %v16009_v32 = vld [vmem:[#allocation3_spill] sm:$0xff] }
 0x256   :  { %7029 = vmatprep.subr.bf16.mxu0 %v16002_v0  ;;  %7141 = vmatprep.subr.bf16.mxu1 %v16002_v0  ;;  %v751_v30 = vmul.f32 %v16005_v21, %v15896_v1  ;;  %v1732_v15 = vadd.f32 %v1604_v13, %v1440_v59  ;;  %v2170_v46 = vmul.f32 %v16006_v42, %v15931_v36  ;;  %v16011_v29 = vld [vmem:[#allocation107_spill] sm:$0xff]  ;;  %v16012_v3 = vld [vmem:[#allocation130_spill] sm:$0xff]  ;;  %v16014_v42 = vld [vmem:[#allocation5_spill] sm:$0xff] }
 0x257   :  { %v1996_v23 = vadd.f32 %v1876_v62, %v1716_v37  ;;  %v2428_v45 = vmul.f32 %v16008_v56, %v16007_v51  ;;  %v2441_v47 = vmul.f32 %v16009_v32, %v16007_v51  ;;  %v595_v35 = vadd.f32 %v483_v14, %v16010_v31  ;;  %v16013_v62 = vld [vmem:[#allocation83_spill] sm:$0xff] }
 0x258   :  { %v766_v25 = vmul.f32 %v16011_v29, %v15896_v1  ;;  %v1035_v18 = vmul.f32 %v16012_v3, %v15979_v9  ;;  %v2012_v59 = vadd.f32 %v1891_v7, %v1732_v15  ;;  %v609_v37 = vadd.f32 %v497_v48, %v16013_v62  ;;  %v16015_v31 = vld [vmem:[#allocation139_spill] sm:$0xff] }
 0x259   :  { %7031 = vmatpush1.bf16.msra.mxu0 %v15956_v50  ;;  %7143 = vmatpush1.bf16.msra.mxu1 %v15956_v50  ;;  %v2268_v13 = vadd.f32 %v2156_v24, %v1996_v23  ;;  %v871_v21 = vadd.f32 %v751_v30, %v595_v35  ;;  %v1051_v14 = vmul.f32 %v16015_v31, %v15979_v9  ;;  %v16016_v29 = vld [vmem:[#allocation123_spill] sm:$0xff]  ;;  %v2915_v3 = vmax.f32 %v12470_v44, 0.0  ;;  %v16017_v44 = vld [vmem:[#allocation68_spill] sm:$0xff] }
 0x25a   :  { %7033 = vmatprep.subr.bf16.mxu0 %v16014_v42  ;;  %7145 = vmatprep.subr.bf16.mxu1 %v16014_v42  ;;  %v1328_v32 = vmul.f32 %v16016_v29, %v15989_v10  ;;  %v2363_v56 = vadd.f32 %v2239_v6, %v2091_v8  ;;  %v2643_v26 = vadd.f32 %v2518_v19, %v2379_v2  ;;  %v2899_v35 = vmax.f32 %v2771_v27, 0.0 }
 0x25b   :  { %v2284_v50 = vadd.f32 %v2170_v46, %v2012_v59  ;;  %v886_v7 = vadd.f32 %v766_v25, %v609_v37  ;;  %v1163_v24 = vadd.f32 %v1035_v18, %v871_v21  ;;  %v1344_v48 = vmul.f32 %v15858_v5, %v15989_v10 }
 0x25c   :  { %v1620_v15 = vmul.f32 %v15859_v55, %v15772_v4  ;;  %v2627_v30 = vadd.f32 %v2505_v28, %v2363_v56  ;;  %v2532_v23 = vadd.f32 %v2428_v45, %v2268_v13  ;;  %v1906_v25 = vmul.f32 %v15862_v34, %v15847_v52  ;;  %v16019_v56 = vld [vmem:[#allocation77_spill] sm:$0xff] }
 0x25d   :  { %7035 = vmatpush1.bf16.msra.mxu0 %v15968_v12  ;;  %7147 = vmatpush1.bf16.msra.mxu1 %v15968_v12  ;;  %v2548_v62 = vadd.f32 %v2441_v47, %v2284_v50  ;;  %v1179_v46 = vadd.f32 %v1051_v14, %v886_v7  ;;  %v1456_v18 = vadd.f32 %v1328_v32, %v1163_v24  ;;  %v12574_v24 = vld [vmem:[%s14492_s3 + $0x10] sm:$0xff] }
 0x25e   :  { %7037 = vmatprep.subr.bf16.mxu0 %v16017_v44  ;;  %7149 = vmatprep.subr.bf16.mxu1 %v16017_v44  ;;  %v12547_v8 = vpack.c.bf16 %v2915_v3, %v2899_v35  ;;  %v2803_v2 = vadd.f32 %v15861_v11, %v2627_v30  ;;  %v2819_v19 = vadd.f32 %v15944_v41, %v2643_v26  ;;  %v16020_v30 = vld [vmem:[#allocation93_spill] sm:$0xff] }
 0x25f   :  { %v2708_v27 = vadd.f32 %v15945_v61, %v2532_v23  ;;  %v1472_v28 = vadd.f32 %v1344_v48, %v1179_v46  ;;  %v1636_v50 = vmul.f32 %v15865_v20, %v15772_v4  ;;  %v1748_v45 = vadd.f32 %v1620_v15, %v1456_v18  ;;  %v16021_v18 = vld [vmem:[#allocation119_spill] sm:$0xff] }
 0x260   :  { %16018 = vst [vmem:[#allocation69_spill] sm:$0xff] %v12547_v8  ;;  %v511_v47 = vmul.f32 %v15863_v54, %v15822_v60  ;;  %v2724_v6 = vadd.f32 %v15946_v33, %v2548_v62  ;;  %v2184_v32 = vmul.f32 %v15793_v39, %v15931_v36  ;;  %v796_v26 = vmul.f32 %v15867_v43, %v15896_v1  ;;  %v16064_v33 = vld [vmem:[#allocation46_spill] sm:$0xff] }
 0x261   :  { %7039 = vmatpush1.bf16.msra.mxu0 %v15977_v16  ;;  %7151 = vmatpush1.bf16.msra.mxu1 %v15977_v16  ;;  %v1921_v3 = vmul.f32 %v15790_v17, %v15847_v52  ;;  %v2028_v21 = vadd.f32 %v1906_v25, %v1748_v45  ;;  %v781_v59 = vmul.f32 %v15866_v57, %v15896_v1  ;;  %v2931_v13 = vmax.f32 %v2803_v2, 0.0  ;;  %v16022_v2 = vld [vmem:[#allocation43_spill] sm:$0xff] }
 0x262   :  { %7041 = vmatprep.subr.bf16.mxu0 %v16019_v56  ;;  %7153 = vmatprep.subr.bf16.mxu1 %v16019_v56  ;;  %v2947_v37 = vmax.f32 %v2819_v19, 0.0  ;;  %v2836_v14 = vmax.f32 %v2708_v27, 0.0  ;;  %v1083_v7 = vmul.f32 %v15871_v49, %v15979_v9  ;;  %v1764_v48 = vadd.f32 %v1636_v50, %v1472_v28  ;;  %v16023_v50 = vld [vmem:[#allocation128_spill] sm:$0xff]  ;;  %v16031_v16 = vld [vmem:[#allocation187_spill] sm:$0xff] }
 0x263   :  { %v2198_v15 = vmul.f32 %v15873_v40, %v15931_v36  ;;  %v2454_v35 = vmul.f32 %v15877_v22, %v16007_v51  ;;  %v623_v23 = vadd.f32 %v511_v47, %v16020_v30  ;;  %v2852_v62 = vmax.f32 %v2724_v6, 0.0  ;;  %v12594_v47 = vld [vmem:[%s14492_s3 + $0x40] sm:$0xff]  ;;  %v16041_v40 = vld [vmem:[#allocation117_spill] sm:$0xff] }
 0x264   :  { %3698 = vmatmul.mubr.f32.vlgmr.msra.gmra.mrb[8].mxu0 %v12574_v24  ;;  %v2300_v46 = vadd.f32 %v2184_v32, %v2028_v21  ;;  %v2467_v25 = vmul.f32 %v16021_v18, %v16007_v51  ;;  %v916_v19 = vadd.f32 %v796_v26, %v16022_v2  ;;  %v2044_v27 = vadd.f32 %v1921_v3, %v1764_v48  ;;  %v12606_v3 = vld [vmem:[%s14492_s3 + $0x38] sm:$0xff]  ;;  %v16029_v2 = vld [vmem:[#allocation116_spill] sm:$0xff] }
 0x265   :  { %7043 = vmatpush1.bf16.msra.mxu0 %v15993_v63  ;;  %7155 = vmatpush1.bf16.msra.mxu1 %v15993_v63  ;;  %v901_v28 = vadd.f32 %v781_v59, %v623_v23  ;;  %v1067_v45 = vmul.f32 %v16023_v50, %v15979_v9  ;;  %v12597_v6 = vpack.c.bf16 %v2947_v37, %v2931_v13  ;;  %v16026_v13 = vld [vmem:[#allocation151_spill] sm:$0xff]  ;;  %v16028_v23 = vld [vmem:[#allocation160_spill] sm:$0xff]  ;;  %v16038_v18 = vld [vmem:[#allocation101_spill] sm:$0xff] }
 0x266   :  { %7045 = vmatprep.subr.bf16.mxu0 %v12384_v38  ;;  %7157 = vmatprep.subr.bf16.mxu1 %v12384_v38  ;;  %v12599_v32 = vpack.c.bf16 %v2852_v62, %v2836_v14  ;;  %v1211_v26 = vadd.f32 %v1083_v7, %v916_v19  ;;  %v1376_v21 = vmul.f32 %v15879_v53, %v15989_v10  ;;  %v16027_v14 = vld [vmem:[#allocation172_spill] sm:$0xff]  ;;  %v16030_v19 = vld [vmem:[#allocation6_spill] sm:$0xff] }
 0x267   :  { %3703 = vmatprep.mubr.f32.mxu0 %v12594_v47  ;;  %16024 = vst [vmem:[#allocation79_spill] sm:$0xff] %v12597_v6  ;;  %v2316_v59 = vadd.f32 %v2198_v15, %v2044_v27  ;;  %v1360_v48 = vmul.f32 %v15878_v58, %v15989_v10  ;;  %v1652_v37 = vmul.f32 %v16026_v13, %v15772_v4  ;;  %v16040_v13 = vld [vmem:[#allocation159_spill] sm:$0xff] }
 0x268   :  { %16025 = vst [vmem:[#allocation89_spill] sm:$0xff] %v12599_v32  ;;  %3704 = vmatmul.mubr.f32.gmra.mrb[10].mxu0 %v12606_v3  ;;  %v1668_v7 = vmul.f32 %v16027_v14, %v15772_v4  ;;  %v2564_v30 = vadd.f32 %v2454_v35, %v2300_v46  ;;  %v1936_v62 = vmul.f32 %v16028_v23, %v15847_v52  ;;  %v16032_v46 = vld [vmem:[#allocation112_spill] sm:$0xff]  ;;  %v16033_v23 = vld [vmem:[#allocation30_spill] sm:$0xff] }
 0x269   :  { %7047 = vmatpush1.bf16.msra.mxu0 %v16002_v0  ;;  %7159 = vmatpush1.bf16.msra.mxu1 %v16002_v0  ;;  %v811_v15 = vmul.f32 %v16029_v2, %v15896_v1  ;;  %v2580_v27 = vadd.f32 %v2467_v25, %v2316_v59  ;;  %v1195_v63 = vadd.f32 %v1067_v45, %v901_v28  ;;  %v12628_v0 = vld [vmem:[%s14492_s3 + $0x68] sm:$0xff]  ;;  %v12640_v45 = vld [vmem:[%s14492_s3 + $0x60] sm:$0xff] }
 0x26a   :  { %7049 = vmatprep.subr.bf16.mxu0 %v16030_v19  ;;  %7161 = vmatprep.subr.bf16.mxu1 %v16030_v19  ;;  %v826_v12 = vmul.f32 %v16031_v16, %v15896_v1  ;;  %v1504_v35 = vadd.f32 %v1376_v21, %v1211_v26  ;;  %v1951_v2 = vmul.f32 %v16032_v46, %v15847_v52  ;;  %v16034_v25 = vld [vmem:[#allocation135_spill] sm:$0xff]  ;;  %v16036_v16 = vld [vmem:[#allocation184_spill] sm:$0xff]  ;;  %v16037_v21 = vld [vmem:[#allocation18_spill] sm:$0xff] }
 0x26b   :  { %3709 = vmatprep.mubr.f32.mxu0 %v12628_v0  ;;  %v1099_v14 = vmul.f32 %v16033_v23, %v15979_v9  ;;  %v1115_v28 = vmul.f32 %v16034_v25, %v15979_v9  ;;  %16035 = vst [vmem:[#allocation138_spill] sm:$0xff] %v12640_v45  ;;  %v1488_v59 = vadd.f32 %v1360_v48, %v1195_v63  ;;  %v16039_v23 = vld [vmem:[#allocation182_spill] sm:$0xff]  ;;  %v16042_v48 = vld [vmem:[#allocation61_spill] sm:$0xff] }
 0x26c   :  { %3710 = vmatmul.mubr.f32.gmra.mrb[12].mxu0 %v12640_v45  ;;  %v2212_v26 = vmul.f32 %v16036_v16, %v15931_v36  ;;  %v2226_v46 = vmul.f32 %v16037_v21, %v15931_v36  ;;  %v946_v22 = vadd.f32 %v826_v12, %v16038_v18  ;;  %v931_v25 = vadd.f32 %v811_v15, %v16039_v23  ;;  %v16043_v16 = vld [vmem:[#allocation66_spill] sm:$0xff]  ;;  %v12666_v23 = vld [vmem:[%s14492_s3 + $0x90] sm:$0xff] }
 0x26d   :  { %7051 = vmatpush1.bf16.msra.mxu0 %v16014_v42  ;;  %7163 = vmatpush1.bf16.msra.mxu1 %v16014_v42  ;;  %v1392_v53 = vmul.f32 %v16040_v13, %v15989_v10  ;;  %v1408_v63 = vmul.f32 %v16041_v40, %v15989_v10  ;;  %v12658_v21 = vadd.f32 %v16043_v16, %v2564_v30  ;;  %v16044_v12 = vld [vmem:[#allocation146_spill] sm:$0xff]  ;;  %v16046_v13 = vld [vmem:[#allocation113_spill] sm:$0xff]  ;;  %v12674_v30 = vld [vmem:[%s14492_s3 + $0x88] sm:$0xff] }
 0x26e   :  { %7053 = vmatprep.subr.bf16.mxu0 %v16042_v48  ;;  %7165 = vmatprep.subr.bf16.mxu1 %v16042_v48  ;;  %v12661_v18 = vadd.f32 %v16044_v12, %v2580_v27  ;;  %v1243_v58 = vadd.f32 %v1115_v28, %v946_v22  ;;  %16045 = vst [vmem:[#allocation110_spill] sm:$0xff] %v12666_v23  ;;  %16047 = vst [vmem:[#allocation178_spill] sm:$0xff] %v12674_v30  ;;  %v16048_v22 = vld [vmem:[#allocation191_spill] sm:$0xff]  ;;  %v16065_v45 = vld [vmem:[#allocation96_spill] sm:$0xff] }
 0x26f   :  { %3715 = vmatprep.mubr.f32.mxu0 %v12666_v23  ;;  %v1780_v15 = vadd.f32 %v1652_v37, %v1488_v59  ;;  %v1796_v10 = vadd.f32 %v1668_v7, %v1504_v35  ;;  %v1227_v42 = vadd.f32 %v1099_v14, %v931_v25  ;;  %v1700_v40 = vmul.f32 %v16046_v13, %v15772_v4  ;;  %v16049_v12 = vld [vmem:[#allocation163_spill] sm:$0xff]  ;;  %v16050_v37 = vld [vmem:[#allocation162_spill] sm:$0xff]  ;;  %v16056_v23 = vld [vmem:[#allocation132_spill] sm:$0xff] }
 0x270   :  { %3716 = vmatmul.mubr.f32.gmra.mrb[14].mxu0 %v12674_v30  ;;  %v2480_v27 = vmul.f32 %v16048_v22, %v16007_v51  ;;  %v1536_v28 = vadd.f32 %v1408_v63, %v1243_v58  ;;  %v1684_v16 = vmul.f32 %v16049_v12, %v15772_v4  ;;  %v1981_v14 = vmul.f32 %v16050_v37, %v15847_v52  ;;  %v16051_v59 = vld [vmem:[#allocation150_spill] sm:$0xff]  ;;  %v16053_v58 = vld [vmem:[#allocation120_spill] sm:$0xff] }
 0x271   :  { %7055 = vmatpush1.bf16.msra.mxu0 %v16017_v44  ;;  %7167 = vmatpush1.bf16.msra.mxu1 %v16017_v44  ;;  %v2060_v7 = vadd.f32 %v1936_v62, %v1780_v15  ;;  %v2076_v35 = vadd.f32 %v1951_v2, %v1796_v10  ;;  %v1520_v25 = vadd.f32 %v1392_v53, %v1227_v42  ;;  %v16052_v13 = vld [vmem:[#allocation102_spill] sm:$0xff]  ;;  %v16054_v4 = vld [vmem:[#allocation104_spill] sm:$0xff]  ;;  %v16055_v22 = vmov 0.0  }
 0x272   :  { %7169 = vmatprep.subr.bf16.mxu1 %v16051_v59  ;;  %7201 = vmatprep.subr.bf16.mxu0 %v16052_v13  ;;  %v1828_v30 = vadd.f32 %v1700_v40, %v1536_v28  ;;  %v1966_v63 = vmul.f32 %v16053_v58, %v15847_v52  ;;  %v2254_v12 = vmul.f32 %v16054_v4, %v15931_v36  ;;  %v16057_v62 = vld [vmem:[#allocation188_spill] sm:$0xff]  ;;  %v12701_v40 = vld [vmem:[%s14492_s3 + $0x20] sm:$0xff] }
 0x273   :  { %3786 = vmatprep.mubr.f32.mxu0 %v16055_v22  ;;  %v2348_v37 = vadd.f32 %v2226_v46, %v2076_v35  ;;  %v2493_v44 = vmul.f32 %v16056_v23, %v16007_v51  ;;  %v2240_v53 = vmul.f32 %v16057_v62, %v15931_v36  ;;  %v16058_v42 = vld [vmem:[#allocation16_spill] sm:$0xff]  ;;  %16059 = vst [vmem:[#allocation31_spill] sm:$0xff] %v12701_v40  ;;  %v16060_v46 = vld [vmem:[#allocation155_spill] sm:$0xff]  ;;  %v16062_v62 = vld [vmem:[#allocation86_spill] sm:$0xff] }
 0x274   :  { %v456_v2 = vmul.f32 %v16058_v42, %v15896_v1  ;;  %6592 = vmatmul.mubr.msk.f32.vlgmr.msra.gmra.mrb[8].mxu0 %vm2997_vm0, %v12701_v40  ;;  %v1812_v15 = vadd.f32 %v1684_v16, %v1520_v25  ;;  %v2108_v10 = vadd.f32 %v1981_v14, %v1828_v30  ;;  %v2519_v28 = vmul.f32 %v16060_v46, %v16007_v51  ;;  %v16061_v35 = vld [vmem:[#allocation103_spill] sm:$0xff]  ;;  %v16067_v25 = vld [vmem:[#allocation136_spill] sm:$0xff]  ;;  %v16070_v40 = vld [vmem:[#allocation125_spill] sm:$0xff] }
 0x275   :  { %v722_v4 = vmul.f32 %v16061_v35, %v15979_v9  ;;  %7171 = vmatpush1.bf16.msra.mxu1 %v16019_v56  ;;  %7203 = vmatpush1.bf16.msra.mxu0 %v16062_v62  ;;  %v2332_v42 = vadd.f32 %v2212_v26, %v2060_v7  ;;  %v16063_v58 = vld [vmem:[#allocation23_spill] sm:$0xff]  ;;  %v2506_v46 = vmul.f32 %v16067_v25, %v16007_v51  ;;  %v16068_v35 = vld [vmem:[#allocation57_spill] sm:$0xff]  ;;  %v16069_v7 = vld [vmem:[#allocation36_spill] sm:$0xff] }
 0x276   :  { %v470_v23 = vmul.f32 %v16063_v58, %v15896_v1  ;;  %v568_v61 = vadd.f32 %v456_v2, %v16064_v33  ;;  %7173 = vmatprep.subr.bf16.mxu1 %v16065_v45  ;;  %v16066_v16 = vld [vmem:[#allocation95_spill] sm:$0xff]  ;;  %v2092_v30 = vadd.f32 %v1966_v63, %v1812_v15  ;;  %v2380_v14 = vadd.f32 %v2254_v12, %v2108_v10  ;;  %v16072_v15 = vld [vmem:[#allocation33_spill] sm:$0xff]  ;;  %v16075_v10 = vld [vmem:[#allocation8_spill] sm:$0xff] }
 0x277   :  { %7205 = vmatprep.subr.bf16.mxu0 %v16066_v16  ;;  %3792 = vmatprep.mubr.f32.mxu0 %v16055_v22  ;;  %v2612_v56 = vadd.f32 %v2493_v44, %v2348_v37  ;;  %v1004_v58 = vmul.f32 %v16070_v40, %v16069_v7  ;;  %v12725_v33 = vld [vmem:[%s14492_s3 + $0x48] sm:$0xff]  ;;  %v2596_v12 = vadd.f32 %v2480_v27, %v2332_v42 }
 0x278   :  { %v582_v62 = vadd.f32 %v470_v23, %v16068_v35  ;;  %v842_v26 = vadd.f32 %v722_v4, %v568_v61  ;;  %16071 = vst [vmem:[#allocation51_spill] sm:$0xff] %v12725_v33  ;;  %6593 = vmatmul.mubr.msk.f32.gmra.mrb[10].mxu0 %vm2997_vm0, %v12725_v33  ;;  %v2364_v63 = vadd.f32 %v2240_v53, %v2092_v30  ;;  %v16073_v4 = vld [vmem:[#allocation58_spill] sm:$0xff]  ;;  %v16077_v25 = vld [vmem:[#allocation147_spill] sm:$0xff] }
 0x279   :  { %v2644_v2 = vadd.f32 %v2519_v28, %v2380_v14  ;;  %v737_v44 = vmul.f32 %v16072_v15, %v15979_v9  ;;  %7175 = vmatpush1.bf16.msra.mxu1 %v12384_v38  ;;  %7207 = vmatpush1.bf16.msra.mxu0 %v16073_v4  ;;  %v16074_v61 = vld [vmem:[#allocation78_spill] sm:$0xff]  ;;  %v12738_v49 = vmul.f32 0.0, %v16077_v25  ;;  %v16079_v27 = vld [vmem:[#allocation127_spill] sm:$0xff]  ;;  %v16084_v25 = vld [vmem:[#allocation108_spill] sm:$0xff] }
 0x27a   :  { %v1020_v23 = vmul.f32 %v16074_v61, %v16069_v7  ;;  %v1132_v37 = vadd.f32 %v1004_v58, %v842_v26  ;;  %v16076_v35 = vld [vmem:[#allocation106_spill] sm:$0xff]  ;;  %7177 = vmatprep.subr.bf16.mxu1 %v12547_v8  ;;  %7209 = vmatprep.subr.bf16.mxu0 %v16079_v27  ;;  %v2628_v28 = vadd.f32 %v2506_v46, %v2364_v63  ;;  %v16082_v4 = vld [vmem:[#allocation3_spill] sm:$0xff]  ;;  %v2868_v58 = vmax.f32 %v12658_v21, 0.0  ;;  %v16086_v46 = vld [vmem:[#allocation133_spill] sm:$0xff] }
 0x27b   :  { %v1297_v40 = vmul.f32 %v16076_v35, %v16075_v10  ;;  %16078 = vst [vmem:[#allocation22_spill] sm:$0xff] %v12738_v49  ;;  %v16080_v53 = vld [vmem:[#allocation170_spill] sm:$0xff]  ;;  %v12746_v38 = vmul.f32 0.0, %v16082_v4  ;;  %3798 = vmatprep.mubr.f32.mxu0 %v16055_v22  ;;  %v857_v26 = vadd.f32 %v737_v44, %v582_v62  ;;  %v1313_v35 = vmul.f32 %v16084_v25, %v16075_v10  ;;  %v16087_v21 = vld [vmem:[#allocation21_spill] sm:$0xff]  ;;  %v16090_v15 = vld [vmem:[#allocation52_spill] sm:$0xff] }
 0x27c   :  { %v2788_v42 = vadd.f32 %v16080_v53, %v2612_v56  ;;  %v16081_v30 = vld [vmem:[#allocation70_spill] sm:$0xff]  ;;  %v12755_v56 = vld [vmem:[%s14492_s3 + $0x70] sm:$0xff]  ;;  %v2772_v63 = vadd.f32 %v16086_v46, %v2596_v12  ;;  %v2804_v4 = vadd.f32 %v15861_v11, %v2628_v28  ;;  %v2820_v53 = vadd.f32 %v15944_v41, %v2644_v2 }
 0x27d   :  { %v1589_v14 = vmul.f32 %v16081_v30, %v15847_v52  ;;  %16083 = vst [vmem:[#allocation19_spill] sm:$0xff] %v12746_v38  ;;  %v1425_v61 = vadd.f32 %v1297_v40, %v1132_v37  ;;  %16085 = vst [vmem:[#allocation62_spill] sm:$0xff] %v12755_v56  ;;  %6594 = vmatmul.mubr.msk.f32.gmra.mrb[12].mxu0 %vm2997_vm0, %v12755_v56  ;;  %v1877_v62 = vmul.f32 %v16087_v21, %v15931_v36  ;;  %v16088_v40 = vld [vmem:[#allocation175_spill] sm:$0xff]  ;;  %v16091_v28 = vld [vmem:[#allocation145_spill] sm:$0xff] }
 0x27e   :  { %7179 = vmatpush1.bf16.msra.mxu1 %v16030_v19  ;;  %7211 = vmatpush1.bf16.msra.mxu0 %v16088_v40  ;;  %v2884_v44 = vmax.f32 %v12661_v18, 0.0  ;;  %v1148_v37 = vadd.f32 %v1020_v23, %v857_v26  ;;  %v16089_v30 = vld [vmem:[#allocation143_spill] sm:$0xff]  ;;  %v484_v12 = vmul.f32 %v16090_v15, %v15896_v1  ;;  %v2916_v2 = vmax.f32 %v2788_v42, 0.0  ;;  %v16092_v11 = vld [vmem:[#allocation185_spill] sm:$0xff]  ;;  %v16093_v40 = vld [vmem:[#allocation60_spill] sm:$0xff] }
 0x27f   :  { %v1605_v25 = vmul.f32 %v16089_v30, %v15847_v52  ;;  %7181 = vmatprep.subr.bf16.mxu1 %v12597_v6  ;;  %7213 = vmatprep.subr.bf16.mxu0 %v16091_v28  ;;  %v1717_v41 = vadd.f32 %v1589_v14, %v1425_v61  ;;  %v2157_v19 = vmul.f32 %v16092_v11, %v16007_v51  ;;  %v16094_v23 = vld [vmem:[#allocation129_spill] sm:$0xff]  ;;  %v16096_v30 = vld [vmem:[#allocation98_spill] sm:$0xff]  ;;  %v2932_v42 = vmax.f32 %v2804_v4, 0.0  ;;  %v16102_v4 = vld [vmem:[#allocation152_spill] sm:$0xff] }
 0x280   :  { %v498_v21 = vmul.f32 %v16093_v40, %v15896_v1  ;;  %3804 = vmatprep.mubr.f32.mxu0 %v16055_v22  ;;  %v1441_v18 = vadd.f32 %v1313_v35, %v1148_v37  ;;  %v1892_v26 = vmul.f32 %v16094_v23, %v15931_v36  ;;  %v16095_v46 = vld [vmem:[#allocation45_spill] sm:$0xff]  ;;  %v752_v56 = vmul.f32 %v16096_v30, %v15979_v9  ;;  %v16099_v40 = vld [vmem:[#allocation107_spill] sm:$0xff]  ;;  %v16101_v22 = vld [vmem:[#allocation130_spill] sm:$0xff] }
 0x281   :  { %v232_v15 = vmul.f32 %v15822_v60, %v16095_v46  ;;  %v12787_v61 = vld [vmem:[%s14492_s3 + $0x98] sm:$0xff]  ;;  %v1997_v14 = vadd.f32 %v1877_v62, %v1717_v41  ;;  %v767_v23 = vmul.f32 %v16099_v40, %v15979_v9  ;;  %v2900_v30 = vmax.f32 %v2772_v63, 0.0 }
 0x282   :  { %16097 = vst [vmem:[#allocation195_spill] sm:$0xff] %v12787_v61  ;;  %6595 = vmatmul.mubr.msk.f32.gmra.mrb[14].mxu0 %vm2997_vm0, %v12787_v61  ;;  %v16098_v35 = vld [vmem:[#allocation9_spill] sm:$0xff]  ;;  %7183 = vmatpush1.bf16.msra.mxu1 %v16042_v48  ;;  %v16100_v46 = vld [vmem:[#allocation174_spill] sm:$0xff]  ;;  %v1733_v11 = vadd.f32 %v1605_v25, %v1441_v18  ;;  %v1036_v28 = vmul.f32 %v16101_v22, %v16069_v7  ;;  %v2948_v41 = vmax.f32 %v2820_v53, 0.0 }
 0x283   :  { %v2171_v37 = vmul.f32 %v16098_v35, %v16007_v51  ;;  %7215 = vmatpush1.bf16.msra.mxu0 %v16100_v46  ;;  %v596_v33 = vadd.f32 %v484_v12, %v232_v15  ;;  %7185 = vmatprep.subr.bf16.mxu1 %v12599_v32  ;;  %v2269_v62 = vadd.f32 %v2157_v19, %v1997_v14  ;;  %v16103_v35 = vld [vmem:[#allocation84_spill] sm:$0xff]  ;;  %v16123_v32 = vld [vmem:[#allocation75_spill] sm:$0xff] }
 0x284   :  { %7217 = vmatprep.subr.bf16.mxu0 %v16102_v4  ;;  %v610_v61 = vadd.f32 %v498_v21, %v16103_v35  ;;  %v1052_v40 = vmul.f32 %v16015_v31, %v16069_v7  ;;  %v12804_v48 = vpack.c.bf16 %v2884_v44, %v2868_v58  ;;  %v12809_v15 = vld [vmem:[%s14492_s3 + $0x8] sm:$0xff]  ;;  %v2013_v25 = vadd.f32 %v1892_v26, %v1733_v11  ;;  %v16110_v35 = vld [vmem:[#allocation94_spill] sm:$0xff] }
 0x285   :  { %4142 = vmatprep.mubr.f32.mxu0 %v12809_v15  ;;  %v872_v46 = vadd.f32 %v752_v56, %v596_v33  ;;  %v1329_v53 = vmul.f32 %v16016_v29, %v16075_v10  ;;  %3965 = vmatmul.mubr.f32.vlgmr.msra.gmra.mrb[8].mxu1 %v12574_v24  ;;  %v12815_v19 = vpack.c.bf16 %v2916_v2, %v2900_v30  ;;  %v16107_v24 = vld [vmem:[#allocation194_spill] sm:$0xff] }
 0x286   :  { %16104 = vst [vmem:[#allocation28_spill] sm:$0xff] %v12804_v48  ;;  %v12817_v63 = vpack.c.bf16 %v2948_v41, %v2932_v42  ;;  %v887_v58 = vadd.f32 %v767_v23, %v610_v61  ;;  %v1345_v21 = vmul.f32 %v15858_v5, %v16075_v10  ;;  %7187 = vmatpush1.bf16.msra.mxu1 %v16051_v59  ;;  %v16109_v61 = vld [vmem:[#allocation17_spill] sm:$0xff] }
 0x287   :  { %16105 = vst [vmem:[#allocation190_spill] sm:$0xff] %v12815_v19  ;;  %7219 = vmatpush1.bf16.msra.mxu0 %v16052_v13  ;;  %v2285_v44 = vadd.f32 %v2171_v37, %v2013_v25  ;;  %v1164_v11 = vadd.f32 %v1036_v28, %v872_v46  ;;  %v1621_v33 = vmul.f32 %v15859_v55, %v15847_v52  ;;  %v16108_v28 = vld [vmem:[#allocation115_spill] sm:$0xff] }
 0x288   :  { %16106 = vst [vmem:[#allocation71_spill] sm:$0xff] %v12817_v63  ;;  %7189 = vmatprep.subr.bf16.mxu1 %v12804_v48  ;;  %7221 = vmatprep.subr.bf16.mxu0 %v16107_v24  ;;  %v2533_v30 = vadd.f32 %v12738_v49, %v2269_v62  ;;  %v1180_v56 = vadd.f32 %v1052_v40, %v887_v58 }
 0x289   :  { %v1637_v12 = vmul.f32 %v15865_v20, %v15847_v52  ;;  %3970 = vmatprep.mubr.f32.mxu1 %v12594_v47  ;;  %v1457_v2 = vadd.f32 %v1329_v53, %v1164_v11  ;;  %v1907_v13 = vmul.f32 %v15862_v34, %v15931_v36  ;;  %v271_v18 = vmul.f32 %v15822_v60, %v16108_v28  ;;  %v16113_v11 = vld [vmem:[#allocation138_spill] sm:$0xff] }
 0x28a   :  { %v512_v23 = vmul.f32 %v15863_v54, %v15896_v1  ;;  %3971 = vmatmul.mubr.f32.gmra.mrb[10].mxu1 %v12606_v3  ;;  %v2549_v26 = vadd.f32 %v12746_v38, %v2285_v44  ;;  %v1473_v40 = vadd.f32 %v1345_v21, %v1180_v56  ;;  %v526_v42 = vmul.f32 %v16109_v61, %v15896_v1  ;;  %v16111_v3 = vld [vmem:[#allocation76_spill] sm:$0xff]  ;;  %v16112_v21 = vld [vmem:[#allocation167_spill] sm:$0xff] }
 0x28b   :  { %v782_v47 = vmul.f32 %v15866_v57, %v15979_v9  ;;  %7191 = vmatpush1.bf16.msra.mxu1 %v16065_v45  ;;  %7223 = vmatpush1.bf16.msra.mxu0 %v16066_v16  ;;  %v1749_v14 = vadd.f32 %v1621_v33, %v1457_v2  ;;  %v797_v41 = vmul.f32 %v15867_v43, %v15979_v9  ;;  %v16114_v33 = vld [vmem:[#allocation122_spill] sm:$0xff]  ;;  %v16115_v2 = vld [vmem:[#allocation149_spill] sm:$0xff] }
 0x28c   :  { %v624_v37 = vadd.f32 %v512_v23, %v16110_v35  ;;  %7193 = vmatprep.subr.bf16.mxu1 %v12815_v19  ;;  %7225 = vmatprep.subr.bf16.mxu0 %v16111_v3  ;;  %v1922_v62 = vmul.f32 %v15790_v17, %v15931_v36  ;;  %v2185_v25 = vmul.f32 %v15793_v39, %v16007_v51  ;;  %v16116_v19 = vld [vmem:[#allocation189_spill] sm:$0xff]  ;;  %v16125_v45 = vld [vmem:[#allocation178_spill] sm:$0xff] }
 0x28d   :  { %v638_v46 = vadd.f32 %v526_v42, %v271_v18  ;;  %3976 = vmatprep.mubr.f32.mxu1 %v12628_v0  ;;  %v2029_v16 = vadd.f32 %v1907_v13, %v1749_v14  ;;  %v1068_v58 = vmul.f32 %v16023_v50, %v16069_v7  ;;  %v1084_v44 = vmul.f32 %v16112_v21, %v16069_v7  ;;  %v16117_v13 = vld [vmem:[#allocation157_spill] sm:$0xff] }
 0x28e   :  { %v902_v53 = vadd.f32 %v782_v47, %v624_v37  ;;  %3977 = vmatmul.mubr.f32.gmra.mrb[12].mxu1 %v16113_v11  ;;  %v2709_v56 = vadd.f32 %v16114_v33, %v2533_v30  ;;  %v2725_v23 = vadd.f32 %v16115_v2, %v2549_v26  ;;  %v1361_v18 = vmul.f32 %v16116_v19, %v16075_v10  ;;  %v16118_v47 = vld [vmem:[#allocation144_spill] sm:$0xff]  ;;  %v16119_v30 = vld [vmem:[#allocation67_spill] sm:$0xff] }
 0x28f   :  { %v917_v35 = vadd.f32 %v797_v41, %v638_v46  ;;  %7195 = vmatpush1.bf16.msra.mxu1 %v12547_v8  ;;  %7227 = vmatpush1.bf16.msra.mxu0 %v16079_v27  ;;  %v1765_v0 = vadd.f32 %v1637_v12, %v1473_v40  ;;  %v2199_v42 = vmul.f32 %v16117_v13, %v16007_v51  ;;  %v16120_v41 = vld [vmem:[#allocation151_spill] sm:$0xff]  ;;  %v16121_v11 = vld [vmem:[#allocation156_spill] sm:$0xff]  ;;  %v16122_v27 = vld [vmem:[#allocation110_spill] sm:$0xff]  ;;  %v12878_v8 = vmul.f32 0.0, %v16123_v32 }
 0x290   :  { %v1377_v14 = vmul.f32 %v16118_v47, %v16075_v10  ;;  %7197 = vmatprep.subr.bf16.mxu1 %v12817_v63  ;;  %7229 = vmatprep.subr.bf16.mxu0 %v16119_v30  ;;  %v1196_v26 = vadd.f32 %v1068_v58, %v902_v53  ;;  %v1653_v46 = vmul.f32 %v16120_v41, %v15847_v52  ;;  %v16126_v63 = vld [vmem:[#allocation119_spill] sm:$0xff]  ;;  %v16128_v58 = vld [vmem:[#allocation172_spill] sm:$0xff]  ;;  %v16131_v32 = vld [vmem:[#allocation161_spill] sm:$0xff] }
 0x291   :  { %v1212_v37 = vadd.f32 %v1084_v44, %v917_v35  ;;  %v284_v48 = vmul.f32 %v15822_v60, %v16121_v11  ;;  %3982 = vmatprep.mubr.f32.mxu1 %v16122_v27  ;;  %v2045_v12 = vadd.f32 %v1922_v62, %v1765_v0  ;;  %v2301_v40 = vadd.f32 %v2185_v25, %v2029_v16  ;;  %v16129_v35 = vld [vmem:[#allocation160_spill] sm:$0xff]  ;;  %v16130_v60 = vld [vmem:[#allocation145_spill] sm:$0xff]  ;;  %v16133_v0 = vld [vmem:[#allocation158_spill] sm:$0xff] }
 0x292   :  { %16124 = vst [vmem:[#allocation154_spill] sm:$0xff] %v12878_v8  ;;  %3983 = vmatmul.mubr.f32.gmra.mrb[14].mxu1 %v16125_v45  ;;  %v12882_v59 = vmul.f32 0.0, %v16126_v63  ;;  %v1489_v53 = vadd.f32 %v1361_v18, %v1196_v26  ;;  %v1669_v44 = vmul.f32 %v16128_v58, %v15847_v52  ;;  %v1937_v47 = vmul.f32 %v16129_v35, %v15931_v36  ;;  %v16132_v45 = vld [vmem:[#allocation164_spill] sm:$0xff]  ;;  %v16134_v11 = vld [vmem:[#allocation187_spill] sm:$0xff] }
 0x293   :  { %7199 = vmatpush1.bf16.msra.mxu1 %v12597_v6  ;;  %7231 = vmatpush1.bf16.msra.mxu0 %v16130_v60  ;;  %v2837_v62 = vmax.f32 %v2709_v56, 0.0  ;;  %v2317_v25 = vadd.f32 %v2199_v42, %v2045_v12  ;;  %v540_v16 = vmul.f32 %v16131_v32, %v15896_v1  ;;  %v554_v63 = vmul.f32 %v16132_v45, %v15896_v1  ;;  %v16136_v42 = vld [vmem:[#allocation112_spill] sm:$0xff]  ;;  %v16138_v32 = vld [vmem:[#allocation105_spill] sm:$0xff]  ;;  %v16139_v41 = vld [vmem:[#allocation31_spill] sm:$0xff] }
 0x294   :  { %16127 = vst [vmem:[#allocation80_spill] sm:$0xff] %v12882_v59  ;;  %7233 = vmatprep.subr.bf16.mxu0 %v16133_v0  ;;  %7345 = vmatprep.subr.bf16.mxu1 %v16133_v0  ;;  %v2853_v18 = vmax.f32 %v2725_v23, 0.0  ;;  %v1505_v26 = vadd.f32 %v1377_v14, %v1212_v37  ;;  %v1781_v27 = vadd.f32 %v1653_v46, %v1489_v53  ;;  %v16135_v35 = vmov 0.0   ;;  %v16137_v60 = vld [vmem:[#allocation184_spill] sm:$0xff]  ;;  %v16140_v37 = vld [vmem:[#allocation18_spill] sm:$0xff]  ;;  %v16141_v53 = vld [vmem:[#allocation135_spill] sm:$0xff] }
 0x295   :  { %v827_v6 = vmul.f32 %v16134_v11, %v15979_v9  ;;  %4053 = vmatprep.mubr.f32.mxu1 %v16135_v35  ;;  %v2565_v56 = vadd.f32 %v12878_v8, %v2301_v40  ;;  %v1952_v12 = vmul.f32 %v16136_v42, %v15931_v36  ;;  %v2213_v45 = vmul.f32 %v16137_v60, %v16007_v51  ;;  %v16142_v42 = vld [vmem:[#allocation116_spill] sm:$0xff]  ;;  %v16175_v19 = vld [vmem:[#allocation195_spill] sm:$0xff] }
 0x296   :  { %v666_v58 = vadd.f32 %v554_v63, %v16138_v32  ;;  %6596 = vmatmul.mubr.msk.f32.vlgmr.msra.gmra.mrb[8].mxu1 %vm2997_vm0, %v16139_v41  ;;  %v1797_v23 = vadd.f32 %v1669_v44, %v1505_v26  ;;  %v2061_v14 = vadd.f32 %v1937_v47, %v1781_v27  ;;  %v2227_v46 = vmul.f32 %v16140_v37, %v16007_v51  ;;  %v16143_v63 = vld [vmem:[#allocation20_spill] sm:$0xff]  ;;  %v16145_v44 = vld [vmem:[#allocation191_spill] sm:$0xff]  ;;  %v16147_v27 = vld [vmem:[#allocation117_spill] sm:$0xff] }
 0x297   :  { %v1116_v11 = vmul.f32 %v16141_v53, %v16069_v7  ;;  %7235 = vmatpush1.bf16.msra.mxu0 %v16102_v4  ;;  %7347 = vmatpush1.bf16.msra.mxu1 %v16102_v4  ;;  %v652_v40 = vadd.f32 %v540_v16, %v284_v48  ;;  %v812_v8 = vmul.f32 %v16142_v42, %v15979_v9  ;;  %v12921_v26 = vmul.f32 0.0, %v16145_v44  ;;  %v16148_v4 = vld [vmem:[#allocation30_spill] sm:$0xff]  ;;  %v16149_v16 = vld [vmem:[#allocation113_spill] sm:$0xff] }
 0x298   :  { %v947_v32 = vadd.f32 %v827_v6, %v666_v58  ;;  %7237 = vmatprep.subr.bf16.mxu0 %v16143_v63  ;;  %7349 = vmatprep.subr.bf16.mxu1 %v16143_v63  ;;  %v12917_v47 = vpack.c.bf16 %v2853_v18, %v2837_v62  ;;  %v2581_v41 = vadd.f32 %v12882_v59, %v2317_v25  ;;  %v16150_v62 = vld [vmem:[#allocation51_spill] sm:$0xff]  ;;  %v16151_v25 = vld [vmem:[#allocation66_spill] sm:$0xff] }
 0x299   :  { %16146 = vst [vmem:[#allocation134_spill] sm:$0xff] %v12921_v26  ;;  %v1409_v53 = vmul.f32 %v16147_v27, %v16075_v10  ;;  %4059 = vmatprep.mubr.f32.mxu1 %v16135_v35  ;;  %v2077_v48 = vadd.f32 %v1952_v12, %v1797_v23  ;;  %v1100_v6 = vmul.f32 %v16148_v4, %v16069_v7  ;;  %v16152_v44 = vld [vmem:[#allocation146_spill] sm:$0xff]  ;;  %v16153_v59 = vld [vmem:[#allocation159_spill] sm:$0xff] }
 0x29a   :  { %16144 = vst [vmem:[#allocation171_spill] sm:$0xff] %v12917_v47  ;;  %v1244_v58 = vadd.f32 %v1116_v11, %v947_v32  ;;  %v1701_v42 = vmul.f32 %v16149_v16, %v15847_v52  ;;  %6597 = vmatmul.mubr.msk.f32.gmra.mrb[10].mxu1 %vm2997_vm0, %v16150_v62  ;;  %v12933_v18 = vadd.f32 %v16151_v25, %v2565_v56  ;;  %v16154_v16 = vld [vmem:[#allocation153_spill] sm:$0xff]  ;;  %v16155_v56 = vld [vmem:[#allocation132_spill] sm:$0xff] }
 0x29b   :  { %v12936_v47 = vadd.f32 %v16152_v44, %v2581_v41  ;;  %v2333_v27 = vadd.f32 %v2213_v45, %v2061_v14  ;;  %v1393_v12 = vmul.f32 %v16153_v59, %v16075_v10  ;;  %7239 = vmatpush1.bf16.msra.mxu0 %v16107_v24  ;;  %7351 = vmatpush1.bf16.msra.mxu1 %v16107_v24  ;;  %v12945_v62 = vmul.f32 0.0, %v16155_v56  ;;  %v16157_v45 = vld [vmem:[#allocation163_spill] sm:$0xff]  ;;  %v16158_v10 = vld [vmem:[#allocation25_spill] sm:$0xff] }
 0x29c   :  { %v2349_v11 = vadd.f32 %v2227_v46, %v2077_v48  ;;  %v932_v23 = vadd.f32 %v812_v8, %v652_v40  ;;  %v1537_v32 = vadd.f32 %v1409_v53, %v1244_v58  ;;  %7241 = vmatprep.subr.bf16.mxu0 %v16154_v16  ;;  %7353 = vmatprep.subr.bf16.mxu1 %v16154_v16  ;;  %v16159_v46 = vld [vmem:[#allocation162_spill] sm:$0xff]  ;;  %v16160_v40 = vld [vmem:[#allocation32_spill] sm:$0xff]  ;;  %v16171_v25 = vld [vmem:[#allocation33_spill] sm:$0xff] }
 0x29d   :  { %16156 = vst [vmem:[#allocation90_spill] sm:$0xff] %v12945_v62  ;;  %v2597_v41 = vadd.f32 %v12921_v26, %v2333_v27  ;;  %v1685_v14 = vmul.f32 %v16157_v45, %v15847_v52  ;;  %v207_v44 = vmul.f32 %v15896_v1, %v16158_v10  ;;  %4065 = vmatprep.mubr.f32.mxu1 %v16135_v35  ;;  %v16161_v58 = vld [vmem:[#allocation62_spill] sm:$0xff]  ;;  %v16162_v27 = vld [vmem:[#allocation120_spill] sm:$0xff]  ;;  %v16164_v10 = vld [vmem:[#allocation23_spill] sm:$0xff] }
 0x29e   :  { %v1228_v24 = vadd.f32 %v1100_v6, %v932_v23  ;;  %v1829_v8 = vadd.f32 %v1701_v42, %v1537_v32  ;;  %v1982_v53 = vmul.f32 %v16159_v46, %v15931_v36  ;;  %v220_v48 = vmul.f32 %v15896_v1, %v16160_v40  ;;  %6598 = vmatmul.mubr.msk.f32.gmra.mrb[12].mxu1 %vm2997_vm0, %v16161_v58  ;;  %v16163_v52 = vld [vmem:[#allocation16_spill] sm:$0xff]  ;;  %v16165_v42 = vld [vmem:[#allocation103_spill] sm:$0xff] }
 0x29f   :  { %v1967_v56 = vmul.f32 %v16162_v27, %v15931_v36  ;;  %v457_v26 = vmul.f32 %v16163_v52, %v15979_v9  ;;  %v471_v45 = vmul.f32 %v16164_v10, %v15979_v9  ;;  %v723_v6 = vmul.f32 %v16165_v42, %v16069_v7  ;;  %7243 = vmatpush1.bf16.msra.mxu0 %v16111_v3  ;;  %v16166_v32 = vld [vmem:[#allocation188_spill] sm:$0xff] }
 0x2a0   :  { %7355 = vmatpush1.bf16.msra.mxu1 %v16111_v3  ;;  %v1521_v23 = vadd.f32 %v1393_v12, %v1228_v24  ;;  %v2241_v58 = vmul.f32 %v16166_v32, %v16007_v51  ;;  %v16167_v40 = vld [vmem:[#allocation104_spill] sm:$0xff]  ;;  %v738_v4 = vmul.f32 %v16171_v25, %v16069_v7  ;;  %4071 = vmatprep.mubr.f32.mxu1 %v16135_v35  ;;  %v16172_v24 = vld [vmem:[#allocation37_spill] sm:$0xff] }
 0x2a1   :  { %v2255_v46 = vmul.f32 %v16167_v40, %v16007_v51  ;;  %v16168_v27 = vld [vmem:[#allocation168_spill] sm:$0xff]  ;;  %v569_v59 = vadd.f32 %v457_v26, %v207_v44  ;;  %v583_v42 = vadd.f32 %v471_v45, %v220_v48  ;;  %v2109_v12 = vadd.f32 %v1982_v53, %v1829_v8  ;;  %v16173_v32 = vld [vmem:[#allocation125_spill] sm:$0xff]  ;;  %v16174_v40 = vld [vmem:[#allocation78_spill] sm:$0xff] }
 0x2a2   :  { %7245 = vmatprep.subr.bf16.mxu0 %v16168_v27  ;;  %7357 = vmatprep.subr.bf16.mxu1 %v16168_v27  ;;  %v16169_v52 = vld [vmem:[#allocation136_spill] sm:$0xff]  ;;  %v1813_v3 = vadd.f32 %v1685_v14, %v1521_v23  ;;  %v1005_v37 = vmul.f32 %v16173_v32, %v16172_v24  ;;  %v1021_v60 = vmul.f32 %v16174_v40, %v16172_v24  ;;  %v16176_v45 = vld [vmem:[#allocation10_spill] sm:$0xff]  ;;  %v16178_v8 = vld [vmem:[#allocation155_spill] sm:$0xff] }
 0x2a3   :  { %v12976_v10 = vmul.f32 0.0, %v16169_v52  ;;  %6599 = vmatmul.mubr.msk.f32.gmra.mrb[14].mxu1 %vm2997_vm0, %v16175_v19  ;;  %v2613_v52 = vadd.f32 %v12945_v62, %v2349_v11  ;;  %v843_v26 = vadd.f32 %v723_v6, %v569_v59  ;;  %v858_v44 = vadd.f32 %v738_v4, %v583_v42  ;;  %v16177_v48 = vld [vmem:[#allocation108_spill] sm:$0xff]  ;;  %7247 = vmatpush1.bf16.msra.mxu0 %v16119_v30  ;;  %v16180_v23 = vld [vmem:[#allocation106_spill] sm:$0xff]  ;;  %v16182_v11 = vld [vmem:[#allocation49_spill] sm:$0xff] }
 0x2a4   :  { %v1314_v25 = vmul.f32 %v16177_v48, %v16176_v45  ;;  %7359 = vmatpush1.bf16.msra.mxu1 %v16119_v30  ;;  %v2093_v14 = vadd.f32 %v1967_v56, %v1813_v3  ;;  %v12993_v53 = vmul.f32 0.0, %v16178_v8  ;;  %v1298_v35 = vmul.f32 %v16180_v23, %v16176_v45  ;;  %v16181_v19 = vld [vmem:[#allocation70_spill] sm:$0xff]  ;;  %7249 = vmatprep.subr.bf16.mxu0 %v16182_v11  ;;  %v16183_v42 = vld [vmem:[#allocation143_spill] sm:$0xff]  ;;  %v16184_v30 = vld [vmem:[#allocation185_spill] sm:$0xff] }
 0x2a5   :  { %16170 = vst [vmem:[#allocation173_spill] sm:$0xff] %v12976_v10  ;;  %v1590_v40 = vmul.f32 %v16181_v19, %v15931_v36  ;;  %7361 = vmatprep.subr.bf16.mxu1 %v16182_v11  ;;  %v1133_v59 = vadd.f32 %v1005_v37, %v843_v26  ;;  %v1149_v4 = vadd.f32 %v1021_v60, %v858_v44  ;;  %v13004_v56 = vmul.f32 0.0, %v16184_v30  ;;  %v16186_v3 = vld [vmem:[#allocation133_spill] sm:$0xff]  ;;  %v16189_v26 = vld [vmem:[#allocation44_spill] sm:$0xff] }
 0x2a6   :  { %16179 = vst [vmem:[#allocation131_spill] sm:$0xff] %v12993_v53  ;;  %v1606_v6 = vmul.f32 %v16183_v42, %v15931_v36  ;;  %4409 = vmatprep.mubr.f32.mxu1 %v12809_v15  ;;  %v13008_v8 = vadd.f32 %v16186_v3, %v2597_v41  ;;  %v2365_v23 = vadd.f32 %v2241_v58, %v2093_v14  ;;  %v16187_v19 = vld [vmem:[#allocation21_spill] sm:$0xff] }
 0x2a7   :  { %16185 = vst [vmem:[#allocation48_spill] sm:$0xff] %v13004_v56  ;;  %v2381_v48 = vadd.f32 %v2255_v46, %v2109_v12  ;;  %v1878_v32 = vmul.f32 %v16187_v19, %v16007_v51  ;;  %v1426_v62 = vadd.f32 %v1298_v35, %v1133_v59  ;;  %v1442_v11 = vadd.f32 %v1314_v25, %v1149_v4  ;;  %v16188_v60 = vld [vmem:[#allocation129_spill] sm:$0xff]  ;;  %v16193_v12 = vld [vmem:[#allocation52_spill] sm:$0xff]  ;;  %v16195_v59 = vld [vmem:[#allocation59_spill] sm:$0xff] }
 0x2a8   :  { %v1893_v37 = vmul.f32 %v16188_v60, %v16007_v51  ;;  %v246_v44 = vmul.f32 %v15896_v1, %v16189_v26  ;;  %7251 = vmatpush1.bf16.msra.mxu0 %v16133_v0  ;;  %7363 = vmatpush1.bf16.msra.mxu1 %v16133_v0  ;;  %v16190_v15 = vld [vmem:[#allocation9_spill] sm:$0xff]  ;;  %v485_v35 = vmul.f32 %v16193_v12, %v15979_v9  ;;  %v16194_v25 = vld [vmem:[#allocation60_spill] sm:$0xff]  ;;  %v16196_v0 = vld [vmem:[#allocation98_spill] sm:$0xff] }
 0x2a9   :  { %v13019_v41 = vmul.f32 0.0, %v16190_v15  ;;  %v16192_v58 = vld [vmem:[#allocation45_spill] sm:$0xff]  ;;  %v499_v14 = vmul.f32 %v16194_v25, %v15979_v9  ;;  %7253 = vmatprep.subr.bf16.mxu0 %v16195_v59  ;;  %7365 = vmatprep.subr.bf16.mxu1 %v16195_v59  ;;  %v1718_v4 = vadd.f32 %v1590_v40, %v1426_v62  ;;  %v1734_v30 = vadd.f32 %v1606_v6, %v1442_v11  ;;  %v16198_v12 = vld [vmem:[#allocation107_spill] sm:$0xff] }
 0x2aa   :  { %v233_v46 = vmul.f32 %v15896_v1, %v16192_v58  ;;  %v753_v26 = vmul.f32 %v16196_v0, %v16069_v7  ;;  %v13032_v15 = vmul.f32 0.0, %v15793_v39  ;;  %v2645_v58 = vadd.f32 %v12993_v53, %v2381_v48  ;;  %v16199_v39 = vld [vmem:[#allocation170_spill] sm:$0xff] }
 0x2ab   :  { %16191 = vst [vmem:[#allocation140_spill] sm:$0xff] %v13019_v41  ;;  %v611_v3 = vadd.f32 %v499_v14, %v246_v44  ;;  %v768_v60 = vmul.f32 %v16198_v12, %v16069_v7  ;;  %v1998_v25 = vadd.f32 %v1878_v32, %v1718_v4  ;;  %v2014_v19 = vadd.f32 %v1893_v37, %v1734_v30  ;;  %v16201_v32 = vld [vmem:[#allocation5_spill] sm:$0xff] }
 0x2ac   :  { %16197 = vst [vmem:[#allocation85_spill] sm:$0xff] %v13032_v15  ;;  %v597_v42 = vadd.f32 %v485_v35, %v233_v46  ;;  %v1037_v59 = vmul.f32 %v16101_v22, %v16172_v24  ;;  %v1053_v62 = vmul.f32 %v16015_v31, %v16172_v24  ;;  %7255 = vmatpush1.bf16.msra.mxu0 %v16143_v63  ;;  %v13046_v6 = vmul.f32 0.0, %v16117_v13 }
 0x2ad   :  { %7367 = vmatpush1.bf16.msra.mxu1 %v16143_v63  ;;  %v2789_v40 = vadd.f32 %v16199_v39, %v2613_v52  ;;  %v2629_v48 = vadd.f32 %v12976_v10, %v2365_v23  ;;  %7257 = vmatprep.subr.bf16.mxu0 %v16201_v32  ;;  %v2869_v37 = vmax.f32 %v12933_v18, 0.0  ;;  %v2270_v44 = vadd.f32 %v13004_v56, %v1998_v25  ;;  %v16202_v63 = vld [vmem:[#allocation169_spill] sm:$0xff]  ;;  %v16203_v52 = vld [vmem:[#allocation166_spill] sm:$0xff] }
 0x2ae   :  { %v873_v11 = vadd.f32 %v753_v26, %v597_v42  ;;  %16200 = vst [vmem:[#allocation121_spill] sm:$0xff] %v13046_v6  ;;  %7369 = vmatprep.subr.bf16.mxu1 %v16201_v32  ;;  %v2286_v46 = vadd.f32 %v13019_v41, %v2014_v19  ;;  %v888_v35 = vadd.f32 %v768_v60, %v611_v3  ;;  %v2885_v19 = vmax.f32 %v12936_v47, 0.0 }
 0x2af   :  { %v2805_v14 = vadd.f32 %v16202_v63, %v2629_v48  ;;  %v2821_v4 = vadd.f32 %v16203_v52, %v2645_v58  ;;  %v1330_v23 = vmul.f32 %v16016_v29, %v16176_v45  ;;  %v1346_v13 = vmul.f32 %v15858_v5, %v16176_v45  ;;  %v16204_v58 = vld [vmem:[#allocation47_spill] sm:$0xff]  ;;  %v16205_v48 = vld [vmem:[#allocation68_spill] sm:$0xff] }
 0x2b0   :  { %v2534_v42 = vadd.f32 %v12738_v49, %v2270_v44  ;;  %v2550_v26 = vadd.f32 %v12746_v38, %v2286_v46  ;;  %v1165_v18 = vadd.f32 %v1037_v59, %v873_v11  ;;  %v1181_v30 = vadd.f32 %v1053_v62, %v888_v35  ;;  %7259 = vmatpush1.bf16.msra.mxu0 %v16154_v16 }
 0x2b1   :  { %7371 = vmatpush1.bf16.msra.mxu1 %v16154_v16  ;;  %v1622_v3 = vmul.f32 %v15859_v55, %v15931_v36  ;;  %v1638_v60 = vmul.f32 %v15865_v20, %v15931_v36  ;;  %v259_v25 = vmul.f32 %v15896_v1, %v16204_v58  ;;  %7261 = vmatprep.subr.bf16.mxu0 %v16205_v48  ;;  %v2901_v59 = vmax.f32 %v13008_v8, 0.0 }
 0x2b2   :  { %7373 = vmatprep.subr.bf16.mxu1 %v16205_v48  ;;  %v2710_v62 = vadd.f32 %v16114_v33, %v2534_v42  ;;  %v1908_v47 = vmul.f32 %v15862_v34, %v16007_v51  ;;  %v272_v16 = vmul.f32 %v15896_v1, %v16108_v28  ;;  %v1458_v11 = vadd.f32 %v1330_v23, %v1165_v18 }
 0x2b3   :  { %v1474_v44 = vadd.f32 %v1346_v13, %v1181_v30  ;;  %v513_v46 = vmul.f32 %v15863_v54, %v15979_v9  ;;  %v527_v35 = vmul.f32 %v16109_v61, %v15979_v9  ;;  %v2917_v52 = vmax.f32 %v2789_v40, 0.0  ;;  %v16206_v61 = vld [vmem:[#allocation77_spill] sm:$0xff] }
 0x2b4   :  { %v2726_v38 = vadd.f32 %v16115_v2, %v2550_v26  ;;  %v1923_v8 = vmul.f32 %v15790_v17, %v16007_v51  ;;  %v783_v42 = vmul.f32 %v15866_v57, %v16069_v7  ;;  %7263 = vmatpush1.bf16.msra.mxu0 %v16168_v27  ;;  %v2933_v23 = vmax.f32 %v2805_v14, 0.0  ;;  %v13100_v14 = vld [vmem:[%s14492_s3] sm:$0xff] }
 0x2b5   :  { %7375 = vmatpush1.bf16.msra.mxu1 %v16168_v27  ;;  %v1750_v13 = vadd.f32 %v1622_v3, %v1458_v11  ;;  %v625_v18 = vadd.f32 %v513_v46, %v259_v25  ;;  %v798_v30 = vmul.f32 %v15867_v43, %v16069_v7  ;;  %7265 = vmatprep.subr.bf16.mxu0 %v16206_v61  ;;  %v2949_v40 = vmax.f32 %v2821_v4, 0.0  ;;  %v16212_v46 = vld [vmem:[#allocation186_spill] sm:$0xff]  ;;  %v13179_v43 = vld [vmem:[%s14492_s3 + $0x50] sm:$0xff] }
 0x2b6   :  { %7377 = vmatprep.subr.bf16.mxu1 %v16206_v61  ;;  %v2838_v26 = vmax.f32 %v2710_v62, 0.0  ;;  %v639_v2 = vadd.f32 %v527_v35, %v272_v16  ;;  %v1069_v57 = vmul.f32 %v16023_v50, %v16172_v24  ;;  %v1766_v33 = vadd.f32 %v1638_v60, %v1474_v44  ;;  %v16209_v62 = vld [vmem:[#allocation189_spill] sm:$0xff]  ;;  %v3254_v35 = vpop.f32.mrb[0].mxu0 }
 0x2b7   :  { %v2030_v28 = vadd.f32 %v1908_v47, %v1750_v13  ;;  %v903_v54 = vadd.f32 %v783_v42, %v625_v18  ;;  %v1085_v27 = vmul.f32 %v16112_v21, %v16172_v24  ;;  %4143 = vmatmul.mubr.f32.vlgmr.msra.gmra.mrb[16].mxu0 %v13100_v14  ;;  %v13103_v3 = vpack.c.bf16 %v2885_v19, %v2869_v37  ;;  %v16210_v47 = vld [vmem:[#allocation49_spill] sm:$0xff]  ;;  %v3256_v13 = vpop.f32.mrb[1].mxu0  ;;  %v13135_v18 = vld [vmem:[%s14492_s3 + $0x28] sm:$0xff] }
 0x2b8   :  { %v13105_v4 = vpack.c.bf16 %v2917_v52, %v2901_v59  ;;  %v2854_v25 = vmax.f32 %v2726_v38, 0.0  ;;  %v1362_v60 = vmul.f32 %v16209_v62, %v16176_v45  ;;  %7267 = vmatpush1.bf16.msra.mxu0 %v16210_v47  ;;  %v13111_v16 = vpack.c.bf16 %v2949_v40, %v2933_v23  ;;  %v16214_v38 = vld [vmem:[#allocation151_spill] sm:$0xff]  ;;  %v13119_v59 = vpop.permute.xlu1 %2979  ;;  %v13124_v42 = vld [vmem:[%s14492_s3 + $0x30] sm:$0xff]  ;;  %16217 = vst [vmem:[#allocation29_spill] sm:$0xff] %v13135_v18 }
 0x2b9   :  { %16207 = vst [vmem:[#allocation141_spill] sm:$0xff] %v13103_v3  ;;  %7379 = vmatpush1.bf16.msra.mxu1 %v16210_v47  ;;  %v2046_v11 = vadd.f32 %v1923_v8, %v1766_v33  ;;  %v918_v44 = vadd.f32 %v798_v30, %v639_v2  ;;  %7269 = vmatprep.subr.bf16.mxu0 %v16212_v46  ;;  %16215 = vst [vmem:[#allocation24_spill] sm:$0xff] %v13119_v59  ;;  %v16218_v40 = vld [vmem:[#allocation172_spill] sm:$0xff]  ;;  %v16228_v3 = vld [vmem:[#allocation161_spill] sm:$0xff] }
 0x2ba   :  { %16208 = vst [vmem:[#allocation124_spill] sm:$0xff] %v13105_v4  ;;  %16211 = vst [vmem:[#allocation4_spill] sm:$0xff] %v13111_v16  ;;  %7381 = vmatprep.subr.bf16.mxu1 %v16212_v46  ;;  %v13115_v37 = vpack.c.bf16 %v2854_v25, %v2838_v26  ;;  %v1197_v52 = vadd.f32 %v1069_v57, %v903_v54  ;;  %v1654_v19 = vmul.f32 %v16214_v38, %v15931_v36  ;;  %v16216_v54 = vld [vmem:[#allocation144_spill] sm:$0xff] }
 0x2bb   :  { %4148 = vmatprep.mubr.f32.mxu0 %v13124_v42  ;;  %v2302_v33 = vadd.f32 %v13032_v15, %v2030_v28  ;;  %v2318_v2 = vadd.f32 %v13046_v6, %v2046_v11  ;;  %v1213_v8 = vadd.f32 %v1085_v27, %v918_v44  ;;  %v1378_v57 = vmul.f32 %v16216_v54, %v16176_v45  ;;  %v16219_v26 = vld [vmem:[#allocation160_spill] sm:$0xff]  ;;  %v16220_v11 = vld [vmem:[#allocation59_spill] sm:$0xff]  ;;  %v13161_v54 = vpop.permute.xlu0 %2984 }
 0x2bc   :  { %16213 = vst [vmem:[#allocation179_spill] sm:$0xff] %v13115_v37  ;;  %v8224_v23 = vadd.f32 %v3254_v35, %v13119_v59  ;;  %4149 = vmatmul.mubr.f32.gmra.mrb[18].mxu0 %v13135_v18  ;;  %v1490_v30 = vadd.f32 %v1362_v60, %v1197_v52  ;;  %v1670_v28 = vmul.f32 %v16218_v40, %v15931_v36  ;;  %v16221_v44 = vld [vmem:[#allocation184_spill] sm:$0xff]  ;;  %v16225_v52 = vld [vmem:[#allocation6_spill] sm:$0xff]  ;;  %16230 = vst [vmem:[#allocation26_spill] sm:$0xff] %v13161_v54 }
 0x2bd   :  { %v1938_v27 = vmul.f32 %v16219_v26, %v16007_v51  ;;  %v8225_v25 = vadd.f32 %v3256_v13, %v13119_v59  ;;  %7271 = vmatpush1.bf16.msra.mxu0 %v16220_v11  ;;  %7383 = vmatpush1.bf16.msra.mxu1 %v16220_v11  ;;  %v13146_v35 = vmul.f32 0.0, %v16221_v44  ;;  %v16223_v47 = vld [vmem:[#allocation156_spill] sm:$0xff]  ;;  %v16226_v40 = vld [vmem:[#allocation18_spill] sm:$0xff]  ;;  %v541_v11 = vmul.f32 %v16228_v3, %v15979_v9  ;;  %v16237_v18 = vld [vmem:[#allocation61_spill] sm:$0xff] }
 0x2be   :  { %v285_v37 = vmul.f32 %v15896_v1, %v16223_v47  ;;  %v16224_v16 = vld [vmem:[#allocation56_spill] sm:$0xff]  ;;  %7273 = vmatprep.subr.bf16.mxu0 %v16225_v52  ;;  %7385 = vmatprep.subr.bf16.mxu1 %v16225_v52  ;;  %v1782_v4 = vadd.f32 %v1654_v19, %v1490_v30  ;;  %v13155_v13 = vmul.f32 0.0, %v16226_v40  ;;  %v3260_v47 = vpop.f32.mrb[2].mxu0  ;;  %v16232_v19 = vld [vmem:[#allocation154_spill] sm:$0xff]  ;;  %v1506_v15 = vadd.f32 %v1378_v57, %v1213_v8 }
 0x2bf   :  { %16222 = vst [vmem:[#allocation114_spill] sm:$0xff] %v13146_v35  ;;  %v298_v60 = vmul.f32 %v15896_v1, %v16224_v16  ;;  %v16229_v44 = vld [vmem:[#allocation164_spill] sm:$0xff]  ;;  %v13166_v1 = vld [vmem:[%s14492_s3 + $0x58] sm:$0xff]  ;;  %v2566_v30 = vadd.f32 %v16232_v19, %v2302_v33  ;;  %v8226_v6 = vadd.f32 %v3260_v47, %v13161_v54  ;;  %v3262_v50 = vpop.f32.mrb[3].mxu0  ;;  %v16236_v47 = vld [vmem:[#allocation187_spill] sm:$0xff]  ;;  %v5147_v49 = vmax.f32 %v8225_v25, 0.0 }
 0x2c0   :  { %16227 = vst [vmem:[#allocation53_spill] sm:$0xff] %v13155_v13  ;;  %v555_v38 = vmul.f32 %v16229_v44, %v15979_v9  ;;  %16231 = vst [vmem:[#allocation63_spill] sm:$0xff] %v13166_v1  ;;  %4154 = vmatprep.mubr.f32.mxu0 %v13166_v1  ;;  %v16233_v40 = vld [vmem:[#allocation80_spill] sm:$0xff]  ;;  %v2062_v33 = vadd.f32 %v1938_v27, %v1782_v4  ;;  %v653_v19 = vadd.f32 %v541_v11, %v285_v37  ;;  %v16238_v4 = vld [vmem:[#allocation30_spill] sm:$0xff]  ;;  %v13199_v11 = vpop.permute.xlu1 %2989 }
 0x2c1   :  { %v2582_v16 = vadd.f32 %v16233_v40, %v2318_v2  ;;  %v16234_v62 = vld [vmem:[#allocation112_spill] sm:$0xff]  ;;  %4155 = vmatmul.mubr.f32.gmra.mrb[20].mxu0 %v13179_v43  ;;  %v5146_v2 = vmax.f32 %v8224_v23, 0.0  ;;  %v8227_v40 = vadd.f32 %v3262_v50, %v13161_v54  ;;  %7387 = vmatpush1.bf16.msra.mxu1 %v16201_v32  ;;  %v828_v1 = vmul.f32 %v16236_v47, %v16069_v7  ;;  %v3266_v50 = vpop.f32.mrb[4].mxu0  ;;  %v13194_v23 = vld [vmem:[%s14492_s3 + $0x80] sm:$0xff] }
 0x2c2   :  { %v1953_v3 = vmul.f32 %v16234_v62, %v16007_v51  ;;  %v16235_v21 = vld [vmem:[#allocation116_spill] sm:$0xff]  ;;  %7275 = vmatpush1.bf16.msra.mxu0 %v16201_v32  ;;  %v5162_v58 = vmax.f32 %v8226_v6, 0.0  ;;  %7389 = vmatprep.subr.bf16.mxu1 %v16237_v18  ;;  %v1798_v8 = vadd.f32 %v1670_v28, %v1506_v15  ;;  %v1101_v37 = vmul.f32 %v16238_v4, %v16172_v24  ;;  %v16239_v6 = vld [vmem:[#allocation135_spill] sm:$0xff]  ;;  %v3268_v28 = vpop.f32.mrb[5].mxu0  ;;  %v16247_v4 = vld [vmem:[#allocation150_spill] sm:$0xff] }
 0x2c3   :  { %v813_v44 = vmul.f32 %v16235_v21, %v16069_v7  ;;  %v667_v21 = vadd.f32 %v555_v38, %v298_v60  ;;  %7277 = vmatprep.subr.bf16.mxu0 %v16237_v18  ;;  %v5163_v57 = vmax.f32 %v8227_v40, 0.0  ;;  %4160 = vmatprep.mubr.f32.mxu0 %v13194_v23  ;;  %v1117_v25 = vmul.f32 %v16239_v6, %v16172_v24  ;;  %v13206_v60 = vld [vmem:[%s14492_s3 + $0x78] sm:$0xff] }
 0x2c4   :  { %16240 = vst [vmem:[#allocation118_spill] sm:$0xff] %v13199_v11  ;;  %v13201_v15 = vpack.c.bf16 %v5162_v58, %v5146_v2  ;;  %16242 = vst [vmem:[#allocation165_spill] sm:$0xff] %v13206_v60  ;;  %v16243_v40 = vld [vmem:[#allocation66_spill] sm:$0xff]  ;;  %v16245_v2 = vld [vmem:[#allocation188_spill] sm:$0xff]  ;;  %v8229_v6 = vadd.f32 %v3268_v28, %v13199_v11 }
 0x2c5   :  { %v933_v38 = vadd.f32 %v813_v44, %v653_v19  ;;  %v948_v27 = vadd.f32 %v828_v1, %v667_v21  ;;  %4161 = vmatmul.mubr.f32.gmra.mrb[22].mxu0 %v13206_v60  ;;  %v13210_v32 = vadd.f32 %v16243_v40, %v2566_v30  ;;  %v2078_v44 = vadd.f32 %v1953_v3, %v1798_v8  ;;  %v16256_v47 = vld [vmem:[#allocation134_spill] sm:$0xff] }
 0x2c6   :  { %16241 = vst [vmem:[#allocation142_spill] sm:$0xff] %v13201_v15  ;;  %v2334_v21 = vadd.f32 %v13146_v35, %v2062_v33  ;;  %v13213_v1 = vpack.c.bf16 %v5163_v57, %v5147_v49  ;;  %v8228_v19 = vadd.f32 %v3266_v50, %v13199_v11  ;;  %7279 = vmatpush1.bf16.msra.mxu0 %v16205_v48  ;;  %v13219_v15 = vmul.f32 0.0, %v16245_v2  ;;  %v16248_v49 = vld [vmem:[#allocation159_spill] sm:$0xff]  ;;  %v16249_v33 = vld [vmem:[#allocation104_spill] sm:$0xff]  ;;  %v13229_v57 = vpop.permute.xlu0 %2994  ;;  %v3272_v50 = vpop.f32.mrb[6].mxu0  ;;  %v16257_v11 = vld [vmem:[#allocation113_spill] sm:$0xff] }
 0x2c7   :  { %7391 = vmatpush1.bf16.msra.mxu1 %v16205_v48  ;;  %v1229_v58 = vadd.f32 %v1101_v37, %v933_v38  ;;  %7281 = vmatprep.subr.bf16.mxu0 %v16247_v4  ;;  %v1245_v3 = vadd.f32 %v1117_v25, %v948_v27  ;;  %v1394_v30 = vmul.f32 %v16248_v49, %v16176_v45  ;;  %v13227_v8 = vmul.f32 0.0, %v16249_v33  ;;  %v13234_v37 = vld [vmem:[%s14492_s3 + $0x18] sm:$0xff]  ;;  %v16255_v33 = vld [vmem:[#allocation163_spill] sm:$0xff]  ;;  %v3274_v49 = vpop.f32.mrb[7].mxu0 }
 0x2c8   :  { %16244 = vst [vmem:[#allocation72_spill] sm:$0xff] %v13213_v1  ;;  %16246 = vst [vmem:[#allocation177_spill] sm:$0xff] %v13219_v15  ;;  %7393 = vmatprep.subr.bf16.mxu1 %v16247_v4  ;;  %4231 = vmatprep.mubr.f32.mxu0 %v13234_v37  ;;  %v16253_v38 = vld [vmem:[#allocation146_spill] sm:$0xff]  ;;  %v2350_v27 = vadd.f32 %v13155_v13, %v2078_v44  ;;  %v16254_v25 = vld [vmem:[#allocation117_spill] sm:$0xff]  ;;  %v1686_v1 = vmul.f32 %v16255_v33, %v15931_v36  ;;  %v5178_v60 = vmax.f32 %v8228_v19, 0.0 }
 0x2c9   :  { %16250 = vst [vmem:[#allocation81_spill] sm:$0xff] %v13227_v8  ;;  %16251 = vst [vmem:[#allocation148_spill] sm:$0xff] %v13229_v57  ;;  %v13238_v28 = vadd.f32 %v16253_v38, %v2582_v16  ;;  %v1410_v2 = vmul.f32 %v16254_v25, %v16176_v45  ;;  %v8230_v48 = vadd.f32 %v3272_v50, %v13229_v57  ;;  %v16258_v44 = vld [vmem:[#allocation120_spill] sm:$0xff]  ;;  %v5179_v13 = vmax.f32 %v8229_v6, 0.0 }
 0x2ca   :  { %16252 = vst [vmem:[#allocation183_spill] sm:$0xff] %v13234_v37  ;;  %v2598_v35 = vadd.f32 %v16256_v47, %v2334_v21  ;;  %v1522_v40 = vadd.f32 %v1394_v30, %v1229_v58  ;;  %v1702_v37 = vmul.f32 %v16257_v11, %v15931_v36  ;;  %v8231_v16 = vadd.f32 %v3274_v49, %v13229_v57  ;;  %v16259_v25 = vld [vmem:[#allocation96_spill] sm:$0xff]  ;;  %v16260_v58 = vld [vmem:[#allocation162_spill] sm:$0xff]  ;;  %v16261_v36 = vld [vmem:[#allocation25_spill] sm:$0xff] }
 0x2cb   :  { %7283 = vmatpush1.bf16.msra.mxu0 %v16206_v61  ;;  %7395 = vmatpush1.bf16.msra.mxu1 %v16206_v61  ;;  %v1538_v45 = vadd.f32 %v1410_v2, %v1245_v3  ;;  %v1968_v33 = vmul.f32 %v16258_v44, %v16007_v51  ;;  %v5194_v50 = vmax.f32 %v8230_v48, 0.0  ;;  %v1983_v19 = vmul.f32 %v16260_v58, %v16007_v51  ;;  %v16262_v61 = vld [vmem:[#allocation32_spill] sm:$0xff]  ;;  %v16265_v47 = vld [vmem:[#allocation23_spill] sm:$0xff]  ;;  %v16276_v58 = vld [vmem:[#allocation133_spill] sm:$0xff] }
 0x2cc   :  { %7285 = vmatprep.subr.bf16.mxu0 %v16259_v25  ;;  %7397 = vmatprep.subr.bf16.mxu1 %v16259_v25  ;;  %v1814_v21 = vadd.f32 %v1686_v1, %v1522_v40  ;;  %v5195_v30 = vmax.f32 %v8231_v16, 0.0  ;;  %v208_v11 = vmul.f32 %v15979_v9, %v16261_v36  ;;  %v221_v3 = vmul.f32 %v15979_v9, %v16262_v61  ;;  %v16264_v48 = vld [vmem:[#allocation16_spill] sm:$0xff]  ;;  %v16267_v16 = vld [vmem:[#allocation103_spill] sm:$0xff]  ;;  %v16268_v61 = vld [vmem:[#allocation21_spill] sm:$0xff] }
 0x2cd   :  { %v1830_v49 = vadd.f32 %v1702_v37, %v1538_v45  ;;  %v13262_v2 = vpack.c.bf16 %v5194_v50, %v5178_v60  ;;  %v458_v44 = vmul.f32 %v16264_v48, %v16069_v7  ;;  %v472_v40 = vmul.f32 %v16265_v47, %v16069_v7  ;;  %v16270_v50 = vld [vmem:[#allocation90_spill] sm:$0xff]  ;;  %v16274_v47 = vld [vmem:[#allocation125_spill] sm:$0xff] }
 0x2ce   :  { %v2094_v6 = vadd.f32 %v1968_v33, %v1814_v21  ;;  %v13268_v1 = vpack.c.bf16 %v5195_v30, %v5179_v13  ;;  %v724_v45 = vmul.f32 %v16267_v16, %v16172_v24  ;;  %v13275_v60 = vmul.f32 0.0, %v16268_v61  ;;  %v16269_v33 = vld [vmem:[#allocation69_spill] sm:$0xff]  ;;  %v16273_v16 = vld [vmem:[#allocation38_spill] sm:$0xff] }
 0x2cf   :  { %16263 = vst [vmem:[#allocation193_spill] sm:$0xff] %v13262_v2  ;;  %7287 = vmatpush1.bf16.msra.mxu0 %v16212_v46  ;;  %7399 = vmatpush1.bf16.msra.mxu1 %v16212_v46  ;;  %v2110_v37 = vadd.f32 %v1983_v19, %v1830_v49  ;;  %v2614_v21 = vadd.f32 %v16270_v50, %v2350_v27  ;;  %v16271_v30 = vld [vmem:[#allocation129_spill] sm:$0xff]  ;;  %v16275_v48 = vld [vmem:[#allocation78_spill] sm:$0xff] }
 0x2d0   :  { %16266 = vst [vmem:[#allocation87_spill] sm:$0xff] %v13268_v1  ;;  %7289 = vmatprep.subr.bf16.mxu0 %v16269_v33  ;;  %7401 = vmatprep.subr.bf16.mxu1 %v16269_v33  ;;  %v570_v2 = vadd.f32 %v458_v44, %v208_v11  ;;  %v584_v13 = vadd.f32 %v472_v40, %v221_v3  ;;  %v13281_v1 = vmul.f32 0.0, %v16271_v30  ;;  %v16272_v19 = vld [vmem:[#allocation33_spill] sm:$0xff]  ;;  %v16277_v40 = vld [vmem:[#allocation11_spill] sm:$0xff]  ;;  %v16278_v30 = vld [vmem:[#allocation108_spill] sm:$0xff] }
 0x2d1   :  { %v2366_v46 = vadd.f32 %v13219_v15, %v2094_v6  ;;  %v739_v49 = vmul.f32 %v16272_v19, %v16172_v24  ;;  %v1006_v61 = vmul.f32 %v16274_v47, %v16273_v16  ;;  %v1022_v36 = vmul.f32 %v16275_v48, %v16273_v16 }
 0x2d2   :  { %v13291_v38 = vadd.f32 %v16276_v58, %v2598_v35  ;;  %v13294_v11 = vadd.f32 %v16199_v39, %v2614_v21  ;;  %v2382_v27 = vadd.f32 %v13227_v8, %v2110_v37  ;;  %v844_v44 = vadd.f32 %v724_v45, %v570_v2  ;;  %v16279_v35 = vld [vmem:[#allocation79_spill] sm:$0xff]  ;;  %v16280_v2 = vld [vmem:[#allocation106_spill] sm:$0xff]  ;;  %v16284_v8 = vld [vmem:[#allocation44_spill] sm:$0xff] }
 0x2d3   :  { %7291 = vmatpush1.bf16.msra.mxu0 %v16225_v52  ;;  %7403 = vmatpush1.bf16.msra.mxu1 %v16225_v52  ;;  %v2630_v3 = vadd.f32 %v12976_v10, %v2366_v46  ;;  %v859_v6 = vadd.f32 %v739_v49, %v584_v13  ;;  %v1315_v15 = vmul.f32 %v16278_v30, %v16277_v40  ;;  %v13303_v48 = vmul.f32 0.0, %v15862_v34  ;;  %v16281_v45 = vld [vmem:[#allocation70_spill] sm:$0xff]  ;;  %v16283_v10 = vld [vmem:[#allocation143_spill] sm:$0xff]  ;;  %v16287_v39 = vld [vmem:[#allocation60_spill] sm:$0xff] }
 0x2d4   :  { %7293 = vmatprep.subr.bf16.mxu0 %v16279_v35  ;;  %7405 = vmatprep.subr.bf16.mxu1 %v16279_v35  ;;  %v1134_v21 = vadd.f32 %v1006_v61, %v844_v44  ;;  %v1299_v37 = vmul.f32 %v16280_v2, %v16277_v40  ;;  %v1591_v52 = vmul.f32 %v16007_v51, %v16281_v45  ;;  %v13312_v46 = vmul.f32 0.0, %v15790_v17  ;;  %v16285_v61 = vld [vmem:[#allocation45_spill] sm:$0xff]  ;;  %v16286_v2 = vld [vmem:[#allocation52_spill] sm:$0xff] }
 0x2d5   :  { %v2646_v13 = vadd.f32 %v12993_v53, %v2382_v27  ;;  %v1150_v49 = vadd.f32 %v1022_v36, %v859_v6  ;;  %v1607_v34 = vmul.f32 %v16007_v51, %v16283_v10  ;;  %v247_v30 = vmul.f32 %v15979_v9, %v16284_v8 }
 0x2d6   :  { %16282 = vst [vmem:[#allocation91_spill] sm:$0xff] %v13312_v46  ;;  %v1427_v47 = vadd.f32 %v1299_v37, %v1134_v21  ;;  %v234_v44 = vmul.f32 %v15979_v9, %v16285_v61  ;;  %v486_v19 = vmul.f32 %v16286_v2, %v16069_v7  ;;  %v500_v17 = vmul.f32 %v16287_v39, %v16069_v7  ;;  %v16289_v37 = vld [vmem:[#allocation89_spill] sm:$0xff] }
 0x2d7   :  { %7295 = vmatpush1.bf16.msra.mxu0 %v16237_v18  ;;  %7407 = vmatpush1.bf16.msra.mxu1 %v16237_v18  ;;  %v1443_v36 = vadd.f32 %v1315_v15, %v1150_v49  ;;  %v754_v27 = vmul.f32 %v16196_v0, %v16172_v24  ;;  %v769_v6 = vmul.f32 %v16198_v12, %v16172_v24  ;;  %v13332_v21 = vmul.f32 0.0, %v16219_v26 }
 0x2d8   :  { %7297 = vmatprep.subr.bf16.mxu0 %v16289_v37  ;;  %7409 = vmatprep.subr.bf16.mxu1 %v16289_v37  ;;  %v2886_v53 = vmax.f32 %v13238_v28, 0.0  ;;  %v1719_v39 = vadd.f32 %v1591_v52, %v1427_v47  ;;  %v598_v2 = vadd.f32 %v486_v19, %v234_v44  ;;  %v612_v8 = vadd.f32 %v500_v17, %v247_v30 }
 0x2d9   :  { %16288 = vst [vmem:[#allocation41_spill] sm:$0xff] %v13332_v21  ;;  %v13338_v15 = vadd.f32 %v16202_v63, %v2630_v3  ;;  %v1735_v49 = vadd.f32 %v1607_v34, %v1443_v36  ;;  %v1038_v18 = vmul.f32 %v16101_v22, %v16273_v16  ;;  %v1054_v26 = vmul.f32 %v16015_v31, %v16273_v16 }
 0x2da   :  { %4410 = vmatmul.mubr.f32.vlgmr.msra.gmra.mrb[16].mxu1 %v13100_v14  ;;  %v1999_v12 = vadd.f32 %v13275_v60, %v1719_v39  ;;  %v874_v0 = vadd.f32 %v754_v27, %v598_v2  ;;  %v889_v61 = vadd.f32 %v769_v6, %v612_v8  ;;  %v1331_v52 = vmul.f32 %v16016_v29, %v16277_v40  ;;  %v16290_v39 = vld [vmem:[#allocation28_spill] sm:$0xff]  ;;  %v16294_v6 = vld [vmem:[#allocation22_spill] sm:$0xff] }
 0x2db   :  { %7299 = vmatpush1.bf16.msra.mxu0 %v16247_v4  ;;  %7411 = vmatpush1.bf16.msra.mxu1 %v16247_v4  ;;  %v2870_v47 = vmax.f32 %v13210_v32, 0.0  ;;  %v2015_v28 = vadd.f32 %v13281_v1, %v1735_v49  ;;  %v1347_v19 = vmul.f32 %v15858_v5, %v16277_v40  ;;  %v1623_v14 = vmul.f32 %v16007_v51, %v15859_v55  ;;  %v3521_v32 = vpop.f32.mrb[0].mxu1  ;;  %v16300_v4 = vld [vmem:[#allocation122_spill] sm:$0xff] }
 0x2dc   :  { %7301 = vmatprep.subr.bf16.mxu0 %v16290_v39  ;;  %7413 = vmatprep.subr.bf16.mxu1 %v16290_v39  ;;  %v2271_v8 = vadd.f32 %v13004_v56, %v1999_v12  ;;  %v1166_v3 = vadd.f32 %v1038_v18, %v874_v0  ;;  %v1182_v30 = vadd.f32 %v1054_v26, %v889_v61  ;;  %v13360_v2 = vmul.f32 0.0, %v16234_v62  ;;  %v3523_v12 = vpop.f32.mrb[1].mxu1  ;;  %v16292_v61 = vld [vmem:[#allocation29_spill] sm:$0xff]  ;;  %v16293_v62 = vld [vmem:[#allocation47_spill] sm:$0xff] }
 0x2dd   :  { %v13362_v34 = vpack.c.bf16 %v2886_v53, %v2870_v47  ;;  %v2902_v44 = vmax.f32 %v13291_v38, 0.0  ;;  %v2287_v17 = vadd.f32 %v13019_v41, %v2015_v28  ;;  %v1639_v36 = vmul.f32 %v16007_v51, %v15865_v20  ;;  %4415 = vmatprep.mubr.f32.mxu1 %v13124_v42  ;;  %v16295_v26 = vld [vmem:[#allocation19_spill] sm:$0xff]  ;;  %v16296_v47 = vld [vmem:[#allocation126_spill] sm:$0xff] }
 0x2de   :  { %16291 = vst [vmem:[#allocation99_spill] sm:$0xff] %v13360_v2  ;;  %v8232_v27 = vadd.f32 %v3521_v32, %v13119_v59  ;;  %v1459_v0 = vadd.f32 %v1331_v52, %v1166_v3  ;;  %v1475_v18 = vadd.f32 %v1347_v19, %v1182_v30  ;;  %4416 = vmatmul.mubr.f32.gmra.mrb[18].mxu1 %v16292_v61  ;;  %v2918_v38 = vmax.f32 %v13294_v11, 0.0  ;;  %v16297_v52 = vld [vmem:[#allocation190_spill] sm:$0xff]  ;;  %v16299_v61 = vld [vmem:[#allocation115_spill] sm:$0xff] }
 0x2df   :  { %v260_v53 = vmul.f32 %v15979_v9, %v16293_v62  ;;  %7303 = vmatpush1.bf16.msra.mxu0 %v16259_v25  ;;  %7415 = vmatpush1.bf16.msra.mxu1 %v16259_v25  ;;  %v2535_v49 = vadd.f32 %v16294_v6, %v2271_v8  ;;  %v2551_v42 = vadd.f32 %v16295_v26, %v2287_v17  ;;  %v16298_v19 = vld [vmem:[#allocation166_spill] sm:$0xff]  ;;  %v2934_v30 = vmax.f32 %v13338_v15, 0.0  ;;  %v3527_v8 = vpop.f32.mrb[2].mxu1  ;;  %v16301_v6 = vld [vmem:[#allocation17_spill] sm:$0xff] }
 0x2e0   :  { %v514_v28 = vmul.f32 %v16296_v47, %v16069_v7  ;;  %7305 = vmatprep.subr.bf16.mxu0 %v16297_v52  ;;  %7417 = vmatprep.subr.bf16.mxu1 %v16297_v52  ;;  %v2822_v3 = vadd.f32 %v16298_v19, %v2646_v13  ;;  %v1751_v32 = vadd.f32 %v1623_v14, %v1459_v0  ;;  %v16302_v47 = vld [vmem:[#allocation63_spill] sm:$0xff]  ;;  %v3529_v13 = vpop.f32.mrb[3].mxu1  ;;  %v16303_v62 = vld [vmem:[#allocation149_spill] sm:$0xff] }
 0x2e1   :  { %v273_v25 = vmul.f32 %v15979_v9, %v16299_v61  ;;  %v8233_v11 = vadd.f32 %v3523_v12, %v13119_v59  ;;  %v2711_v17 = vadd.f32 %v16300_v4, %v2535_v49  ;;  %v1767_v26 = vadd.f32 %v1639_v36, %v1475_v18  ;;  %4421 = vmatprep.mubr.f32.mxu1 %v16302_v47  ;;  %v16304_v18 = vld [vmem:[#allocation109_spill] sm:$0xff] }
 0x2e2   :  { %v528_v41 = vmul.f32 %v16301_v6, %v16069_v7  ;;  %v8234_v56 = vadd.f32 %v3527_v8, %v13161_v54  ;;  %v2727_v15 = vadd.f32 %v16303_v62, %v2551_v42  ;;  %v2031_v14 = vadd.f32 %v13303_v48, %v1751_v32  ;;  %4422 = vmatmul.mubr.f32.gmra.mrb[20].mxu1 %v13179_v43  ;;  %v16305_v8 = vld [vmem:[#allocation71_spill] sm:$0xff] }
 0x2e3   :  { %v626_v0 = vadd.f32 %v514_v28, %v260_v53  ;;  %v5148_v12 = vmax.f32 %v8232_v27, 0.0  ;;  %v8235_v59 = vadd.f32 %v3529_v13, %v13161_v54  ;;  %7307 = vmatpush1.bf16.msra.mxu0 %v16269_v33  ;;  %7419 = vmatpush1.bf16.msra.mxu1 %v16269_v33  ;;  %v2047_v36 = vadd.f32 %v13312_v46, %v1767_v26  ;;  %v16306_v53 = vld [vmem:[#allocation85_spill] sm:$0xff]  ;;  %v16307_v27 = vld [vmem:[#allocation111_spill] sm:$0xff]  ;;  %v3533_v54 = vpop.f32.mrb[4].mxu1  ;;  %v16308_v26 = vld [vmem:[#allocation128_spill] sm:$0xff] }
 0x2e4   :  { %v784_v49 = vmul.f32 %v16304_v18, %v16172_v24  ;;  %v5164_v47 = vmax.f32 %v8234_v56, 0.0  ;;  %7309 = vmatprep.subr.bf16.mxu0 %v16305_v8  ;;  %7421 = vmatprep.subr.bf16.mxu1 %v16305_v8  ;;  %v2303_v42 = vadd.f32 %v16306_v53, %v2031_v14  ;;  %v640_v43 = vadd.f32 %v528_v41, %v273_v25  ;;  %v3535_v4 = vpop.f32.mrb[5].mxu1  ;;  %v16310_v14 = vld [vmem:[#allocation121_spill] sm:$0xff] }
 0x2e5   :  { %v799_v28 = vmul.f32 %v16307_v27, %v16172_v24  ;;  %v5149_v32 = vmax.f32 %v8233_v11, 0.0  ;;  %v5165_v13 = vmax.f32 %v8235_v59, 0.0  ;;  %v1070_v62 = vmul.f32 %v16308_v26, %v16273_v16  ;;  %4427 = vmatprep.mubr.f32.mxu1 %v13194_v23  ;;  %v16311_v25 = vld [vmem:[#allocation165_spill] sm:$0xff]  ;;  %v16313_v59 = vld [vmem:[#allocation118_spill] sm:$0xff] }
 0x2e6   :  { %v904_v33 = vadd.f32 %v784_v49, %v626_v0  ;;  %v13409_v56 = vpack.c.bf16 %v5164_v47, %v5148_v12  ;;  %v13411_v46 = vpack.c.bf16 %v2918_v38, %v2902_v44  ;;  %v2839_v18 = vmax.f32 %v2711_v17, 0.0  ;;  %4428 = vmatmul.mubr.f32.gmra.mrb[22].mxu1 %v16311_v25  ;;  %v16314_v23 = vld [vmem:[#allocation154_spill] sm:$0xff]  ;;  %v16315_v44 = vld [vmem:[#allocation171_spill] sm:$0xff]  ;;  %v16317_v25 = vld [vmem:[#allocation189_spill] sm:$0xff] }
 0x2e7   :  { %v2319_v41 = vadd.f32 %v16310_v14, %v2047_v36  ;;  %v13415_v53 = vpack.c.bf16 %v5165_v13, %v5149_v32  ;;  %v8236_v11 = vadd.f32 %v3533_v54, %v16313_v59  ;;  %7311 = vmatpush1.bf16.msra.mxu0 %v16279_v35  ;;  %7423 = vmatpush1.bf16.msra.mxu1 %v16279_v35  ;;  %v2950_v0 = vmax.f32 %v2822_v3, 0.0  ;;  %v16316_v36 = vld [vmem:[#allocation167_spill] sm:$0xff]  ;;  %v3539_v32 = vpop.f32.mrb[6].mxu1 }
 0x2e8   :  { %16309 = vst [vmem:[#allocation180_spill] sm:$0xff] %v13409_v56  ;;  %v2567_v12 = vadd.f32 %v16314_v23, %v2303_v42  ;;  %v8237_v49 = vadd.f32 %v3535_v4, %v16313_v59  ;;  %7313 = vmatprep.subr.bf16.mxu0 %v16315_v44  ;;  %7425 = vmatprep.subr.bf16.mxu1 %v16315_v44  ;;  %v2855_v38 = vmax.f32 %v2727_v15, 0.0  ;;  %v16318_v42 = vld [vmem:[#allocation144_spill] sm:$0xff]  ;;  %v16319_v4 = vld [vmem:[#allocation183_spill] sm:$0xff]  ;;  %v3541_v59 = vpop.f32.mrb[7].mxu1 }
 0x2e9   :  { %16312 = vst [vmem:[#allocation34_spill] sm:$0xff] %v13415_v53  ;;  %v919_v17 = vadd.f32 %v799_v28, %v640_v43  ;;  %v1086_v47 = vmul.f32 %v16316_v36, %v16273_v16  ;;  %v13426_v54 = vpack.c.bf16 %v2950_v0, %v2934_v30  ;;  %v1198_v13 = vadd.f32 %v1070_v62, %v904_v33  ;;  %v16320_v43 = vld [vmem:[#allocation80_spill] sm:$0xff]  ;;  %v16321_v62 = vld [vmem:[#allocation151_spill] sm:$0xff] }
 0x2ea   :  { %v1363_v3 = vmul.f32 %v16317_v25, %v16277_v40  ;;  %v1379_v53 = vmul.f32 %v16318_v42, %v16277_v40  ;;  %4498 = vmatprep.mubr.f32.mxu1 %v16319_v4  ;;  %v8238_v56 = vadd.f32 %v3539_v32, %v13229_v57  ;;  %v13434_v15 = vpack.c.bf16 %v2855_v38, %v2839_v18  ;;  %v16322_v32 = vld [vmem:[#allocation141_spill] sm:$0xff]  ;;  %v16323_v18 = vld [vmem:[#allocation66_spill] sm:$0xff] }
 0x2eb   :  { %v2583_v28 = vadd.f32 %v16320_v43, %v2319_v41  ;;  %v1214_v35 = vadd.f32 %v1086_v47, %v919_v17  ;;  %v5180_v23 = vmax.f32 %v8236_v11, 0.0  ;;  %v8239_v30 = vadd.f32 %v3541_v59, %v13229_v57  ;;  %7315 = vmatpush1.bf16.msra.mxu0 %v16289_v37  ;;  %7427 = vmatpush1.bf16.msra.mxu1 %v16289_v37  ;;  %v16324_v11 = vld [vmem:[#allocation172_spill] sm:$0xff]  ;;  %v16328_v37 = vld [vmem:[#allocation161_spill] sm:$0xff] }
 0x2ec   :  { %v1491_v33 = vadd.f32 %v1363_v3, %v1198_v13  ;;  %v1655_v0 = vmul.f32 %v16007_v51, %v16321_v62  ;;  %v5181_v4 = vmax.f32 %v8237_v49, 0.0  ;;  %v5196_v42 = vmax.f32 %v8238_v56, 0.0  ;;  %7317 = vmatprep.subr.bf16.mxu0 %v16322_v32  ;;  %7429 = vmatprep.subr.bf16.mxu1 %v16322_v32  ;;  %v16325_v57 = vld [vmem:[#allocation56_spill] sm:$0xff] }
 0x2ed   :  { %v13445_v41 = vadd.f32 %v16323_v18, %v2567_v12  ;;  %v1671_v59 = vmul.f32 %v16007_v51, %v16324_v11  ;;  %v5197_v38 = vmax.f32 %v8239_v30, 0.0  ;;  %v1507_v17 = vadd.f32 %v1379_v53, %v1214_v35  ;;  %v16327_v49 = vld [vmem:[#allocation156_spill] sm:$0xff] }
 0x2ee   :  { %v1783_v47 = vadd.f32 %v1655_v0, %v1491_v33  ;;  %v299_v13 = vmul.f32 %v15979_v9, %v16325_v57  ;;  %v13451_v3 = vpack.c.bf16 %v5196_v42, %v5180_v23  ;;  %v286_v56 = vmul.f32 %v15979_v9, %v16327_v49  ;;  %v16329_v12 = vld [vmem:[#allocation164_spill] sm:$0xff]  ;;  %v16333_v0 = vld [vmem:[#allocation114_spill] sm:$0xff] }
 0x2ef   :  { %v542_v43 = vmul.f32 %v16328_v37, %v16069_v7  ;;  %v556_v18 = vmul.f32 %v16329_v12, %v16069_v7  ;;  %v13459_v25 = vpack.c.bf16 %v5197_v38, %v5181_v4  ;;  %7319 = vmatpush1.bf16.msra.mxu0 %v16290_v39  ;;  %7431 = vmatpush1.bf16.msra.mxu1 %v16290_v39  ;;  %v16331_v53 = vld [vmem:[#allocation116_spill] sm:$0xff]  ;;  %v16334_v4 = vld [vmem:[#allocation187_spill] sm:$0xff]  ;;  %v16337_v12 = vld [vmem:[#allocation146_spill] sm:$0xff] }
 0x2f0   :  { %16326 = vst [vmem:[#allocation54_spill] sm:$0xff] %v13451_v3  ;;  %v2063_v35 = vadd.f32 %v13332_v21, %v1783_v47  ;;  %v814_v23 = vmul.f32 %v16331_v53, %v16172_v24  ;;  %v16332_v42 = vld [vmem:[#allocation124_spill] sm:$0xff]  ;;  %v1799_v9 = vadd.f32 %v1671_v59, %v1507_v17  ;;  %v829_v38 = vmul.f32 %v16334_v4, %v16172_v24  ;;  %v16336_v47 = vld [vmem:[#allocation135_spill] sm:$0xff]  ;;  %v16339_v59 = vld [vmem:[#allocation134_spill] sm:$0xff] }
 0x2f1   :  { %16330 = vst [vmem:[#allocation27_spill] sm:$0xff] %v13459_v25  ;;  %7321 = vmatprep.subr.bf16.mxu0 %v16332_v42  ;;  %7433 = vmatprep.subr.bf16.mxu1 %v16332_v42  ;;  %v654_v30 = vadd.f32 %v542_v43, %v286_v56  ;;  %v668_v33 = vadd.f32 %v556_v18, %v299_v13  ;;  %v16335_v25 = vld [vmem:[#allocation30_spill] sm:$0xff]  ;;  %v16338_v43 = vld [vmem:[#allocation159_spill] sm:$0xff]  ;;  %v16340_v56 = vld [vmem:[#allocation117_spill] sm:$0xff] }
 0x2f2   :  { %v2335_v3 = vadd.f32 %v16333_v0, %v2063_v35  ;;  %v1102_v39 = vmul.f32 %v16335_v25, %v16273_v16  ;;  %v1118_v21 = vmul.f32 %v16336_v47, %v16273_v16  ;;  %v13476_v53 = vadd.f32 %v16337_v12, %v2583_v28  ;;  %v16341_v0 = vld [vmem:[#allocation120_spill] sm:$0xff] }
 0x2f3   :  { %v2079_v37 = vadd.f32 %v13360_v2, %v1799_v9  ;;  %v934_v49 = vadd.f32 %v814_v23, %v654_v30  ;;  %v1395_v18 = vmul.f32 %v16338_v43, %v16277_v40  ;;  %7323 = vmatpush1.bf16.msra.mxu0 %v16297_v52  ;;  %7435 = vmatpush1.bf16.msra.mxu1 %v16297_v52  ;;  %v13487_v47 = vmul.f32 0.0, %v16341_v0  ;;  %v16343_v28 = vld [vmem:[#allocation4_spill] sm:$0xff]  ;;  %v16344_v23 = vld [vmem:[#allocation53_spill] sm:$0xff]  ;;  %v16345_v43 = vld [vmem:[#allocation163_spill] sm:$0xff] }
 0x2f4   :  { %v2599_v17 = vadd.f32 %v16339_v59, %v2335_v3  ;;  %v949_v13 = vadd.f32 %v829_v38, %v668_v33  ;;  %v1411_v35 = vmul.f32 %v16340_v56, %v16277_v40  ;;  %7325 = vmatprep.subr.bf16.mxu0 %v16343_v28  ;;  %7437 = vmatprep.subr.bf16.mxu1 %v16343_v28  ;;  %v16346_v52 = vld [vmem:[#allocation162_spill] sm:$0xff]  ;;  %v16348_v33 = vld [vmem:[#allocation113_spill] sm:$0xff]  ;;  %v16350_v59 = vld [vmem:[#allocation32_spill] sm:$0xff] }
 0x2f5   :  { %16342 = vst [vmem:[#allocation64_spill] sm:$0xff] %v13487_v47  ;;  %v2351_v9 = vadd.f32 %v16344_v23, %v2079_v37  ;;  %v1230_v30 = vadd.f32 %v1102_v39, %v934_v49  ;;  %v1687_v2 = vmul.f32 %v16007_v51, %v16345_v43  ;;  %v13495_v25 = vmul.f32 0.0, %v16346_v52  ;;  %v16349_v38 = vld [vmem:[#allocation25_spill] sm:$0xff]  ;;  %v16351_v39 = vld [vmem:[#allocation16_spill] sm:$0xff]  ;;  %v16352_v23 = vld [vmem:[#allocation23_spill] sm:$0xff] }
 0x2f6   :  { %v1246_v3 = vadd.f32 %v1118_v21, %v949_v13  ;;  %v1703_v40 = vmul.f32 %v16007_v51, %v16348_v33  ;;  %v209_v0 = vmul.f32 %v16069_v7, %v16349_v38  ;;  %v222_v56 = vmul.f32 %v16069_v7, %v16350_v59  ;;  %v16353_v13 = vld [vmem:[#allocation103_spill] sm:$0xff] }
 0x2f7   :  { %16347 = vst [vmem:[#allocation73_spill] sm:$0xff] %v13495_v25  ;;  %v2615_v4 = vadd.f32 %v16270_v50, %v2351_v9  ;;  %v1523_v37 = vadd.f32 %v1395_v18, %v1230_v30  ;;  %v459_v49 = vmul.f32 %v16172_v24, %v16351_v39  ;;  %v473_v52 = vmul.f32 %v16172_v24, %v16352_v23  ;;  %v16354_v18 = vld [vmem:[#allocation179_spill] sm:$0xff]  ;;  %v16355_v50 = vld [vmem:[#allocation170_spill] sm:$0xff] }
 0x2f8   :  { %7327 = vmatpush1.bf16.msra.mxu0 %v16305_v8  ;;  %7439 = vmatpush1.bf16.msra.mxu1 %v16305_v8  ;;  %v13511_v51 = vadd.f32 %v16276_v58, %v2599_v17  ;;  %v1539_v21 = vadd.f32 %v1411_v35, %v1246_v3  ;;  %v725_v59 = vmul.f32 %v16273_v16, %v16353_v13  ;;  %v1592_v9 = vmul.f32 0.0, %v16281_v45  ;;  %v16356_v58 = vld [vmem:[#allocation33_spill] sm:$0xff]  ;;  %v16358_v13 = vld [vmem:[#allocation39_spill] sm:$0xff] }
 0x2f9   :  { %7329 = vmatprep.subr.bf16.mxu0 %v16354_v18  ;;  %7441 = vmatprep.subr.bf16.mxu1 %v16354_v18  ;;  %v1815_v30 = vadd.f32 %v1687_v2, %v1523_v37  ;;  %v571_v38 = vadd.f32 %v459_v49, %v209_v0  ;;  %v585_v23 = vadd.f32 %v473_v52, %v222_v56  ;;  %v1608_v39 = vmul.f32 0.0, %v16283_v10  ;;  %v16357_v3 = vld [vmem:[#allocation125_spill] sm:$0xff]  ;;  %v16360_v56 = vld [vmem:[#allocation78_spill] sm:$0xff]  ;;  %v16362_v0 = vld [vmem:[#allocation12_spill] sm:$0xff] }
 0x2fa   :  { %v13520_v8 = vadd.f32 %v16355_v50, %v2615_v4  ;;  %v1831_v17 = vadd.f32 %v1703_v40, %v1539_v21  ;;  %v740_v35 = vmul.f32 %v16273_v16, %v16356_v58  ;;  %v1007_v33 = vmul.f32 %v16358_v13, %v16357_v3  ;;  %v13529_v45 = vld [vmem:[%s14492_s3 + $0x10] sm:$0xff]  ;;  %v16361_v40 = vld [vmem:[#allocation106_spill] sm:$0xff] }
 0x2fb   :  { %16359 = vst [vmem:[#allocation82_spill] sm:$0xff] %v13529_v45  ;;  %4232 = vmatmul.mubr.f32.vlgmr.msra.gmra.mrb[16].mxu0 %v13529_v45  ;;  %v2095_v2 = vadd.f32 %v13487_v47, %v1815_v30  ;;  %v845_v10 = vadd.f32 %v725_v59, %v571_v38  ;;  %v1023_v4 = vmul.f32 %v16358_v13, %v16360_v56  ;;  %v2887_v58 = vmax.f32 %v13476_v53, 0.0  ;;  %v16363_v21 = vld [vmem:[#allocation108_spill] sm:$0xff]  ;;  %v16364_v30 = vld [vmem:[#allocation177_spill] sm:$0xff]  ;;  %v13552_v53 = vld [vmem:[%s14492_s3 + $0x40] sm:$0xff] }
 0x2fc   :  { %v1300_v37 = vmul.f32 %v16362_v0, %v16361_v40  ;;  %7331 = vmatpush1.bf16.msra.mxu0 %v16315_v44  ;;  %7443 = vmatpush1.bf16.msra.mxu1 %v16315_v44  ;;  %v2111_v49 = vadd.f32 %v13495_v25, %v1831_v17  ;;  %v860_v52 = vadd.f32 %v740_v35, %v585_v23  ;;  %v2871_v59 = vmax.f32 %v13445_v41, 0.0  ;;  %v16365_v40 = vld [vmem:[#allocation45_spill] sm:$0xff]  ;;  %v16368_v35 = vld [vmem:[#allocation44_spill] sm:$0xff] }
 0x2fd   :  { %v1316_v3 = vmul.f32 %v16362_v0, %v16363_v21  ;;  %7333 = vmatprep.subr.bf16.mxu0 %v13362_v34  ;;  %7445 = vmatprep.subr.bf16.mxu1 %v13362_v34  ;;  %v2367_v38 = vadd.f32 %v16364_v30, %v2095_v2  ;;  %v1135_v56 = vadd.f32 %v1007_v33, %v845_v10  ;;  %v16367_v23 = vld [vmem:[#allocation81_spill] sm:$0xff]  ;;  %v16369_v25 = vld [vmem:[#allocation52_spill] sm:$0xff]  ;;  %v1624_v45 = vmul.f32 0.0, %v15859_v55  ;;  %v16374_v55 = vld [vmem:[#allocation107_spill] sm:$0xff] }
 0x2fe   :  { %v235_v44 = vmul.f32 %v16069_v7, %v16365_v40  ;;  %16366 = vst [vmem:[#allocation92_spill] sm:$0xff] %v13552_v53  ;;  %4237 = vmatprep.mubr.f32.mxu0 %v13552_v53  ;;  %v2383_v17 = vadd.f32 %v16367_v23, %v2111_v49  ;;  %v248_v21 = vmul.f32 %v16069_v7, %v16368_v35  ;;  %v16370_v2 = vld [vmem:[#allocation60_spill] sm:$0xff]  ;;  %v13565_v10 = vld [vmem:[%s14492_s3 + $0x38] sm:$0xff] }
 0x2ff   :  { %v487_v41 = vmul.f32 %v16172_v24, %v16369_v25  ;;  %v501_v33 = vmul.f32 %v16172_v24, %v16370_v2  ;;  %4238 = vmatmul.mubr.f32.gmra.mrb[18].mxu0 %v13565_v10  ;;  %v16371_v40 = vld [vmem:[#allocation173_spill] sm:$0xff]  ;;  %v1151_v53 = vadd.f32 %v1023_v4, %v860_v52  ;;  %v1428_v49 = vadd.f32 %v1300_v37, %v1135_v56  ;;  %v16372_v23 = vld [vmem:[#allocation98_spill] sm:$0xff]  ;;  %v16373_v2 = vld [vmem:[#allocation131_spill] sm:$0xff] }
 0x300   :  { %v2631_v30 = vadd.f32 %v16371_v40, %v2367_v38  ;;  %v755_v35 = vmul.f32 %v16273_v16, %v16372_v23  ;;  %7335 = vmatpush1.bf16.msra.mxu0 %v16322_v32  ;;  %7447 = vmatpush1.bf16.msra.mxu1 %v16322_v32  ;;  %v13573_v25 = vpack.c.bf16 %v2887_v58, %v2871_v59  ;;  %v2903_v4 = vmax.f32 %v13511_v51, 0.0  ;;  %v13585_v58 = vld [vmem:[%s14492_s3 + $0x68] sm:$0xff] }
 0x301   :  { %v2647_v47 = vadd.f32 %v16373_v2, %v2383_v17  ;;  %v599_v50 = vadd.f32 %v487_v41, %v235_v44  ;;  %7337 = vmatprep.subr.bf16.mxu0 %v13411_v46  ;;  %7449 = vmatprep.subr.bf16.mxu1 %v13411_v46  ;;  %v2919_v37 = vmax.f32 %v13520_v8, 0.0  ;;  %v1444_v38 = vadd.f32 %v1316_v3, %v1151_v53  ;;  %v13595_v8 = vld [vmem:[%s14492_s3 + $0x60] sm:$0xff]  ;;  %v13616_v41 = vld [vmem:[%s14492_s3 + $0x90] sm:$0xff] }
 0x302   :  { %v2807_v52 = vadd.f32 %v16202_v63, %v2631_v30  ;;  %4243 = vmatprep.mubr.f32.mxu0 %v13585_v58  ;;  %v613_v44 = vadd.f32 %v501_v33, %v248_v21  ;;  %v770_v59 = vmul.f32 %v16273_v16, %v16374_v55  ;;  %v1039_v51 = vmul.f32 %v16358_v13, %v16101_v22 }
 0x303   :  { %v875_v56 = vadd.f32 %v755_v35, %v599_v50  ;;  %4244 = vmatmul.mubr.f32.gmra.mrb[20].mxu0 %v13595_v8  ;;  %v2823_v3 = vadd.f32 %v16298_v19, %v2647_v47  ;;  %v1720_v30 = vadd.f32 %v1592_v9, %v1428_v49  ;;  %v1736_v53 = vadd.f32 %v1608_v39, %v1444_v38  ;;  %v16375_v49 = vld [vmem:[#allocation47_spill] sm:$0xff]  ;;  %v16377_v38 = vld [vmem:[#allocation126_spill] sm:$0xff] }
 0x304   :  { %v1055_v23 = vmul.f32 %v16358_v13, %v16015_v31  ;;  %7339 = vmatpush1.bf16.msra.mxu0 %v16332_v42  ;;  %7451 = vmatpush1.bf16.msra.mxu1 %v16332_v42  ;;  %v890_v50 = vadd.f32 %v770_v59, %v613_v44  ;;  %v1332_v17 = vmul.f32 %v16362_v0, %v16016_v29  ;;  %v1640_v21 = vmul.f32 0.0, %v15865_v20 }
 0x305   :  { %v1167_v22 = vadd.f32 %v1039_v51, %v875_v56  ;;  %7341 = vmatprep.subr.bf16.mxu0 %v13426_v54  ;;  %7453 = vmatprep.subr.bf16.mxu1 %v13426_v54  ;;  %v13608_v47 = vpack.c.bf16 %v2919_v37, %v2903_v4  ;;  %v2935_v9 = vmax.f32 %v2807_v52, 0.0  ;;  %v2000_v31 = vadd.f32 %v13275_v60, %v1720_v30  ;;  %v13625_v60 = vld [vmem:[%s14492_s3 + $0x88] sm:$0xff]  ;;  %v16378_v56 = vld [vmem:[#allocation77_spill] sm:$0xff] }
 0x306   :  { %v1348_v39 = vmul.f32 %v16362_v0, %v15858_v5  ;;  %4249 = vmatprep.mubr.f32.mxu0 %v13616_v41  ;;  %v2016_v20 = vadd.f32 %v13281_v1, %v1736_v53  ;;  %v1183_v29 = vadd.f32 %v1055_v23, %v890_v50  ;;  %v261_v35 = vmul.f32 %v16069_v7, %v16375_v49  ;;  %v16376_v4 = vld [vmem:[#allocation48_spill] sm:$0xff] }
 0x307   :  { %v1460_v33 = vadd.f32 %v1332_v17, %v1167_v22  ;;  %4250 = vmatmul.mubr.f32.gmra.mrb[22].mxu0 %v13625_v60  ;;  %v2951_v5 = vmax.f32 %v2823_v3, 0.0  ;;  %v2272_v37 = vadd.f32 %v16376_v4, %v2000_v31  ;;  %v274_v52 = vmul.f32 %v16069_v7, %v16299_v61  ;;  %v16379_v3 = vld [vmem:[#allocation140_spill] sm:$0xff]  ;;  %v16381_v17 = vld [vmem:[#allocation109_spill] sm:$0xff] }
 0x308   :  { %v515_v1 = vmul.f32 %v16172_v24, %v16377_v38  ;;  %7343 = vmatpush1.bf16.msra.mxu0 %v16343_v28  ;;  %7455 = vmatpush1.bf16.msra.mxu1 %v16343_v28  ;;  %v1476_v44 = vadd.f32 %v1348_v39, %v1183_v29  ;;  %v529_v59 = vmul.f32 %v16172_v24, %v16301_v6  ;;  %v16380_v53 = vmov 0.0   ;;  %v13649_v6 = vld [vmem:[%s14492_s3 + $0x20] sm:$0xff]  ;;  %v16384_v29 = vld [vmem:[#allocation49_spill] sm:$0xff] }
 0x309   :  { %v1752_v55 = vadd.f32 %v1624_v45, %v1460_v33  ;;  %7457 = vmatprep.subr.bf16.mxu1 %v13434_v15  ;;  %7489 = vmatprep.subr.bf16.mxu0 %v16378_v56  ;;  %v13639_v51 = vpack.c.bf16 %v2951_v5, %v2935_v9  ;;  %v2288_v61 = vadd.f32 %v16379_v3, %v2016_v20  ;;  %v16382_v9 = vld [vmem:[#allocation22_spill] sm:$0xff]  ;;  %v16383_v39 = vld [vmem:[#allocation19_spill] sm:$0xff] }
 0x30a   :  { %v627_v30 = vadd.f32 %v515_v1, %v261_v35  ;;  %4320 = vmatprep.mubr.f32.mxu0 %v16380_v53  ;;  %v1768_v23 = vadd.f32 %v1640_v21, %v1476_v44  ;;  %v641_v22 = vadd.f32 %v529_v59, %v274_v52  ;;  %v785_v45 = vmul.f32 %v16273_v16, %v16381_v17  ;;  %v16385_v33 = vld [vmem:[#allocation91_spill] sm:$0xff]  ;;  %v16386_v35 = vld [vmem:[#allocation85_spill] sm:$0xff]  ;;  %v16388_v38 = vld [vmem:[#allocation122_spill] sm:$0xff] }
 0x30b   :  { %v2032_v50 = vadd.f32 %v13303_v48, %v1752_v55  ;;  %6600 = vmatmul.mubr.msk.f32.vlgmr.msra.gmra.mrb[16].mxu0 %vm2997_vm0, %v13649_v6  ;;  %v2536_v31 = vadd.f32 %v16382_v9, %v2272_v37  ;;  %v2552_v20 = vadd.f32 %v16383_v39, %v2288_v61  ;;  %v800_v21 = vmul.f32 %v16273_v16, %v16307_v27  ;;  %v16387_v37 = vld [vmem:[#allocation186_spill] sm:$0xff]  ;;  %v16394_v9 = vld [vmem:[#allocation80_spill] sm:$0xff] }
 0x30c   :  { %v1071_v48 = vmul.f32 %v16358_v13, %v16308_v26  ;;  %7459 = vmatpush1.bf16.msra.mxu1 %v16354_v18  ;;  %7491 = vmatpush1.bf16.msra.mxu0 %v16384_v29  ;;  %v2048_v49 = vadd.f32 %v16385_v33, %v1768_v23  ;;  %v905_v4 = vadd.f32 %v785_v45, %v627_v30  ;;  %v1656_v52 = vmul.f32 0.0, %v16321_v62  ;;  %v16389_v59 = vld [vmem:[#allocation154_spill] sm:$0xff]  ;;  %v16390_v62 = vld [vmem:[#allocation189_spill] sm:$0xff]  ;;  %v13678_v23 = vld [vmem:[%s14492_s3 + $0x48] sm:$0xff] }
 0x30d   :  { %v2304_v5 = vadd.f32 %v16386_v35, %v2032_v50  ;;  %7461 = vmatprep.subr.bf16.mxu1 %v13573_v25  ;;  %7493 = vmatprep.subr.bf16.mxu0 %v16387_v37  ;;  %v2712_v27 = vadd.f32 %v16388_v38, %v2536_v31  ;;  %v920_v1 = vadd.f32 %v800_v21, %v641_v22  ;;  %v1672_v44 = vmul.f32 0.0, %v16324_v11  ;;  %v16392_v22 = vld [vmem:[#allocation144_spill] sm:$0xff]  ;;  %v16393_v45 = vld [vmem:[#allocation59_spill] sm:$0xff]  ;;  %v16397_v35 = vld [vmem:[#allocation161_spill] sm:$0xff] }
 0x30e   :  { %v1087_v26 = vmul.f32 %v16358_v13, %v16316_v36  ;;  %4326 = vmatprep.mubr.f32.mxu0 %v16380_v53  ;;  %v2320_v55 = vadd.f32 %v16310_v14, %v2048_v49  ;;  %v1199_v61 = vadd.f32 %v1071_v48, %v905_v4  ;;  %v1364_v30 = vmul.f32 %v16362_v0, %v16390_v62  ;;  %v16391_v36 = vld [vmem:[#allocation149_spill] sm:$0xff]  ;;  %v16395_v21 = vld [vmem:[#allocation156_spill] sm:$0xff]  ;;  %v16399_v38 = vld [vmem:[#allocation66_spill] sm:$0xff] }
 0x30f   :  { %v2568_v3 = vadd.f32 %v16389_v59, %v2304_v5  ;;  %6601 = vmatmul.mubr.msk.f32.gmra.mrb[18].mxu0 %vm2997_vm0, %v13678_v23  ;;  %v2728_v11 = vadd.f32 %v16391_v36, %v2552_v20  ;;  %v1380_v14 = vmul.f32 %v16362_v0, %v16392_v22  ;;  %v300_v17 = vmul.f32 %v16069_v7, %v16325_v57  ;;  %v16396_v20 = vld [vmem:[#allocation6_spill] sm:$0xff]  ;;  %v16398_v5 = vld [vmem:[#allocation164_spill] sm:$0xff]  ;;  %v16401_v62 = vld [vmem:[#allocation187_spill] sm:$0xff] }
 0x310   :  { %v1215_v50 = vadd.f32 %v1087_v26, %v920_v1  ;;  %7463 = vmatpush1.bf16.msra.mxu1 %v13362_v34  ;;  %7495 = vmatpush1.bf16.msra.mxu0 %v16393_v45  ;;  %v2584_v31 = vadd.f32 %v16394_v9, %v2320_v55  ;;  %v1492_v39 = vadd.f32 %v1364_v30, %v1199_v61  ;;  %v1688_v29 = vmul.f32 0.0, %v16345_v43  ;;  %v16400_v43 = vld [vmem:[#allocation116_spill] sm:$0xff]  ;;  %v16403_v30 = vld [vmem:[#allocation41_spill] sm:$0xff] }
 0x311   :  { %v287_v48 = vmul.f32 %v16069_v7, %v16395_v21  ;;  %7465 = vmatprep.subr.bf16.mxu1 %v13608_v47  ;;  %7497 = vmatprep.subr.bf16.mxu0 %v16396_v20  ;;  %v2840_v33 = vmax.f32 %v2712_v27, 0.0  ;;  %v543_v57 = vmul.f32 %v16172_v24, %v16397_v35  ;;  %v557_v4 = vmul.f32 %v16172_v24, %v16398_v5  ;;  %v13707_v27 = vld [vmem:[%s14492_s3 + $0x70] sm:$0xff]  ;;  %v16410_v35 = vld [vmem:[#allocation159_spill] sm:$0xff] }
 0x312   :  { %v1508_v49 = vadd.f32 %v1380_v14, %v1215_v50  ;;  %4332 = vmatprep.mubr.f32.mxu0 %v16380_v53  ;;  %v2744_v1 = vadd.f32 %v16399_v38, %v2568_v3  ;;  %v2760_v7 = vadd.f32 %v16337_v12, %v2584_v31  ;;  %v1784_v26 = vadd.f32 %v1656_v52, %v1492_v39  ;;  %v16402_v12 = vld [vmem:[#allocation5_spill] sm:$0xff]  ;;  %v16404_v50 = vld [vmem:[#allocation30_spill] sm:$0xff]  ;;  %v16405_v14 = vld [vmem:[#allocation135_spill] sm:$0xff] }
 0x313   :  { %v815_v55 = vmul.f32 %v16273_v16, %v16400_v43  ;;  %6602 = vmatmul.mubr.msk.f32.gmra.mrb[20].mxu0 %vm2997_vm0, %v13707_v27  ;;  %v655_v24 = vadd.f32 %v543_v57, %v287_v48  ;;  %v669_v61 = vadd.f32 %v557_v4, %v300_v17  ;;  %v830_v3 = vmul.f32 %v16273_v16, %v16401_v62  ;;  %v16407_v17 = vld [vmem:[#allocation99_spill] sm:$0xff]  ;;  %v16408_v39 = vld [vmem:[#allocation113_spill] sm:$0xff]  ;;  %v16409_v48 = vld [vmem:[#allocation114_spill] sm:$0xff] }
 0x314   :  { %v1800_v59 = vadd.f32 %v1672_v44, %v1508_v49  ;;  %7467 = vmatpush1.bf16.msra.mxu1 %v13411_v46  ;;  %7499 = vmatpush1.bf16.msra.mxu0 %v16402_v12  ;;  %v2856_v52 = vmax.f32 %v2728_v11, 0.0  ;;  %v2064_v36 = vadd.f32 %v16403_v30, %v1784_v26  ;;  %v1103_v22 = vmul.f32 %v16358_v13, %v16404_v50  ;;  %v16406_v44 = vld [vmem:[#allocation61_spill] sm:$0xff]  ;;  %v13750_v50 = vld [vmem:[%s14492_s3 + $0x8] sm:$0xff] }
 0x315   :  { %v1119_v45 = vmul.f32 %v16358_v13, %v16405_v14  ;;  %7469 = vmatprep.subr.bf16.mxu1 %v13639_v51  ;;  %7501 = vmatprep.subr.bf16.mxu0 %v16406_v44  ;;  %v935_v16 = vadd.f32 %v815_v55, %v655_v24  ;;  %v950_v31 = vadd.f32 %v830_v3, %v669_v61  ;;  %v1704_v21 = vmul.f32 0.0, %v16408_v39  ;;  %v16411_v13 = vld [vmem:[#allocation117_spill] sm:$0xff]  ;;  %v16414_v24 = vld [vmem:[#allocation134_spill] sm:$0xff] }
 0x316   :  { %v2080_v9 = vadd.f32 %v16407_v17, %v1800_v59  ;;  %4338 = vmatprep.mubr.f32.mxu0 %v16380_v53  ;;  %v13725_v11 = vpack.c.bf16 %v2856_v52, %v2840_v33  ;;  %v2336_v49 = vadd.f32 %v16409_v48, %v2064_v36  ;;  %v1396_v57 = vmul.f32 %v16362_v0, %v16410_v35  ;;  %v13735_v4 = vld [vmem:[%s14492_s3 + $0x98] sm:$0xff]  ;;  %v16413_v59 = vld [vmem:[#allocation68_spill] sm:$0xff] }
 0x317   :  { %v1412_v5 = vmul.f32 %v16362_v0, %v16411_v13  ;;  %6603 = vmatmul.mubr.msk.f32.gmra.mrb[22].mxu0 %vm2997_vm0, %v13735_v4  ;;  %v2888_v38 = vmax.f32 %v2760_v7, 0.0  ;;  %v16412_v26 = vld [vmem:[#allocation53_spill] sm:$0xff]  ;;  %v1231_v43 = vadd.f32 %v1103_v22, %v935_v16  ;;  %v1247_v55 = vadd.f32 %v1119_v45, %v950_v31  ;;  %v16415_v0 = vld [vmem:[#allocation150_spill] sm:$0xff]  ;;  %v16420_v16 = vld [vmem:[#allocation96_spill] sm:$0xff] }
 0x318   :  { %v2352_v33 = vadd.f32 %v16412_v26, %v2080_v9  ;;  %7471 = vmatpush1.bf16.msra.mxu1 %v13426_v54  ;;  %7503 = vmatpush1.bf16.msra.mxu0 %v16413_v59  ;;  %v2600_v61 = vadd.f32 %v16414_v24, %v2336_v49  ;;  %v2872_v62 = vmax.f32 %v2744_v1, 0.0  ;;  %v16416_v3 = vld [vmem:[#allocation90_spill] sm:$0xff]  ;;  %v16417_v7 = vld [vmem:[#allocation133_spill] sm:$0xff]  ;;  %v16421_v48 = vld [vmem:[#allocation64_spill] sm:$0xff] }
 0x319   :  { %7473 = vmatprep.subr.bf16.mxu1 %v13725_v11  ;;  %7505 = vmatprep.subr.bf16.mxu0 %v16415_v0  ;;  %v1524_v52 = vadd.f32 %v1396_v57, %v1231_v43  ;;  %v1540_v30 = vadd.f32 %v1412_v5, %v1247_v55  ;;  %v16418_v22 = vld [vmem:[#allocation82_spill] sm:$0xff]  ;;  %v16422_v35 = vld [vmem:[#allocation73_spill] sm:$0xff]  ;;  %v16423_v13 = vld [vmem:[#allocation92_spill] sm:$0xff] }
 0x31a   :  { %v2616_v12 = vadd.f32 %v16416_v3, %v2352_v33  ;;  %v2776_v36 = vadd.f32 %v16417_v7, %v2600_v61  ;;  %4676 = vmatprep.mubr.f32.mxu0 %v13750_v50  ;;  %v13754_v14 = vpack.c.bf16 %v2888_v38, %v2872_v62  ;;  %v16419_v45 = vld [vmem:[#allocation170_spill] sm:$0xff]  ;;  %v16425_v38 = vld [vmem:[#allocation81_spill] sm:$0xff]  ;;  %v16427_v61 = vld [vmem:[#allocation79_spill] sm:$0xff] }
 0x31b   :  { %4499 = vmatmul.mubr.f32.vlgmr.msra.gmra.mrb[16].mxu1 %v16418_v22  ;;  %v1816_v1 = vadd.f32 %v1688_v29, %v1524_v52  ;;  %v1832_v9 = vadd.f32 %v1704_v21, %v1540_v30  ;;  %v16424_v21 = vld [vmem:[#allocation177_spill] sm:$0xff]  ;;  %v13857_v52 = vld [vmem:[%s14492_s3 + $0x28] sm:$0xff] }
 0x31c   :  { %v2792_v17 = vadd.f32 %v16419_v45, %v2616_v12  ;;  %7475 = vmatpush1.bf16.msra.mxu1 %v13434_v15  ;;  %7507 = vmatpush1.bf16.msra.mxu0 %v16378_v56  ;;  %v2904_v31 = vmax.f32 %v2776_v36, 0.0  ;;  %v16426_v26 = vld [vmem:[#allocation69_spill] sm:$0xff]  ;;  %v16433_v7 = vld [vmem:[#allocation24_spill] sm:$0xff] }
 0x31d   :  { %7477 = vmatprep.subr.bf16.mxu1 %v13754_v14  ;;  %7509 = vmatprep.subr.bf16.mxu0 %v16420_v16  ;;  %v2096_v49 = vadd.f32 %v16421_v48, %v1816_v1  ;;  %v2112_v57 = vadd.f32 %v16422_v35, %v1832_v9  ;;  %v13848_v62 = vld [vmem:[%s14492_s3 + $0x30] sm:$0xff]  ;;  %v13864_v30 = vld [vmem:[%s14492_s3 + $0x58] sm:$0xff] }
 0x31e   :  { %v2920_v39 = vmax.f32 %v2792_v17, 0.0  ;;  %4504 = vmatprep.mubr.f32.mxu1 %v16423_v13  ;;  %v16434_v17 = vld [vmem:[#allocation26_spill] sm:$0xff] }
 0x31f   :  { %4505 = vmatmul.mubr.f32.gmra.mrb[18].mxu1 %v13565_v10  ;;  %v2368_v5 = vadd.f32 %v16424_v21, %v2096_v49  ;;  %v2384_v56 = vadd.f32 %v16425_v38, %v2112_v57 }
 0x320   :  { %v13765_v29 = vpack.c.bf16 %v2920_v39, %v2904_v31  ;;  %7479 = vmatpush1.bf16.msra.mxu1 %v13573_v25  ;;  %7511 = vmatpush1.bf16.msra.mxu0 %v16387_v37  ;;  %v13884_v39 = vld [vmem:[%s14492_s3 + $0x80] sm:$0xff] }
 0x321   :  { %7513 = vmatprep.subr.bf16.mxu0 %v16426_v26  ;;  %v2632_v33 = vadd.f32 %v16371_v40, %v2368_v5  ;;  %v2648_v43 = vadd.f32 %v16373_v2, %v2384_v56  ;;  %4510 = vmatprep.mubr.f32.mxu1 %v13585_v58  ;;  %v16430_v2 = vld [vmem:[#allocation190_spill] sm:$0xff] }
 0x322   :  { %7481 = vmatprep.subr.bf16.mxu1 %v13765_v29  ;;  %v13895_v56 = vld [vmem:[%s14492_s3 + $0x78] sm:$0xff] }
 0x323   :  { %4511 = vmatmul.mubr.f32.gmra.mrb[20].mxu1 %v13595_v8  ;;  %v2808_v55 = vadd.f32 %v16202_v63, %v2632_v33  ;;  %v2824_v59 = vadd.f32 %v16298_v19, %v2648_v43  ;;  %v16428_v63 = vld [vmem:[#allocation89_spill] sm:$0xff]  ;;  %v16429_v19 = vld [vmem:[#allocation28_spill] sm:$0xff]  ;;  %v16435_v43 = vld [vmem:[#allocation118_spill] sm:$0xff] }
 0x324   :  { %7483 = vmatpush1.bf16.msra.mxu1 %v13608_v47  ;;  %7515 = vmatpush1.bf16.msra.mxu0 %v16396_v20  ;;  %v16431_v20 = vld [vmem:[#allocation71_spill] sm:$0xff]  ;;  %v13904_v33 = vld [vmem:[%s14492_s3 + $0x18] sm:$0xff] }
 0x325   :  { %v2936_v37 = vmax.f32 %v2808_v55, 0.0  ;;  %v2952_v24 = vmax.f32 %v2824_v59, 0.0  ;;  %7517 = vmatprep.subr.bf16.mxu0 %v16427_v61  ;;  %4516 = vmatprep.mubr.f32.mxu1 %v13616_v41 }
 0x327   :  { %v13783_v40 = vpack.c.bf16 %v2952_v24, %v2936_v37  ;;  %4517 = vmatmul.mubr.f32.gmra.mrb[22].mxu1 %v13625_v60  ;;  %v16436_v24 = vld [vmem:[#allocation148_spill] sm:$0xff] }
 0x328   :  { %7519 = vmatpush1.bf16.msra.mxu0 %v16406_v44  ;;  %4587 = vmatprep.mubr.f32.mxu1 %v16380_v53  ;;  %v16432_v44 = vld [vmem:[#allocation171_spill] sm:$0xff] }
 0x329   :  { %7485 = vmatprep.subr.bf16.mxu1 %v13783_v40  ;;  %7521 = vmatprep.subr.bf16.mxu0 %v16428_v63 }
 0x32a   :  { %7487 = vmatpush1.bf16.msra.mxu1 %v13639_v51 }
 0x32b   :  { %6638 = vmatprep.subr.mxu1 %v16380_v53 }
 0x32c   :  { %7523 = vmatpush1.bf16.msra.mxu0 %v16415_v0 }
 0x32d   :  { %6604 = vmatmul.mubr.msk.f32.vlgmr.msra.gmra.mrb[16].mxu1 %vm2997_vm0, %v13649_v6  ;;  %7525 = vmatprep.subr.bf16.mxu0 %v16429_v19 }
 0x32e   :  { %6639 = vmatpush3.msra.mxu1 %v16380_v53  ;;  %4593 = vmatprep.mubr.f32.mxu1 %v16380_v53 }
 0x32f   :  { %7613 = vmatprep.subr.bf16.mxu1 %v16428_v63 }
 0x330   :  { %7527 = vmatpush1.bf16.msra.mxu0 %v16420_v16 }
 0x331   :  { %6605 = vmatmul.mubr.msk.f32.gmra.mrb[18].mxu1 %vm2997_vm0, %v13678_v23  ;;  %7529 = vmatprep.subr.bf16.mxu0 %v16430_v2 }
 0x332   :  { %4599 = vmatprep.mubr.f32.mxu1 %v16380_v53 }
 0x334   :  { %7531 = vmatpush1.bf16.msra.mxu0 %v16426_v26 }
 0x335   :  { %6606 = vmatmul.mubr.msk.f32.gmra.mrb[20].mxu1 %vm2997_vm0, %v13707_v27  ;;  %7533 = vmatprep.subr.bf16.mxu0 %v16431_v20 }
 0x336   :  { %4605 = vmatprep.mubr.f32.mxu1 %v16380_v53 }
 0x338   :  { %7535 = vmatpush1.bf16.msra.mxu0 %v16427_v61 }
 0x339   :  { %6607 = vmatmul.mubr.msk.f32.gmra.mrb[22].mxu1 %vm2997_vm0, %v13735_v4  ;;  %7537 = vmatprep.subr.bf16.mxu0 %v16432_v44 }
 0x33a   :  { %6640 = vmatprep.mubr.msk.f32.mxu1 %vm2997_vm0, %v13649_v6 }
 0x33c   :  { %7539 = vmatpush1.bf16.msra.mxu0 %v16428_v63 }
 0x33d   :  { %6641 = vmatmul.mubr.msk.f32.vlgmr.msra.gmra.mrb[24].mxu1 %vm2997_vm0, %v13678_v23  ;;  %7541 = vmatprep.subr.bf16.mxu0 %v16322_v32 }
 0x33e   :  { %7615 = vmatpush1.bf16.msra.mxu1 %v16415_v0  ;;  %6643 = vmatprep.mubr.msk.f32.mxu1 %vm2997_vm0, %v13707_v27  ;;  %v13841_v0 = vld [vmem:[%s14492_s3] sm:$0xff] }
 0x33f   :  { %7617 = vmatprep.subr.bf16.mxu1 %v16429_v19 }
 0x340   :  { %7543 = vmatpush1.bf16.msra.mxu0 %v16429_v19 }
 0x341   :  { %7545 = vmatprep.subr.bf16.mxu0 %v16332_v42  ;;  %6644 = vmatmul.mubr.msk.f32.gmra.mrb[26].mxu1 %vm2997_vm0, %v13735_v4 }
 0x342   :  { %7619 = vmatpush1.bf16.msra.mxu1 %v16420_v16  ;;  %4943 = vmatprep.mubr.f32.mxu1 %v13750_v50  ;;  %v13876_v16 = vld [vmem:[%s14492_s3 + $0x50] sm:$0xff] }
 0x343   :  { %7621 = vmatprep.subr.bf16.mxu1 %v16430_v2 }
 0x344   :  { %7547 = vmatpush1.bf16.msra.mxu0 %v16430_v2 }
 0x345   :  { %7549 = vmatprep.subr.bf16.mxu0 %v16343_v28 }
 0x346   :  { %7623 = vmatpush1.bf16.msra.mxu1 %v16426_v26 }
 0x347   :  { %7625 = vmatprep.subr.bf16.mxu1 %v16431_v20  ;;  %v3788_v3 = vpop.f32.mrb[8].mxu0 }
 0x348   :  { %7551 = vmatpush1.bf16.msra.mxu0 %v16431_v20  ;;  %v3790_v12 = vpop.f32.mrb[9].mxu0  ;;  %v8240_v36 = vadd.f32 %v3788_v3, %v16433_v7 }
 0x349   :  { %7553 = vmatprep.subr.bf16.mxu0 %v16354_v18  ;;  %v8241_v50 = vadd.f32 %v3790_v12, %v16433_v7 }
 0x34a   :  { %7627 = vmatpush1.bf16.msra.mxu1 %v16427_v61  ;;  %v5150_v48 = vmax.f32 %v8240_v36, 0.0 }
 0x34b   :  { %7629 = vmatprep.subr.bf16.mxu1 %v16432_v44  ;;  %4677 = vmatmul.mubr.f32.vlgmr.msra.gmra.mrb[24].mxu0 %v13841_v0  ;;  %v3794_v45 = vpop.f32.mrb[10].mxu0  ;;  %v5151_v35 = vmax.f32 %v8241_v50, 0.0 }
 0x34c   :  { %7555 = vmatpush1.bf16.msra.mxu0 %v16432_v44  ;;  %4682 = vmatprep.mubr.f32.mxu0 %v13848_v62  ;;  %v8242_v1 = vadd.f32 %v3794_v45, %v16434_v17  ;;  %v3796_v9 = vpop.f32.mrb[11].mxu0 }
 0x34d   :  { %7557 = vmatprep.subr.bf16.mxu0 %v13362_v34  ;;  %v8243_v31 = vadd.f32 %v3796_v9, %v16434_v17 }
 0x34e   :  { %7631 = vmatpush1.bf16.msra.mxu1 %v16428_v63  ;;  %v5166_v49 = vmax.f32 %v8242_v1, 0.0 }
 0x34f   :  { %7633 = vmatprep.subr.bf16.mxu1 %v16322_v32  ;;  %4683 = vmatmul.mubr.f32.gmra.mrb[26].mxu0 %v13857_v52  ;;  %v5167_v57 = vmax.f32 %v8243_v31, 0.0 }
 0x350   :  { %7559 = vmatpush1.bf16.msra.mxu0 %v16322_v32  ;;  %4688 = vmatprep.mubr.f32.mxu0 %v13864_v30  ;;  %v3800_v21 = vpop.f32.mrb[12].mxu0  ;;  %v13889_v5 = vpack.c.bf16 %v5166_v49, %v5150_v48 }
 0x351   :  { %7561 = vmatprep.subr.bf16.mxu0 %v13411_v46  ;;  %v3802_v38 = vpop.f32.mrb[13].mxu0  ;;  %v13898_v26 = vpack.c.bf16 %v5167_v57, %v5151_v35  ;;  %v8244_v55 = vadd.f32 %v3800_v21, %v16435_v43 }
 0x352   :  { %7635 = vmatpush1.bf16.msra.mxu1 %v16429_v19  ;;  %v8245_v59 = vadd.f32 %v3802_v38, %v16435_v43 }
 0x353   :  { %7637 = vmatprep.subr.bf16.mxu1 %v16332_v42  ;;  %4689 = vmatmul.mubr.f32.gmra.mrb[28].mxu0 %v13876_v16 }
 0x354   :  { %7563 = vmatpush1.bf16.msra.mxu0 %v16332_v42  ;;  %4694 = vmatprep.mubr.f32.mxu0 %v13884_v39  ;;  %v5183_v12 = vmax.f32 %v8245_v59, 0.0  ;;  %v16437_v59 = vmov 0.0|0.0  }
 0x355   :  { %7565 = vmatprep.subr.bf16.mxu0 %v13426_v54  ;;  %v3806_v37 = vpop.f32.mrb[14].mxu0 }
 0x356   :  { %7639 = vmatpush1.bf16.msra.mxu1 %v16430_v2  ;;  %v8246_v61 = vadd.f32 %v3806_v37, %v16436_v24  ;;  %v3808_v63 = vpop.f32.mrb[15].mxu0  ;;  %v5182_v2 = vmax.f32 %v8244_v55, 0.0 }
 0x357   :  { %7641 = vmatprep.subr.bf16.mxu1 %v16343_v28  ;;  %4695 = vmatmul.mubr.f32.gmra.mrb[30].mxu0 %v13895_v56  ;;  %v8247_v19 = vadd.f32 %v3808_v63, %v16436_v24 }
 0x358   :  { %7567 = vmatpush1.bf16.msra.mxu0 %v16343_v28  ;;  %4765 = vmatprep.mubr.f32.mxu0 %v13904_v33  ;;  %v5198_v3 = vmax.f32 %v8246_v61, 0.0 }
 0x359   :  { %7569 = vmatprep.subr.bf16.mxu0 %v13434_v15  ;;  %v5199_v36 = vmax.f32 %v8247_v19, 0.0 }
 0x35a   :  { %7643 = vmatpush1.bf16.msra.mxu1 %v16431_v20  ;;  %v13917_v50 = vpack.c.bf16 %v5198_v3, %v5182_v2 }
 0x35b   :  { %7645 = vmatprep.subr.bf16.mxu1 %v16354_v18  ;;  %v13920_v20 = vpack.c.bf16 %v5199_v36, %v5183_v12 }
 0x35c   :  { %7571 = vmatpush1.bf16.msra.mxu0 %v16354_v18 }
 0x35d   :  { %7573 = vmatprep.subr.bf16.mxu0 %v13573_v25 }
 0x35e   :  { %7647 = vmatpush1.bf16.msra.mxu1 %v16432_v44 }
 0x35f   :  { %7649 = vmatprep.subr.bf16.mxu1 %v13362_v34 }
 0x360   :  { %7575 = vmatpush1.bf16.msra.mxu0 %v13362_v34 }
 0x361   :  { %7577 = vmatprep.subr.bf16.mxu0 %v13608_v47 }
 0x362   :  { %7651 = vmatpush1.bf16.msra.mxu1 %v16322_v32 }
 0x363   :  { %7653 = vmatprep.subr.bf16.mxu1 %v13411_v46 }
 0x364   :  { %7579 = vmatpush1.bf16.msra.mxu0 %v13411_v46 }
 0x365   :  { %7581 = vmatprep.subr.bf16.mxu0 %v13639_v51 }
 0x366   :  { %7655 = vmatpush1.bf16.msra.mxu1 %v16332_v42 }
 0x367   :  { %7657 = vmatprep.subr.bf16.mxu1 %v13426_v54 }
 0x368   :  { %7583 = vmatpush1.bf16.msra.mxu0 %v13426_v54 }
 0x369   :  { %7585 = vmatprep.subr.bf16.mxu0 %v13725_v11  ;;  %v4055_v32 = vpop.f32.mrb[8].mxu1 }
 0x36a   :  { %7659 = vmatpush1.bf16.msra.mxu1 %v16343_v28  ;;  %v4057_v42 = vpop.f32.mrb[9].mxu1  ;;  %v8248_v44 = vadd.f32 %v4055_v32, %v16433_v7 }
 0x36b   :  { %7661 = vmatprep.subr.bf16.mxu1 %v13434_v15  ;;  %v8249_v28 = vadd.f32 %v4057_v42, %v16433_v7 }
 0x36c   :  { %7587 = vmatpush1.bf16.msra.mxu0 %v13434_v15  ;;  %v5152_v31 = vmax.f32 %v8248_v44, 0.0 }
 0x36d   :  { %7589 = vmatprep.subr.bf16.mxu0 %v13754_v14  ;;  %v4061_v45 = vpop.f32.mrb[10].mxu1  ;;  %v5153_v49 = vmax.f32 %v8249_v28, 0.0 }
 0x36e   :  { %7663 = vmatpush1.bf16.msra.mxu1 %v16354_v18  ;;  %v8250_v1 = vadd.f32 %v4061_v45, %v16434_v17  ;;  %v4063_v18 = vpop.f32.mrb[11].mxu1 }
 0x36f   :  { %7665 = vmatprep.subr.bf16.mxu1 %v13573_v25  ;;  %v8251_v9 = vadd.f32 %v4063_v18, %v16434_v17 }
 0x370   :  { %7591 = vmatpush1.bf16.msra.mxu0 %v13573_v25  ;;  %v5168_v48 = vmax.f32 %v8250_v1, 0.0 }
 0x371   :  { %7593 = vmatprep.subr.bf16.mxu0 %v13765_v29  ;;  %v5169_v35 = vmax.f32 %v8251_v9, 0.0  ;;  %v4067_v57 = vpop.f32.mrb[12].mxu1 }
 0x372   :  { %7667 = vmatpush1.bf16.msra.mxu1 %v13362_v34  ;;  %v13949_v34 = vpack.c.bf16 %v5168_v48, %v5152_v31  ;;  %v4069_v21 = vpop.f32.mrb[13].mxu1  ;;  %v8252_v55 = vadd.f32 %v4067_v57, %v16435_v43 }
 0x373   :  { %7669 = vmatprep.subr.bf16.mxu1 %v13608_v47  ;;  %v13952_v38 = vpack.c.bf16 %v5169_v35, %v5153_v49  ;;  %v8253_v37 = vadd.f32 %v4069_v21, %v16435_v43 }
 0x374   :  { %7595 = vmatpush1.bf16.msra.mxu0 %v13608_v47  ;;  %v5184_v2 = vmax.f32 %v8252_v55, 0.0 }
 0x375   :  { %7597 = vmatprep.subr.bf16.mxu0 %v13783_v40  ;;  %v5185_v12 = vmax.f32 %v8253_v37, 0.0 }
 0x376   :  { %7671 = vmatpush1.bf16.msra.mxu1 %v13411_v46  ;;  %v4073_v61 = vpop.f32.mrb[14].mxu1 }
 0x377   :  { %7673 = vmatprep.subr.bf16.mxu1 %v13639_v51  ;;  %v8254_v46 = vadd.f32 %v4073_v61, %v16436_v24  ;;  %v4075_v63 = vpop.f32.mrb[15].mxu1 }
 0x378   :  { %7599 = vmatpush1.bf16.msra.mxu0 %v13639_v51  ;;  %v8255_v19 = vadd.f32 %v4075_v63, %v16436_v24 }
 0x379   :  { %7600 = vmatprep.subr.bf16.mxu0 %v16437_v59  ;;  %v5200_v3 = vmax.f32 %v8254_v46, 0.0 }
 0x37a   :  { %7675 = vmatpush1.bf16.msra.mxu1 %v13426_v54  ;;  %v5201_v36 = vmax.f32 %v8255_v19, 0.0 }
 0x37b   :  { %7677 = vmatprep.subr.bf16.mxu1 %v13725_v11  ;;  %v13967_v54 = vpack.c.bf16 %v5200_v3, %v5184_v2 }
 0x37c   :  { %7602 = vmatpush1.bf16.msra.mxu0 %v13725_v11  ;;  %v13970_v32 = vpack.c.bf16 %v5201_v36, %v5185_v12 }
 0x37d   :  { %4944 = vmatmul.mubr.f32.vlgmr.msra.gmra.mrb[28].mxu1 %v13841_v0  ;;  %7603 = vmatprep.subr.bf16.mxu0 %v16437_v59 }
 0x37e   :  { %7679 = vmatpush1.bf16.msra.mxu1 %v13434_v15  ;;  %4949 = vmatprep.mubr.f32.mxu1 %v13848_v62  ;;  %v14003_v15 = vld [vmem:[%s14493_s5] sm:$0x7] }
 0x37f   :  { %7681 = vmatprep.subr.bf16.mxu1 %v13754_v14 }
 0x380   :  { %7605 = vmatpush1.bf16.msra.mxu0 %v13754_v14 }
 0x381   :  { %7606 = vmatprep.subr.bf16.mxu0 %v16437_v59  ;;  %4950 = vmatmul.mubr.f32.gmra.mrb[30].mxu1 %v13857_v52 }
 0x382   :  { %7683 = vmatpush1.bf16.msra.mxu1 %v13573_v25  ;;  %4955 = vmatprep.mubr.f32.mxu1 %v13864_v30  ;;  %v16438_v25 = vld [vmem:[#allocation13_spill] sm:$0xff] }
 0x383   :  { %7685 = vmatprep.subr.bf16.mxu1 %v13765_v29 }
 0x384   :  { %7608 = vmatpush1.bf16.msra.mxu0 %v13765_v29 }
 0x385   :  { %7609 = vmatprep.subr.bf16.mxu0 %v16437_v59  ;;  %4956 = vmatmul.mubr.f32.gmra.mrb[32].mxu1 %v13876_v16 }
 0x386   :  { %7687 = vmatpush1.bf16.msra.mxu1 %v13608_v47  ;;  %4961 = vmatprep.mubr.f32.mxu1 %v13884_v39  ;;  %v14012_v47 = vrot.slane %v14003_v15, %v16438_v25 }
 0x387   :  { %7689 = vmatprep.subr.bf16.mxu1 %v13783_v40 }
 0x388   :  { %7611 = vmatpush1.bf16.msra.mxu0 %v13783_v40 }
 0x389   :  { %7704 = vmatprep.subr.bf16.mxu0 %v16437_v59  ;;  %4962 = vmatmul.mubr.f32.gmra.mrb[34].mxu1 %v13895_v56 }
 0x38a   :  { %7691 = vmatpush1.bf16.msra.mxu1 %v13639_v51  ;;  %5032 = vmatprep.mubr.f32.mxu1 %v13904_v33  ;;  %v16439_v51 = vld [vmem:[#allocation142_spill] sm:$0xff] }
 0x38b   :  { %7692 = vmatprep.subr.bf16.mxu1 %v16437_v59  ;;  %4766 = vmatmul.mubr.f32.vlgmr.msra.gmra.mrb[24].mxu0 %v16418_v22 }
 0x38c   :  { %7705 = vmatpush1.bf16.msra.mxu0 %v16437_v59  ;;  %4771 = vmatprep.mubr.f32.mxu0 %v16423_v13 }
 0x38d   :  { %7706 = vmatprep.subr.bf16.mxu0 %v16437_v59 }
 0x38e   :  { %7694 = vmatpush1.bf16.msra.mxu1 %v13725_v11  ;;  %v16440_v11 = vld [vmem:[#allocation193_spill] sm:$0xff] }
 0x38f   :  { %7695 = vmatprep.subr.bf16.mxu1 %v16437_v59  ;;  %4772 = vmatmul.mubr.f32.gmra.mrb[26].mxu0 %v13565_v10 }
 0x390   :  { %7707 = vmatpush1.bf16.msra.mxu0 %v16437_v59  ;;  %4777 = vmatprep.mubr.f32.mxu0 %v13585_v58 }
 0x391   :  { %7708 = vmatprep.subr.bf16.mxu0 %v16437_v59 }
 0x392   :  { %7697 = vmatpush1.bf16.msra.mxu1 %v13754_v14 }
 0x393   :  { %7698 = vmatprep.subr.bf16.mxu1 %v16437_v59  ;;  %4778 = vmatmul.mubr.f32.gmra.mrb[28].mxu0 %v13595_v8 }
 0x394   :  { %7709 = vmatpush1.bf16.msra.mxu0 %v16437_v59  ;;  %4783 = vmatprep.mubr.f32.mxu0 %v13616_v41 }
 0x395   :  { %7710 = vmatprep.subr.bf16.mxu0 %v16437_v59 }
 0x396   :  { %7700 = vmatpush1.bf16.msra.mxu1 %v13765_v29 }
 0x397   :  { %7701 = vmatprep.subr.bf16.mxu1 %v16437_v59  ;;  %4784 = vmatmul.mubr.f32.gmra.mrb[30].mxu0 %v13625_v60 }
 0x398   :  { %7711 = vmatpush1.bf16.msra.mxu0 %v16437_v59  ;;  %5303 = vmatprep.mubr.f32.mxu0 %v14012_v47 }
 0x399   :  { %7712 = vmatprep.subr.bf16.mxu0 %v16437_v59 }
 0x39a   :  { %7703 = vmatpush1.bf16.msra.mxu1 %v13783_v40 }
 0x39b   :  { %6646 = vmatprep.subr.mxu1 %v16380_v53 }
 0x39c   :  { %7713 = vmatpush1.bf16.msra.mxu0 %v16437_v59 }
 0x39d   :  { %5033 = vmatmul.mubr.f32.vlgmr.msra.gmra.mrb[28].mxu1 %v16418_v22  ;;  %7714 = vmatprep.subr.bf16.mxu0 %v16437_v59  ;;  %v16441_v22 = vld [vmem:[#allocation72_spill] sm:$0xff] }
 0x39e   :  { %6647 = vmatpush3.msra.mxu1 %v16380_v53  ;;  %5038 = vmatprep.mubr.f32.mxu1 %v16423_v13 }
 0x39f   :  { %7762 = vmatprep.subr.bf16.mxu1 %v16437_v59 }
 0x3a0   :  { %7715 = vmatpush1.bf16.msra.mxu0 %v16437_v59 }
 0x3a1   :  { %5039 = vmatmul.mubr.f32.gmra.mrb[30].mxu1 %v13565_v10  ;;  %7717 = vmatprep.subr.bf16.mxu0 %v16439_v51  ;;  %v16442_v10 = vld [vmem:[#allocation87_spill] sm:$0xff] }
 0x3a2   :  { %5044 = vmatprep.mubr.f32.mxu1 %v13585_v58  ;;  %v16443_v58 = vld [vmem:[#allocation180_spill] sm:$0xff] }
 0x3a4   :  { %7718 = vmatpush1.bf16.msra.mxu0 %v16437_v59 }
 0x3a5   :  { %5045 = vmatmul.mubr.f32.gmra.mrb[32].mxu1 %v13595_v8  ;;  %7720 = vmatprep.subr.bf16.mxu0 %v16440_v11  ;;  %v16444_v8 = vld [vmem:[#allocation54_spill] sm:$0xff] }
 0x3a6   :  { %5050 = vmatprep.mubr.f32.mxu1 %v13616_v41  ;;  %v16445_v41 = vld [vmem:[#allocation34_spill] sm:$0xff] }
 0x3a8   :  { %7721 = vmatpush1.bf16.msra.mxu0 %v16437_v59 }
 0x3a9   :  { %5051 = vmatmul.mubr.f32.gmra.mrb[34].mxu1 %v13625_v60  ;;  %7723 = vmatprep.subr.bf16.mxu0 %v16441_v22  ;;  %v16446_v60 = vld [vmem:[#allocation27_spill] sm:$0xff] }
 0x3aa   :  { %6648 = vmatprep.mubr.msk.f32.mxu1 %vm2997_vm0, %v13649_v6  ;;  %v16447_v6 = vld [vmem:[#allocation14_spill] sm:$0xff] }
 0x3ac   :  { %7725 = vmatpush1.bf16.msra.mxu0 %v16439_v51 }
 0x3ad   :  { %6649 = vmatmul.mubr.msk.f32.vlgmr.msra.gmra.mrb[36].mxu1 %vm2997_vm0, %v13678_v23  ;;  %7727 = vmatprep.subr.bf16.mxu0 %v16442_v10  ;;  %v14079_v23 = vrot.slane %v14003_v15, %v16447_v6 }
 0x3ae   :  { %7763 = vmatpush1.bf16.msra.mxu1 %v16437_v59  ;;  %6651 = vmatprep.mubr.msk.f32.mxu1 %vm2997_vm0, %v13707_v27  ;;  %v16448_v27 = vld [vmem:[#allocation15_spill] sm:$0xff] }
 0x3af   :  { %7764 = vmatprep.subr.bf16.mxu1 %v16437_v59 }
 0x3b0   :  { %7729 = vmatpush1.bf16.msra.mxu0 %v16440_v11 }
 0x3b1   :  { %6652 = vmatmul.mubr.msk.f32.gmra.mrb[38].mxu1 %vm2997_vm0, %v13735_v4  ;;  %7731 = vmatprep.subr.bf16.mxu0 %v16443_v58  ;;  %v14093_v4 = vrot.slane %v14003_v15, %v16448_v27 }
 0x3b2   :  { %7765 = vmatpush1.bf16.msra.mxu1 %v16437_v59  ;;  %5445 = vmatprep.mubr.f32.mxu1 %v14012_v47 }
 0x3b3   :  { %7767 = vmatprep.subr.bf16.mxu1 %v16439_v51 }
 0x3b4   :  { %7733 = vmatpush1.bf16.msra.mxu0 %v16441_v22 }
 0x3b5   :  { %7735 = vmatprep.subr.bf16.mxu0 %v16444_v8 }
 0x3b6   :  { %7768 = vmatpush1.bf16.msra.mxu1 %v16437_v59 }
 0x3b7   :  { %7770 = vmatprep.subr.bf16.mxu1 %v16440_v11 }
 0x3b8   :  { %7737 = vmatpush1.bf16.msra.mxu0 %v16442_v10 }
 0x3b9   :  { %7739 = vmatprep.subr.bf16.mxu0 %v16445_v41 }
 0x3ba   :  { %7771 = vmatpush1.bf16.msra.mxu1 %v16437_v59 }
 0x3bb   :  { %7773 = vmatprep.subr.bf16.mxu1 %v16441_v22 }
 0x3bc   :  { %7741 = vmatpush1.bf16.msra.mxu0 %v16443_v58 }
 0x3bd   :  { %7743 = vmatprep.subr.bf16.mxu0 %v16446_v60 }
 0x3be   :  { %7775 = vmatpush1.bf16.msra.mxu1 %v16439_v51 }
 0x3bf   :  { %7777 = vmatprep.subr.bf16.mxu1 %v16442_v10 }
 0x3c0   :  { %7745 = vmatpush1.bf16.msra.mxu0 %v16444_v8 }
 0x3c1   :  { %7747 = vmatprep.subr.bf16.mxu0 %v13889_v5 }
 0x3c2   :  { %7779 = vmatpush1.bf16.msra.mxu1 %v16440_v11 }
 0x3c3   :  { %7781 = vmatprep.subr.bf16.mxu1 %v16443_v58 }
 0x3c4   :  { %7749 = vmatpush1.bf16.msra.mxu0 %v16445_v41 }
 0x3c5   :  { %7751 = vmatprep.subr.bf16.mxu0 %v13917_v50 }
 0x3c6   :  { %7783 = vmatpush1.bf16.msra.mxu1 %v16441_v22 }
 0x3c7   :  { %7785 = vmatprep.subr.bf16.mxu1 %v16444_v8 }
 0x3c8   :  { %7753 = vmatpush1.bf16.msra.mxu0 %v16446_v60 }
 0x3c9   :  { %7755 = vmatprep.subr.bf16.mxu0 %v13898_v26 }
 0x3ca   :  { %7787 = vmatpush1.bf16.msra.mxu1 %v16442_v10 }
 0x3cb   :  { %7789 = vmatprep.subr.bf16.mxu1 %v16445_v41  ;;  %5304 = vmatmul.mubr.f32.vlgmr.msra.gmra.mrb[32].mxu0 %v14079_v23 }
 0x3cc   :  { %7757 = vmatpush1.bf16.msra.mxu0 %v13889_v5  ;;  %5374 = vmatprep.mubr.f32.mxu0 %v16380_v53 }
 0x3cd   :  { %7759 = vmatprep.subr.bf16.mxu0 %v13920_v20 }
 0x3ce   :  { %7791 = vmatpush1.bf16.msra.mxu1 %v16443_v58 }
 0x3cf   :  { %7793 = vmatprep.subr.bf16.mxu1 %v16446_v60 }
 0x3d0   :  { %7761 = vmatpush1.bf16.msra.mxu0 %v13917_v50 }
 0x3d1   :  { %7829 = vmatprep.subr.bf16.mxu0 %v16441_v22 }
 0x3d2   :  { %7795 = vmatpush1.bf16.msra.mxu1 %v16444_v8 }
 0x3d3   :  { %7797 = vmatprep.subr.bf16.mxu1 %v13889_v5  ;;  %6616 = vmatmul.mubr.msk.f32.vlgmr.msra.gmra.mrb[32].mxu0 %vm5236_vm1, %v14093_v4 }
 0x3d4   :  { %7831 = vmatpush1.bf16.msra.mxu0 %v16439_v51  ;;  %5587 = vmatprep.mubr.f32.mxu0 %v14012_v47 }
 0x3d5   :  { %7833 = vmatprep.subr.bf16.mxu0 %v16442_v10 }
 0x3d6   :  { %7799 = vmatpush1.bf16.msra.mxu1 %v16445_v41 }
 0x3d7   :  { %7801 = vmatprep.subr.bf16.mxu1 %v13917_v50 }
 0x3d8   :  { %7835 = vmatpush1.bf16.msra.mxu0 %v16440_v11 }
 0x3d9   :  { %7837 = vmatprep.subr.bf16.mxu0 %v16443_v58 }
 0x3da   :  { %7803 = vmatpush1.bf16.msra.mxu1 %v16446_v60 }
 0x3db   :  { %7805 = vmatprep.subr.bf16.mxu1 %v13898_v26 }
 0x3dc   :  { %7839 = vmatpush1.bf16.msra.mxu0 %v16441_v22 }
 0x3dd   :  { %7841 = vmatprep.subr.bf16.mxu0 %v16444_v8 }
 0x3de   :  { %7807 = vmatpush1.bf16.msra.mxu1 %v13889_v5  ;;  %v4322_v14 = vpop.f32.mrb[16].mxu0 }
 0x3df   :  { %7809 = vmatprep.subr.bf16.mxu1 %v13920_v20  ;;  %v4324_v13 = vpop.f32.mrb[17].mxu0  ;;  %v8256_v29 = vadd.f32 %v4322_v14, %v16433_v7 }
 0x3e0   :  { %7843 = vmatpush1.bf16.msra.mxu0 %v16442_v10  ;;  %v8257_v40 = vadd.f32 %v4324_v13, %v16433_v7 }
 0x3e1   :  { %7845 = vmatprep.subr.bf16.mxu0 %v16445_v41  ;;  %v5154_v16 = vmax.f32 %v8256_v29, 0.0 }
 0x3e2   :  { %7811 = vmatpush1.bf16.msra.mxu1 %v13917_v50  ;;  %v4328_v0 = vpop.f32.mrb[18].mxu0  ;;  %v5155_v56 = vmax.f32 %v8257_v40, 0.0 }
 0x3e3   :  { %7813 = vmatprep.subr.bf16.mxu1 %v13949_v34  ;;  %v8258_v62 = vadd.f32 %v4328_v0, %v16434_v17  ;;  %v4330_v52 = vpop.f32.mrb[19].mxu0 }
 0x3e4   :  { %v8259_v30 = vadd.f32 %v4330_v52, %v16434_v17  ;;  %7847 = vmatpush1.bf16.msra.mxu0 %v16443_v58 }
 0x3e5   :  { %v5170_v39 = vmax.f32 %v8258_v62, 0.0  ;;  %7849 = vmatprep.subr.bf16.mxu0 %v16446_v60 }
 0x3e6   :  { %7815 = vmatpush1.bf16.msra.mxu1 %v13898_v26  ;;  %v5171_v33 = vmax.f32 %v8259_v30, 0.0  ;;  %v4334_v42 = vpop.f32.mrb[20].mxu0 }
 0x3e7   :  { %v14125_v44 = vpack.c.bf16 %v5170_v39, %v5154_v16  ;;  %7817 = vmatprep.subr.bf16.mxu1 %v13967_v54  ;;  %v4336_v28 = vpop.f32.mrb[21].mxu0  ;;  %v8260_v1 = vadd.f32 %v4334_v42, %v16435_v43 }
 0x3e8   :  { %v14128_v45 = vpack.c.bf16 %v5171_v33, %v5155_v56  ;;  %7851 = vmatpush1.bf16.msra.mxu0 %v16444_v8  ;;  %v8261_v18 = vadd.f32 %v4336_v28, %v16435_v43 }
 0x3e9   :  { %7853 = vmatprep.subr.bf16.mxu0 %v13889_v5  ;;  %v5186_v35 = vmax.f32 %v8260_v1, 0.0 }
 0x3ea   :  { %7819 = vmatpush1.bf16.msra.mxu1 %v13920_v20  ;;  %v4340_v9 = vpop.f32.mrb[22].mxu0  ;;  %v5187_v21 = vmax.f32 %v8261_v18, 0.0 }
 0x3eb   :  { %7821 = vmatprep.subr.bf16.mxu1 %v13952_v38  ;;  %v8262_v31 = vadd.f32 %v4340_v9, %v16436_v24  ;;  %v4342_v48 = vpop.f32.mrb[23].mxu0 }
 0x3ec   :  { %v8263_v49 = vadd.f32 %v4342_v48, %v16436_v24  ;;  %7855 = vmatpush1.bf16.msra.mxu0 %v16445_v41 }
 0x3ed   :  { %5446 = vmatmul.mubr.f32.vlgmr.msra.gmra.mrb[40].mxu1 %v14079_v23  ;;  %v5202_v57 = vmax.f32 %v8262_v31, 0.0  ;;  %7857 = vmatprep.subr.bf16.mxu0 %v13917_v50 }
 0x3ee   :  { %7823 = vmatpush1.bf16.msra.mxu1 %v13949_v34  ;;  %v5203_v55 = vmax.f32 %v8263_v49, 0.0  ;;  %5516 = vmatprep.mubr.f32.mxu1 %v16380_v53 }
 0x3ef   :  { %v14143_v37 = vpack.c.bf16 %v5202_v57, %v5186_v35  ;;  %7825 = vmatprep.subr.bf16.mxu1 %v13970_v32 }
 0x3f0   :  { %v14146_v61 = vpack.c.bf16 %v5203_v55, %v5187_v21  ;;  %7859 = vmatpush1.bf16.msra.mxu0 %v16446_v60 }
 0x3f1   :  { %7861 = vmatprep.subr.bf16.mxu0 %v13898_v26 }
 0x3f2   :  { %7827 = vmatpush1.bf16.msra.mxu1 %v13967_v54 }
 0x3f3   :  { %7901 = vmatprep.subr.bf16.mxu1 %v16445_v41 }
 0x3f4   :  { %7863 = vmatpush1.bf16.msra.mxu0 %v13889_v5 }
 0x3f5   :  { %6617 = vmatmul.mubr.msk.f32.vlgmr.msra.gmra.mrb[40].mxu1 %vm5236_vm1, %v14093_v4  ;;  %7865 = vmatprep.subr.bf16.mxu0 %v13920_v20 }
 0x3f6   :  { %7903 = vmatpush1.bf16.msra.mxu1 %v16443_v58  ;;  %5729 = vmatprep.mubr.f32.mxu1 %v14012_v47 }
 0x3f7   :  { %7905 = vmatprep.subr.bf16.mxu1 %v16446_v60 }
 0x3f8   :  { %7867 = vmatpush1.bf16.msra.mxu0 %v13917_v50 }
 0x3f9   :  { %7869 = vmatprep.subr.bf16.mxu0 %v13949_v34 }
 0x3fa   :  { %7907 = vmatpush1.bf16.msra.mxu1 %v16444_v8 }
 0x3fb   :  { %7909 = vmatprep.subr.bf16.mxu1 %v13889_v5 }
 0x3fc   :  { %7871 = vmatpush1.bf16.msra.mxu0 %v13898_v26 }
 0x3fd   :  { %7873 = vmatprep.subr.bf16.mxu0 %v13967_v54 }
 0x3fe   :  { %7911 = vmatpush1.bf16.msra.mxu1 %v16445_v41 }
 0x3ff   :  { %7913 = vmatprep.subr.bf16.mxu1 %v13917_v50 }
 0x400   :  { %v4589_v46 = vpop.f32.mrb[16].mxu1  ;;  %7875 = vmatpush1.bf16.msra.mxu0 %v13920_v20 }
 0x401   :  { %v4591_v63 = vpop.f32.mrb[17].mxu1  ;;  %7877 = vmatprep.subr.bf16.mxu0 %v13952_v38  ;;  %v8264_v19 = vadd.f32 %v4589_v46, %v16433_v7 }
 0x402   :  { %7915 = vmatpush1.bf16.msra.mxu1 %v16446_v60  ;;  %v8265_v2 = vadd.f32 %v4591_v63, %v16433_v7 }
 0x403   :  { %7917 = vmatprep.subr.bf16.mxu1 %v13898_v26  ;;  %v5156_v25 = vmax.f32 %v8264_v19, 0.0 }
 0x404   :  { %v4595_v3 = vpop.f32.mrb[18].mxu1  ;;  %7879 = vmatpush1.bf16.msra.mxu0 %v13949_v34  ;;  %v5157_v11 = vmax.f32 %v8265_v2, 0.0 }
 0x405   :  { %v8266_v12 = vadd.f32 %v4595_v3, %v16434_v17  ;;  %v4597_v36 = vpop.f32.mrb[19].mxu1  ;;  %7881 = vmatprep.subr.bf16.mxu0 %v13970_v32 }
 0x406   :  { %7919 = vmatpush1.bf16.msra.mxu1 %v13889_v5  ;;  %v8267_v15 = vadd.f32 %v4597_v36, %v16434_v17 }
 0x407   :  { %v5172_v51 = vmax.f32 %v8266_v12, 0.0  ;;  %7921 = vmatprep.subr.bf16.mxu1 %v13920_v20 }
 0x408   :  { %v5173_v22 = vmax.f32 %v8267_v15, 0.0  ;;  %v4601_v10 = vpop.f32.mrb[20].mxu1  ;;  %7883 = vmatpush1.bf16.msra.mxu0 %v13967_v54 }
 0x409   :  { %v14180_v58 = vpack.c.bf16 %v5172_v51, %v5156_v25  ;;  %v4603_v8 = vpop.f32.mrb[21].mxu1  ;;  %7885 = vmatprep.subr.bf16.mxu0 %v14125_v44  ;;  %v8268_v60 = vadd.f32 %v4601_v10, %v16435_v43 }
 0x40a   :  { %v14183_v41 = vpack.c.bf16 %v5173_v22, %v5157_v11  ;;  %7923 = vmatpush1.bf16.msra.mxu1 %v13917_v50  ;;  %v8269_v27 = vadd.f32 %v4603_v8, %v16435_v43 }
 0x40b   :  { %7925 = vmatprep.subr.bf16.mxu1 %v13949_v34  ;;  %v5188_v0 = vmax.f32 %v8268_v60, 0.0 }
 0x40c   :  { %v4607_v14 = vpop.f32.mrb[22].mxu1  ;;  %7887 = vmatpush1.bf16.msra.mxu0 %v13952_v38  ;;  %v5189_v52 = vmax.f32 %v8269_v27, 0.0 }
 0x40d   :  { %v8270_v13 = vadd.f32 %v4607_v14, %v16436_v24  ;;  %v4609_v29 = vpop.f32.mrb[23].mxu1  ;;  %7889 = vmatprep.subr.bf16.mxu0 %v14143_v37 }
 0x40e   :  { %7927 = vmatpush1.bf16.msra.mxu1 %v13898_v26  ;;  %v8271_v40 = vadd.f32 %v4609_v29, %v16436_v24 }
 0x40f   :  { %v5204_v62 = vmax.f32 %v8270_v13, 0.0  ;;  %7929 = vmatprep.subr.bf16.mxu1 %v13967_v54 }
 0x410   :  { %v5205_v30 = vmax.f32 %v8271_v40, 0.0  ;;  %v14195_v16 = vpop.f32.mrb[24].mxu1  ;;  %7891 = vmatpush1.bf16.msra.mxu0 %v13970_v32  ;;  %v8580_v40 = vmov 11  }
 0x411   :  { %v14198_v39 = vpack.c.bf16 %v5204_v62, %v5188_v0  ;;  %v14200_v56 = vpop.f32.mrb[25].mxu1  ;;  %7893 = vmatprep.subr.bf16.mxu0 %v14128_v45  ;;  %8501 = vset.pattern.permute.xlu0 %v8580_v40 }
 0x412   :  { %v14203_v33 = vpack.c.bf16 %v5205_v30, %v5189_v52  ;;  %7931 = vmatpush1.bf16.msra.mxu1 %v13920_v20 }
 0x413   :  { %7933 = vmatprep.subr.bf16.mxu1 %v13952_v38  ;;  %5588 = vmatmul.mubr.f32.vlgmr.msra.gmra.mrb[34].mxu0 %v14079_v23 }
 0x414   :  { %7895 = vmatpush1.bf16.msra.mxu0 %v14125_v44  ;;  %5658 = vmatprep.mubr.f32.mxu0 %v16380_v53  ;;  %v14210_v42 = vpop.f32.mrb[26].mxu1 }
 0x415   :  { %7897 = vmatprep.subr.bf16.mxu0 %v14146_v61  ;;  %v14213_v28 = vpop.f32.mrb[27].mxu1 }
 0x416   :  { %7935 = vmatpush1.bf16.msra.mxu1 %v13949_v34 }
 0x417   :  { %7937 = vmatprep.subr.bf16.mxu1 %v13970_v32 }
 0x418   :  { %7899 = vmatpush1.bf16.msra.mxu0 %v14143_v37 }
 0x419   :  { %7973 = vmatprep.subr.bf16.mxu0 %v13898_v26 }
 0x41a   :  { %7939 = vmatpush1.bf16.msra.mxu1 %v13967_v54 }
 0x41b   :  { %7941 = vmatprep.subr.bf16.mxu1 %v14125_v44  ;;  %6618 = vmatmul.mubr.msk.f32.vlgmr.msra.gmra.mrb[34].mxu0 %vm5236_vm1, %v14093_v4 }
 0x41c   :  { %7975 = vmatpush1.bf16.msra.mxu0 %v13889_v5  ;;  %5871 = vmatprep.mubr.f32.mxu0 %v14012_v47  ;;  %v8578_v5 = vmov 9  }
 0x41d   :  { %7977 = vmatprep.subr.bf16.mxu0 %v13920_v20  ;;  %8499 = vset.pattern.permute.xlu1 %v8578_v5 }
 0x41e   :  { %7943 = vmatpush1.bf16.msra.mxu1 %v13952_v38 }
 0x41f   :  { %7945 = vmatprep.subr.bf16.mxu1 %v14143_v37 }
 0x420   :  { %7979 = vmatpush1.bf16.msra.mxu0 %v13917_v50  ;;  %v8579_v50 = vmov 10  }
 0x421   :  { %7981 = vmatprep.subr.bf16.mxu0 %v13949_v34 }
 0x422   :  { %7947 = vmatpush1.bf16.msra.mxu1 %v13970_v32 }
 0x423   :  { %7949 = vmatprep.subr.bf16.mxu1 %v14128_v45 }
 0x424   :  { %7983 = vmatpush1.bf16.msra.mxu0 %v13898_v26  ;;  %v14287_v26 = vld [vmem:[%s14491_s7] sm:$0xff] }
 0x425   :  { %7985 = vmatprep.subr.bf16.mxu0 %v13967_v54  ;;  %6484 = vperm.xlu1 %8499, %v14287_v26  }
 0x426   :  { %7951 = vmatpush1.bf16.msra.mxu1 %v14125_v44  ;;  %6504 = vperm.xlu0 %8501, %v14287_v26  }
 0x427   :  { %7953 = vmatprep.subr.bf16.mxu1 %v14146_v61 }
 0x428   :  { %7987 = vmatpush1.bf16.msra.mxu0 %v13920_v20 }
 0x429   :  { %7989 = vmatprep.subr.bf16.mxu0 %v13952_v38  ;;  %8500 = vset.pattern.permute.xlu1 %v8579_v50 }
 0x42a   :  { %7955 = vmatpush1.bf16.msra.mxu1 %v14143_v37  ;;  %6494 = vperm.xlu1 %8500, %v14287_v26  }
 0x42b   :  { %7957 = vmatprep.subr.bf16.mxu1 %v14180_v58 }
 0x42c   :  { %7991 = vmatpush1.bf16.msra.mxu0 %v13949_v34 }
 0x42d   :  { %7993 = vmatprep.subr.bf16.mxu0 %v13970_v32 }
 0x42e   :  { %7959 = vmatpush1.bf16.msra.mxu1 %v14128_v45 }
 0x42f   :  { %7961 = vmatprep.subr.bf16.mxu1 %v14198_v39 }
 0x430   :  { %7995 = vmatpush1.bf16.msra.mxu0 %v13967_v54 }
 0x431   :  { %7997 = vmatprep.subr.bf16.mxu0 %v14125_v44 }
 0x432   :  { %7963 = vmatpush1.bf16.msra.mxu1 %v14146_v61 }
 0x433   :  { %7965 = vmatprep.subr.bf16.mxu1 %v14183_v41 }
 0x434   :  { %7999 = vmatpush1.bf16.msra.mxu0 %v13952_v38 }
 0x435   :  { %5730 = vmatmul.mubr.f32.vlgmr.msra.gmra.mrb[42].mxu1 %v14079_v23  ;;  %8001 = vmatprep.subr.bf16.mxu0 %v14143_v37 }
 0x436   :  { %7967 = vmatpush1.bf16.msra.mxu1 %v14180_v58  ;;  %5800 = vmatprep.mubr.f32.mxu1 %v16380_v53 }
 0x437   :  { %7969 = vmatprep.subr.bf16.mxu1 %v14203_v33 }
 0x438   :  { %8003 = vmatpush1.bf16.msra.mxu0 %v13970_v32 }
 0x439   :  { %8005 = vmatprep.subr.bf16.mxu0 %v14128_v45 }
 0x43a   :  { %7971 = vmatpush1.bf16.msra.mxu1 %v14198_v39 }
 0x43b   :  { %8045 = vmatprep.subr.bf16.mxu1 %v13952_v38 }
 0x43c   :  { %8007 = vmatpush1.bf16.msra.mxu0 %v14125_v44 }
 0x43d   :  { %6619 = vmatmul.mubr.msk.f32.vlgmr.msra.gmra.mrb[42].mxu1 %vm5236_vm1, %v14093_v4  ;;  %8009 = vmatprep.subr.bf16.mxu0 %v14146_v61 }
 0x43e   :  { %8047 = vmatpush1.bf16.msra.mxu1 %v13949_v34  ;;  %6013 = vmatprep.mubr.f32.mxu1 %v14012_v47 }
 0x43f   :  { %8049 = vmatprep.subr.bf16.mxu1 %v13970_v32 }
 0x440   :  { %8011 = vmatpush1.bf16.msra.mxu0 %v14143_v37 }
 0x441   :  { %8013 = vmatprep.subr.bf16.mxu0 %v14180_v58 }
 0x442   :  { %8051 = vmatpush1.bf16.msra.mxu1 %v13967_v54 }
 0x443   :  { %8053 = vmatprep.subr.bf16.mxu1 %v14125_v44 }
 0x444   :  { %8015 = vmatpush1.bf16.msra.mxu0 %v14128_v45 }
 0x445   :  { %8017 = vmatprep.subr.bf16.mxu0 %v14198_v39 }
 0x446   :  { %8055 = vmatpush1.bf16.msra.mxu1 %v13952_v38 }
 0x447   :  { %8057 = vmatprep.subr.bf16.mxu1 %v14143_v37 }
 0x448   :  { %8019 = vmatpush1.bf16.msra.mxu0 %v14146_v61 }
 0x449   :  { %8021 = vmatprep.subr.bf16.mxu0 %v14183_v41 }
 0x44a   :  { %8059 = vmatpush1.bf16.msra.mxu1 %v13970_v32 }
 0x44b   :  { %8061 = vmatprep.subr.bf16.mxu1 %v14128_v45 }
 0x44c   :  { %8023 = vmatpush1.bf16.msra.mxu0 %v14180_v58 }
 0x44d   :  { %8025 = vmatprep.subr.bf16.mxu0 %v14203_v33 }
 0x44e   :  { %8063 = vmatpush1.bf16.msra.mxu1 %v14125_v44 }
 0x44f   :  { %8065 = vmatprep.subr.bf16.mxu1 %v14146_v61 }
 0x450   :  { %8027 = vmatpush1.bf16.msra.mxu0 %v14198_v39 }
 0x452   :  { %8067 = vmatpush1.bf16.msra.mxu1 %v14143_v37 }
 0x453   :  { %8069 = vmatprep.subr.bf16.mxu1 %v14180_v58 }
 0x456   :  { %8071 = vmatpush1.bf16.msra.mxu1 %v14128_v45 }
 0x457   :  { %8073 = vmatprep.subr.bf16.mxu1 %v14198_v39 }
 0x45a   :  { %8075 = vmatpush1.bf16.msra.mxu1 %v14146_v61 }
 0x45b   :  { %8077 = vmatprep.subr.bf16.mxu1 %v14183_v41 }
 0x45e   :  { %8079 = vmatpush1.bf16.msra.mxu1 %v14180_v58  ;;  %v4767_v20 = vpop.f32.mrb[24].mxu0 }
 0x45f   :  { %8081 = vmatprep.subr.bf16.mxu1 %v14203_v33  ;;  %v8272_v34 = vadd.f32 %v4767_v20, %v16433_v7  ;;  %v4769_v38 = vpop.f32.mrb[25].mxu0 }
 0x460   :  { %v8273_v32 = vadd.f32 %v4769_v38, %v16433_v7 }
 0x461   :  { %v4857_v54 = vadd.f32 %v8272_v34, %v14200_v56 }
 0x462   :  { %8083 = vmatpush1.bf16.msra.mxu1 %v14198_v39  ;;  %v4773_v1 = vpop.f32.mrb[26].mxu0  ;;  %v5159_v49 = vmax.f32 %v8273_v32, 0.0 }
 0x463   :  { %v8274_v18 = vadd.f32 %v4773_v1, %v16434_v17  ;;  %v4775_v9 = vpop.f32.mrb[27].mxu0  ;;  %v5158_v21 = vmax.f32 %v4857_v54, 0.0 }
 0x464   :  { %v8275_v31 = vadd.f32 %v4775_v9, %v16434_v17 }
 0x465   :  { %v4863_v48 = vadd.f32 %v8274_v18, %v14195_v16 }
 0x466   :  { %v5175_v35 = vmax.f32 %v8275_v31, 0.0  ;;  %v4779_v57 = vpop.f32.mrb[28].mxu0 }
 0x467   :  { %v5174_v55 = vmax.f32 %v4863_v48, 0.0  ;;  %v8276_v46 = vadd.f32 %v4779_v57, %v16435_v43  ;;  %v4781_v63 = vpop.f32.mrb[29].mxu0 }
 0x468   :  { %v14305_v19 = vpack.c.bf16 %v5175_v35, %v5159_v49  ;;  %v8277_v12 = vadd.f32 %v4781_v63, %v16435_v43 }
 0x469   :  { %v14307_v2 = vpack.c.bf16 %v5174_v55, %v5158_v21  ;;  %v4869_v3 = vadd.f32 %v8276_v46, %v14213_v28 }
 0x46a   :  { %v4785_v36 = vpop.f32.mrb[30].mxu0  ;;  %v5191_v22 = vmax.f32 %v8277_v12, 0.0 }
 0x46b   :  { %v8278_v15 = vadd.f32 %v4785_v36, %v16436_v24  ;;  %v4787_v25 = vpop.f32.mrb[31].mxu0  ;;  %8029 = vmatprep.subr.bf16.mxu0 %v14307_v2  ;;  %8085 = vmatprep.subr.bf16.mxu1 %v14307_v2  ;;  %v5190_v8 = vmax.f32 %v4869_v3, 0.0 }
 0x46c   :  { %v8279_v51 = vadd.f32 %v4787_v25, %v16436_v24  ;;  %8031 = vmatpush1.bf16.msra.mxu0 %v14183_v41  ;;  %8087 = vmatpush1.bf16.msra.mxu1 %v14183_v41  ;;  %v16449_v25 = vmov 0  }
 0x46d   :  { %v4875_v11 = vadd.f32 %v8278_v15, %v14210_v42 }
 0x46e   :  { %v5207_v10 = vmax.f32 %v8279_v51, 0.0 }
 0x46f   :  { %v5206_v60 = vmax.f32 %v4875_v11, 0.0 }
 0x470   :  { %v14318_v27 = vpack.c.bf16 %v5207_v10, %v5191_v22  ;;  %v5034_v14 = vpop.f32.mrb[28].mxu1  ;;  %v8585_v22 = vmov 15  }
 0x471   :  { %v14320_v13 = vpack.c.bf16 %v5206_v60, %v5190_v8  ;;  %v5036_v29 = vpop.f32.mrb[29].mxu1  ;;  %v8280_v32 = vadd.f32 %v5034_v14, %v16433_v7  ;;  %v6395_v60 = vpop.permute.xlu0 %6394 }
 0x472   :  { %v8281_v0 = vadd.f32 %v5036_v29, %v16433_v7  ;;  %v6553_v29 = vld [vmem:[%s14494_s8] sm:$0xff] }
 0x473   :  { %8033 = vmatprep.subr.bf16.mxu0 %v14320_v13  ;;  %8089 = vmatprep.subr.bf16.mxu1 %v14320_v13 }
 0x474   :  { %v5040_v62 = vpop.f32.mrb[30].mxu1  ;;  %8035 = vmatpush1.bf16.msra.mxu0 %v14203_v33  ;;  %8091 = vmatpush1.bf16.msra.mxu1 %v14203_v33  ;;  %v5161_v16 = vmax.f32 %v8281_v0, 0.0 }
 0x475   :  { %v5042_v52 = vpop.f32.mrb[31].mxu1  ;;  %8037 = vmatprep.subr.bf16.mxu0 %v14305_v19  ;;  %8093 = vmatprep.subr.bf16.mxu1 %v14305_v19  ;;  %v8282_v54 = vadd.f32 %v5040_v62, %v16434_v17 }
 0x476   :  { %v8283_v30 = vadd.f32 %v5042_v52, %v16434_v17  ;;  %v6415_v52 = vpop.permute.xlu0 %6414 }
 0x477   :  { %5872 = vmatmul.mubr.f32.vlgmr.msra.gmra.mrb[36].mxu0 %v14079_v23 }
 0x478   :  { %v5177_v56 = vmax.f32 %v8283_v30, 0.0  ;;  %v5046_v42 = vpop.f32.mrb[32].mxu1  ;;  %8039 = vmatpush1.bf16.msra.mxu0 %v14307_v2  ;;  %8095 = vmatpush1.bf16.msra.mxu1 %v14307_v2 }
 0x479   :  { %v5048_v28 = vpop.f32.mrb[33].mxu1  ;;  %8041 = vmatprep.subr.bf16.mxu0 %v14318_v27  ;;  %8097 = vmatprep.subr.bf16.mxu1 %v14318_v27  ;;  %v8284_v21 = vadd.f32 %v5046_v42, %v16435_v43 }
 0x47a   :  { %v14336_v5 = vpack.c.bf16 %v5177_v56, %v5161_v16  ;;  %5942 = vmatprep.mubr.f32.mxu0 %v16380_v53  ;;  %v8285_v50 = vadd.f32 %v5048_v28, %v16435_v43 }
 0x47c   :  { %v5052_v20 = vpop.f32.mrb[34].mxu1  ;;  %8043 = vmatpush1.bf16.msra.mxu0 %v14320_v13  ;;  %8099 = vmatpush1.bf16.msra.mxu1 %v14320_v13  ;;  %v5193_v1 = vmax.f32 %v8285_v50, 0.0 }
 0x47d   :  { %v5054_v34 = vpop.f32.mrb[35].mxu1  ;;  %8117 = vmatprep.subr.bf16.mxu0 %v14128_v45  ;;  %v8286_v17 = vadd.f32 %v5052_v20, %v16436_v24 }
 0x47e   :  { %v8287_v38 = vadd.f32 %v5054_v34, %v16436_v24  ;;  %v8582_v24 = vmov 12  }
 0x47f   :  { %6620 = vmatmul.mubr.msk.f32.vlgmr.msra.gmra.mrb[36].mxu0 %vm5236_vm1, %v14093_v4  ;;  %8502 = vset.pattern.permute.xlu1 %v8582_v24 }
 0x480   :  { %v5209_v18 = vmax.f32 %v8287_v38, 0.0  ;;  %v6650_v9 = vpop.f32.mrb[36].mxu1  ;;  %8119 = vmatpush1.bf16.msra.mxu0 %v14125_v44  ;;  %6155 = vmatprep.mubr.f32.mxu0 %v14012_v47 }
 0x481   :  { %v5130_v31 = vadd.f32 %v8282_v54, %v6650_v9  ;;  %v5123_v48 = vpop.f32.mrb[37].mxu1  ;;  %8121 = vmatprep.subr.bf16.mxu0 %v14146_v61  ;;  %6514 = vperm.xlu1 %8502, %v14287_v26  }
 0x482   :  { %v14351_v49 = vpack.c.bf16 %v5209_v18, %v5193_v1  ;;  %v5124_v35 = vadd.f32 %v8280_v32, %v5123_v48  ;;  %v6445_v1 = vpop.permute.xlu0 %6444 }
 0x483   :  { %v5176_v57 = vmax.f32 %v5130_v31, 0.0 }
 0x484   :  { %v5160_v7 = vmax.f32 %v5124_v35, 0.0  ;;  %v6653_v55 = vpop.f32.mrb[38].mxu1  ;;  %8123 = vmatpush1.bf16.msra.mxu0 %v14143_v37  ;;  %v5215_v37 = vpop.permute.xlu1 %5214 }
 0x485   :  { %v5142_v46 = vadd.f32 %v8286_v17, %v6653_v55  ;;  %v5135_v44 = vpop.f32.mrb[39].mxu1  ;;  %8125 = vmatprep.subr.bf16.mxu0 %v14180_v58 }
 0x486   :  { %v14357_v63 = vpack.c.bf16 %v5176_v57, %v5160_v7  ;;  %v5136_v3 = vadd.f32 %v8284_v21, %v5135_v44 }
 0x487   :  { %v5208_v12 = vmax.f32 %v5142_v46, 0.0 }
 0x488   :  { %v5192_v36 = vmax.f32 %v5136_v3, 0.0  ;;  %8101 = vmatprep.subr.bf16.mxu1 %v14357_v63  ;;  %8127 = vmatpush1.bf16.msra.mxu0 %v14128_v45  ;;  %v8583_v45 = vmov 14   ;;  %v6405_v8 = vpop.permute.xlu1 %6404 }
 0x489   :  { %8103 = vmatpush1.bf16.msra.mxu1 %v14305_v19  ;;  %8129 = vmatprep.subr.bf16.mxu0 %v14198_v39 }
 0x48a   :  { %v14363_v43 = vpack.c.bf16 %v5208_v12, %v5192_v36  ;;  %8504 = vset.pattern.permute.xlu0 %v8583_v45 }
 0x48b   :  { %6534 = vperm.xlu0 %8504, %v14287_v26  }
 0x48c   :  { %8105 = vmatprep.subr.bf16.mxu1 %v14363_v43  ;;  %8131 = vmatpush1.bf16.msra.mxu0 %v14146_v61  ;;  %v14403_v61 = vrot.slane %v5215_v37, %v16447_v6 }
 0x48d   :  { %8107 = vmatpush1.bf16.msra.mxu1 %v14318_v27  ;;  %8133 = vmatprep.subr.bf16.mxu0 %v14183_v41 }
 0x48e   :  { %8109 = vmatprep.subr.bf16.mxu1 %v14336_v5 }
 0x48f   :  { %8507 = vset.pattern.permute.xlu0 %v16449_v25 }
 0x490   :  { %6014 = vmatmul.mubr.f32.vlgmr.msra.gmra.mrb[44].mxu1 %v14079_v23  ;;  %8135 = vmatpush1.bf16.msra.mxu0 %v14180_v58 }
 0x491   :  { %8111 = vmatpush1.bf16.msra.mxu1 %v14357_v63  ;;  %8137 = vmatprep.subr.bf16.mxu0 %v14203_v33 }
 0x492   :  { %8113 = vmatprep.subr.bf16.mxu1 %v14351_v49  ;;  %6084 = vmatprep.mubr.f32.mxu1 %v16380_v53 }
 0x494   :  { %8139 = vmatpush1.bf16.msra.mxu0 %v14198_v39 }
 0x495   :  { %8115 = vmatpush1.bf16.msra.mxu1 %v14363_v43  ;;  %8141 = vmatprep.subr.bf16.mxu0 %v14307_v2 }
 0x496   :  { %6654 = vmatprep.subr.mxu1 %v16380_v53 }
 0x498   :  { %6621 = vmatmul.mubr.msk.f32.vlgmr.msra.gmra.mrb[44].mxu1 %vm5236_vm1, %v14093_v4  ;;  %8143 = vmatpush1.bf16.msra.mxu0 %v14183_v41 }
 0x499   :  { %6655 = vmatpush3.msra.mxu1 %v16380_v53  ;;  %6656 = vmatprep.mubr.msk.f32.mxu1 %vm8581_vm2, %v16380_v53 }
 0x49a   :  { %8179 = vmatprep.subr.bf16.mxu1 %v14183_v41  ;;  %8145 = vmatprep.subr.bf16.mxu0 %v14320_v13 }
 0x49c   :  { %6657 = vmatmul.mubr.msk.f32.vlgmr.msra.gmra.mrb[46].mxu1 %vm5236_vm1, %v14093_v4  ;;  %8147 = vmatpush1.bf16.msra.mxu0 %v14203_v33 }
 0x49d   :  { %8181 = vmatpush1.bf16.msra.mxu1 %v14180_v58  ;;  %8149 = vmatprep.subr.bf16.mxu0 %v14305_v19 }
 0x49e   :  { %8183 = vmatprep.subr.bf16.mxu1 %v14203_v33  ;;  %6297 = vmatprep.mubr.f32.mxu1 %v14012_v47  ;;  %v8584_v47 = vmov 13  }
 0x49f   :  { %8503 = vset.pattern.permute.xlu1 %v8584_v47 }
 0x4a0   :  { %8151 = vmatpush1.bf16.msra.mxu0 %v14307_v2  ;;  %6524 = vperm.xlu1 %8503, %v14287_v26  }
 0x4a1   :  { %8185 = vmatpush1.bf16.msra.mxu1 %v14198_v39  ;;  %8153 = vmatprep.subr.bf16.mxu0 %v14318_v27 }
 0x4a2   :  { %8187 = vmatprep.subr.bf16.mxu1 %v14307_v2 }
 0x4a4   :  { %8155 = vmatpush1.bf16.msra.mxu0 %v14320_v13  ;;  %8505 = vset.pattern.permute.xlu1 %v8585_v22 }
 0x4a5   :  { %8189 = vmatpush1.bf16.msra.mxu1 %v14183_v41  ;;  %8157 = vmatprep.subr.bf16.mxu0 %v14357_v63 }
 0x4a6   :  { %8191 = vmatprep.subr.bf16.mxu1 %v14320_v13  ;;  %v5376_v58 = vpop.f32.mrb[32].mxu0  ;;  %6544 = vperm.xlu1 %8505, %v14287_v26  }
 0x4a7   :  { %v8288_v39 = vadd.f32 %v5376_v58, %v14403_v61  ;;  %v5378_v15 = vpop.f32.mrb[33].mxu0 }
 0x4a8   :  { %v8289_v51 = vadd.f32 %v5378_v15, %v14403_v61  ;;  %8159 = vmatpush1.bf16.msra.mxu0 %v14305_v19  ;;  %v6475_v15 = vpop.permute.xlu0 %6474 }
 0x4a9   :  { %8193 = vmatpush1.bf16.msra.mxu1 %v14203_v33  ;;  %v6375_v11 = vmax.f32 %v8288_v39, 0.0  ;;  %8161 = vmatprep.subr.bf16.mxu0 %v14363_v43 }
 0x4aa   :  { %8195 = vmatprep.subr.bf16.mxu1 %v14305_v19  ;;  %v6376_v41 = vmax.f32 %v8289_v51, 0.0  ;;  %8506 = vset.pattern.permute.xlu1 %v16449_v25 }
 0x4ab   :  { %v6400_v10 = vrot.slane %v6375_v11, %v16447_v6  ;;  %6556 = vperm.xlu1 %8506, %v6553_v29  }
 0x4ac   :  { %8163 = vmatpush1.bf16.msra.mxu0 %v14318_v27  ;;  %v6410_v14 = vrot.slane %v6376_v41, %v16447_v6 }
 0x4ad   :  { %8197 = vmatpush1.bf16.msra.mxu1 %v14307_v2  ;;  %v6401_v33 = vmul.f32 %v6400_v10, %v6395_v60  ;;  %8165 = vmatprep.subr.bf16.mxu0 %v14336_v5 }
 0x4ae   :  { %8199 = vmatprep.subr.bf16.mxu1 %v14318_v27  ;;  %v6411_v40 = vmul.f32 %v6410_v14, %v6405_v8 }
 0x4b0   :  { %v6412_v26 = vadd.f32 %v6411_v40, %v6401_v33  ;;  %8167 = vmatpush1.bf16.msra.mxu0 %v14357_v63 }
 0x4b1   :  { %8201 = vmatpush1.bf16.msra.mxu1 %v14320_v13  ;;  %8169 = vmatprep.subr.bf16.mxu0 %v14351_v49 }
 0x4b2   :  { %8203 = vmatprep.subr.bf16.mxu1 %v14357_v63 }
 0x4b4   :  { %8171 = vmatpush1.bf16.msra.mxu0 %v14363_v43 }
 0x4b5   :  { %8205 = vmatpush1.bf16.msra.mxu1 %v14305_v19  ;;  %8172 = vmatprep.subr.bf16.mxu0 %v16437_v59 }
 0x4b6   :  { %8207 = vmatprep.subr.bf16.mxu1 %v14363_v43 }
 0x4b8   :  { %8174 = vmatpush1.bf16.msra.mxu0 %v14336_v5 }
 0x4b9   :  { %8209 = vmatpush1.bf16.msra.mxu1 %v14318_v27  ;;  %8175 = vmatprep.subr.bf16.mxu0 %v16437_v59 }
 0x4ba   :  { %8211 = vmatprep.subr.bf16.mxu1 %v14336_v5 }
 0x4bc   :  { %8177 = vmatpush1.bf16.msra.mxu0 %v14351_v49 }
 0x4bd   :  { %8213 = vmatpush1.bf16.msra.mxu1 %v14357_v63 }
 0x4be   :  { %8215 = vmatprep.subr.bf16.mxu1 %v14351_v49 }
 0x4bf   :  { %6156 = vmatmul.mubr.f32.vlgmr.msra.gmra.mrb[38].mxu0 %v14079_v23 }
 0x4c1   :  { %8217 = vmatpush1.bf16.msra.mxu1 %v14363_v43 }
 0x4c2   :  { %8218 = vmatprep.subr.bf16.mxu1 %v16437_v59 }
 0x4c5   :  { %8220 = vmatpush1.bf16.msra.mxu1 %v14336_v5 }
 0x4c6   :  { %8221 = vmatprep.subr.bf16.mxu1 %v16437_v59  ;;  %v6425_v59 = vpop.permute.xlu1 %6424 }
 0x4c8   :  { %v5518_v19 = vpop.f32.mrb[40].mxu1 }
 0x4c9   :  { %v8290_v2 = vadd.f32 %v5518_v19, %v14403_v61  ;;  %v5520_v27 = vpop.f32.mrb[41].mxu1  ;;  %8223 = vmatpush1.bf16.msra.mxu1 %v14351_v49 }
 0x4ca   :  { %v8291_v13 = vadd.f32 %v5520_v27, %v14403_v61  ;;  %6659 = vmatprep.subr.mxu1 %v16380_v53  ;;  %v6435_v32 = vpop.permute.xlu1 %6434 }
 0x4cb   :  { %v6377_v0 = vmax.f32 %v8290_v2, 0.0 }
 0x4cc   :  { %v6378_v62 = vmax.f32 %v8291_v13, 0.0  ;;  %6298 = vmatmul.mubr.f32.vlgmr.msra.gmra.mrb[48].mxu1 %v14079_v23 }
 0x4cd   :  { %6660 = vmatpush3.msra.mxu1 %v16380_v53  ;;  %v6420_v30 = vrot.slane %v6377_v0, %v16447_v6  ;;  %6661 = vmatprep.mubr.msk.f32.mxu1 %vm8581_vm2, %v16380_v53  ;;  %v6505_v0 = vpop.permute.xlu0 %6504 }
 0x4ce   :  { %v6430_v16 = vrot.slane %v6378_v62, %v16447_v6  ;;  %v6455_v49 = vpop.permute.xlu1 %6454 }
 0x4cf   :  { %v6421_v56 = vmul.f32 %v6420_v30, %v6415_v52 }
 0x4d0   :  { %v6431_v42 = vmul.f32 %v6430_v16, %v6425_v59  ;;  %6662 = vmatmul.mubr.msk.f32.vlgmr.msra.gmra.mrb[50].mxu1 %vm5236_vm1, %v14093_v4 }
 0x4d1   :  { %v6422_v28 = vadd.f32 %v6421_v56, %v6412_v26 }
 0x4d2   :  { %v6465_v44 = vpop.permute.xlu1 %6464 }
 0x4d3   :  { %v6432_v5 = vadd.f32 %v6431_v42, %v6422_v28 }
 0x4d6   :  { %v6485_v51 = vpop.permute.xlu1 %6484 }
 0x4da   :  { %v6495_v2 = vpop.permute.xlu1 %6494 }
 0x4ee   :  { %v5660_v50 = vpop.f32.mrb[34].mxu0 }
 0x4ef   :  { %v8292_v23 = vadd.f32 %v5660_v50, %v14403_v61  ;;  %v5662_v20 = vpop.f32.mrb[35].mxu0 }
 0x4f0   :  { %v8293_v34 = vadd.f32 %v5662_v20, %v14403_v61 }
 0x4f1   :  { %v6379_v38 = vmax.f32 %v8292_v23, 0.0 }
 0x4f2   :  { %v6380_v54 = vmax.f32 %v8293_v34, 0.0 }
 0x4f3   :  { %v6440_v53 = vrot.slane %v6379_v38, %v16447_v6 }
 0x4f4   :  { %v6450_v18 = vrot.slane %v6380_v54, %v16447_v6 }
 0x4f5   :  { %v6441_v9 = vmul.f32 %v6440_v53, %v6435_v32 }
 0x4f6   :  { %v6451_v31 = vmul.f32 %v6450_v18, %v6445_v1 }
 0x4f7   :  { %v6442_v48 = vadd.f32 %v6441_v9, %v6432_v5 }
 0x4f9   :  { %v6452_v4 = vadd.f32 %v6451_v31, %v6442_v48 }
 0x500   :  { %v6515_v50 = vpop.permute.xlu1 %6514 }
 0x510   :  { %v5802_v35 = vpop.f32.mrb[42].mxu1 }
 0x511   :  { %v8294_v17 = vadd.f32 %v5802_v35, %v14403_v61  ;;  %v5804_v57 = vpop.f32.mrb[43].mxu1 }
 0x512   :  { %v8295_v21 = vadd.f32 %v5804_v57, %v14403_v61 }
 0x513   :  { %v6381_v7 = vmax.f32 %v8294_v17, 0.0 }
 0x514   :  { %v6382_v55 = vmax.f32 %v8295_v21, 0.0 }
 0x515   :  { %v6460_v46 = vrot.slane %v6381_v7, %v16447_v6 }
 0x516   :  { %v6470_v63 = vrot.slane %v6382_v55, %v16447_v6  ;;  %v6535_v55 = vpop.permute.xlu0 %6534 }
 0x517   :  { %v6461_v3 = vmul.f32 %v6460_v46, %v6455_v49 }
 0x518   :  { %v6471_v12 = vmul.f32 %v6470_v63, %v6465_v44 }
 0x519   :  { %v6462_v36 = vadd.f32 %v6461_v3, %v6452_v4 }
 0x51b   :  { %v6472_v43 = vadd.f32 %v6471_v12, %v6462_v36 }
 0x51f   :  { %v6525_v32 = vpop.permute.xlu1 %6524 }
 0x525   :  { %v6545_v63 = vpop.permute.xlu1 %6544 }
 0x552   :  { %v5944_v24 = vpop.f32.mrb[36].mxu0 }
 0x553   :  { %v8296_v45 = vadd.f32 %v5944_v24, %v14403_v61  ;;  %v5946_v37 = vpop.f32.mrb[37].mxu0 }
 0x554   :  { %v8297_v47 = vadd.f32 %v5946_v37, %v14403_v61 }
 0x555   :  { %v6383_v58 = vmax.f32 %v8296_v45, 0.0 }
 0x556   :  { %v6384_v39 = vmax.f32 %v8297_v47, 0.0 }
 0x557   :  { %v6480_v25 = vrot.slane %v6383_v58, %v16447_v6 }
 0x558   :  { %v6490_v11 = vrot.slane %v6384_v39, %v16447_v6 }
 0x559   :  { %v6481_v41 = vmul.f32 %v6480_v25, %v6475_v15 }
 0x55a   :  { %v6491_v22 = vmul.f32 %v6490_v11, %v6485_v51 }
 0x55b   :  { %v6482_v10 = vadd.f32 %v6481_v41, %v6472_v43  ;;  %v6557_v43 = vpop.permute.xlu1 %6556 }
 0x55d   :  { %v6492_v8 = vadd.f32 %v6491_v22, %v6482_v10 }
 0x56b   :  { %v6086_v60 = vpop.f32.mrb[44].mxu1 }
 0x56c   :  { %v8298_v14 = vadd.f32 %v6086_v60, %v14403_v61  ;;  %v6088_v33 = vpop.f32.mrb[45].mxu1 }
 0x56d   :  { %v8299_v29 = vadd.f32 %v6088_v33, %v14403_v61 }
 0x56e   :  { %v6385_v40 = vmax.f32 %v8298_v14, 0.0 }
 0x56f   :  { %v6386_v26 = vmax.f32 %v8299_v29, 0.0  ;;  %v6228_v19 = vpop.f32.mrb[46].mxu1 }
 0x570   :  { %v6658_v27 = vpop.f32.mrb[47].mxu1  ;;  %v6500_v13 = vrot.slane %v6385_v40, %v16447_v6 }
 0x571   :  { %v6510_v62 = vrot.slane %v6386_v26, %v16447_v6 }
 0x572   :  { %v6501_v52 = vmul.f32 %v6500_v13, %v6495_v2 }
 0x573   :  { %v6511_v30 = vmul.f32 %v6510_v62, %v6505_v0 }
 0x574   :  { %v6502_v59 = vadd.f32 %v6501_v52, %v6492_v8 }
 0x576   :  { %v6512_v16 = vadd.f32 %v6511_v30, %v6502_v59 }
 0x592   :  { %v6157_v56 = vpop.f32.mrb[38].mxu0 }
 0x593   :  { %v6158_v42 = vadd.f32 %v6157_v56, %v14403_v61  ;;  %v6159_v28 = vpop.f32.mrb[39].mxu0 }
 0x594   :  { %v6160_v5 = vadd.f32 %v6159_v28, %v14403_v61 }
 0x595   :  { %v6229_v23 = vadd.f32 %v6228_v19, %v6158_v42 }
 0x596   :  { %v6388_v20 = vmax.f32 %v6160_v5, 0.0 }
 0x597   :  { %v6387_v34 = vmax.f32 %v6229_v23, 0.0 }
 0x598   :  { %v6530_v54 = vrot.slane %v6388_v20, %v16447_v6 }
 0x599   :  { %v6520_v38 = vrot.slane %v6387_v34, %v16447_v6 }
 0x59a   :  { %v6531_v18 = vmul.f32 %v6530_v54, %v6525_v32 }
 0x59b   :  { %v6521_v53 = vmul.f32 %v6520_v38, %v6515_v50 }
 0x59d   :  { %v6522_v1 = vadd.f32 %v6521_v53, %v6512_v16 }
 0x59f   :  { %v6532_v9 = vadd.f32 %v6531_v18, %v6522_v1  ;;  %v6299_v31 = vpop.f32.mrb[48].mxu1 }
 0x5a0   :  { %v6301_v48 = vpop.f32.mrb[49].mxu1  ;;  %v6300_v49 = vadd.f32 %v6299_v31, %v14403_v61 }
 0x5a1   :  { %v6302_v4 = vadd.f32 %v6301_v48, %v14403_v61 }
 0x5a3   :  { %v6370_v35 = vpop.f32.mrb[50].mxu1  ;;  %v6390_v17 = vmax.f32 %v6302_v4, 0.0 }
 0x5a4   :  { %v6371_v57 = vadd.f32 %v6370_v35, %v6300_v49  ;;  %v6663_v21 = vpop.f32.mrb[51].mxu1 }
 0x5a5   :  { %v6550_v46 = vrot.slane %v6390_v17, %v16447_v6 }
 0x5a6   :  { %v6389_v7 = vmax.f32 %v6371_v57, 0.0 }
 0x5a7   :  { %v6551_v12 = vmul.f32 %v6550_v46, %v6545_v63 }
 0x5a8   :  { %v6540_v44 = vrot.slane %v6389_v7, %v16447_v6 }
 0x5aa   :  { %v6541_v3 = vmul.f32 %v6540_v44, %v6535_v55 }
 0x5ac   :  { %v6542_v36 = vadd.f32 %v6541_v3, %v6532_v9 }
 0x5ae   :  { %v6552_v24 = vadd.f32 %v6551_v12, %v6542_v36 }
 0x5b0   :  { %v6559_v45 = vadd.f32 %v6557_v43, %v6552_v24 }
 0x5b2   :  { %v6560_v37 = vrot.slane %v6559_v45, 4 }
 0x5b4   :  { %v6561_v47 = vmax.f32 %v6559_v45, %v6560_v37 }
 0x5b6   :  { %v6562_v61 = vrot.slane %v6561_v47, 2 }
 0x5b8   :  { %v6563_v58 = vmax.f32 %v6561_v47, %v6562_v61 }
 0x5ba   :  { %v6564_v39 = vrot.slane %v6563_v58, 1 }
 0x5bc   :  { %v6565_v15 = vmax.f32 %v6563_v58, %v6564_v39 }
 0x5be   :  { %v6566_v25 = vsub.f32 %v6559_v45, %v6565_v15 }
 0x5c0   :  { %v6567_v51 = vmul.f32 1.442695, %v6566_v25 }
 0x5c2   :  { %8508 = vpow2.f32 %v6567_v51 }
 0x5cc   :  { %v8509_v11 = vpop.eup %8508 }
 0x5cd   :  { %v6569_v41 = vrot.slane %v8509_v11, 4 }
 0x5cf   :  { %v6570_v22 = vadd.f32 %v8509_v11, %v6569_v41 }
 0x5d1   :  { %v6571_v6 = vrot.slane %v6570_v22, 2 }
 0x5d3   :  { %v6572_v10 = vadd.f32 %v6571_v6, %v6570_v22 }
 0x5d5   :  { %v6573_v8 = vrot.slane %v6572_v10, 1 }
 0x5d7   :  { %v6574_v60 = vadd.f32 %v6573_v8, %v6572_v10 }
 0x5d9   :  { %8510 = vlog2.f32 %v6574_v60 }
 0x5e3   :  { %v8511_v14 = vpop.eup %8510 }
 0x5e4   :  { %v6576_v33 = vmul.f32 0.6931472, %v8511_v14 }
 0x5e6   :  { %v6577_v29 = vadd.f32 %v6576_v33, %v6565_v15 }
 0x5e8   :  { %v6578_v40 = vsub.f32 %v6559_v45, %v6577_v29 }
 0x5ea   :  { %6579 = vst [vmem:[%s14495_s9] sm:$0xff] %v6578_v40 }

</bundles_post_ra>
